<compile_context>
chip_gen: v6e
topology: v6e:2x2x1
jax: 0.10.0
libtpu: 0.0.40
codegen_flags: <defaults>
</compile_context>

<pallas_src>
import jax
import jax.numpy as jnp
from jax.experimental import pallas as pl
from jax.experimental.pallas import tpu as pltpu

CP = 128  # padded channel width (lane-dense MXU / vector work)


def _fused_da_kernel(x_ref, w_ref, b_ref, o_ref, abuf, bbuf):
    """Fused reduce_conv -> conv -> conv(+res) -> out_conv for one image.

    x_ref : (1, H, W, Cin)     compact input tile
    w_ref : (4*9*CP, CP)       weights; rows [(layer*9 + dy*3 + dx)*CP : +CP]
                               are the tap matrix (BN scale already folded in,
                               zero-padded to CP x CP)
    b_ref : (4, CP)            per-layer folded bias (zero in pad lanes)
    o_ref : (1, H, W, Cout)    compact output tile
    abuf/bbuf : (H+2, W+2, CP) zero-bordered VMEM ping-pong scratch
    """
    _, H, W, Cin = x_ref.shape
    Cout = o_ref.shape[-1]
    Hp, Wp, Cp = abuf.shape

    b_all = b_ref[...]                                       # (4, CP), tiny

    def zero_border(buf):
        # Interiors are fully overwritten every step; only the 1-px halo must
        # be (re)set to zero (~37 KiB of strip stores per buffer per step).
        zrow = jnp.zeros((1, Wp, Cp), jnp.float32)
        zcol = jnp.zeros((Hp, 1, Cp), jnp.float32)
        buf[pl.ds(0, 1), :, :] = zrow
        buf[pl.ds(Hp - 1, 1), :, :] = zrow
        buf[:, pl.ds(0, 1), :] = zcol
        buf[:, pl.ds(Wp - 1, 1), :] = zcol

    zero_border(abuf)
    zero_border(bbuf)

    def store_interior(buf, y_hwc):                          # y_hwc: (H, W, Cp)
        buf[pl.ds(1, H), pl.ds(1, W), :] = y_hwc

    def conv3x3(src, layer):
        """3x3 SAME conv as 9 accumulating shifted matmuls. Returns (H*W, Cp)."""
        acc = None
        for dx in range(3):
            # One sublane-shifted read per dx, reused for all three dy taps.
            slab = src[:, pl.ds(dx, W), :]                   # (Hp, W, Cp)
            for dy in range(3):
                tap = slab[dy:dy + H].reshape(H * W, Cp)     # major-dim slice
                row = (layer * 9 + dy * 3 + dx) * Cp
                part = jnp.dot(tap, w_ref[pl.ds(row, Cp), :],
                               preferred_element_type=jnp.float32)
                acc = part if acc is None else acc + part
        return acc + b_all[layer:layer + 1, :]               # folded bias

    # Compact input -> padded lanes in VMEM (halo stays zero: interior stores
    # never touch it; stale pad-lane data would be killed by zero weight rows
    # anyway, but we overwrite it for robustness).
    x0 = jnp.pad(x_ref[0].astype(jnp.float32),
                 ((0, 0), (0, 0), (0, Cp - Cin)))            # (H, W, Cp)
    store_interior(abuf, x0)

    y1 = jnp.maximum(conv3x3(abuf, 0), 0.0)                  # reduce_conv
    store_interior(bbuf, y1.reshape(H, W, Cp))
    y2 = jnp.maximum(conv3x3(bbuf, 1), 0.0)                  # conv[0:3]
    store_interior(abuf, y2.reshape(H, W, Cp))               # x is dead: reuse abuf
    res = bbuf[pl.ds(1, H), pl.ds(1, W), :].reshape(H * W, Cp)   # = y1 (residual)
    y3 = jnp.maximum(conv3x3(abuf, 2), 0.0) + res            # conv[3:6] + residual
    store_interior(bbuf, y3.reshape(H, W, Cp))
    out = conv3x3(bbuf, 3)                                   # out_conv (+ bias)
    o_ref[0] = out.reshape(H, W, Cp)[:, :, :Cout].astype(o_ref.dtype)


def fold_bn(gamma, beta, mean, var, eps=1e-5):
    scale = gamma / jnp.sqrt(var + eps)
    bias = beta - mean * scale
    return scale, bias


def _prep_weight(w, scale=None, cp=CP):
    """HWIO (3,3,cin,cout) -> BN-scale-folded, zero-padded (9*cp, cp)."""
    w = w.astype(jnp.float32)
    if scale is not None:
        w = w * scale.astype(jnp.float32)      # fold BN scale over cout axis
    cin, cout = w.shape[2], w.shape[3]
    wp = jnp.zeros((3, 3, cp, cp), jnp.float32).at[:, :, :cin, :cout].set(w)
    return wp.reshape(9 * cp, cp)


def _prep_bias(bias, cp=CP):
    c = bias.shape[0]
    return jnp.zeros((cp,), jnp.float32).at[:c].set(bias.astype(jnp.float32))


@jax.jit
def depth_aggregation_forward(x, p):
    """x: (N, H, W, Cin) float32 (NHWC) -> (N, H, W, out_channels) float32."""
    N, H, W, Cin = x.shape
    Cmid = p["w1"].shape[-1]
    Cout = p["w4"].shape[-1]
    # TODO(synk): channel-tiled formulation for in/mid/out channels > 128.
    assert max(Cin, Cmid, Cout) <= CP

    s1, b1 = fold_bn(*p["bn1"])
    s2, b2 = fold_bn(*p["bn2"])
    s3, b3 = fold_bn(*p["bn3"])

    # One flat weight operand (single invariant DMA per step).
    w_all = jnp.concatenate([
        _prep_weight(p["w1"], s1),
        _prep_weight(p["w2"], s2),
        _prep_weight(p["w3"], s3),
        _prep_weight(p["w4"]),
    ], axis=0)                                              # (4*9*CP, CP)
    b_all = jnp.stack(
        [_prep_bias(b1), _prep_bias(b2), _prep_bias(b3), _prep_bias(p["b4"])],
        axis=0)                                             # (4, CP)

    out = pl.pallas_call(
        _fused_da_kernel,
        out_shape=jax.ShapeDtypeStruct((N, H, W, Cout), jnp.float32),
        grid=(N,),
        in_specs=[
            pl.BlockSpec((1, H, W, Cin), lambda n: (n, 0, 0, 0)),
            pl.BlockSpec((4 * 9 * CP, CP), lambda n: (0, 0)),
            pl.BlockSpec((4, CP), lambda n: (0, 0)),
        ],
        out_specs=pl.BlockSpec((1, H, W, Cout), lambda n: (n, 0, 0, 0)),
        scratch_shapes=[
            pltpu.VMEM((H + 2, W + 2, CP), jnp.float32),
            pltpu.VMEM((H + 2, W + 2, CP), jnp.float32),
        ],
        compiler_params=pltpu.CompilerParams(
            dimension_semantics=("parallel",),
            vmem_limit_bytes=32 * 1024 * 1024,
        ),
    )(x, w_all, b_all)
    # TODO(synk): for large BEV grids (e.g. 128x128) add a row-tile grid axis
    # with a 2-row halo (second "parallel" axis for v7x megacore) and size the
    # tiles so the working set stays under ~48 MiB on v7x / larger on v5e/v6e.
    return out


def make_params(key, in_channels, mid_channels, out_channels):
    ks = jax.random.split(key, 16)
    p = {}
    # reduce_conv: conv(in->mid, no bias) + BN
    p["w1"] = jax.random.normal(ks[0], (3, 3, in_channels, mid_channels), jnp.float32) * 0.1
    p["bn1"] = (jax.random.uniform(ks[1], (mid_channels,), minval=0.5, maxval=1.5),
                jax.random.normal(ks[2], (mid_channels,)) * 0.1,
                jax.random.normal(ks[3], (mid_channels,)) * 0.1,
                jax.random.uniform(ks[4], (mid_channels,), minval=0.5, maxval=1.5))
    # conv block: two conv(mid->mid, no bias) + BN
    p["w2"] = jax.random.normal(ks[5], (3, 3, mid_channels, mid_channels), jnp.float32) * 0.1
    p["bn2"] = (jax.random.uniform(ks[6], (mid_channels,), minval=0.5, maxval=1.5),
                jax.random.normal(ks[7], (mid_channels,)) * 0.1,
                jax.random.normal(ks[8], (mid_channels,)) * 0.1,
                jax.random.uniform(ks[9], (mid_channels,), minval=0.5, maxval=1.5))
    p["w3"] = jax.random.normal(ks[10], (3, 3, mid_channels, mid_channels), jnp.float32) * 0.1
    p["bn3"] = (jax.random.uniform(ks[11], (mid_channels,), minval=0.5, maxval=1.5),
                jax.random.normal(ks[12], (mid_channels,)) * 0.1,
                jax.random.normal(ks[13], (mid_channels,)) * 0.1,
                jax.random.uniform(ks[14], (mid_channels,), minval=0.5, maxval=1.5))
    # out_conv: conv(mid->out) WITH bias, no BN
    p["w4"] = jax.random.normal(ks[15], (3, 3, mid_channels, out_channels), jnp.float32) * 0.1
    p["b4"] = jnp.linspace(-0.1, 0.1, out_channels, dtype=jnp.float32)
    return p


# ---------------- pure-JAX reference (for correctness check) ----------------
def _conv_ref(x, w):
    return jax.lax.conv_general_dilated(
        x, w, window_strides=(1, 1), padding="SAME",
        dimension_numbers=("NHWC", "HWIO", "NHWC"))


def depth_aggregation_ref(x, p):
    s1, b1 = fold_bn(*p["bn1"])
    s2, b2 = fold_bn(*p["bn2"])
    s3, b3 = fold_bn(*p["bn3"])
    x1 = jax.nn.relu(_conv_ref(x,  p["w1"]) * s1 + b1)
    x2 = jax.nn.relu(_conv_ref(x1, p["w2"]) * s2 + b2)
    x3 = jax.nn.relu(_conv_ref(x2, p["w3"]) * s3 + b3) + x1
    return _conv_ref(x3, p["w4"]) + p["b4"]


if __name__ == "__main__":
    N, H, W = 2, 16, 16
    in_channels, mid_channels, out_channels = 4, 8, 4

    key = jax.random.PRNGKey(0)
    kx, kp = jax.random.split(key)
    x = jax.random.normal(kx, (N, H, W, in_channels), jnp.float32)  # NHWC
    params = make_params(kp, in_channels, mid_channels, out_channels)

    out = depth_aggregation_forward(x, params)
    out = jax.block_until_ready(out)

    ref = depth_aggregation_ref(x, params)
    assert out.shape == (N, H, W, out_channels)
    err = float(jnp.max(jnp.abs(out - ref)))
    assert jnp.allclose(out, ref, atol=1e-3, rtol=1e-3), err

    print("KERNEL_OK")
</pallas_src>

<mosaic_0001>
module attributes {stable_mosaic.version = 11 : i64} {
  func.func @_fused_da_kernel(%arg0: i32, %arg1: memref<1x16x16x4xf32, #tpu.memory_space<vmem>>, %arg2: memref<4608x128xf32, #tpu.memory_space<vmem>>, %arg3: memref<4x128xf32, #tpu.memory_space<vmem>>, %arg4: memref<1x16x16x4xf32, #tpu.memory_space<vmem>>, %arg5: memref<18x18x128xf32, #tpu.memory_space<vmem>>, %arg6: memref<18x18x128xf32, #tpu.memory_space<vmem>>) attributes {dimension_semantics = [#tpu.dimension_semantics<parallel>], iteration_bounds = array<i64: 2>, scalar_prefetch = 0 : i64, scratch_operands = 2 : i64, tpu.core_type = #tpu.core_type<tc>, window_params = [{transform_indices = @transform_0, window_bounds = array<i64: 1, 16, 16, 4>}, {pipeline_mode = #tpu.pipeline_mode<synchronous>, transform_indices = @transform_1, window_bounds = array<i64: 4608, 128>}, {pipeline_mode = #tpu.pipeline_mode<synchronous>, transform_indices = @transform_2, window_bounds = array<i64: 4, 128>}, {transform_indices = @transform_3, window_bounds = array<i64: 1, 16, 16, 4>}]} {
    %c0 = arith.constant 0 : index
    %c0_0 = arith.constant 0 : index
    %0 = vector.load %arg3[%c0, %c0_0] : memref<4x128xf32, #tpu.memory_space<vmem>>, vector<4x128xf32>
    %cst = arith.constant 0.000000e+00 : f32
    %1 = vector.broadcast %cst : f32 to vector<1x18x128xf32>
    %cst_1 = arith.constant 0.000000e+00 : f32
    %2 = vector.broadcast %cst_1 : f32 to vector<18x1x128xf32>
    %c0_2 = arith.constant 0 : index
    %c0_3 = arith.constant 0 : index
    %c0_4 = arith.constant 0 : index
    %3 = vector.load %arg5[%c0_2, %c0_3, %c0_4] : memref<18x18x128xf32, #tpu.memory_space<vmem>>, vector<1x18x128xf32>
    tpu.vector_store %arg5[%c0_2, %c0_3, %c0_4], %1 {strides = array<i32>} : memref<18x18x128xf32, #tpu.memory_space<vmem>>, vector<1x18x128xf32>,
    %c17 = arith.constant 17 : index
    %c0_5 = arith.constant 0 : index
    %c0_6 = arith.constant 0 : index
    %4 = vector.load %arg5[%c17, %c0_5, %c0_6] : memref<18x18x128xf32, #tpu.memory_space<vmem>>, vector<1x18x128xf32>
    tpu.vector_store %arg5[%c17, %c0_5, %c0_6], %1 {strides = array<i32>} : memref<18x18x128xf32, #tpu.memory_space<vmem>>, vector<1x18x128xf32>,
    %c0_7 = arith.constant 0 : index
    %c0_8 = arith.constant 0 : index
    %c0_9 = arith.constant 0 : index
    %5 = vector.load %arg5[%c0_7, %c0_8, %c0_9] : memref<18x18x128xf32, #tpu.memory_space<vmem>>, vector<18x1x128xf32>
    tpu.vector_store %arg5[%c0_7, %c0_8, %c0_9], %2 {strides = array<i32>} : memref<18x18x128xf32, #tpu.memory_space<vmem>>, vector<18x1x128xf32>,
    %c0_10 = arith.constant 0 : index
    %c17_11 = arith.constant 17 : index
    %c0_12 = arith.constant 0 : index
    %6 = vector.load %arg5[%c0_10, %c17_11, %c0_12] : memref<18x18x128xf32, #tpu.memory_space<vmem>>, vector<18x1x128xf32>
    tpu.vector_store %arg5[%c0_10, %c17_11, %c0_12], %2 {strides = array<i32>} : memref<18x18x128xf32, #tpu.memory_space<vmem>>, vector<18x1x128xf32>,
    %cst_13 = arith.constant 0.000000e+00 : f32
    %7 = vector.broadcast %cst_13 : f32 to vector<1x18x128xf32>
    %cst_14 = arith.constant 0.000000e+00 : f32
    %8 = vector.broadcast %cst_14 : f32 to vector<18x1x128xf32>
    %c0_15 = arith.constant 0 : index
    %c0_16 = arith.constant 0 : index
    %c0_17 = arith.constant 0 : index
    %9 = vector.load %arg6[%c0_15, %c0_16, %c0_17] : memref<18x18x128xf32, #tpu.memory_space<vmem>>, vector<1x18x128xf32>
    tpu.vector_store %arg6[%c0_15, %c0_16, %c0_17], %7 {strides = array<i32>} : memref<18x18x128xf32, #tpu.memory_space<vmem>>, vector<1x18x128xf32>,
    %c17_18 = arith.constant 17 : index
    %c0_19 = arith.constant 0 : index
    %c0_20 = arith.constant 0 : index
    %10 = vector.load %arg6[%c17_18, %c0_19, %c0_20] : memref<18x18x128xf32, #tpu.memory_space<vmem>>, vector<1x18x128xf32>
    tpu.vector_store %arg6[%c17_18, %c0_19, %c0_20], %7 {strides = array<i32>} : memref<18x18x128xf32, #tpu.memory_space<vmem>>, vector<1x18x128xf32>,
    %c0_21 = arith.constant 0 : index
    %c0_22 = arith.constant 0 : index
    %c0_23 = arith.constant 0 : index
    %11 = vector.load %arg6[%c0_21, %c0_22, %c0_23] : memref<18x18x128xf32, #tpu.memory_space<vmem>>, vector<18x1x128xf32>
    tpu.vector_store %arg6[%c0_21, %c0_22, %c0_23], %8 {strides = array<i32>} : memref<18x18x128xf32, #tpu.memory_space<vmem>>, vector<18x1x128xf32>,
    %c0_24 = arith.constant 0 : index
    %c17_25 = arith.constant 17 : index
    %c0_26 = arith.constant 0 : index
    %12 = vector.load %arg6[%c0_24, %c17_25, %c0_26] : memref<18x18x128xf32, #tpu.memory_space<vmem>>, vector<18x1x128xf32>
    tpu.vector_store %arg6[%c0_24, %c17_25, %c0_26], %8 {strides = array<i32>} : memref<18x18x128xf32, #tpu.memory_space<vmem>>, vector<18x1x128xf32>,
    %c0_27 = arith.constant 0 : index
    %c0_28 = arith.constant 0 : index
    %c0_29 = arith.constant 0 : index
    %c0_30 = arith.constant 0 : index
    %13 = vector.load %arg1[%c0_27, %c0_28, %c0_29, %c0_30] : memref<1x16x16x4xf32, #tpu.memory_space<vmem>>, vector<1x16x16x4xf32>
    %14 = vector.shape_cast %13 : vector<1x16x16x4xf32> to vector<16x16x4xf32>
    %c0_i32 = arith.constant 0 : i32
    %15 = arith.sitofp %c0_i32 : i32 to f32
    %16 = vector.broadcast %15 : f32 to vector<16x16x124xf32>
    %17 = tpu.concatenate %14, %16 in 2 : vector<16x16x4xf32>, vector<16x16x124xf32> -> vector<16x16x128xf32>
    %c1 = arith.constant 1 : index
    %c1_31 = arith.constant 1 : index
    %c0_32 = arith.constant 0 : index
    %18 = vector.load %arg5[%c1, %c1_31, %c0_32] : memref<18x18x128xf32, #tpu.memory_space<vmem>>, vector<16x16x128xf32>
    tpu.vector_store %arg5[%c1, %c1_31, %c0_32], %17 {strides = array<i32>} : memref<18x18x128xf32, #tpu.memory_space<vmem>>, vector<16x16x128xf32>,
    %c0_33 = arith.constant 0 : index
    %c0_34 = arith.constant 0 : index
    %c0_35 = arith.constant 0 : index
    %19 = vector.load %arg5[%c0_33, %c0_34, %c0_35] : memref<18x18x128xf32, #tpu.memory_space<vmem>>, vector<18x16x128xf32>
    %20 = vector.extract_strided_slice %19 {offsets = [0, 0, 0], sizes = [16, 16, 128], strides = [1, 1, 1]} : vector<18x16x128xf32> to vector<16x16x128xf32>
    %21 = vector.shape_cast %20 : vector<16x16x128xf32> to vector<256x128xf32>
    %c0_36 = arith.constant 0 : index
    %c0_37 = arith.constant 0 : index
    %22 = vector.load %arg2[%c0_36, %c0_37] : memref<4608x128xf32, #tpu.memory_space<vmem>>, vector<128x128xf32>
    %cst_38 = arith.constant dense<0.000000e+00> : vector<256x128xf32>
    %23 = tpu.matmul %21, %22, %cst_38 {dimension_numbers = #tpu.dot_dimension_numbers<[1], [0], [0], [1], [0, 0, 1, 1], [], []>} : vector<256x128xf32>, vector<128x128xf32>, vector<256x128xf32> -> vector<256x128xf32>
    %24 = vector.extract_strided_slice %19 {offsets = [1, 0, 0], sizes = [16, 16, 128], strides = [1, 1, 1]} : vector<18x16x128xf32> to vector<16x16x128xf32>
    %25 = vector.shape_cast %24 : vector<16x16x128xf32> to vector<256x128xf32>
    %c384 = arith.constant 384 : index
    %c0_39 = arith.constant 0 : index
    %26 = vector.load %arg2[%c384, %c0_39] : memref<4608x128xf32, #tpu.memory_space<vmem>>, vector<128x128xf32>
    %cst_40 = arith.constant dense<0.000000e+00> : vector<256x128xf32>
    %27 = tpu.matmul %25, %26, %cst_40 {dimension_numbers = #tpu.dot_dimension_numbers<[1], [0], [0], [1], [0, 0, 1, 1], [], []>} : vector<256x128xf32>, vector<128x128xf32>, vector<256x128xf32> -> vector<256x128xf32>
    %28 = arith.addf %23, %27 : vector<256x128xf32>
    %29 = vector.extract_strided_slice %19 {offsets = [2, 0, 0], sizes = [16, 16, 128], strides = [1, 1, 1]} : vector<18x16x128xf32> to vector<16x16x128xf32>
    %30 = vector.shape_cast %29 : vector<16x16x128xf32> to vector<256x128xf32>
    %c768 = arith.constant 768 : index
    %c0_41 = arith.constant 0 : index
    %31 = vector.load %arg2[%c768, %c0_41] : memref<4608x128xf32, #tpu.memory_space<vmem>>, vector<128x128xf32>
    %cst_42 = arith.constant dense<0.000000e+00> : vector<256x128xf32>
    %32 = tpu.matmul %30, %31, %cst_42 {dimension_numbers = #tpu.dot_dimension_numbers<[1], [0], [0], [1], [0, 0, 1, 1], [], []>} : vector<256x128xf32>, vector<128x128xf32>, vector<256x128xf32> -> vector<256x128xf32>
    %33 = arith.addf %28, %32 : vector<256x128xf32>
    %c0_43 = arith.constant 0 : index
    %c1_44 = arith.constant 1 : index
    %c0_45 = arith.constant 0 : index
    %34 = vector.load %arg5[%c0_43, %c1_44, %c0_45] : memref<18x18x128xf32, #tpu.memory_space<vmem>>, vector<18x16x128xf32>
    %35 = vector.extract_strided_slice %34 {offsets = [0, 0, 0], sizes = [16, 16, 128], strides = [1, 1, 1]} : vector<18x16x128xf32> to vector<16x16x128xf32>
    %36 = vector.shape_cast %35 : vector<16x16x128xf32> to vector<256x128xf32>
    %c128 = arith.constant 128 : index
    %c0_46 = arith.constant 0 : index
    %37 = vector.load %arg2[%c128, %c0_46] : memref<4608x128xf32, #tpu.memory_space<vmem>>, vector<128x128xf32>
    %cst_47 = arith.constant dense<0.000000e+00> : vector<256x128xf32>
    %38 = tpu.matmul %36, %37, %cst_47 {dimension_numbers = #tpu.dot_dimension_numbers<[1], [0], [0], [1], [0, 0, 1, 1], [], []>} : vector<256x128xf32>, vector<128x128xf32>, vector<256x128xf32> -> vector<256x128xf32>
    %39 = arith.addf %33, %38 : vector<256x128xf32>
    %40 = vector.extract_strided_slice %34 {offsets = [1, 0, 0], sizes = [16, 16, 128], strides = [1, 1, 1]} : vector<18x16x128xf32> to vector<16x16x128xf32>
    %41 = vector.shape_cast %40 : vector<16x16x128xf32> to vector<256x128xf32>
    %c512 = arith.constant 512 : index
    %c0_48 = arith.constant 0 : index
    %42 = vector.load %arg2[%c512, %c0_48] : memref<4608x128xf32, #tpu.memory_space<vmem>>, vector<128x128xf32>
    %cst_49 = arith.constant dense<0.000000e+00> : vector<256x128xf32>
    %43 = tpu.matmul %41, %42, %cst_49 {dimension_numbers = #tpu.dot_dimension_numbers<[1], [0], [0], [1], [0, 0, 1, 1], [], []>} : vector<256x128xf32>, vector<128x128xf32>, vector<256x128xf32> -> vector<256x128xf32>
    %44 = arith.addf %39, %43 : vector<256x128xf32>
    %45 = vector.extract_strided_slice %34 {offsets = [2, 0, 0], sizes = [16, 16, 128], strides = [1, 1, 1]} : vector<18x16x128xf32> to vector<16x16x128xf32>
    %46 = vector.shape_cast %45 : vector<16x16x128xf32> to vector<256x128xf32>
    %c896 = arith.constant 896 : index
    %c0_50 = arith.constant 0 : index
    %47 = vector.load %arg2[%c896, %c0_50] : memref<4608x128xf32, #tpu.memory_space<vmem>>, vector<128x128xf32>
    %cst_51 = arith.constant dense<0.000000e+00> : vector<256x128xf32>
    %48 = tpu.matmul %46, %47, %cst_51 {dimension_numbers = #tpu.dot_dimension_numbers<[1], [0], [0], [1], [0, 0, 1, 1], [], []>} : vector<256x128xf32>, vector<128x128xf32>, vector<256x128xf32> -> vector<256x128xf32>
    %49 = arith.addf %44, %48 : vector<256x128xf32>
    %c0_52 = arith.constant 0 : index
    %c2 = arith.constant 2 : index
    %c0_53 = arith.constant 0 : index
    %50 = vector.load %arg5[%c0_52, %c2, %c0_53] : memref<18x18x128xf32, #tpu.memory_space<vmem>>, vector<18x16x128xf32>
    %51 = vector.extract_strided_slice %50 {offsets = [0, 0, 0], sizes = [16, 16, 128], strides = [1, 1, 1]} : vector<18x16x128xf32> to vector<16x16x128xf32>
    %52 = vector.shape_cast %51 : vector<16x16x128xf32> to vector<256x128xf32>
    %c256 = arith.constant 256 : index
    %c0_54 = arith.constant 0 : index
    %53 = vector.load %arg2[%c256, %c0_54] : memref<4608x128xf32, #tpu.memory_space<vmem>>, vector<128x128xf32>
    %cst_55 = arith.constant dense<0.000000e+00> : vector<256x128xf32>
    %54 = tpu.matmul %52, %53, %cst_55 {dimension_numbers = #tpu.dot_dimension_numbers<[1], [0], [0], [1], [0, 0, 1, 1], [], []>} : vector<256x128xf32>, vector<128x128xf32>, vector<256x128xf32> -> vector<256x128xf32>
    %55 = arith.addf %49, %54 : vector<256x128xf32>
    %56 = vector.extract_strided_slice %50 {offsets = [1, 0, 0], sizes = [16, 16, 128], strides = [1, 1, 1]} : vector<18x16x128xf32> to vector<16x16x128xf32>
    %57 = vector.shape_cast %56 : vector<16x16x128xf32> to vector<256x128xf32>
    %c640 = arith.constant 640 : index
    %c0_56 = arith.constant 0 : index
    %58 = vector.load %arg2[%c640, %c0_56] : memref<4608x128xf32, #tpu.memory_space<vmem>>, vector<128x128xf32>
    %cst_57 = arith.constant dense<0.000000e+00> : vector<256x128xf32>
    %59 = tpu.matmul %57, %58, %cst_57 {dimension_numbers = #tpu.dot_dimension_numbers<[1], [0], [0], [1], [0, 0, 1, 1], [], []>} : vector<256x128xf32>, vector<128x128xf32>, vector<256x128xf32> -> vector<256x128xf32>
    %60 = arith.addf %55, %59 : vector<256x128xf32>
    %61 = vector.extract_strided_slice %50 {offsets = [2, 0, 0], sizes = [16, 16, 128], strides = [1, 1, 1]} : vector<18x16x128xf32> to vector<16x16x128xf32>
    %62 = vector.shape_cast %61 : vector<16x16x128xf32> to vector<256x128xf32>
    %c1024 = arith.constant 1024 : index
    %c0_58 = arith.constant 0 : index
    %63 = vector.load %arg2[%c1024, %c0_58] : memref<4608x128xf32, #tpu.memory_space<vmem>>, vector<128x128xf32>
    %cst_59 = arith.constant dense<0.000000e+00> : vector<256x128xf32>
    %64 = tpu.matmul %62, %63, %cst_59 {dimension_numbers = #tpu.dot_dimension_numbers<[1], [0], [0], [1], [0, 0, 1, 1], [], []>} : vector<256x128xf32>, vector<128x128xf32>, vector<256x128xf32> -> vector<256x128xf32>
    %65 = arith.addf %60, %64 : vector<256x128xf32>
    %66 = vector.extract_strided_slice %0 {offsets = [0, 0], sizes = [1, 128], strides = [1, 1]} : vector<4x128xf32> to vector<1x128xf32>
    %67 = vector.broadcast %66 : vector<1x128xf32> to vector<256x128xf32>
    %68 = arith.addf %65, %67 : vector<256x128xf32>
    %cst_60 = arith.constant 0.000000e+00 : f32
    %69 = vector.broadcast %cst_60 : f32 to vector<256x128xf32>
    %70 = arith.maximumf %68, %69 : vector<256x128xf32>
    %71 = vector.shape_cast %70 : vector<256x128xf32> to vector<16x16x128xf32>
    %c1_61 = arith.constant 1 : index
    %c1_62 = arith.constant 1 : index
    %c0_63 = arith.constant 0 : index
    %72 = vector.load %arg6[%c1_61, %c1_62, %c0_63] : memref<18x18x128xf32, #tpu.memory_space<vmem>>, vector<16x16x128xf32>
    tpu.vector_store %arg6[%c1_61, %c1_62, %c0_63], %71 {strides = array<i32>} : memref<18x18x128xf32, #tpu.memory_space<vmem>>, vector<16x16x128xf32>,
    %c0_64 = arith.constant 0 : index
    %c0_65 = arith.constant 0 : index
    %c0_66 = arith.constant 0 : index
    %73 = vector.load %arg6[%c0_64, %c0_65, %c0_66] : memref<18x18x128xf32, #tpu.memory_space<vmem>>, vector<18x16x128xf32>
    %74 = vector.extract_strided_slice %73 {offsets = [0, 0, 0], sizes = [16, 16, 128], strides = [1, 1, 1]} : vector<18x16x128xf32> to vector<16x16x128xf32>
    %75 = vector.shape_cast %74 : vector<16x16x128xf32> to vector<256x128xf32>
    %c1152 = arith.constant 1152 : index
    %c0_67 = arith.constant 0 : index
    %76 = vector.load %arg2[%c1152, %c0_67] : memref<4608x128xf32, #tpu.memory_space<vmem>>, vector<128x128xf32>
    %cst_68 = arith.constant dense<0.000000e+00> : vector<256x128xf32>
    %77 = tpu.matmul %75, %76, %cst_68 {dimension_numbers = #tpu.dot_dimension_numbers<[1], [0], [0], [1], [0, 0, 1, 1], [], []>} : vector<256x128xf32>, vector<128x128xf32>, vector<256x128xf32> -> vector<256x128xf32>
    %78 = vector.extract_strided_slice %73 {offsets = [1, 0, 0], sizes = [16, 16, 128], strides = [1, 1, 1]} : vector<18x16x128xf32> to vector<16x16x128xf32>
    %79 = vector.shape_cast %78 : vector<16x16x128xf32> to vector<256x128xf32>
    %c1536 = arith.constant 1536 : index
    %c0_69 = arith.constant 0 : index
    %80 = vector.load %arg2[%c1536, %c0_69] : memref<4608x128xf32, #tpu.memory_space<vmem>>, vector<128x128xf32>
    %cst_70 = arith.constant dense<0.000000e+00> : vector<256x128xf32>
    %81 = tpu.matmul %79, %80, %cst_70 {dimension_numbers = #tpu.dot_dimension_numbers<[1], [0], [0], [1], [0, 0, 1, 1], [], []>} : vector<256x128xf32>, vector<128x128xf32>, vector<256x128xf32> -> vector<256x128xf32>
    %82 = arith.addf %77, %81 : vector<256x128xf32>
    %83 = vector.extract_strided_slice %73 {offsets = [2, 0, 0], sizes = [16, 16, 128], strides = [1, 1, 1]} : vector<18x16x128xf32> to vector<16x16x128xf32>
    %84 = vector.shape_cast %83 : vector<16x16x128xf32> to vector<256x128xf32>
    %c1920 = arith.constant 1920 : index
    %c0_71 = arith.constant 0 : index
    %85 = vector.load %arg2[%c1920, %c0_71] : memref<4608x128xf32, #tpu.memory_space<vmem>>, vector<128x128xf32>
    %cst_72 = arith.constant dense<0.000000e+00> : vector<256x128xf32>
    %86 = tpu.matmul %84, %85, %cst_72 {dimension_numbers = #tpu.dot_dimension_numbers<[1], [0], [0], [1], [0, 0, 1, 1], [], []>} : vector<256x128xf32>, vector<128x128xf32>, vector<256x128xf32> -> vector<256x128xf32>
    %87 = arith.addf %82, %86 : vector<256x128xf32>
    %c0_73 = arith.constant 0 : index
    %c1_74 = arith.constant 1 : index
    %c0_75 = arith.constant 0 : index
    %88 = vector.load %arg6[%c0_73, %c1_74, %c0_75] : memref<18x18x128xf32, #tpu.memory_space<vmem>>, vector<18x16x128xf32>
    %89 = vector.extract_strided_slice %88 {offsets = [0, 0, 0], sizes = [16, 16, 128], strides = [1, 1, 1]} : vector<18x16x128xf32> to vector<16x16x128xf32>
    %90 = vector.shape_cast %89 : vector<16x16x128xf32> to vector<256x128xf32>
    %c1280 = arith.constant 1280 : index
    %c0_76 = arith.constant 0 : index
    %91 = vector.load %arg2[%c1280, %c0_76] : memref<4608x128xf32, #tpu.memory_space<vmem>>, vector<128x128xf32>
    %cst_77 = arith.constant dense<0.000000e+00> : vector<256x128xf32>
    %92 = tpu.matmul %90, %91, %cst_77 {dimension_numbers = #tpu.dot_dimension_numbers<[1], [0], [0], [1], [0, 0, 1, 1], [], []>} : vector<256x128xf32>, vector<128x128xf32>, vector<256x128xf32> -> vector<256x128xf32>
    %93 = arith.addf %87, %92 : vector<256x128xf32>
    %94 = vector.extract_strided_slice %88 {offsets = [1, 0, 0], sizes = [16, 16, 128], strides = [1, 1, 1]} : vector<18x16x128xf32> to vector<16x16x128xf32>
    %95 = vector.shape_cast %94 : vector<16x16x128xf32> to vector<256x128xf32>
    %c1664 = arith.constant 1664 : index
    %c0_78 = arith.constant 0 : index
    %96 = vector.load %arg2[%c1664, %c0_78] : memref<4608x128xf32, #tpu.memory_space<vmem>>, vector<128x128xf32>
    %cst_79 = arith.constant dense<0.000000e+00> : vector<256x128xf32>
    %97 = tpu.matmul %95, %96, %cst_79 {dimension_numbers = #tpu.dot_dimension_numbers<[1], [0], [0], [1], [0, 0, 1, 1], [], []>} : vector<256x128xf32>, vector<128x128xf32>, vector<256x128xf32> -> vector<256x128xf32>
    %98 = arith.addf %93, %97 : vector<256x128xf32>
    %99 = vector.extract_strided_slice %88 {offsets = [2, 0, 0], sizes = [16, 16, 128], strides = [1, 1, 1]} : vector<18x16x128xf32> to vector<16x16x128xf32>
    %100 = vector.shape_cast %99 : vector<16x16x128xf32> to vector<256x128xf32>
    %c2048 = arith.constant 2048 : index
    %c0_80 = arith.constant 0 : index
    %101 = vector.load %arg2[%c2048, %c0_80] : memref<4608x128xf32, #tpu.memory_space<vmem>>, vector<128x128xf32>
    %cst_81 = arith.constant dense<0.000000e+00> : vector<256x128xf32>
    %102 = tpu.matmul %100, %101, %cst_81 {dimension_numbers = #tpu.dot_dimension_numbers<[1], [0], [0], [1], [0, 0, 1, 1], [], []>} : vector<256x128xf32>, vector<128x128xf32>, vector<256x128xf32> -> vector<256x128xf32>
    %103 = arith.addf %98, %102 : vector<256x128xf32>
    %c0_82 = arith.constant 0 : index
    %c2_83 = arith.constant 2 : index
    %c0_84 = arith.constant 0 : index
    %104 = vector.load %arg6[%c0_82, %c2_83, %c0_84] : memref<18x18x128xf32, #tpu.memory_space<vmem>>, vector<18x16x128xf32>
    %105 = vector.extract_strided_slice %104 {offsets = [0, 0, 0], sizes = [16, 16, 128], strides = [1, 1, 1]} : vector<18x16x128xf32> to vector<16x16x128xf32>
    %106 = vector.shape_cast %105 : vector<16x16x128xf32> to vector<256x128xf32>
    %c1408 = arith.constant 1408 : index
    %c0_85 = arith.constant 0 : index
    %107 = vector.load %arg2[%c1408, %c0_85] : memref<4608x128xf32, #tpu.memory_space<vmem>>, vector<128x128xf32>
    %cst_86 = arith.constant dense<0.000000e+00> : vector<256x128xf32>
    %108 = tpu.matmul %106, %107, %cst_86 {dimension_numbers = #tpu.dot_dimension_numbers<[1], [0], [0], [1], [0, 0, 1, 1], [], []>} : vector<256x128xf32>, vector<128x128xf32>, vector<256x128xf32> -> vector<256x128xf32>
    %109 = arith.addf %103, %108 : vector<256x128xf32>
    %110 = vector.extract_strided_slice %104 {offsets = [1, 0, 0], sizes = [16, 16, 128], strides = [1, 1, 1]} : vector<18x16x128xf32> to vector<16x16x128xf32>
    %111 = vector.shape_cast %110 : vector<16x16x128xf32> to vector<256x128xf32>
    %c1792 = arith.constant 1792 : index
    %c0_87 = arith.constant 0 : index
    %112 = vector.load %arg2[%c1792, %c0_87] : memref<4608x128xf32, #tpu.memory_space<vmem>>, vector<128x128xf32>
    %cst_88 = arith.constant dense<0.000000e+00> : vector<256x128xf32>
    %113 = tpu.matmul %111, %112, %cst_88 {dimension_numbers = #tpu.dot_dimension_numbers<[1], [0], [0], [1], [0, 0, 1, 1], [], []>} : vector<256x128xf32>, vector<128x128xf32>, vector<256x128xf32> -> vector<256x128xf32>
    %114 = arith.addf %109, %113 : vector<256x128xf32>
    %115 = vector.extract_strided_slice %104 {offsets = [2, 0, 0], sizes = [16, 16, 128], strides = [1, 1, 1]} : vector<18x16x128xf32> to vector<16x16x128xf32>
    %116 = vector.shape_cast %115 : vector<16x16x128xf32> to vector<256x128xf32>
    %c2176 = arith.constant 2176 : index
    %c0_89 = arith.constant 0 : index
    %117 = vector.load %arg2[%c2176, %c0_89] : memref<4608x128xf32, #tpu.memory_space<vmem>>, vector<128x128xf32>
    %cst_90 = arith.constant dense<0.000000e+00> : vector<256x128xf32>
    %118 = tpu.matmul %116, %117, %cst_90 {dimension_numbers = #tpu.dot_dimension_numbers<[1], [0], [0], [1], [0, 0, 1, 1], [], []>} : vector<256x128xf32>, vector<128x128xf32>, vector<256x128xf32> -> vector<256x128xf32>
    %119 = arith.addf %114, %118 : vector<256x128xf32>
    %120 = vector.extract_strided_slice %0 {offsets = [1, 0], sizes = [1, 128], strides = [1, 1]} : vector<4x128xf32> to vector<1x128xf32>
    %121 = vector.broadcast %120 : vector<1x128xf32> to vector<256x128xf32>
    %122 = arith.addf %119, %121 : vector<256x128xf32>
    %cst_91 = arith.constant 0.000000e+00 : f32
    %123 = vector.broadcast %cst_91 : f32 to vector<256x128xf32>
    %124 = arith.maximumf %122, %123 : vector<256x128xf32>
    %125 = vector.shape_cast %124 : vector<256x128xf32> to vector<16x16x128xf32>
    %c1_92 = arith.constant 1 : index
    %c1_93 = arith.constant 1 : index
    %c0_94 = arith.constant 0 : index
    %126 = vector.load %arg5[%c1_92, %c1_93, %c0_94] : memref<18x18x128xf32, #tpu.memory_space<vmem>>, vector<16x16x128xf32>
    tpu.vector_store %arg5[%c1_92, %c1_93, %c0_94], %125 {strides = array<i32>} : memref<18x18x128xf32, #tpu.memory_space<vmem>>, vector<16x16x128xf32>,
    %c1_95 = arith.constant 1 : index
    %c1_96 = arith.constant 1 : index
    %c0_97 = arith.constant 0 : index
    %127 = vector.load %arg6[%c1_95, %c1_96, %c0_97] : memref<18x18x128xf32, #tpu.memory_space<vmem>>, vector<16x16x128xf32>
    %128 = vector.shape_cast %127 : vector<16x16x128xf32> to vector<256x128xf32>
    %c0_98 = arith.constant 0 : index
    %c0_99 = arith.constant 0 : index
    %c0_100 = arith.constant 0 : index
    %129 = vector.load %arg5[%c0_98, %c0_99, %c0_100] : memref<18x18x128xf32, #tpu.memory_space<vmem>>, vector<18x16x128xf32>
    %130 = vector.extract_strided_slice %129 {offsets = [0, 0, 0], sizes = [16, 16, 128], strides = [1, 1, 1]} : vector<18x16x128xf32> to vector<16x16x128xf32>
    %131 = vector.shape_cast %130 : vector<16x16x128xf32> to vector<256x128xf32>
    %c2304 = arith.constant 2304 : index
    %c0_101 = arith.constant 0 : index
    %132 = vector.load %arg2[%c2304, %c0_101] : memref<4608x128xf32, #tpu.memory_space<vmem>>, vector<128x128xf32>
    %cst_102 = arith.constant dense<0.000000e+00> : vector<256x128xf32>
    %133 = tpu.matmul %131, %132, %cst_102 {dimension_numbers = #tpu.dot_dimension_numbers<[1], [0], [0], [1], [0, 0, 1, 1], [], []>} : vector<256x128xf32>, vector<128x128xf32>, vector<256x128xf32> -> vector<256x128xf32>
    %134 = vector.extract_strided_slice %129 {offsets = [1, 0, 0], sizes = [16, 16, 128], strides = [1, 1, 1]} : vector<18x16x128xf32> to vector<16x16x128xf32>
    %135 = vector.shape_cast %134 : vector<16x16x128xf32> to vector<256x128xf32>
    %c2688 = arith.constant 2688 : index
    %c0_103 = arith.constant 0 : index
    %136 = vector.load %arg2[%c2688, %c0_103] : memref<4608x128xf32, #tpu.memory_space<vmem>>, vector<128x128xf32>
    %cst_104 = arith.constant dense<0.000000e+00> : vector<256x128xf32>
    %137 = tpu.matmul %135, %136, %cst_104 {dimension_numbers = #tpu.dot_dimension_numbers<[1], [0], [0], [1], [0, 0, 1, 1], [], []>} : vector<256x128xf32>, vector<128x128xf32>, vector<256x128xf32> -> vector<256x128xf32>
    %138 = arith.addf %133, %137 : vector<256x128xf32>
    %139 = vector.extract_strided_slice %129 {offsets = [2, 0, 0], sizes = [16, 16, 128], strides = [1, 1, 1]} : vector<18x16x128xf32> to vector<16x16x128xf32>
    %140 = vector.shape_cast %139 : vector<16x16x128xf32> to vector<256x128xf32>
    %c3072 = arith.constant 3072 : index
    %c0_105 = arith.constant 0 : index
    %141 = vector.load %arg2[%c3072, %c0_105] : memref<4608x128xf32, #tpu.memory_space<vmem>>, vector<128x128xf32>
    %cst_106 = arith.constant dense<0.000000e+00> : vector<256x128xf32>
    %142 = tpu.matmul %140, %141, %cst_106 {dimension_numbers = #tpu.dot_dimension_numbers<[1], [0], [0], [1], [0, 0, 1, 1], [], []>} : vector<256x128xf32>, vector<128x128xf32>, vector<256x128xf32> -> vector<256x128xf32>
    %143 = arith.addf %138, %142 : vector<256x128xf32>
    %c0_107 = arith.constant 0 : index
    %c1_108 = arith.constant 1 : index
    %c0_109 = arith.constant 0 : index
    %144 = vector.load %arg5[%c0_107, %c1_108, %c0_109] : memref<18x18x128xf32, #tpu.memory_space<vmem>>, vector<18x16x128xf32>
    %145 = vector.extract_strided_slice %144 {offsets = [0, 0, 0], sizes = [16, 16, 128], strides = [1, 1, 1]} : vector<18x16x128xf32> to vector<16x16x128xf32>
    %146 = vector.shape_cast %145 : vector<16x16x128xf32> to vector<256x128xf32>
    %c2432 = arith.constant 2432 : index
    %c0_110 = arith.constant 0 : index
    %147 = vector.load %arg2[%c2432, %c0_110] : memref<4608x128xf32, #tpu.memory_space<vmem>>, vector<128x128xf32>
    %cst_111 = arith.constant dense<0.000000e+00> : vector<256x128xf32>
    %148 = tpu.matmul %146, %147, %cst_111 {dimension_numbers = #tpu.dot_dimension_numbers<[1], [0], [0], [1], [0, 0, 1, 1], [], []>} : vector<256x128xf32>, vector<128x128xf32>, vector<256x128xf32> -> vector<256x128xf32>
    %149 = arith.addf %143, %148 : vector<256x128xf32>
    %150 = vector.extract_strided_slice %144 {offsets = [1, 0, 0], sizes = [16, 16, 128], strides = [1, 1, 1]} : vector<18x16x128xf32> to vector<16x16x128xf32>
    %151 = vector.shape_cast %150 : vector<16x16x128xf32> to vector<256x128xf32>
    %c2816 = arith.constant 2816 : index
    %c0_112 = arith.constant 0 : index
    %152 = vector.load %arg2[%c2816, %c0_112] : memref<4608x128xf32, #tpu.memory_space<vmem>>, vector<128x128xf32>
    %cst_113 = arith.constant dense<0.000000e+00> : vector<256x128xf32>
    %153 = tpu.matmul %151, %152, %cst_113 {dimension_numbers = #tpu.dot_dimension_numbers<[1], [0], [0], [1], [0, 0, 1, 1], [], []>} : vector<256x128xf32>, vector<128x128xf32>, vector<256x128xf32> -> vector<256x128xf32>
    %154 = arith.addf %149, %153 : vector<256x128xf32>
    %155 = vector.extract_strided_slice %144 {offsets = [2, 0, 0], sizes = [16, 16, 128], strides = [1, 1, 1]} : vector<18x16x128xf32> to vector<16x16x128xf32>
    %156 = vector.shape_cast %155 : vector<16x16x128xf32> to vector<256x128xf32>
    %c3200 = arith.constant 3200 : index
    %c0_114 = arith.constant 0 : index
    %157 = vector.load %arg2[%c3200, %c0_114] : memref<4608x128xf32, #tpu.memory_space<vmem>>, vector<128x128xf32>
    %cst_115 = arith.constant dense<0.000000e+00> : vector<256x128xf32>
    %158 = tpu.matmul %156, %157, %cst_115 {dimension_numbers = #tpu.dot_dimension_numbers<[1], [0], [0], [1], [0, 0, 1, 1], [], []>} : vector<256x128xf32>, vector<128x128xf32>, vector<256x128xf32> -> vector<256x128xf32>
    %159 = arith.addf %154, %158 : vector<256x128xf32>
    %c0_116 = arith.constant 0 : index
    %c2_117 = arith.constant 2 : index
    %c0_118 = arith.constant 0 : index
    %160 = vector.load %arg5[%c0_116, %c2_117, %c0_118] : memref<18x18x128xf32, #tpu.memory_space<vmem>>, vector<18x16x128xf32>
    %161 = vector.extract_strided_slice %160 {offsets = [0, 0, 0], sizes = [16, 16, 128], strides = [1, 1, 1]} : vector<18x16x128xf32> to vector<16x16x128xf32>
    %162 = vector.shape_cast %161 : vector<16x16x128xf32> to vector<256x128xf32>
    %c2560 = arith.constant 2560 : index
    %c0_119 = arith.constant 0 : index
    %163 = vector.load %arg2[%c2560, %c0_119] : memref<4608x128xf32, #tpu.memory_space<vmem>>, vector<128x128xf32>
    %cst_120 = arith.constant dense<0.000000e+00> : vector<256x128xf32>
    %164 = tpu.matmul %162, %163, %cst_120 {dimension_numbers = #tpu.dot_dimension_numbers<[1], [0], [0], [1], [0, 0, 1, 1], [], []>} : vector<256x128xf32>, vector<128x128xf32>, vector<256x128xf32> -> vector<256x128xf32>
    %165 = arith.addf %159, %164 : vector<256x128xf32>
    %166 = vector.extract_strided_slice %160 {offsets = [1, 0, 0], sizes = [16, 16, 128], strides = [1, 1, 1]} : vector<18x16x128xf32> to vector<16x16x128xf32>
    %167 = vector.shape_cast %166 : vector<16x16x128xf32> to vector<256x128xf32>
    %c2944 = arith.constant 2944 : index
    %c0_121 = arith.constant 0 : index
    %168 = vector.load %arg2[%c2944, %c0_121] : memref<4608x128xf32, #tpu.memory_space<vmem>>, vector<128x128xf32>
    %cst_122 = arith.constant dense<0.000000e+00> : vector<256x128xf32>
    %169 = tpu.matmul %167, %168, %cst_122 {dimension_numbers = #tpu.dot_dimension_numbers<[1], [0], [0], [1], [0, 0, 1, 1], [], []>} : vector<256x128xf32>, vector<128x128xf32>, vector<256x128xf32> -> vector<256x128xf32>
    %170 = arith.addf %165, %169 : vector<256x128xf32>
    %171 = vector.extract_strided_slice %160 {offsets = [2, 0, 0], sizes = [16, 16, 128], strides = [1, 1, 1]} : vector<18x16x128xf32> to vector<16x16x128xf32>
    %172 = vector.shape_cast %171 : vector<16x16x128xf32> to vector<256x128xf32>
    %c3328 = arith.constant 3328 : index
    %c0_123 = arith.constant 0 : index
    %173 = vector.load %arg2[%c3328, %c0_123] : memref<4608x128xf32, #tpu.memory_space<vmem>>, vector<128x128xf32>
    %cst_124 = arith.constant dense<0.000000e+00> : vector<256x128xf32>
    %174 = tpu.matmul %172, %173, %cst_124 {dimension_numbers = #tpu.dot_dimension_numbers<[1], [0], [0], [1], [0, 0, 1, 1], [], []>} : vector<256x128xf32>, vector<128x128xf32>, vector<256x128xf32> -> vector<256x128xf32>
    %175 = arith.addf %170, %174 : vector<256x128xf32>
    %176 = vector.extract_strided_slice %0 {offsets = [2, 0], sizes = [1, 128], strides = [1, 1]} : vector<4x128xf32> to vector<1x128xf32>
    %177 = vector.broadcast %176 : vector<1x128xf32> to vector<256x128xf32>
    %178 = arith.addf %175, %177 : vector<256x128xf32>
    %cst_125 = arith.constant 0.000000e+00 : f32
    %179 = vector.broadcast %cst_125 : f32 to vector<256x128xf32>
    %180 = arith.maximumf %178, %179 : vector<256x128xf32>
    %181 = arith.addf %180, %128 : vector<256x128xf32>
    %182 = vector.shape_cast %181 : vector<256x128xf32> to vector<16x16x128xf32>
    %c1_126 = arith.constant 1 : index
    %c1_127 = arith.constant 1 : index
    %c0_128 = arith.constant 0 : index
    %183 = vector.load %arg6[%c1_126, %c1_127, %c0_128] : memref<18x18x128xf32, #tpu.memory_space<vmem>>, vector<16x16x128xf32>
    tpu.vector_store %arg6[%c1_126, %c1_127, %c0_128], %182 {strides = array<i32>} : memref<18x18x128xf32, #tpu.memory_space<vmem>>, vector<16x16x128xf32>,
    %c0_129 = arith.constant 0 : index
    %c0_130 = arith.constant 0 : index
    %c0_131 = arith.constant 0 : index
    %184 = vector.load %arg6[%c0_129, %c0_130, %c0_131] : memref<18x18x128xf32, #tpu.memory_space<vmem>>, vector<18x16x128xf32>
    %185 = vector.extract_strided_slice %184 {offsets = [0, 0, 0], sizes = [16, 16, 128], strides = [1, 1, 1]} : vector<18x16x128xf32> to vector<16x16x128xf32>
    %186 = vector.shape_cast %185 : vector<16x16x128xf32> to vector<256x128xf32>
    %c3456 = arith.constant 3456 : index
    %c0_132 = arith.constant 0 : index
    %187 = vector.load %arg2[%c3456, %c0_132] : memref<4608x128xf32, #tpu.memory_space<vmem>>, vector<128x128xf32>
    %cst_133 = arith.constant dense<0.000000e+00> : vector<256x128xf32>
    %188 = tpu.matmul %186, %187, %cst_133 {dimension_numbers = #tpu.dot_dimension_numbers<[1], [0], [0], [1], [0, 0, 1, 1], [], []>} : vector<256x128xf32>, vector<128x128xf32>, vector<256x128xf32> -> vector<256x128xf32>
    %189 = vector.extract_strided_slice %184 {offsets = [1, 0, 0], sizes = [16, 16, 128], strides = [1, 1, 1]} : vector<18x16x128xf32> to vector<16x16x128xf32>
    %190 = vector.shape_cast %189 : vector<16x16x128xf32> to vector<256x128xf32>
    %c3840 = arith.constant 3840 : index
    %c0_134 = arith.constant 0 : index
    %191 = vector.load %arg2[%c3840, %c0_134] : memref<4608x128xf32, #tpu.memory_space<vmem>>, vector<128x128xf32>
    %cst_135 = arith.constant dense<0.000000e+00> : vector<256x128xf32>
    %192 = tpu.matmul %190, %191, %cst_135 {dimension_numbers = #tpu.dot_dimension_numbers<[1], [0], [0], [1], [0, 0, 1, 1], [], []>} : vector<256x128xf32>, vector<128x128xf32>, vector<256x128xf32> -> vector<256x128xf32>
    %193 = arith.addf %188, %192 : vector<256x128xf32>
    %194 = vector.extract_strided_slice %184 {offsets = [2, 0, 0], sizes = [16, 16, 128], strides = [1, 1, 1]} : vector<18x16x128xf32> to vector<16x16x128xf32>
    %195 = vector.shape_cast %194 : vector<16x16x128xf32> to vector<256x128xf32>
    %c4224 = arith.constant 4224 : index
    %c0_136 = arith.constant 0 : index
    %196 = vector.load %arg2[%c4224, %c0_136] : memref<4608x128xf32, #tpu.memory_space<vmem>>, vector<128x128xf32>
    %cst_137 = arith.constant dense<0.000000e+00> : vector<256x128xf32>
    %197 = tpu.matmul %195, %196, %cst_137 {dimension_numbers = #tpu.dot_dimension_numbers<[1], [0], [0], [1], [0, 0, 1, 1], [], []>} : vector<256x128xf32>, vector<128x128xf32>, vector<256x128xf32> -> vector<256x128xf32>
    %198 = arith.addf %193, %197 : vector<256x128xf32>
    %c0_138 = arith.constant 0 : index
    %c1_139 = arith.constant 1 : index
    %c0_140 = arith.constant 0 : index
    %199 = vector.load %arg6[%c0_138, %c1_139, %c0_140] : memref<18x18x128xf32, #tpu.memory_space<vmem>>, vector<18x16x128xf32>
    %200 = vector.extract_strided_slice %199 {offsets = [0, 0, 0], sizes = [16, 16, 128], strides = [1, 1, 1]} : vector<18x16x128xf32> to vector<16x16x128xf32>
    %201 = vector.shape_cast %200 : vector<16x16x128xf32> to vector<256x128xf32>
    %c3584 = arith.constant 3584 : index
    %c0_141 = arith.constant 0 : index
    %202 = vector.load %arg2[%c3584, %c0_141] : memref<4608x128xf32, #tpu.memory_space<vmem>>, vector<128x128xf32>
    %cst_142 = arith.constant dense<0.000000e+00> : vector<256x128xf32>
    %203 = tpu.matmul %201, %202, %cst_142 {dimension_numbers = #tpu.dot_dimension_numbers<[1], [0], [0], [1], [0, 0, 1, 1], [], []>} : vector<256x128xf32>, vector<128x128xf32>, vector<256x128xf32> -> vector<256x128xf32>
    %204 = arith.addf %198, %203 : vector<256x128xf32>
    %205 = vector.extract_strided_slice %199 {offsets = [1, 0, 0], sizes = [16, 16, 128], strides = [1, 1, 1]} : vector<18x16x128xf32> to vector<16x16x128xf32>
    %206 = vector.shape_cast %205 : vector<16x16x128xf32> to vector<256x128xf32>
    %c3968 = arith.constant 3968 : index
    %c0_143 = arith.constant 0 : index
    %207 = vector.load %arg2[%c3968, %c0_143] : memref<4608x128xf32, #tpu.memory_space<vmem>>, vector<128x128xf32>
    %cst_144 = arith.constant dense<0.000000e+00> : vector<256x128xf32>
    %208 = tpu.matmul %206, %207, %cst_144 {dimension_numbers = #tpu.dot_dimension_numbers<[1], [0], [0], [1], [0, 0, 1, 1], [], []>} : vector<256x128xf32>, vector<128x128xf32>, vector<256x128xf32> -> vector<256x128xf32>
    %209 = arith.addf %204, %208 : vector<256x128xf32>
    %210 = vector.extract_strided_slice %199 {offsets = [2, 0, 0], sizes = [16, 16, 128], strides = [1, 1, 1]} : vector<18x16x128xf32> to vector<16x16x128xf32>
    %211 = vector.shape_cast %210 : vector<16x16x128xf32> to vector<256x128xf32>
    %c4352 = arith.constant 4352 : index
    %c0_145 = arith.constant 0 : index
    %212 = vector.load %arg2[%c4352, %c0_145] : memref<4608x128xf32, #tpu.memory_space<vmem>>, vector<128x128xf32>
    %cst_146 = arith.constant dense<0.000000e+00> : vector<256x128xf32>
    %213 = tpu.matmul %211, %212, %cst_146 {dimension_numbers = #tpu.dot_dimension_numbers<[1], [0], [0], [1], [0, 0, 1, 1], [], []>} : vector<256x128xf32>, vector<128x128xf32>, vector<256x128xf32> -> vector<256x128xf32>
    %214 = arith.addf %209, %213 : vector<256x128xf32>
    %c0_147 = arith.constant 0 : index
    %c2_148 = arith.constant 2 : index
    %c0_149 = arith.constant 0 : index
    %215 = vector.load %arg6[%c0_147, %c2_148, %c0_149] : memref<18x18x128xf32, #tpu.memory_space<vmem>>, vector<18x16x128xf32>
    %216 = vector.extract_strided_slice %215 {offsets = [0, 0, 0], sizes = [16, 16, 128], strides = [1, 1, 1]} : vector<18x16x128xf32> to vector<16x16x128xf32>
    %217 = vector.shape_cast %216 : vector<16x16x128xf32> to vector<256x128xf32>
    %c3712 = arith.constant 3712 : index
    %c0_150 = arith.constant 0 : index
    %218 = vector.load %arg2[%c3712, %c0_150] : memref<4608x128xf32, #tpu.memory_space<vmem>>, vector<128x128xf32>
    %cst_151 = arith.constant dense<0.000000e+00> : vector<256x128xf32>
    %219 = tpu.matmul %217, %218, %cst_151 {dimension_numbers = #tpu.dot_dimension_numbers<[1], [0], [0], [1], [0, 0, 1, 1], [], []>} : vector<256x128xf32>, vector<128x128xf32>, vector<256x128xf32> -> vector<256x128xf32>
    %220 = arith.addf %214, %219 : vector<256x128xf32>
    %221 = vector.extract_strided_slice %215 {offsets = [1, 0, 0], sizes = [16, 16, 128], strides = [1, 1, 1]} : vector<18x16x128xf32> to vector<16x16x128xf32>
    %222 = vector.shape_cast %221 : vector<16x16x128xf32> to vector<256x128xf32>
    %c4096 = arith.constant 4096 : index
    %c0_152 = arith.constant 0 : index
    %223 = vector.load %arg2[%c4096, %c0_152] : memref<4608x128xf32, #tpu.memory_space<vmem>>, vector<128x128xf32>
    %cst_153 = arith.constant dense<0.000000e+00> : vector<256x128xf32>
    %224 = tpu.matmul %222, %223, %cst_153 {dimension_numbers = #tpu.dot_dimension_numbers<[1], [0], [0], [1], [0, 0, 1, 1], [], []>} : vector<256x128xf32>, vector<128x128xf32>, vector<256x128xf32> -> vector<256x128xf32>
    %225 = arith.addf %220, %224 : vector<256x128xf32>
    %226 = vector.extract_strided_slice %215 {offsets = [2, 0, 0], sizes = [16, 16, 128], strides = [1, 1, 1]} : vector<18x16x128xf32> to vector<16x16x128xf32>
    %227 = vector.shape_cast %226 : vector<16x16x128xf32> to vector<256x128xf32>
    %c4480 = arith.constant 4480 : index
    %c0_154 = arith.constant 0 : index
    %228 = vector.load %arg2[%c4480, %c0_154] : memref<4608x128xf32, #tpu.memory_space<vmem>>, vector<128x128xf32>
    %cst_155 = arith.constant dense<0.000000e+00> : vector<256x128xf32>
    %229 = tpu.matmul %227, %228, %cst_155 {dimension_numbers = #tpu.dot_dimension_numbers<[1], [0], [0], [1], [0, 0, 1, 1], [], []>} : vector<256x128xf32>, vector<128x128xf32>, vector<256x128xf32> -> vector<256x128xf32>
    %230 = arith.addf %225, %229 : vector<256x128xf32>
    %231 = vector.extract_strided_slice %0 {offsets = [3, 0], sizes = [1, 128], strides = [1, 1]} : vector<4x128xf32> to vector<1x128xf32>
    %232 = vector.broadcast %231 : vector<1x128xf32> to vector<256x128xf32>
    %233 = arith.addf %230, %232 : vector<256x128xf32>
    %234 = vector.shape_cast %233 : vector<256x128xf32> to vector<16x16x128xf32>
    %235 = vector.extract_strided_slice %234 {offsets = [0, 0, 0], sizes = [16, 16, 4], strides = [1, 1, 1]} : vector<16x16x128xf32> to vector<16x16x4xf32>
    %c0_156 = arith.constant 0 : index
    %c0_157 = arith.constant 0 : index
    %c0_158 = arith.constant 0 : index
    %c0_159 = arith.constant 0 : index
    %236 = vector.load %arg4[%c0_156, %c0_157, %c0_158, %c0_159] : memref<1x16x16x4xf32, #tpu.memory_space<vmem>>, vector<1x16x16x4xf32>
    %237 = vector.shape_cast %236 : vector<1x16x16x4xf32> to vector<16x16x4xf32>
    %238 = vector.shape_cast %235 : vector<16x16x4xf32> to vector<1x16x16x4xf32>
    tpu.vector_store %arg4[%c0_156, %c0_157, %c0_158, %c0_159], %238 {strides = array<i32>} : memref<1x16x16x4xf32, #tpu.memory_space<vmem>>, vector<1x16x16x4xf32>,
    return
  }
  func.func @transform_0(%arg0: i32) -> (i32, i32, i32, i32) {
    %c0_i32 = arith.constant 0 : i32
    %c0_i32_0 = arith.constant 0 : i32
    %c0_i32_1 = arith.constant 0 : i32
    %c0_i32_2 = arith.constant 0 : i32
    return %arg0, %c0_i32, %c0_i32_0, %c0_i32_1 : i32, i32, i32, i32
  }
  func.func @transform_1(%arg0: i32) -> (i32, i32) {
    %c0_i32 = arith.constant 0 : i32
    %c0_i32_0 = arith.constant 0 : i32
    %c0_i32_1 = arith.constant 0 : i32
    return %c0_i32, %c0_i32_0 : i32, i32
  }
  func.func @transform_2(%arg0: i32) -> (i32, i32) {
    %c0_i32 = arith.constant 0 : i32
    %c0_i32_0 = arith.constant 0 : i32
    %c0_i32_1 = arith.constant 0 : i32
    return %c0_i32, %c0_i32_0 : i32, i32
  }
  func.func @transform_3(%arg0: i32) -> (i32, i32, i32, i32) {
    %c0_i32 = arith.constant 0 : i32
    %c0_i32_0 = arith.constant 0 : i32
    %c0_i32_1 = arith.constant 0 : i32
    %c0_i32_2 = arith.constant 0 : i32
    return %arg0, %c0_i32, %c0_i32_0, %c0_i32_1 : i32, i32, i32, i32
  }
}

</mosaic_0001>

<bundles_post_ra>
// kernel: depth_aggregation_forward.1
= control target key start
LH: loop header
LB: loop body
LE: loop exit
PB: predicated region body
PF: predicated region fallthrough
CT: control target
= control target key end

     0   :  { %s15639_s12 = smov 0   ;;  %s22359_s0 = inlined_call_operand.vmem [shape: f32[2,16,16,4], index: 0, kind: input, shape index: {}]   ;;  %s22360_s1 = inlined_call_operand.vmem [shape: f32[4608,128], index: 1, kind: input, shape index: {}]   ;;  %s22361_s2 = inlined_call_operand.vmem [shape: f32[4,128], index: 2, kind: input, shape index: {}]   ;;  %s22362_s3 = inlined_call_operand.vmem [shape: f32[2,16,16,4], index: 3, kind: output, shape index: {}]  }
   0x1 LB: > { %s10848_s13 = sadd.s32 4294967295, %s15616_s12   ;;  %p10852_p0 = scmp.ge.s32.totalorder %s15616_s12, 1  ;;  %s15616_s12 = sphi %s15639_s12, %s13_s12  }
   0x2   : > { %p137_p1 = scmp.lt.s32.totalorder %s15616_s12, 3 }
   0x4   : > { %p138_p2 = pnand %p10852_p0, %p137_p1 }
   0x6   : > { %141 = sbr.rel (%p138_p2) target bundleno = 1985 (0x7c1), region = 32 }
   0xb   : > { %v15650_v0 = vld [vmem:[%s22360_s1 + $0x1f8] sm:$0xff]  ;;  %v15660_v2 = vld [vmem:[%s22360_s1 + $0x1f0] sm:$0xff]  ;;  %p15664_p3 = scmp.lt.s32.totalorder %s10848_s13, 1  ;;  %v15618_v4 = vmov 0.0   ;;  %v421_v5 = vld [vmem:[%s22360_s1 + $0x1e8] sm:$0xff]  ;;  %vm290_vm0 = vcmask 31744  }
   0xc   : > { %v15655_v1 = vld [vmem:[%s22360_s1 + $0x78] sm:$0xff]  ;;  %12589 = vmatprep.subr.mxu0 %v15650_v0  ;;  %v15673_v3 = vld [vmem:[%s22360_s1 + $0x70] sm:$0xff]  ;;  %180 = vst [vmem:[#allocation2 + $0x18] sm:$0x1] %v15618_v4  ;;  %172 = vst [vmem:[#allocation2] sm:$0xff] %v15618_v4 }
   0xd   : > { %12669 = vmatprep.subr.mxu1 %v15655_v1  ;;  %173 = vst [vmem:[#allocation2 + $0x8] sm:$0xff] %v15618_v4  ;;  %174 = vst [vmem:[#allocation2 + $0x10] sm:$0x3] %v15618_v4  ;;  %12590 = vmatpush3.msra.mxu0 %v15650_v0  ;;  %v405_v6 = vld [vmem:[%s22360_s1 + $0x68] sm:$0xff]  ;;  %s23277_s13 = smov (!%p15664_p3, %s10848_s13), 1  ;;  %v420_v7 = vld [vmem:[%s22360_s1 + $0x1e0] sm:$0xff] }
   0xe   : > { %176 = vst [vmem:[#allocation2 + $0x198] sm:$0xff] %v15618_v4  ;;  %177 = vst [vmem:[#allocation2 + $0x1a0] sm:$0xff] %v15618_v4  ;;  %12670 = vmatpush3.msra.mxu1 %v15655_v1  ;;  %12591 = vmatprep.subr.mxu0 %v15660_v2  ;;  %v404_v8 = vld [vmem:[%s22360_s1 + $0x60] sm:$0xff]  ;;  %s10859_s4 = sshll.u32 %s23277_s13, 8  ;;  %v419_v9 = vld [vmem:[%s22360_s1 + $0x1d8] sm:$0xff] }
   0xf   : > { %178 = vst [vmem:[#allocation2 + $0x1a8] sm:$0x3] %v15618_v4  ;;  %181 = vst [vmem:[#allocation2 + $0x30] sm:$0x1] %v15618_v4  ;;  %12671 = vmatprep.subr.mxu1 %v15673_v3  ;;  %12592 = vmatpush3.msra.mxu0 %v15660_v2  ;;  %v403_v10 = vld [vmem:[%s22360_s1 + $0x58] sm:$0xff]  ;;  %s15795_s11 = scalar_lea.vmem %s22359_s0, %s10859_s4  ;;  %v418_v11 = vld [vmem:[%s22360_s1 + $0x1d0] sm:$0xff]  ;;  %s22143_s5 = scalar_lea.vmem %s22362_s3, %s10859_s4 }
  0x10   : > { %182 = vst [vmem:[#allocation2 + $0x48] sm:$0x1] %v15618_v4  ;;  %183 = vst [vmem:[#allocation2 + $0x60] sm:$0x1] %v15618_v4  ;;  %12672 = vmatpush3.msra.mxu1 %v15673_v3  ;;  %12593 = vmatprep.subr.mxu0 %v421_v5  ;;  %v402_v12 = vld [vmem:[%s22360_s1 + $0x50] sm:$0xff]  ;;  %v417_v13 = vld [vmem:[%s22360_s1 + $0x1c8] sm:$0xff] }
  0x11   : > { %184 = vst [vmem:[#allocation2 + $0x78] sm:$0x1] %v15618_v4  ;;  %185 = vst [vmem:[#allocation2 + $0x90] sm:$0x1] %v15618_v4  ;;  %12673 = vmatprep.subr.mxu1 %v405_v6  ;;  %12594 = vmatpush3.msra.mxu0 %v421_v5  ;;  %v401_v14 = vld [vmem:[%s22360_s1 + $0x48] sm:$0xff]  ;;  %v15810_v15 = vld [vmem:[%s15795_s11] sm:$0xff] }
  0x12   : > { %186 = vst [vmem:[#allocation2 + $0xa8] sm:$0x1] %v15618_v4  ;;  %187 = vst [vmem:[#allocation2 + $0xc0] sm:$0x1] %v15618_v4  ;;  %12674 = vmatpush3.msra.mxu1 %v405_v6  ;;  %12595 = vmatprep.subr.mxu0 %v420_v7  ;;  %v416_v16 = vld [vmem:[%s22360_s1 + $0x1c0] sm:$0xff]  ;;  %v291_v17 = vsel %vm290_vm0, %v15810_v15, 0.0 }
  0x13   : > { %188 = vst [vmem:[#allocation2 + $0xd8] sm:$0x1] %v15618_v4  ;;  %189 = vst [vmem:[#allocation2 + $0xf0] sm:$0x1] %v15618_v4  ;;  %12675 = vmatprep.subr.mxu1 %v404_v8  ;;  %12596 = vmatpush3.msra.mxu0 %v420_v7  ;;  %v15818_v18 = vld [vmem:[%s15795_s11 + $0x8] sm:$0xff]  ;;  %v400_v19 = vld [vmem:[%s22360_s1 + $0x40] sm:$0xff] }
  0x14   : > { %190 = vst [vmem:[#allocation2 + $0x108] sm:$0x1] %v15618_v4  ;;  %191 = vst [vmem:[#allocation2 + $0x120] sm:$0x1] %v15618_v4  ;;  %12676 = vmatpush3.msra.mxu1 %v404_v8  ;;  %12597 = vmatprep.subr.mxu0 %v419_v9  ;;  %v292_v20 = vsel %vm290_vm0, %v15818_v18, 0.0  ;;  %v15826_v21 = vld [vmem:[%s15795_s11 + $0x10] sm:$0xff] }
  0x15   : > { %192 = vst [vmem:[#allocation2 + $0x138] sm:$0x1] %v15618_v4  ;;  %193 = vst [vmem:[#allocation2 + $0x150] sm:$0x1] %v15618_v4  ;;  %12677 = vmatprep.subr.mxu1 %v403_v10  ;;  %12598 = vmatpush3.msra.mxu0 %v419_v9  ;;  %v15829_v22 = vld [vmem:[%s15795_s11 + $0x18] sm:$0xff]  ;;  %v293_v24 = vsel %vm290_vm0, %v15826_v21, 0.0 }
  0x16   : > { %194 = vst [vmem:[#allocation2 + $0x168] sm:$0x1] %v15618_v4  ;;  %195 = vst [vmem:[#allocation2 + $0x180] sm:$0x1] %v15618_v4  ;;  %12678 = vmatpush3.msra.mxu1 %v403_v10  ;;  %12599 = vmatprep.subr.mxu0 %v418_v11  ;;  %v415_v23 = vld [vmem:[%s22360_s1 + $0x1b8] sm:$0xff]  ;;  %v294_v25 = vsel %vm290_vm0, %v15829_v22, 0.0 }
  0x17   : > { %198 = vst [vmem:[#allocation2 + $0x29] sm:$0x1] %v15618_v4  ;;  %199 = vst [vmem:[#allocation2 + $0x41] sm:$0x1] %v15618_v4  ;;  %12679 = vmatprep.subr.mxu1 %v402_v12  ;;  %12600 = vmatpush3.msra.mxu0 %v418_v11  ;;  %v15839_v26 = vld [vmem:[%s15795_s11 + $0x20] sm:$0xff]  ;;  %v15842_v27 = vld [vmem:[%s15795_s11 + $0x28] sm:$0xff] }
  0x18   : > { %200 = vst [vmem:[#allocation2 + $0x59] sm:$0x1] %v15618_v4  ;;  %201 = vst [vmem:[#allocation2 + $0x71] sm:$0x1] %v15618_v4  ;;  %12680 = vmatpush3.msra.mxu1 %v402_v12  ;;  %12601 = vmatprep.subr.mxu0 %v417_v13  ;;  %v399_v28 = vld [vmem:[%s22360_s1 + $0x38] sm:$0xff]  ;;  %v295_v29 = vsel %vm290_vm0, %v15839_v26, 0.0 }
  0x19   : > { %202 = vst [vmem:[#allocation2 + $0x89] sm:$0x1] %v15618_v4  ;;  %203 = vst [vmem:[#allocation2 + $0xa1] sm:$0x1] %v15618_v4  ;;  %12681 = vmatprep.subr.mxu1 %v401_v14  ;;  %12602 = vmatpush3.msra.mxu0 %v417_v13  ;;  %v296_v30 = vsel %vm290_vm0, %v15842_v27, 0.0  ;;  %v15852_v31 = vld [vmem:[%s15795_s11 + $0x30] sm:$0xff] }
  0x1a   : > { %204 = vst [vmem:[#allocation2 + $0xb9] sm:$0x1] %v15618_v4  ;;  %205 = vst [vmem:[#allocation2 + $0xd1] sm:$0x1] %v15618_v4  ;;  %12682 = vmatpush3.msra.mxu1 %v401_v14  ;;  %v15855_v32 = vld [vmem:[%s15795_s11 + $0x38] sm:$0xff]  ;;  %12603 = vmatprep.subr.mxu0 %v416_v16  ;;  %v414_v33 = vld [vmem:[%s22360_s1 + $0x1b0] sm:$0xff] }
  0x1b   : > { %206 = vst [vmem:[#allocation2 + $0xe9] sm:$0x1] %v15618_v4  ;;  %207 = vst [vmem:[#allocation2 + $0x101] sm:$0x1] %v15618_v4  ;;  %12683 = vmatprep.subr.mxu1 %v400_v19  ;;  %v297_v34 = vsel %vm290_vm0, %v15852_v31, 0.0  ;;  %v298_v35 = vsel %vm290_vm0, %v15855_v32, 0.0  ;;  %12604 = vmatpush3.msra.mxu0 %v416_v16 }
  0x1c   : > { %208 = vst [vmem:[#allocation2 + $0x119] sm:$0x1] %v15618_v4  ;;  %209 = vst [vmem:[#allocation2 + $0x131] sm:$0x1] %v15618_v4  ;;  %v15865_v36 = vld [vmem:[%s15795_s11 + $0x40] sm:$0xff]  ;;  %v15868_v37 = vld [vmem:[%s15795_s11 + $0x48] sm:$0xff]  ;;  %12684 = vmatpush3.msra.mxu1 %v400_v19  ;;  %12605 = vmatprep.subr.mxu0 %v415_v23 }
  0x1d   : > { %210 = vst [vmem:[#allocation2 + $0x149] sm:$0x1] %v15618_v4  ;;  %211 = vst [vmem:[#allocation2 + $0x161] sm:$0x1] %v15618_v4  ;;  %v398_v38 = vld [vmem:[%s22360_s1 + $0x30] sm:$0xff]  ;;  %v299_v39 = vsel %vm290_vm0, %v15865_v36, 0.0  ;;  %12685 = vmatprep.subr.mxu1 %v399_v28  ;;  %12606 = vmatpush3.msra.mxu0 %v415_v23 }
  0x1e   : > { %212 = vst [vmem:[#allocation2 + $0x179] sm:$0x1] %v15618_v4  ;;  %213 = vst [vmem:[#allocation2 + $0x191] sm:$0x1] %v15618_v4  ;;  %v300_v40 = vsel %vm290_vm0, %v15868_v37, 0.0  ;;  %v15878_v41 = vld [vmem:[%s15795_s11 + $0x50] sm:$0xff]  ;;  %12686 = vmatpush3.msra.mxu1 %v399_v28  ;;  %12607 = vmatprep.subr.mxu0 %v414_v33 }
  0x1f   : > { %215 = vst [vmem:[#allocation3] sm:$0xff] %v15618_v4  ;;  %216 = vst [vmem:[#allocation3 + $0x8] sm:$0xff] %v15618_v4  ;;  %v15881_v42 = vld [vmem:[%s15795_s11 + $0x58] sm:$0xff]  ;;  %v413_v43 = vld [vmem:[%s22360_s1 + $0x1a8] sm:$0xff]  ;;  %v301_v44 = vsel %vm290_vm0, %v15878_v41, 0.0  ;;  %12687 = vmatprep.subr.mxu1 %v398_v38  ;;  %12608 = vmatpush3.msra.mxu0 %v414_v33 }
  0x20   : > { %217 = vst [vmem:[#allocation3 + $0x10] sm:$0x3] %v15618_v4  ;;  %219 = vst [vmem:[#allocation3 + $0x198] sm:$0xff] %v15618_v4  ;;  %v302_v45 = vsel %vm290_vm0, %v15881_v42, 0.0  ;;  %v15891_v46 = vld [vmem:[%s15795_s11 + $0x60] sm:$0xff]  ;;  %v15894_v47 = vld [vmem:[%s15795_s11 + $0x68] sm:$0xff]  ;;  %12688 = vmatpush3.msra.mxu1 %v398_v38  ;;  %12609 = vmatprep.subr.mxu0 %v413_v43 }
  0x21   : > { %220 = vst [vmem:[#allocation3 + $0x1a0] sm:$0xff] %v15618_v4  ;;  %221 = vst [vmem:[#allocation3 + $0x1a8] sm:$0x3] %v15618_v4  ;;  %v397_v48 = vld [vmem:[%s22360_s1 + $0x28] sm:$0xff]  ;;  %v303_v49 = vsel %vm290_vm0, %v15891_v46, 0.0  ;;  %v304_v50 = vsel %vm290_vm0, %v15894_v47, 0.0  ;;  %12610 = vmatpush3.msra.mxu0 %v413_v43 }
  0x22   : > { %223 = vst [vmem:[#allocation3 + $0x18] sm:$0x1] %v15618_v4  ;;  %224 = vst [vmem:[#allocation3 + $0x30] sm:$0x1] %v15618_v4  ;;  %v15904_v51 = vld [vmem:[%s15795_s11 + $0x70] sm:$0xff]  ;;  %v15907_v52 = vld [vmem:[%s15795_s11 + $0x78] sm:$0xff]  ;;  %12689 = vmatprep.subr.mxu1 %v397_v48 }
  0x23   : > { %225 = vst [vmem:[#allocation3 + $0x48] sm:$0x1] %v15618_v4  ;;  %226 = vst [vmem:[#allocation3 + $0x60] sm:$0x1] %v15618_v4  ;;  %v305_v53 = vsel %vm290_vm0, %v15904_v51, 0.0  ;;  %v306_v54 = vsel %vm290_vm0, %v15907_v52, 0.0  ;;  %12690 = vmatpush3.msra.mxu1 %v397_v48 }
  0x24   : > { %227 = vst [vmem:[#allocation3 + $0x78] sm:$0x1] %v15618_v4  ;;  %228 = vst [vmem:[#allocation3 + $0x90] sm:$0x1] %v15618_v4  ;;  %v15914_v55 = vld [vmem:[%s15795_s11 + $0x80] sm:$0xff]  ;;  %v15917_v56 = vld [vmem:[%s15795_s11 + $0x88] sm:$0xff] }
  0x25   : > { %229 = vst [vmem:[#allocation3 + $0xa8] sm:$0x1] %v15618_v4  ;;  %230 = vst [vmem:[#allocation3 + $0xc0] sm:$0x1] %v15618_v4  ;;  %v412_v57 = vld [vmem:[%s22360_s1 + $0x1a0] sm:$0xff]  ;;  %v307_v59 = vsel %vm290_vm0, %v15914_v55, 0.0 }
  0x26   : > { %231 = vst [vmem:[#allocation3 + $0xd8] sm:$0x1] %v15618_v4  ;;  %232 = vst [vmem:[#allocation3 + $0xf0] sm:$0x1] %v15618_v4  ;;  %v396_v58 = vld [vmem:[%s22360_s1 + $0x20] sm:$0xff]  ;;  %v308_v60 = vsel %vm290_vm0, %v15917_v56, 0.0  ;;  %12611 = vmatprep.subr.mxu0 %v412_v57 }
  0x27   : > { %233 = vst [vmem:[#allocation3 + $0x108] sm:$0x1] %v15618_v4  ;;  %234 = vst [vmem:[#allocation3 + $0x120] sm:$0x1] %v15618_v4  ;;  %v15930_v61 = vld [vmem:[%s15795_s11 + $0x90] sm:$0xff]  ;;  %v411_v62 = vld [vmem:[%s22360_s1 + $0x198] sm:$0xff]  ;;  %12691 = vmatprep.subr.mxu1 %v396_v58  ;;  %12612 = vmatpush3.msra.mxu0 %v412_v57 }
  0x28   : > { %235 = vst [vmem:[#allocation3 + $0x138] sm:$0x1] %v15618_v4  ;;  %236 = vst [vmem:[#allocation3 + $0x150] sm:$0x1] %v15618_v4  ;;  %v395_v63 = vld [vmem:[%s22360_s1 + $0x18] sm:$0xff]  ;;  %v309_v0 = vsel %vm290_vm0, %v15930_v61, 0.0  ;;  %12692 = vmatpush3.msra.mxu1 %v396_v58  ;;  %12613 = vmatprep.subr.mxu0 %v411_v62 }
  0x29   : > { %237 = vst [vmem:[#allocation3 + $0x168] sm:$0x1] %v15618_v4  ;;  %238 = vst [vmem:[#allocation3 + $0x180] sm:$0x1] %v15618_v4  ;;  %v15941_v1 = vld [vmem:[%s15795_s11 + $0x98] sm:$0xff]  ;;  %v410_v3 = vld [vmem:[%s22360_s1 + $0x190] sm:$0xff]  ;;  %12693 = vmatprep.subr.mxu1 %v395_v63  ;;  %12614 = vmatpush3.msra.mxu0 %v411_v62 }
  0x2a   : > { %241 = vst [vmem:[#allocation3 + $0x29] sm:$0x1] %v15618_v4  ;;  %242 = vst [vmem:[#allocation3 + $0x41] sm:$0x1] %v15618_v4  ;;  %v310_v2 = vsel %vm290_vm0, %v15941_v1, 0.0  ;;  %v394_v5 = vld [vmem:[%s22360_s1 + $0x10] sm:$0xff]  ;;  %12694 = vmatpush3.msra.mxu1 %v395_v63  ;;  %12615 = vmatprep.subr.mxu0 %v410_v3 }
  0x2b   : > { %243 = vst [vmem:[#allocation3 + $0x59] sm:$0x1] %v15618_v4  ;;  %244 = vst [vmem:[#allocation3 + $0x71] sm:$0x1] %v15618_v4  ;;  %v409_v6 = vld [vmem:[%s22360_s1 + $0x188] sm:$0xff]  ;;  %v15958_v8 = vld [vmem:[%s15795_s11 + $0xa0] sm:$0xff]  ;;  %12695 = vmatprep.subr.mxu1 %v394_v5  ;;  %12616 = vmatpush3.msra.mxu0 %v410_v3 }
  0x2c   : > { %245 = vst [vmem:[#allocation3 + $0x89] sm:$0x1] %v15618_v4  ;;  %246 = vst [vmem:[#allocation3 + $0xa1] sm:$0x1] %v15618_v4  ;;  %v393_v7 = vld [vmem:[%s22360_s1 + $0x8] sm:$0xff]  ;;  %v311_v9 = vsel %vm290_vm0, %v15958_v8, 0.0  ;;  %12696 = vmatpush3.msra.mxu1 %v394_v5  ;;  %12617 = vmatprep.subr.mxu0 %v409_v6 }
  0x2d   : > { %247 = vst [vmem:[#allocation3 + $0xb9] sm:$0x1] %v15618_v4  ;;  %248 = vst [vmem:[#allocation3 + $0xd1] sm:$0x1] %v15618_v4  ;;  %v15963_v10 = vld [vmem:[%s15795_s11 + $0xa8] sm:$0xff]  ;;  %v408_v11 = vld [vmem:[%s22360_s1 + $0x180] sm:$0xff]  ;;  %12697 = vmatprep.subr.mxu1 %v393_v7  ;;  %12618 = vmatpush3.msra.mxu0 %v409_v6 }
  0x2e   : > { %249 = vst [vmem:[#allocation3 + $0xe9] sm:$0x1] %v15618_v4  ;;  %250 = vst [vmem:[#allocation3 + $0x101] sm:$0x1] %v15618_v4  ;;  %v392_v12 = vld [vmem:[%s22360_s1] sm:$0xff]  ;;  %v312_v13 = vsel %vm290_vm0, %v15963_v10, 0.0  ;;  %12698 = vmatpush3.msra.mxu1 %v393_v7  ;;  %12619 = vmatprep.subr.mxu0 %v408_v11 }
  0x2f   : > { %251 = vst [vmem:[#allocation3 + $0x119] sm:$0x1] %v15618_v4  ;;  %252 = vst [vmem:[#allocation3 + $0x131] sm:$0x1] %v15618_v4  ;;  %v15974_v16 = vld [vmem:[%s15795_s11 + $0xb0] sm:$0xff]  ;;  %12699 = vmatprep.subr.mxu1 %v392_v12  ;;  %12620 = vmatpush3.msra.mxu0 %v408_v11  ;;  %v16011_v43 = vld [vmem:[%s15795_s11 + $0xd8] sm:$0xff] }
  0x30   : > { %253 = vst [vmem:[#allocation3 + $0x149] sm:$0x1] %v15618_v4  ;;  %254 = vst [vmem:[#allocation3 + $0x161] sm:$0x1] %v15618_v4  ;;  %v313_v19 = vsel %vm290_vm0, %v15974_v16, 0.0  ;;  %12700 = vmatpush3.msra.mxu1 %v392_v12  ;;  %v888_v38 = vld [vmem:[%s22360_s1 + $0x370] sm:$0xff] }
  0x31   : > { %255 = vst [vmem:[#allocation3 + $0x179] sm:$0x1] %v15618_v4  ;;  %256 = vst [vmem:[#allocation3 + $0x191] sm:$0x1] %v15618_v4  ;;  %v16034_v57 = vld [vmem:[%s15795_s11 + $0xf0] sm:$0xff]  ;;  %v885_v6 = vld [vmem:[%s22360_s1 + $0x358] sm:$0xff] }
  0x32   : > { %179 = vst [vmem:[#allocation2] sm:$0x1] %v15618_v4  ;;  %196 = vst [vmem:[#allocation2 + $0x198] sm:$0x1] %v15618_v4  ;;  %v321_v58 = vsel %vm290_vm0, %v16034_v57, 0.0  ;;  %v1196_v7 = vld [vmem:[%s22360_s1 + $0xe8] sm:$0xff] }
  0x33   : > { %197 = vst [vmem:[#allocation2 + $0x11] sm:$0x1] %v15618_v4  ;;  %214 = vst [vmem:[#allocation2 + $0x1a9] sm:$0x1] %v15618_v4  ;;  %v884_v12 = vld [vmem:[%s22360_s1 + $0x350] sm:$0xff] }
  0x34   : > { %222 = vst [vmem:[#allocation3] sm:$0x1] %v15618_v4  ;;  %239 = vst [vmem:[#allocation3 + $0x198] sm:$0x1] %v15618_v4 }
  0x35   : > { %240 = vst [vmem:[#allocation3 + $0x11] sm:$0x1] %v15618_v4  ;;  %257 = vst [vmem:[#allocation3 + $0x1a9] sm:$0x1] %v15618_v4 }
  0x36   : > { %324 = vst [vmem:[#allocation2 + $0x19] sm:$0xff] %v291_v17  ;;  %325 = vst [vmem:[#allocation2 + $0x21] sm:$0xff] %v292_v20  ;;  %v15979_v20 = vld [vmem:[%s15795_s11 + $0xb8] sm:$0xff] }
  0x37   : > { %326 = vst [vmem:[#allocation2 + $0x31] sm:$0xff] %v293_v24  ;;  %327 = vst [vmem:[#allocation2 + $0x39] sm:$0xff] %v294_v25  ;;  %v889_v24 = vld [vmem:[%s22360_s1 + $0x378] sm:$0xff]  ;;  %v314_v25 = vsel %vm290_vm0, %v15979_v20, 0.0 }
  0x38   : > { %328 = vst [vmem:[#allocation2 + $0x49] sm:$0xff] %v295_v29  ;;  %329 = vst [vmem:[#allocation2 + $0x51] sm:$0xff] %v296_v30  ;;  %v15989_v29 = vld [vmem:[%s15795_s11 + $0xc0] sm:$0xff]  ;;  %v15992_v30 = vld [vmem:[%s15795_s11 + $0xc8] sm:$0xff]  ;;  %12749 = vmatprep.subr.mxu0 %v889_v24 }
  0x39   : > { %330 = vst [vmem:[#allocation2 + $0x61] sm:$0xff] %v297_v34  ;;  %331 = vst [vmem:[#allocation2 + $0x69] sm:$0xff] %v298_v35  ;;  %v356_v17 = vld [vmem:[#allocation2] sm:$0xff]  ;;  %v315_v33 = vsel %vm290_vm0, %v15989_v29, 0.0  ;;  %v316_v34 = vsel %vm290_vm0, %v15992_v30, 0.0  ;;  %v15999_v35 = vld [vmem:[%s15795_s11 + $0xd0] sm:$0xff] }
  0x3a   : > { %332 = vst [vmem:[#allocation2 + $0x79] sm:$0xff] %v299_v39  ;;  %333 = vst [vmem:[#allocation2 + $0x81] sm:$0xff] %v300_v40  ;;  %12701 = vmatprep.mubr.f32.mxu1 %v356_v17  ;;  %v1198_v39 = vld [vmem:[%s22360_s1 + $0xf8] sm:$0xff]  ;;  %v317_v40 = vsel %vm290_vm0, %v15999_v35, 0.0 }
  0x3b   : > { %334 = vst [vmem:[#allocation2 + $0x91] sm:$0xff] %v301_v44  ;;  %335 = vst [vmem:[#allocation2 + $0x99] sm:$0xff] %v302_v45  ;;  %12702 = vmatmul.mubr.f32.vlgmr.msra.gmra.mxu1 %v15618_v4  ;;  %v318_v44 = vsel %vm290_vm0, %v16011_v43, 0.0  ;;  %v16019_v45 = vld [vmem:[%s15795_s11 + $0xe0] sm:$0xff]  ;;  %12829 = vmatprep.subr.mxu1 %v1198_v39 }
  0x3c   : > { %336 = vst [vmem:[#allocation2 + $0xa9] sm:$0xff] %v303_v49  ;;  %337 = vst [vmem:[#allocation2 + $0xb1] sm:$0xff] %v304_v50  ;;  %v319_v49 = vsel %vm290_vm0, %v16019_v45, 0.0  ;;  %v16026_v50 = vld [vmem:[%s15795_s11 + $0xe8] sm:$0xff]  ;;  %12830 = vmatpush3.msra.mxu1 %v1198_v39 }
  0x3d   : > { %338 = vst [vmem:[#allocation2 + $0xc1] sm:$0xff] %v305_v53  ;;  %339 = vst [vmem:[#allocation2 + $0xc9] sm:$0xff] %v306_v54  ;;  %v358_v14 = vld [vmem:[#allocation2 + $0x18] sm:$0xff]  ;;  %v359_v23 = vld [vmem:[#allocation2 + $0x20] sm:$0xff]  ;;  %v320_v54 = vsel %vm290_vm0, %v16026_v50, 0.0 }
  0x3e   : > { %340 = vst [vmem:[#allocation2 + $0xd9] sm:$0xff] %v307_v59  ;;  %341 = vst [vmem:[#allocation2 + $0xe1] sm:$0xff] %v308_v60  ;;  %12621 = vmatprep.mubr.f32.mxu0 %v358_v14  ;;  %v15986_v28 = vld [vmem:[#allocation2 + $0x30] sm:$0xff]  ;;  %v16014_v4 = vld [vmem:[#allocation2 + $0x38] sm:$0xff]  ;;  %12704 = vmatprep.mubr.f32.mxu1 %v358_v14 }
  0x3f   : > { %342 = vst [vmem:[#allocation2 + $0xf1] sm:$0xff] %v309_v0  ;;  %343 = vst [vmem:[#allocation2 + $0xf9] sm:$0xff] %v310_v2  ;;  %12622 = vmatmul.mubr.f32.vlgmr.msra.gmra.mxu0 %v359_v23  ;;  %v16021_v48 = vld [vmem:[#allocation2 + $0x48] sm:$0xff]  ;;  %12705 = vmatmul.mubr.f32.gmra.mxu1 %v359_v23  ;;  %v16040_v59 = vld [vmem:[%s15795_s11 + $0xf8] sm:$0xff] }
  0x40   : > { %344 = vst [vmem:[#allocation2 + $0x109] sm:$0xff] %v311_v9  ;;  %345 = vst [vmem:[#allocation2 + $0x111] sm:$0xff] %v312_v13  ;;  %12624 = vmatprep.mubr.f32.mxu0 %v15986_v28  ;;  %12750 = vmatpush3.msra.mxu0 %v889_v24  ;;  %v887_v53 = vld [vmem:[%s22360_s1 + $0x368] sm:$0xff]  ;;  %v16043_v60 = vld [vmem:[#allocation2 + $0x50] sm:$0xff]  ;;  %v322_v62 = vsel %vm290_vm0, %v16040_v59, 0.0 }
  0x41   : > { %346 = vst [vmem:[#allocation2 + $0x121] sm:$0xff] %v313_v19  ;;  %347 = vst [vmem:[#allocation2 + $0x129] sm:$0xff] %v314_v25  ;;  %12751 = vmatprep.subr.mxu0 %v888_v38  ;;  %12707 = vmatprep.mubr.f32.mxu1 %v15986_v28  ;;  %v16048_v63 = vld [vmem:[#allocation2 + $0x60] sm:$0xff]  ;;  %v1197_v2 = vld [vmem:[%s22360_s1 + $0xf0] sm:$0xff] }
  0x42   : > { %348 = vst [vmem:[#allocation2 + $0x139] sm:$0xff] %v315_v33  ;;  %349 = vst [vmem:[#allocation2 + $0x141] sm:$0xff] %v316_v34  ;;  %12752 = vmatpush3.msra.mxu0 %v888_v38  ;;  %v886_v0 = vld [vmem:[%s22360_s1 + $0x360] sm:$0xff]  ;;  %v16060_v3 = vld [vmem:[#allocation2 + $0x68] sm:$0xff]  ;;  %12831 = vmatprep.subr.mxu1 %v1197_v2 }
  0x43   : > { %22438 = vst [vmem:[#allocation4_spill] sm:$0xff] %v16011_v43  ;;  %350 = vst [vmem:[#allocation2 + $0x151] sm:$0xff] %v317_v40  ;;  %12625 = vmatmul.mubr.f32.gmra.mxu0 %v16014_v4  ;;  %12753 = vmatprep.subr.mxu0 %v887_v53  ;;  %v16062_v5 = vld [vmem:[#allocation2 + $0x78] sm:$0xff]  ;;  %v16074_v9 = vld [vmem:[#allocation2 + $0x80] sm:$0xff] }
  0x44   : > { %22439 = vst [vmem:[#allocation5_spill] sm:$0xff] %v16019_v45  ;;  %351 = vst [vmem:[#allocation2 + $0x159] sm:$0xff] %v318_v44  ;;  %12627 = vmatprep.mubr.f32.mxu0 %v16021_v48  ;;  %12754 = vmatpush3.msra.mxu0 %v887_v53  ;;  %v16076_v11 = vld [vmem:[#allocation2 + $0x90] sm:$0xff]  ;;  %v1195_v13 = vld [vmem:[%s22360_s1 + $0xe0] sm:$0xff] }
  0x45   : > { %22440 = vst [vmem:[#allocation6_spill] sm:$0xff] %v16026_v50  ;;  %352 = vst [vmem:[#allocation2 + $0x169] sm:$0xff] %v319_v49  ;;  %12708 = vmatmul.mubr.f32.gmra.mxu1 %v16014_v4  ;;  %12755 = vmatprep.subr.mxu0 %v886_v0  ;;  %v16088_v14 = vld [vmem:[#allocation2 + $0x98] sm:$0xff]  ;;  %v16090_v17 = vld [vmem:[#allocation2 + $0xa8] sm:$0xff] }
  0x46   : > { %22441 = vst [vmem:[#allocation7_spill] sm:$0xff] %v16034_v57  ;;  %353 = vst [vmem:[#allocation2 + $0x171] sm:$0xff] %v320_v54  ;;  %12710 = vmatprep.mubr.f32.mxu1 %v16021_v48  ;;  %12756 = vmatpush3.msra.mxu0 %v886_v0  ;;  %v883_v19 = vld [vmem:[%s22360_s1 + $0x348] sm:$0xff]  ;;  %v1194_v23 = vld [vmem:[%s22360_s1 + $0xd8] sm:$0xff] }
  0x47   : > { %22442 = vst [vmem:[#allocation8_spill] sm:$0xff] %v16040_v59  ;;  %354 = vst [vmem:[#allocation2 + $0x181] sm:$0xff] %v321_v58  ;;  %12628 = vmatmul.mubr.f32.gmra.mxu0 %v16043_v60  ;;  %12832 = vmatpush3.msra.mxu1 %v1197_v2  ;;  %v16102_v24 = vld [vmem:[#allocation2 + $0xb0] sm:$0xff]  ;;  %v16104_v25 = vld [vmem:[#allocation2 + $0xc0] sm:$0xff] }
  0x48   : > { %355 = vst [vmem:[#allocation2 + $0x189] sm:$0xff] %v322_v62  ;;  %12630 = vmatprep.mubr.f32.mxu0 %v16048_v63  ;;  %12757 = vmatprep.subr.mxu0 %v885_v6  ;;  %v882_v33 = vld [vmem:[%s22360_s1 + $0x340] sm:$0xff]  ;;  %v1193_v34 = vld [vmem:[%s22360_s1 + $0xd0] sm:$0xff]  ;;  %v16116_v38 = vld [vmem:[#allocation2 + $0xc8] sm:$0xff] }
  0x49   : > { %12711 = vmatmul.mubr.f32.gmra.mxu1 %v16043_v60  ;;  %12833 = vmatprep.subr.mxu1 %v1196_v7  ;;  %v16118_v39 = vld [vmem:[#allocation2 + $0xd8] sm:$0xff]  ;;  %v1192_v44 = vld [vmem:[%s22360_s1 + $0xc8] sm:$0xff]  ;;  %v16130_v49 = vld [vmem:[#allocation2 + $0xe0] sm:$0xff] }
  0x4a   : > { %12713 = vmatprep.mubr.f32.mxu1 %v16048_v63  ;;  %12758 = vmatpush3.msra.mxu0 %v885_v6  ;;  %v881_v40 = vld [vmem:[%s22360_s1 + $0x338] sm:$0xff]  ;;  %v16132_v53 = vld [vmem:[#allocation2 + $0xf0] sm:$0xff]  ;;  %v1191_v58 = vld [vmem:[%s22360_s1 + $0xc0] sm:$0xff] }
  0x4b   : > { %12631 = vmatmul.mubr.f32.gmra.mxu0 %v16060_v3  ;;  %12834 = vmatpush3.msra.mxu1 %v1196_v7  ;;  %v880_v54 = vld [vmem:[%s22360_s1 + $0x330] sm:$0xff]  ;;  %v16144_v62 = vld [vmem:[#allocation2 + $0xf8] sm:$0xff]  ;;  %v16146_v0 = vld [vmem:[#allocation2 + $0x108] sm:$0xff] }
  0x4c   : > { %12633 = vmatprep.mubr.f32.mxu0 %v16062_v5  ;;  %12759 = vmatprep.subr.mxu0 %v884_v12  ;;  %v879_v2 = vld [vmem:[%s22360_s1 + $0x328] sm:$0xff]  ;;  %v1190_v6 = vld [vmem:[%s22360_s1 + $0xb8] sm:$0xff]  ;;  %v16158_v7 = vld [vmem:[#allocation2 + $0x110] sm:$0xff] }
  0x4d   : > { %12714 = vmatmul.mubr.f32.gmra.mxu1 %v16060_v3  ;;  %12835 = vmatprep.subr.mxu1 %v1195_v13  ;;  %v1185_v59 = vld [vmem:[%s22360_s1 + $0x90] sm:$0xff]  ;;  %v1183_v50 = vld [vmem:[%s22360_s1 + $0x80] sm:$0xff]  ;;  %v1469_v43 = vld [vmem:[%s22360_s1 + $0x268] sm:$0xff] }
  0x4e   : > { %12716 = vmatprep.mubr.f32.mxu1 %v16062_v5  ;;  %12760 = vmatpush3.msra.mxu0 %v884_v12  ;;  %v16160_v12 = vld [vmem:[#allocation2 + $0x120] sm:$0xff] }
  0x4f   : > { %12634 = vmatmul.mubr.f32.gmra.mxu0 %v16074_v9  ;;  %12836 = vmatpush3.msra.mxu1 %v1195_v13  ;;  %v878_v13 = vld [vmem:[%s22360_s1 + $0x320] sm:$0xff]  ;;  %v16228_v57 = vld [vmem:[#allocation2 + $0x188] sm:$0xff] }
  0x50   : > { %12636 = vmatprep.mubr.f32.mxu0 %v16076_v11  ;;  %12761 = vmatprep.subr.mxu0 %v883_v19  ;;  %v1147_v45 = vld [vmem:[#allocation2 + $0x1] sm:$0xff] }
  0x51   : > { %12717 = vmatmul.mubr.f32.gmra.mxu1 %v16074_v9  ;;  %12837 = vmatprep.subr.mxu1 %v1194_v23 }
  0x52   : > { %12719 = vmatprep.mubr.f32.mxu1 %v16076_v11  ;;  %12762 = vmatpush3.msra.mxu0 %v883_v19  ;;  %v1189_v19 = vld [vmem:[%s22360_s1 + $0xb0] sm:$0xff] }
  0x53   : > { %12637 = vmatmul.mubr.f32.gmra.mxu0 %v16088_v14  ;;  %12838 = vmatpush3.msra.mxu1 %v1194_v23  ;;  %v16172_v23 = vld [vmem:[#allocation2 + $0x128] sm:$0xff] }
  0x54   : > { %12639 = vmatprep.mubr.f32.mxu0 %v16090_v17  ;;  %12763 = vmatprep.subr.mxu0 %v882_v33 }
  0x55   : > { %12720 = vmatmul.mubr.f32.gmra.mxu1 %v16088_v14  ;;  %12839 = vmatprep.subr.mxu1 %v1193_v34 }
  0x56   : > { %12722 = vmatprep.mubr.f32.mxu1 %v16090_v17  ;;  %12764 = vmatpush3.msra.mxu0 %v882_v33  ;;  %v16174_v33 = vld [vmem:[#allocation2 + $0x138] sm:$0xff] }
  0x57   : > { %12640 = vmatmul.mubr.f32.gmra.mxu0 %v16102_v24  ;;  %12840 = vmatpush3.msra.mxu1 %v1193_v34  ;;  %v877_v34 = vld [vmem:[%s22360_s1 + $0x318] sm:$0xff] }
  0x58   : > { %12642 = vmatprep.mubr.f32.mxu0 %v16104_v25  ;;  %12765 = vmatprep.subr.mxu0 %v881_v40 }
  0x59   : > { %12723 = vmatmul.mubr.f32.gmra.mxu1 %v16102_v24  ;;  %12841 = vmatprep.subr.mxu1 %v1192_v44 }
  0x5a   : > { %12725 = vmatprep.mubr.f32.mxu1 %v16104_v25  ;;  %12766 = vmatpush3.msra.mxu0 %v881_v40  ;;  %v1188_v40 = vld [vmem:[%s22360_s1 + $0xa8] sm:$0xff] }
  0x5b   : > { %12643 = vmatmul.mubr.f32.gmra.mxu0 %v16116_v38  ;;  %12842 = vmatpush3.msra.mxu1 %v1192_v44  ;;  %v16186_v44 = vld [vmem:[#allocation2 + $0x140] sm:$0xff] }
  0x5c   : > { %12645 = vmatprep.mubr.f32.mxu0 %v16118_v39  ;;  %12767 = vmatprep.subr.mxu0 %v880_v54 }
  0x5d   : > { %12726 = vmatmul.mubr.f32.gmra.mxu1 %v16116_v38  ;;  %12843 = vmatprep.subr.mxu1 %v1191_v58 }
  0x5e   : > { %12728 = vmatprep.mubr.f32.mxu1 %v16118_v39  ;;  %12768 = vmatpush3.msra.mxu0 %v880_v54  ;;  %v16188_v54 = vld [vmem:[#allocation2 + $0x150] sm:$0xff] }
  0x5f   : > { %12646 = vmatmul.mubr.f32.gmra.mxu0 %v16130_v49  ;;  %12844 = vmatpush3.msra.mxu1 %v1191_v58  ;;  %v876_v58 = vld [vmem:[%s22360_s1 + $0x310] sm:$0xff] }
  0x60   : > { %12648 = vmatprep.mubr.f32.mxu0 %v16132_v53  ;;  %12769 = vmatprep.subr.mxu0 %v879_v2 }
  0x61   : > { %12729 = vmatmul.mubr.f32.gmra.mxu1 %v16130_v49  ;;  %12845 = vmatprep.subr.mxu1 %v1190_v6 }
  0x62   : > { %12731 = vmatprep.mubr.f32.mxu1 %v16132_v53  ;;  %12770 = vmatpush3.msra.mxu0 %v879_v2  ;;  %v1187_v2 = vld [vmem:[%s22360_s1 + $0xa0] sm:$0xff] }
  0x63   : > { %12649 = vmatmul.mubr.f32.gmra.mxu0 %v16144_v62  ;;  %12846 = vmatpush3.msra.mxu1 %v1190_v6  ;;  %v16200_v6 = vld [vmem:[#allocation2 + $0x158] sm:$0xff] }
  0x64   : > { %12651 = vmatprep.mubr.f32.mxu0 %v16146_v0  ;;  %12771 = vmatprep.subr.mxu0 %v878_v13 }
  0x65   : > { %12732 = vmatmul.mubr.f32.gmra.mxu1 %v16144_v62  ;;  %12847 = vmatprep.subr.mxu1 %v1189_v19 }
  0x66   : > { %12734 = vmatprep.mubr.f32.mxu1 %v16146_v0  ;;  %12772 = vmatpush3.msra.mxu0 %v878_v13  ;;  %v16202_v13 = vld [vmem:[#allocation2 + $0x168] sm:$0xff] }
  0x67   : > { %12652 = vmatmul.mubr.f32.gmra.mxu0 %v16158_v7  ;;  %12848 = vmatpush3.msra.mxu1 %v1189_v19  ;;  %v875_v19 = vld [vmem:[%s22360_s1 + $0x308] sm:$0xff] }
  0x68   : > { %12654 = vmatprep.mubr.f32.mxu0 %v16160_v12  ;;  %12773 = vmatprep.subr.mxu0 %v877_v34 }
  0x69   : > { %12735 = vmatmul.mubr.f32.gmra.mxu1 %v16158_v7  ;;  %12849 = vmatprep.subr.mxu1 %v1188_v40 }
  0x6a   : > { %12737 = vmatprep.mubr.f32.mxu1 %v16160_v12  ;;  %12774 = vmatpush3.msra.mxu0 %v877_v34  ;;  %v1186_v34 = vld [vmem:[%s22360_s1 + $0x98] sm:$0xff] }
  0x6b   : > { %12655 = vmatmul.mubr.f32.gmra.mxu0 %v16172_v23  ;;  %12850 = vmatpush3.msra.mxu1 %v1188_v40  ;;  %v16214_v40 = vld [vmem:[#allocation2 + $0x170] sm:$0xff] }
  0x6c   : > { %12657 = vmatprep.mubr.f32.mxu0 %v16174_v33  ;;  %12775 = vmatprep.subr.mxu0 %v876_v58 }
  0x6d   : > { %12738 = vmatmul.mubr.f32.gmra.mxu1 %v16172_v23  ;;  %12851 = vmatprep.subr.mxu1 %v1187_v2 }
  0x6e   : > { %12740 = vmatprep.mubr.f32.mxu1 %v16174_v33  ;;  %12776 = vmatpush3.msra.mxu0 %v876_v58  ;;  %v16216_v58 = vld [vmem:[#allocation2 + $0x180] sm:$0xff] }
  0x6f   : > { %12658 = vmatmul.mubr.f32.gmra.mxu0 %v16186_v44  ;;  %12852 = vmatpush3.msra.mxu1 %v1187_v2  ;;  %v874_v2 = vld [vmem:[%s22360_s1 + $0x300] sm:$0xff] }
  0x70   : > { %12660 = vmatprep.mubr.f32.mxu0 %v16188_v54  ;;  %12777 = vmatprep.subr.mxu0 %v875_v19 }
  0x71   : > { %12741 = vmatmul.mubr.f32.gmra.mxu1 %v16186_v44  ;;  %12853 = vmatprep.subr.mxu1 %v1186_v34 }
  0x72   : > { %12743 = vmatprep.mubr.f32.mxu1 %v16188_v54  ;;  %12778 = vmatpush3.msra.mxu0 %v875_v19  ;;  %v1184_v19 = vld [vmem:[%s22360_s1 + $0x88] sm:$0xff] }
  0x73   : > { %12661 = vmatmul.mubr.f32.gmra.mxu0 %v16200_v6  ;;  %12854 = vmatpush3.msra.mxu1 %v1186_v34  ;;  %v1471_v34 = vld [vmem:[%s22360_s1 + $0x278] sm:$0xff] }
  0x74   : > { %12663 = vmatprep.mubr.f32.mxu0 %v16202_v13  ;;  %12779 = vmatprep.subr.mxu0 %v874_v2 }
  0x75   : > { %12744 = vmatmul.mubr.f32.gmra.mxu1 %v16200_v6  ;;  %12855 = vmatprep.subr.mxu1 %v1185_v59 }
  0x76   : > { %12746 = vmatprep.mubr.f32.mxu1 %v16202_v13  ;;  %12780 = vmatpush3.msra.mxu0 %v874_v2  ;;  %v1148_v2 = vld [vmem:[#allocation2 + $0x9] sm:$0xff] }
  0x77   : > { %12664 = vmatmul.mubr.f32.gmra.mxu0 %v16214_v40  ;;  %12856 = vmatpush3.msra.mxu1 %v1185_v59  ;;  %v1470_v59 = vld [vmem:[%s22360_s1 + $0x270] sm:$0xff] }
  0x78   : > { %12666 = vmatprep.mubr.f32.mxu0 %v16216_v58  ;;  %12857 = vmatprep.subr.mxu1 %v1184_v19 }
  0x79   : > { %12747 = vmatmul.mubr.f32.gmra.mxu1 %v16214_v40  ;;  %12909 = vmatprep.subr.mxu0 %v1471_v34 }
  0x7a   : > { %12858 = vmatpush3.msra.mxu1 %v1184_v19  ;;  %12861 = vmatprep.mubr.f32.mxu1 %v1147_v45  ;;  %v1467_v45 = vld [vmem:[%s22360_s1 + $0x258] sm:$0xff]  ;;  %v1729_v19 = vld [vmem:[%s22360_s1 + $0x380] sm:$0xff] }
  0x7b   : > { %12667 = vmatmul.mubr.f32.gmra.mxu0 %v16228_v57  ;;  %12859 = vmatprep.subr.mxu1 %v1183_v50 }
  0x7c   : > { %12781 = vmatprep.mubr.f32.mxu0 %v15986_v28  ;;  %12860 = vmatpush3.msra.mxu1 %v1183_v50  ;;  %v1468_v28 = vld [vmem:[%s22360_s1 + $0x260] sm:$0xff]  ;;  %v1742_v50 = vld [vmem:[%s22360_s1 + $0x3e8] sm:$0xff] }
  0x7d   : > { %12862 = vmatmul.mubr.f32.vlgmr.msra.gmra.mxu1 %v1148_v2  ;;  %v2052_v2 = vld [vmem:[%s22360_s1 + $0x170] sm:$0xff] }
  0x7e   : > { %15519 = vmatprep.mubr.msk.f32.mxu1 %vm290_vm0, %v15810_v15 }
  0x7f   : > { %12782 = vmatmul.mubr.f32.vlgmr.msra.gmra.mxu0 %v16014_v4  ;;  %v1744_v4 = vld [vmem:[%s22360_s1 + $0x3f8] sm:$0xff] }
  0x80   : > { %12910 = vmatpush3.msra.mxu0 %v1471_v34  ;;  %12784 = vmatprep.mubr.f32.mxu0 %v16021_v48  ;;  %v1743_v48 = vld [vmem:[%s22360_s1 + $0x3f0] sm:$0xff] }
  0x81   : > { %12911 = vmatprep.subr.mxu0 %v1470_v59  ;;  %15520 = vmatmul.mubr.msk.f32.gmra.mxu1 %vm290_vm0, %v15818_v18  ;;  %v22445_v34 = vld [vmem:[#allocation6_spill] sm:$0xff] }
  0x82   : > { %12912 = vmatpush3.msra.mxu0 %v1470_v59  ;;  %15521 = vmatprep.mubr.msk.f32.mxu1 %vm290_vm0, %v15826_v21  ;;  %v2326_v59 = vld [vmem:[%s22360_s1 + $0x2f8] sm:$0xff] }
  0x83   : > { %12785 = vmatmul.mubr.f32.gmra.mxu0 %v16043_v60  ;;  %12913 = vmatprep.subr.mxu0 %v1469_v43  ;;  %v1465_v60 = vld [vmem:[%s22360_s1 + $0x248] sm:$0xff] }
  0x84   : > { %12787 = vmatprep.mubr.f32.mxu0 %v16048_v63  ;;  %12914 = vmatpush3.msra.mxu0 %v1469_v43  ;;  %v1466_v43 = vld [vmem:[%s22360_s1 + $0x250] sm:$0xff]  ;;  %v1741_v63 = vld [vmem:[%s22360_s1 + $0x3e0] sm:$0xff] }
  0x85   : > { %12915 = vmatprep.subr.mxu0 %v1468_v28  ;;  %12989 = vmatprep.subr.mxu1 %v1744_v4 }
  0x86   : > { %12990 = vmatpush3.msra.mxu1 %v1744_v4  ;;  %12916 = vmatpush3.msra.mxu0 %v1468_v28  ;;  %v2318_v28 = vld [vmem:[%s22360_s1 + $0x2b8] sm:$0xff]  ;;  %v2313_v4 = vld [vmem:[%s22360_s1 + $0x290] sm:$0xff] }
  0x87   : > { %12788 = vmatmul.mubr.f32.gmra.mxu0 %v16060_v3  ;;  %15522 = vmatmul.mubr.msk.f32.gmra.mxu1 %vm290_vm0, %v15829_v22  ;;  %v1464_v3 = vld [vmem:[%s22360_s1 + $0x240] sm:$0xff] }
  0x88   : > { %12790 = vmatprep.mubr.f32.mxu0 %v16062_v5  ;;  %15523 = vmatprep.mubr.msk.f32.mxu1 %vm290_vm0, %v15839_v26  ;;  %v1740_v5 = vld [vmem:[%s22360_s1 + $0x3d8] sm:$0xff] }
  0x89   : > { %12917 = vmatprep.subr.mxu0 %v1467_v45  ;;  %12991 = vmatprep.subr.mxu1 %v1743_v48 }
  0x8a   : > { %12992 = vmatpush3.msra.mxu1 %v1743_v48  ;;  %12918 = vmatpush3.msra.mxu0 %v1467_v45  ;;  %v1181_v45 = vld [vmem:[#allocation2 + $0x199] sm:$0xff] }
  0x8b   : > { %12791 = vmatmul.mubr.f32.gmra.mxu0 %v16074_v9  ;;  %15524 = vmatmul.mubr.msk.f32.gmra.mxu1 %vm290_vm0, %v15842_v27  ;;  %v1463_v9 = vld [vmem:[%s22360_s1 + $0x238] sm:$0xff]  ;;  %v22447_v48 = vld [vmem:[#allocation8_spill] sm:$0xff] }
  0x8c   : > { %12793 = vmatprep.mubr.f32.mxu0 %v16076_v11  ;;  %15525 = vmatprep.mubr.msk.f32.mxu1 %vm290_vm0, %v15852_v31  ;;  %v1739_v11 = vld [vmem:[%s22360_s1 + $0x3d0] sm:$0xff] }
  0x8d   : > { %12919 = vmatprep.subr.mxu0 %v1466_v43  ;;  %12993 = vmatprep.subr.mxu1 %v1742_v50 }
  0x8e   : > { %12994 = vmatpush3.msra.mxu1 %v1742_v50  ;;  %12920 = vmatpush3.msra.mxu0 %v1466_v43  ;;  %v2312_v43 = vld [vmem:[%s22360_s1 + $0x288] sm:$0xff] }
  0x8f   : > { %12794 = vmatmul.mubr.f32.gmra.mxu0 %v16088_v14  ;;  %15526 = vmatmul.mubr.msk.f32.gmra.mxu1 %vm290_vm0, %v15855_v32  ;;  %v1462_v14 = vld [vmem:[%s22360_s1 + $0x230] sm:$0xff]  ;;  %v1182_v50 = vld [vmem:[#allocation2 + $0x1a1] sm:$0xff] }
  0x90   : > { %12796 = vmatprep.mubr.f32.mxu0 %v16090_v17  ;;  %15527 = vmatprep.mubr.msk.f32.mxu1 %vm290_vm0, %v15865_v36  ;;  %v1738_v17 = vld [vmem:[%s22360_s1 + $0x3c8] sm:$0xff] }
  0x91   : > { %12921 = vmatprep.subr.mxu0 %v1465_v60  ;;  %12995 = vmatprep.subr.mxu1 %v1741_v63 }
  0x92   : > { %12996 = vmatpush3.msra.mxu1 %v1741_v63  ;;  %12922 = vmatpush3.msra.mxu0 %v1465_v60  ;;  %v2002_v60 = vld [vmem:[#allocation2 + $0x2] sm:$0xff]  ;;  %v2599_v63 = vld [vmem:[%s22360_s1 + $0x478] sm:$0xff] }
  0x93   : > { %12797 = vmatmul.mubr.f32.gmra.mxu0 %v16102_v24  ;;  %15528 = vmatmul.mubr.msk.f32.gmra.mxu1 %vm290_vm0, %v15868_v37  ;;  %v1461_v24 = vld [vmem:[%s22360_s1 + $0x228] sm:$0xff] }
  0x94   : > { %12799 = vmatprep.mubr.f32.mxu0 %v16104_v25  ;;  %15529 = vmatprep.mubr.msk.f32.mxu1 %vm290_vm0, %v15878_v41  ;;  %v1737_v25 = vld [vmem:[%s22360_s1 + $0x3c0] sm:$0xff] }
  0x95   : > { %12923 = vmatprep.subr.mxu0 %v1464_v3  ;;  %12997 = vmatprep.subr.mxu1 %v1740_v5 }
  0x96   : > { %12998 = vmatpush3.msra.mxu1 %v1740_v5  ;;  %12924 = vmatpush3.msra.mxu0 %v1464_v3  ;;  %v2311_v3 = vld [vmem:[%s22360_s1 + $0x280] sm:$0xff] }
  0x97   : > { %12800 = vmatmul.mubr.f32.gmra.mxu0 %v16116_v38  ;;  %15530 = vmatmul.mubr.msk.f32.gmra.mxu1 %vm290_vm0, %v15881_v42  ;;  %v1460_v38 = vld [vmem:[%s22360_s1 + $0x220] sm:$0xff] }
  0x98   : > { %12802 = vmatprep.mubr.f32.mxu0 %v16118_v39  ;;  %15531 = vmatprep.mubr.msk.f32.mxu1 %vm290_vm0, %v15891_v46  ;;  %v1736_v39 = vld [vmem:[%s22360_s1 + $0x3b8] sm:$0xff] }
  0x99   : > { %12925 = vmatprep.subr.mxu0 %v1463_v9  ;;  %12999 = vmatprep.subr.mxu1 %v1739_v11  ;;  %v2004_v5 = vld [vmem:[#allocation2 + $0x1a] sm:$0xff] }
  0x9a   : > { %13000 = vmatpush3.msra.mxu1 %v1739_v11  ;;  %12926 = vmatpush3.msra.mxu0 %v1463_v9  ;;  %v2003_v9 = vld [vmem:[#allocation2 + $0xa] sm:$0xff]  ;;  %v2005_v11 = vld [vmem:[#allocation2 + $0x22] sm:$0xff] }
  0x9b   : > { %12803 = vmatmul.mubr.f32.gmra.mxu0 %v16130_v49  ;;  %15532 = vmatmul.mubr.msk.f32.gmra.mxu1 %vm290_vm0, %v15894_v47  ;;  %v1459_v49 = vld [vmem:[%s22360_s1 + $0x218] sm:$0xff] }
  0x9c   : > { %12805 = vmatprep.mubr.f32.mxu0 %v16132_v53  ;;  %15533 = vmatprep.mubr.msk.f32.mxu1 %vm290_vm0, %v15904_v51  ;;  %v1735_v53 = vld [vmem:[%s22360_s1 + $0x3b0] sm:$0xff] }
  0x9d   : > { %12927 = vmatprep.subr.mxu0 %v1462_v14  ;;  %13001 = vmatprep.subr.mxu1 %v1738_v17 }
  0x9e   : > { %13002 = vmatpush3.msra.mxu1 %v1738_v17  ;;  %12928 = vmatpush3.msra.mxu0 %v1462_v14  ;;  %v2598_v14 = vld [vmem:[%s22360_s1 + $0x470] sm:$0xff] }
  0x9f   : > { %12806 = vmatmul.mubr.f32.gmra.mxu0 %v16144_v62  ;;  %15534 = vmatmul.mubr.msk.f32.gmra.mxu1 %vm290_vm0, %v15907_v52  ;;  %v1458_v62 = vld [vmem:[%s22360_s1 + $0x210] sm:$0xff] }
  0xa0   : > { %12808 = vmatprep.mubr.f32.mxu0 %v16146_v0  ;;  %15535 = vmatprep.mubr.msk.f32.mxu1 %vm290_vm0, %v15914_v55  ;;  %v1734_v0 = vld [vmem:[%s22360_s1 + $0x3a8] sm:$0xff] }
  0xa1   : > { %12929 = vmatprep.subr.mxu0 %v1461_v24  ;;  %13003 = vmatprep.subr.mxu1 %v1737_v25 }
  0xa2   : > { %13004 = vmatpush3.msra.mxu1 %v1737_v25  ;;  %12930 = vmatpush3.msra.mxu0 %v1461_v24  ;;  %v16648_v25 = vld [vmem:[#allocation2 + $0x32] sm:$0xff] }
  0xa3   : > { %12809 = vmatmul.mubr.f32.gmra.mxu0 %v16158_v7  ;;  %15536 = vmatmul.mubr.msk.f32.gmra.mxu1 %vm290_vm0, %v15917_v56  ;;  %v1457_v7 = vld [vmem:[%s22360_s1 + $0x208] sm:$0xff] }
  0xa4   : > { %12811 = vmatprep.mubr.f32.mxu0 %v16160_v12  ;;  %15537 = vmatprep.mubr.msk.f32.mxu1 %vm290_vm0, %v15930_v61  ;;  %v1733_v12 = vld [vmem:[%s22360_s1 + $0x3a0] sm:$0xff] }
  0xa5   : > { %12931 = vmatprep.subr.mxu0 %v1460_v38  ;;  %13005 = vmatprep.subr.mxu1 %v1736_v39 }
  0xa6   : > { %13006 = vmatpush3.msra.mxu1 %v1736_v39  ;;  %12932 = vmatpush3.msra.mxu0 %v1460_v38  ;;  %v2597_v39 = vld [vmem:[%s22360_s1 + $0x468] sm:$0xff] }
  0xa7   : > { %12812 = vmatmul.mubr.f32.gmra.mxu0 %v16172_v23  ;;  %15538 = vmatmul.mubr.msk.f32.gmra.mxu1 %vm290_vm0, %v15941_v1  ;;  %v1732_v23 = vld [vmem:[%s22360_s1 + $0x398] sm:$0xff] }
  0xa8   : > { %12814 = vmatprep.mubr.f32.mxu0 %v16174_v33  ;;  %15539 = vmatprep.mubr.msk.f32.mxu1 %vm290_vm0, %v15958_v8  ;;  %v1456_v33 = vld [vmem:[%s22360_s1 + $0x200] sm:$0xff] }
  0xa9   : > { %12933 = vmatprep.subr.mxu0 %v1459_v49  ;;  %13007 = vmatprep.subr.mxu1 %v1735_v53 }
  0xaa   : > { %13008 = vmatpush3.msra.mxu1 %v1735_v53  ;;  %12934 = vmatpush3.msra.mxu0 %v1459_v49 }
  0xab   : > { %12815 = vmatmul.mubr.f32.gmra.mxu0 %v16186_v44  ;;  %15540 = vmatmul.mubr.msk.f32.gmra.mxu1 %vm290_vm0, %v15963_v10  ;;  %v390_v44 = vld [vmem:[#allocation2 + $0x198] sm:$0xff] }
  0xac   : > { %12817 = vmatprep.mubr.f32.mxu0 %v16188_v54  ;;  %15541 = vmatprep.mubr.msk.f32.mxu1 %vm290_vm0, %v15974_v16  ;;  %v1731_v54 = vld [vmem:[%s22360_s1 + $0x390] sm:$0xff] }
  0xad   : > { %12935 = vmatprep.subr.mxu0 %v1458_v62  ;;  %13009 = vmatprep.subr.mxu1 %v1734_v0 }
  0xae   : > { %13010 = vmatpush3.msra.mxu1 %v1734_v0  ;;  %12936 = vmatpush3.msra.mxu0 %v1458_v62  ;;  %v16655_v62 = vld [vmem:[#allocation2 + $0x3a] sm:$0xff] }
  0xaf   : > { %12818 = vmatmul.mubr.f32.gmra.mxu0 %v16200_v6  ;;  %15542 = vmatmul.mubr.msk.f32.gmra.mxu1 %vm290_vm0, %v15979_v20  ;;  %v22443_v6 = vld [vmem:[#allocation4_spill] sm:$0xff] }
  0xb0   : > { %12820 = vmatprep.mubr.f32.mxu0 %v16202_v13  ;;  %15543 = vmatprep.mubr.msk.f32.mxu1 %vm290_vm0, %v15989_v29  ;;  %v1730_v13 = vld [vmem:[%s22360_s1 + $0x388] sm:$0xff] }
  0xb1   : > { %12937 = vmatprep.subr.mxu0 %v1457_v7  ;;  %13011 = vmatprep.subr.mxu1 %v1733_v12 }
  0xb2   : > { %13012 = vmatpush3.msra.mxu1 %v1733_v12  ;;  %12938 = vmatpush3.msra.mxu0 %v1457_v7  ;;  %v16660_v7 = vld [vmem:[#allocation2 + $0x4a] sm:$0xff] }
  0xb3   : > { %12821 = vmatmul.mubr.f32.gmra.mxu0 %v16214_v40  ;;  %15544 = vmatmul.mubr.msk.f32.gmra.mxu1 %vm290_vm0, %v15992_v30  ;;  %v22444_v40 = vld [vmem:[#allocation5_spill] sm:$0xff] }
  0xb4   : > { %12823 = vmatprep.mubr.f32.mxu0 %v16216_v58  ;;  %15545 = vmatprep.mubr.msk.f32.mxu1 %vm290_vm0, %v15999_v35  ;;  %v2053_v58 = vld [vmem:[%s22360_s1 + $0x178] sm:$0xff] }
  0xb5   : > { %13013 = vmatprep.subr.mxu1 %v1732_v23  ;;  %12939 = vmatprep.subr.mxu0 %v1456_v33 }
  0xb6   : > { %13014 = vmatpush3.msra.mxu1 %v1732_v23  ;;  %12940 = vmatpush3.msra.mxu0 %v1456_v33  ;;  %v2596_v33 = vld [vmem:[%s22360_s1 + $0x460] sm:$0xff] }
  0xb7   : > { %12824 = vmatmul.mubr.f32.gmra.mxu0 %v16228_v57  ;;  %15546 = vmatmul.mubr.msk.f32.gmra.mxu1 %vm290_vm0, %v22443_v6  ;;  %v15478_v57 = vld [vmem:[#allocation2 + $0x8] sm:$0xff] }
  0xb8   : > { %12826 = vmatprep.mubr.f32.mxu0 %v390_v44  ;;  %13015 = vmatprep.subr.mxu1 %v1731_v54 }
  0xb9   : > { %15547 = vmatprep.mubr.msk.f32.mxu1 %vm290_vm0, %v22444_v40  ;;  %13016 = vmatpush3.msra.mxu1 %v1731_v54 }
  0xba   : > { %13017 = vmatprep.subr.mxu1 %v1730_v13  ;;  %13069 = vmatprep.subr.mxu0 %v2053_v58 }
  0xbb   : > { %12827 = vmatmul.mubr.f32.gmra.mxu0 %v15478_v57  ;;  %15548 = vmatmul.mubr.msk.f32.gmra.mxu1 %vm290_vm0, %v22445_v34 }
  0xbc   : > { %15549 = vmatprep.mubr.msk.f32.mxu0 %vm290_vm0, %v15810_v15  ;;  %13018 = vmatpush3.msra.mxu1 %v1730_v13  ;;  %v2051_v15 = vld [vmem:[%s22360_s1 + $0x168] sm:$0xff]  ;;  %v16670_v13 = vld [vmem:[#allocation2 + $0x52] sm:$0xff] }
  0xbd   : > { %13019 = vmatprep.subr.mxu1 %v1729_v19  ;;  %15550 = vmatprep.mubr.msk.f32.mxu1 %vm290_vm0, %v15826_v21 }
  0xbe   : > { %13020 = vmatpush3.msra.mxu1 %v1729_v19 }
  0xbf   : > { %15551 = vmatmul.mubr.msk.f32.vlgmr.msra.gmra.mxu0 %vm290_vm0, %v15818_v18  ;;  %15552 = vmatmul.mubr.msk.f32.vlgmr.msra.gmra.mxu1 %vm290_vm0, %v15829_v22  ;;  %v2050_v18 = vld [vmem:[%s22360_s1 + $0x160] sm:$0xff] }
  0xc0   : > { %13070 = vmatpush3.msra.mxu0 %v2053_v58  ;;  %15553 = vmatprep.mubr.msk.f32.mxu0 %vm290_vm0, %v15826_v21  ;;  %v2049_v21 = vld [vmem:[%s22360_s1 + $0x158] sm:$0xff]  ;;  %v16674_v58 = vld [vmem:[#allocation2 + $0x62] sm:$0xff] }
  0xc1   : > { %13071 = vmatprep.subr.mxu0 %v2052_v2  ;;  %15554 = vmatprep.mubr.msk.f32.mxu1 %vm290_vm0, %v15839_v26 }
  0xc2   : > { %13072 = vmatpush3.msra.mxu0 %v2052_v2  ;;  %13149 = vmatprep.subr.mxu1 %v2326_v59 }
  0xc3   : > { %15555 = vmatmul.mubr.msk.f32.gmra.mxu0 %vm290_vm0, %v15829_v22  ;;  %13073 = vmatprep.subr.mxu0 %v2051_v15  ;;  %v2325_v22 = vld [vmem:[%s22360_s1 + $0x2f0] sm:$0xff] }
  0xc4   : > { %15556 = vmatmul.mubr.msk.f32.gmra.mxu1 %vm290_vm0, %v15842_v27  ;;  %15557 = vmatprep.mubr.msk.f32.mxu0 %vm290_vm0, %v15839_v26  ;;  %v2048_v26 = vld [vmem:[%s22360_s1 + $0x150] sm:$0xff] }
  0xc5   : > { %15558 = vmatprep.mubr.msk.f32.mxu1 %vm290_vm0, %v15852_v31  ;;  %13074 = vmatpush3.msra.mxu0 %v2051_v15 }
  0xc6   : > { %13075 = vmatprep.subr.mxu0 %v2050_v18  ;;  %13150 = vmatpush3.msra.mxu1 %v2326_v59  ;;  %v16685_v59 = vld [vmem:[#allocation2 + $0x6a] sm:$0xff] }
  0xc7   : > { %15559 = vmatmul.mubr.msk.f32.gmra.mxu0 %vm290_vm0, %v15842_v27  ;;  %13151 = vmatprep.subr.mxu1 %v2325_v22  ;;  %v2324_v27 = vld [vmem:[%s22360_s1 + $0x2e8] sm:$0xff] }
  0xc8   : > { %15560 = vmatmul.mubr.msk.f32.gmra.mxu1 %vm290_vm0, %v15855_v32  ;;  %15561 = vmatprep.mubr.msk.f32.mxu0 %vm290_vm0, %v15852_v31  ;;  %v2047_v31 = vld [vmem:[%s22360_s1 + $0x148] sm:$0xff] }
  0xc9   : > { %15562 = vmatprep.mubr.msk.f32.mxu1 %vm290_vm0, %v15865_v36  ;;  %13076 = vmatpush3.msra.mxu0 %v2050_v18 }
  0xca   : > { %13077 = vmatprep.subr.mxu0 %v2049_v21  ;;  %13152 = vmatpush3.msra.mxu1 %v2325_v22  ;;  %v16689_v22 = vld [vmem:[#allocation2 + $0x7a] sm:$0xff] }
  0xcb   : > { %15563 = vmatmul.mubr.msk.f32.gmra.mxu0 %vm290_vm0, %v15855_v32  ;;  %13153 = vmatprep.subr.mxu1 %v2324_v27  ;;  %v2323_v32 = vld [vmem:[%s22360_s1 + $0x2e0] sm:$0xff] }
  0xcc   : > { %15564 = vmatmul.mubr.msk.f32.gmra.mxu1 %vm290_vm0, %v15868_v37  ;;  %15565 = vmatprep.mubr.msk.f32.mxu0 %vm290_vm0, %v15865_v36  ;;  %v2046_v36 = vld [vmem:[%s22360_s1 + $0x140] sm:$0xff] }
  0xcd   : > { %15566 = vmatprep.mubr.msk.f32.mxu1 %vm290_vm0, %v15878_v41  ;;  %13078 = vmatpush3.msra.mxu0 %v2049_v21 }
  0xce   : > { %13079 = vmatprep.subr.mxu0 %v2048_v26  ;;  %13154 = vmatpush3.msra.mxu1 %v2324_v27 }
  0xcf   : > { %15567 = vmatmul.mubr.msk.f32.gmra.mxu0 %vm290_vm0, %v15868_v37  ;;  %13155 = vmatprep.subr.mxu1 %v2323_v32  ;;  %v2322_v37 = vld [vmem:[%s22360_s1 + $0x2d8] sm:$0xff] }
  0xd0   : > { %15568 = vmatmul.mubr.msk.f32.gmra.mxu1 %vm290_vm0, %v15881_v42  ;;  %15569 = vmatprep.mubr.msk.f32.mxu0 %vm290_vm0, %v15878_v41  ;;  %v2045_v41 = vld [vmem:[%s22360_s1 + $0x138] sm:$0xff] }
  0xd1   : > { %15570 = vmatprep.mubr.msk.f32.mxu1 %vm290_vm0, %v15891_v46  ;;  %13080 = vmatpush3.msra.mxu0 %v2048_v26 }
  0xd2   : > { %13081 = vmatprep.subr.mxu0 %v2047_v31  ;;  %13156 = vmatpush3.msra.mxu1 %v2323_v32 }
  0xd3   : > { %15571 = vmatmul.mubr.msk.f32.gmra.mxu0 %vm290_vm0, %v15881_v42  ;;  %13157 = vmatprep.subr.mxu1 %v2322_v37  ;;  %v2321_v42 = vld [vmem:[%s22360_s1 + $0x2d0] sm:$0xff] }
  0xd4   : > { %15572 = vmatmul.mubr.msk.f32.gmra.mxu1 %vm290_vm0, %v15894_v47  ;;  %15573 = vmatprep.mubr.msk.f32.mxu0 %vm290_vm0, %v15891_v46  ;;  %v2044_v46 = vld [vmem:[%s22360_s1 + $0x130] sm:$0xff] }
  0xd5   : > { %15574 = vmatprep.mubr.msk.f32.mxu1 %vm290_vm0, %v15904_v51  ;;  %13082 = vmatpush3.msra.mxu0 %v2047_v31  ;;  %v2594_v31 = vld [vmem:[%s22360_s1 + $0x450] sm:$0xff] }
  0xd6   : > { %13083 = vmatprep.subr.mxu0 %v2046_v36  ;;  %13158 = vmatpush3.msra.mxu1 %v2322_v37 }
  0xd7   : > { %15575 = vmatmul.mubr.msk.f32.gmra.mxu0 %vm290_vm0, %v15894_v47  ;;  %13159 = vmatprep.subr.mxu1 %v2321_v42  ;;  %v2320_v47 = vld [vmem:[%s22360_s1 + $0x2c8] sm:$0xff] }
  0xd8   : > { %15576 = vmatmul.mubr.msk.f32.gmra.mxu1 %vm290_vm0, %v15907_v52  ;;  %15577 = vmatprep.mubr.msk.f32.mxu0 %vm290_vm0, %v15904_v51  ;;  %v15479_v51 = vld [vmem:[#allocation2 + $0xe1] sm:$0xff] }
  0xd9   : > { %15578 = vmatprep.mubr.msk.f32.mxu1 %vm290_vm0, %v15914_v55  ;;  %13084 = vmatpush3.msra.mxu0 %v2046_v36 }
  0xda   : > { %13085 = vmatprep.subr.mxu0 %v2045_v41  ;;  %13160 = vmatpush3.msra.mxu1 %v2321_v42 }
  0xdb   : > { %15579 = vmatmul.mubr.msk.f32.gmra.mxu0 %vm290_vm0, %v15907_v52  ;;  %13161 = vmatprep.subr.mxu1 %v2320_v47  ;;  %v2043_v52 = vld [vmem:[%s22360_s1 + $0x128] sm:$0xff] }
  0xdc   : > { %15580 = vmatmul.mubr.msk.f32.gmra.mxu1 %vm290_vm0, %v15917_v56  ;;  %15581 = vmatprep.mubr.msk.f32.mxu0 %vm290_vm0, %v15914_v55  ;;  %v2319_v56 = vld [vmem:[%s22360_s1 + $0x2c0] sm:$0xff] }
  0xdd   : > { %15582 = vmatprep.mubr.msk.f32.mxu1 %vm290_vm0, %v15930_v61  ;;  %13086 = vmatpush3.msra.mxu0 %v2045_v41  ;;  %v2042_v55 = vld [vmem:[%s22360_s1 + $0x120] sm:$0xff] }
  0xde   : > { %13087 = vmatprep.subr.mxu0 %v2044_v46  ;;  %13162 = vmatpush3.msra.mxu1 %v2320_v47  ;;  %v16700_v41 = vld [vmem:[#allocation2 + $0x82] sm:$0xff] }
  0xdf   : > { %12966 = vmatmul.mubr.f32.gmra.mxu0 %v15479_v51  ;;  %13163 = vmatprep.subr.mxu1 %v2319_v56 }
  0xe0   : > { %15583 = vmatmul.mubr.msk.f32.gmra.mxu1 %vm290_vm0, %v15941_v1  ;;  %15584 = vmatprep.mubr.msk.f32.mxu0 %vm290_vm0, %v15930_v61  ;;  %v2041_v61 = vld [vmem:[%s22360_s1 + $0x118] sm:$0xff] }
  0xe1   : > { %15585 = vmatprep.mubr.msk.f32.mxu1 %vm290_vm0, %v15958_v8  ;;  %13088 = vmatpush3.msra.mxu0 %v2044_v46  ;;  %v16704_v46 = vld [vmem:[#allocation2 + $0x92] sm:$0xff] }
  0xe2   : > { %13089 = vmatprep.subr.mxu0 %v2043_v52  ;;  %13164 = vmatpush3.msra.mxu1 %v2319_v56 }
  0xe3   : > { %15586 = vmatmul.mubr.msk.f32.gmra.mxu0 %vm290_vm0, %v15941_v1  ;;  %13165 = vmatprep.subr.mxu1 %v2318_v28  ;;  %v2317_v1 = vld [vmem:[%s22360_s1 + $0x2b0] sm:$0xff] }
  0xe4   : > { %15587 = vmatmul.mubr.msk.f32.gmra.mxu1 %vm290_vm0, %v15963_v10  ;;  %15588 = vmatprep.mubr.msk.f32.mxu0 %vm290_vm0, %v15958_v8  ;;  %v2040_v8 = vld [vmem:[%s22360_s1 + $0x110] sm:$0xff] }
  0xe5   : > { %15589 = vmatprep.mubr.msk.f32.mxu1 %vm290_vm0, %v15974_v16  ;;  %13090 = vmatpush3.msra.mxu0 %v2043_v52  ;;  %v2593_v52 = vld [vmem:[%s22360_s1 + $0x448] sm:$0xff] }
  0xe6   : > { %13091 = vmatprep.subr.mxu0 %v2042_v55  ;;  %13166 = vmatpush3.msra.mxu1 %v2318_v28 }
  0xe7   : > { %15590 = vmatmul.mubr.msk.f32.gmra.mxu0 %vm290_vm0, %v15963_v10  ;;  %13167 = vmatprep.subr.mxu1 %v2317_v1  ;;  %v2316_v10 = vld [vmem:[%s22360_s1 + $0x2a8] sm:$0xff] }
  0xe8   : > { %15591 = vmatmul.mubr.msk.f32.gmra.mxu1 %vm290_vm0, %v15979_v20  ;;  %15592 = vmatprep.mubr.msk.f32.mxu0 %vm290_vm0, %v15974_v16  ;;  %v2039_v16 = vld [vmem:[%s22360_s1 + $0x108] sm:$0xff] }
  0xe9   : > { %15593 = vmatprep.mubr.msk.f32.mxu1 %vm290_vm0, %v15989_v29  ;;  %13092 = vmatpush3.msra.mxu0 %v2042_v55 }
  0xea   : > { %13093 = vmatprep.subr.mxu0 %v2041_v61  ;;  %13168 = vmatpush3.msra.mxu1 %v2317_v1 }
  0xeb   : > { %15594 = vmatmul.mubr.msk.f32.gmra.mxu0 %vm290_vm0, %v15979_v20  ;;  %13169 = vmatprep.subr.mxu1 %v2316_v10  ;;  %v2315_v20 = vld [vmem:[%s22360_s1 + $0x2a0] sm:$0xff] }
  0xec   : > { %15595 = vmatmul.mubr.msk.f32.gmra.mxu1 %vm290_vm0, %v15992_v30  ;;  %15596 = vmatprep.mubr.msk.f32.mxu0 %vm290_vm0, %v15989_v29  ;;  %v2314_v29 = vld [vmem:[%s22360_s1 + $0x298] sm:$0xff] }
  0xed   : > { %15597 = vmatprep.mubr.msk.f32.mxu1 %vm290_vm0, %v15999_v35  ;;  %13094 = vmatpush3.msra.mxu0 %v2041_v61  ;;  %v16715_v61 = vld [vmem:[#allocation2 + $0x9a] sm:$0xff] }
  0xee   : > { %13095 = vmatprep.subr.mxu0 %v2040_v8  ;;  %13170 = vmatpush3.msra.mxu1 %v2316_v10 }
  0xef   : > { %15598 = vmatmul.mubr.msk.f32.gmra.mxu0 %vm290_vm0, %v15992_v30  ;;  %13171 = vmatprep.subr.mxu1 %v2315_v20  ;;  %v2038_v30 = vld [vmem:[%s22360_s1 + $0x100] sm:$0xff] }
  0xf0   : > { %15599 = vmatmul.mubr.msk.f32.gmra.mxu1 %vm290_vm0, %v22443_v6  ;;  %15600 = vmatprep.mubr.msk.f32.mxu0 %vm290_vm0, %v15999_v35  ;;  %v22446_v35 = vld [vmem:[#allocation7_spill] sm:$0xff] }
  0xf1   : > { %15601 = vmatprep.mubr.msk.f32.mxu1 %vm290_vm0, %v22444_v40  ;;  %13096 = vmatpush3.msra.mxu0 %v2040_v8  ;;  %v16719_v8 = vld [vmem:[#allocation2 + $0xaa] sm:$0xff] }
  0xf2   : > { %13097 = vmatprep.subr.mxu0 %v2039_v16  ;;  %13172 = vmatpush3.msra.mxu1 %v2315_v20  ;;  %v2592_v20 = vld [vmem:[%s22360_s1 + $0x440] sm:$0xff] }
  0xf3   : > { %15602 = vmatmul.mubr.msk.f32.gmra.mxu0 %vm290_vm0, %v22443_v6  ;;  %13173 = vmatprep.subr.mxu1 %v2314_v29 }
  0xf4   : > { %15603 = vmatmul.mubr.msk.f32.gmra.mxu1 %vm290_vm0, %v22445_v34  ;;  %15604 = vmatprep.mubr.msk.f32.mxu0 %vm290_vm0, %v22444_v40 }
  0xf5   : > { %15605 = vmatprep.mubr.msk.f32.mxu1 %vm290_vm0, %v22446_v35  ;;  %13098 = vmatpush3.msra.mxu0 %v2039_v16 }
  0xf6   : > { %13099 = vmatprep.subr.mxu0 %v2038_v30  ;;  %13174 = vmatpush3.msra.mxu1 %v2314_v29 }
  0xf7   : > { %15606 = vmatmul.mubr.msk.f32.gmra.mxu0 %vm290_vm0, %v22445_v34  ;;  %13175 = vmatprep.subr.mxu1 %v2313_v4  ;;  %v2595_v34 = vld [vmem:[%s22360_s1 + $0x458] sm:$0xff] }
  0xf8   : > { %15607 = vmatmul.mubr.msk.f32.gmra.mxu1 %vm290_vm0, %v22447_v48  ;;  %15608 = vmatprep.mubr.msk.f32.mxu0 %vm290_vm0, %v22446_v35 }
  0xf9   : > { %13066 = vmatprep.mubr.f32.mxu1 %v1181_v45  ;;  %13100 = vmatpush3.msra.mxu0 %v2038_v30 }
  0xfa   : > { %13176 = vmatpush3.msra.mxu1 %v2313_v4  ;;  %13229 = vmatprep.subr.mxu0 %v2599_v63  ;;  %v16730_v4 = vld [vmem:[#allocation2 + $0xb2] sm:$0xff] }
  0xfb   : > { %15609 = vmatmul.mubr.msk.f32.gmra.mxu0 %vm290_vm0, %v22447_v48  ;;  %13177 = vmatprep.subr.mxu1 %v2312_v43  ;;  %v12703_v24 = vpop.f32.mrf.mxu1  ;;  %v16734_v48 = vld [vmem:[#allocation2 + $0xc2] sm:$0xff] }
  0xfc   : > { %13067 = vmatmul.mubr.f32.gmra.mxu1 %v1182_v50  ;;  %13101 = vmatprep.mubr.f32.mxu0 %v2002_v60  ;;  %v2591_v60 = vld [vmem:[%s22360_s1 + $0x438] sm:$0xff] }
  0xfd   : > { %13178 = vmatpush3.msra.mxu1 %v2312_v43  ;;  %13181 = vmatprep.mubr.f32.mxu1 %v2004_v5  ;;  %v715_v53 = vpop.f32.mrf.mxu1 }
  0xfe   : > { %13179 = vmatprep.subr.mxu1 %v2311_v3 }
  0xff   : > { %v12623_v17 = vpop.f32.mrf.mxu0  ;;  %13102 = vmatmul.mubr.f32.vlgmr.msra.gmra.mxu0 %v2003_v9  ;;  %13180 = vmatpush3.msra.mxu1 %v2311_v3  ;;  %v12706_v23 = vpop.f32.mrf.mxu1  ;;  %v16745_v9 = vld [vmem:[#allocation2 + $0xca] sm:$0xff] }
 0x100   : > { %v16650_v38 = vadd.f32 %v12703_v24, %v12623_v17  ;;  %13230 = vmatpush3.msra.mxu0 %v2599_v63  ;;  %13182 = vmatmul.mubr.f32.vlgmr.msra.gmra.mxu1 %v2005_v11 }
 0x101   : > { %v490_v49 = vpop.f32.mrf.mxu0  ;;  %13104 = vmatprep.mubr.f32.mxu0 %v2004_v5  ;;  %13231 = vmatprep.subr.mxu0 %v2598_v14  ;;  %v725_v6 = vpop.f32.mrf.mxu1 }
 0x102   : > { %v16657_v0 = vadd.f32 %v715_v53, %v490_v49  ;;  %13184 = vmatprep.mubr.f32.mxu1 %v16648_v25  ;;  %13232 = vmatpush3.msra.mxu0 %v2598_v14  ;;  %v16749_v14 = vld [vmem:[#allocation2 + $0xda] sm:$0xff] }
 0x103   : > { %v12626_v12 = vpop.f32.mrf.mxu0  ;;  %13105 = vmatmul.mubr.f32.gmra.mxu0 %v2005_v11  ;;  %13233 = vmatprep.subr.mxu0 %v2597_v39 }
 0x104   : > { %v16665_v44 = vadd.f32 %v12706_v23, %v12626_v12  ;;  %13185 = vmatmul.mubr.f32.gmra.mxu1 %v16655_v62  ;;  %13107 = vmatprep.mubr.f32.mxu0 %v16648_v25  ;;  %v16760_v23 = vld [vmem:[#allocation2 + $0xe2] sm:$0xff] }
 0x105   : > { %v500_v54 = vpop.f32.mrf.mxu0  ;;  %13187 = vmatprep.mubr.f32.mxu1 %v16660_v7  ;;  %13234 = vmatpush3.msra.mxu0 %v2597_v39  ;;  %v12709_v19 = vpop.f32.mrf.mxu1  ;;  %v2590_v39 = vld [vmem:[%s22360_s1 + $0x430] sm:$0xff] }
 0x106   : > { %v16672_v40 = vadd.f32 %v725_v6, %v500_v54  ;;  %13235 = vmatprep.subr.mxu0 %v2596_v33  ;;  %v16764_v54 = vld [vmem:[#allocation2 + $0xf2] sm:$0xff] }
 0x107   : > { %v12629_v57 = vpop.f32.mrf.mxu0  ;;  %13108 = vmatmul.mubr.f32.gmra.mxu0 %v16655_v62  ;;  %v735_v18 = vpop.f32.mrf.mxu1 }
 0x108   : > { %v16680_v2 = vadd.f32 %v12709_v19, %v12629_v57  ;;  %13188 = vmatmul.mubr.f32.gmra.mxu1 %v16670_v13  ;;  %13110 = vmatprep.mubr.f32.mxu0 %v16660_v7  ;;  %v2589_v19 = vld [vmem:[%s22360_s1 + $0x428] sm:$0xff] }
 0x109   : > { %v510_v15 = vpop.f32.mrf.mxu0  ;;  %13190 = vmatprep.mubr.f32.mxu1 %v16674_v58  ;;  %13236 = vmatpush3.msra.mxu0 %v2596_v33  ;;  %v12712_v27 = vpop.f32.mrf.mxu1 }
 0x10a   : > { %v16687_v21 = vadd.f32 %v735_v18, %v510_v15  ;;  %13237 = vmatprep.subr.mxu0 %v2595_v34 }
 0x10b   : > { %v12632_v26 = vpop.f32.mrf.mxu0  ;;  %13111 = vmatmul.mubr.f32.gmra.mxu0 %v16670_v13  ;;  %v745_v37 = vpop.f32.mrf.mxu1 }
 0x10c   : > { %v16695_v32 = vadd.f32 %v12712_v27, %v12632_v26  ;;  %13191 = vmatmul.mubr.f32.gmra.mxu1 %v16685_v59  ;;  %13113 = vmatprep.mubr.f32.mxu0 %v16674_v58  ;;  %v16779_v26 = vld [vmem:[#allocation2 + $0xfa] sm:$0xff]  ;;  %v16781_v27 = vld [vmem:[#allocation2 + $0x10a] sm:$0xff] }
 0x10d   : > { %v520_v36 = vpop.f32.mrf.mxu0  ;;  %13193 = vmatprep.mubr.f32.mxu1 %v16689_v22  ;;  %13238 = vmatpush3.msra.mxu0 %v2595_v34  ;;  %v12715_v51 = vpop.f32.mrf.mxu1 }
 0x10e   : > { %v16702_v42 = vadd.f32 %v745_v37, %v520_v36  ;;  %13239 = vmatprep.subr.mxu0 %v2594_v31  ;;  %v2588_v37 = vld [vmem:[%s22360_s1 + $0x420] sm:$0xff] }
 0x10f   : > { %v12635_v47 = vpop.f32.mrf.mxu0  ;;  %13114 = vmatmul.mubr.f32.gmra.mxu0 %v16685_v59  ;;  %v755_v28 = vpop.f32.mrf.mxu1 }
 0x110   : > { %v16710_v56 = vadd.f32 %v12715_v51, %v12635_v47  ;;  %13194 = vmatmul.mubr.f32.gmra.mxu1 %v16700_v41  ;;  %13116 = vmatprep.mubr.f32.mxu0 %v16689_v22 }
 0x111   : > { %v530_v55 = vpop.f32.mrf.mxu0  ;;  %13196 = vmatprep.mubr.f32.mxu1 %v16704_v46  ;;  %13240 = vmatpush3.msra.mxu0 %v2594_v31  ;;  %v12718_v16 = vpop.f32.mrf.mxu1 }
 0x112   : > { %v16717_v1 = vadd.f32 %v755_v28, %v530_v55  ;;  %13241 = vmatprep.subr.mxu0 %v2593_v52  ;;  %v16796_v55 = vld [vmem:[#allocation2 + $0x112] sm:$0xff]  ;;  %v16798_v28 = vld [vmem:[#allocation2 + $0x122] sm:$0xff] }
 0x113   : > { %v12638_v10 = vpop.f32.mrf.mxu0  ;;  %13117 = vmatmul.mubr.f32.gmra.mxu0 %v16700_v41  ;;  %v765_v35 = vpop.f32.mrf.mxu1 }
 0x114   : > { %v16725_v29 = vadd.f32 %v12718_v16, %v12638_v10  ;;  %13197 = vmatmul.mubr.f32.gmra.mxu1 %v16715_v61  ;;  %13119 = vmatprep.mubr.f32.mxu0 %v16704_v46 }
 0x115   : > { %v540_v30 = vpop.f32.mrf.mxu0  ;;  %13199 = vmatprep.mubr.f32.mxu1 %v16719_v8  ;;  %13242 = vmatpush3.msra.mxu0 %v2593_v52  ;;  %v12721_v50 = vpop.f32.mrf.mxu1 }
 0x116   : > { %v16732_v45 = vadd.f32 %v765_v35, %v540_v30  ;;  %13243 = vmatprep.subr.mxu0 %v2592_v20 }
 0x117   : > { %v12641_v43 = vpop.f32.mrf.mxu0  ;;  %13120 = vmatmul.mubr.f32.gmra.mxu0 %v16715_v61  ;;  %v775_v5 = vpop.f32.mrf.mxu1 }
 0x118   : > { %v16740_v63 = vadd.f32 %v12721_v50, %v12641_v43  ;;  %13200 = vmatmul.mubr.f32.gmra.mxu1 %v16730_v4  ;;  %13122 = vmatprep.mubr.f32.mxu0 %v16719_v8  ;;  %v16813_v50 = vld [vmem:[#allocation2 + $0x12a] sm:$0xff] }
 0x119   : > { %v550_v3 = vpop.f32.mrf.mxu0  ;;  %13202 = vmatprep.mubr.f32.mxu1 %v16734_v48  ;;  %13244 = vmatpush3.msra.mxu0 %v2592_v20  ;;  %v12724_v24 = vpop.f32.mrf.mxu1  ;;  %v2587_v20 = vld [vmem:[%s22360_s1 + $0x418] sm:$0xff] }
 0x11a   : > { %v16747_v11 = vadd.f32 %v775_v5, %v550_v3  ;;  %13245 = vmatprep.subr.mxu0 %v2591_v60 }
 0x11b   : > { %v12644_v17 = vpop.f32.mrf.mxu0  ;;  %13123 = vmatmul.mubr.f32.gmra.mxu0 %v16730_v4  ;;  %v785_v12 = vpop.f32.mrf.mxu1 }
 0x11c   : > { %v16755_v49 = vadd.f32 %v12724_v24, %v12644_v17  ;;  %13203 = vmatmul.mubr.f32.gmra.mxu1 %v16745_v9  ;;  %13125 = vmatprep.mubr.f32.mxu0 %v16734_v48  ;;  %v2586_v17 = vld [vmem:[%s22360_s1 + $0x410] sm:$0xff] }
 0x11d   : > { %v560_v53 = vpop.f32.mrf.mxu0  ;;  %13205 = vmatprep.mubr.f32.mxu1 %v16749_v14  ;;  %13246 = vmatpush3.msra.mxu0 %v2591_v60  ;;  %v12727_v57 = vpop.f32.mrf.mxu1  ;;  %v16815_v60 = vld [vmem:[#allocation2 + $0x13a] sm:$0xff] }
 0x11e   : > { %v16762_v33 = vadd.f32 %v785_v12, %v560_v53  ;;  %13247 = vmatprep.subr.mxu0 %v2590_v39  ;;  %v16830_v12 = vld [vmem:[#allocation2 + $0x142] sm:$0xff] }
 0x11f   : > { %v12647_v6 = vpop.f32.mrf.mxu0  ;;  %13126 = vmatmul.mubr.f32.gmra.mxu0 %v16745_v9  ;;  %v16776_v18 = vpop.f32.mrf.mxu1 }
 0x120   : > { %v16770_v34 = vadd.f32 %v12727_v57, %v12647_v6  ;;  %13206 = vmatmul.mubr.f32.gmra.mxu1 %v16760_v23  ;;  %13128 = vmatprep.mubr.f32.mxu0 %v16749_v14  ;;  %v16832_v6 = vld [vmem:[#allocation2 + $0x152] sm:$0xff] }
 0x121   : > { %v16774_v15 = vpop.f32.mrf.mxu0  ;;  %13208 = vmatprep.mubr.f32.mxu1 %v16764_v54  ;;  %13248 = vmatpush3.msra.mxu0 %v2590_v39  ;;  %v12730_v36 = vpop.f32.mrf.mxu1 }
 0x122   : > { %13249 = vmatprep.subr.mxu0 %v2589_v19 }
 0x123   : > { %v12650_v31 = vpop.f32.mrf.mxu0  ;;  %13129 = vmatmul.mubr.f32.gmra.mxu0 %v16760_v23  ;;  %v16793_v52 = vpop.f32.mrf.mxu1 }
 0x124   : > { %v16787_v47 = vadd.f32 %v12730_v36, %v12650_v31  ;;  %13209 = vmatmul.mubr.f32.gmra.mxu1 %v16779_v26  ;;  %13131 = vmatprep.mubr.f32.mxu0 %v16764_v54  ;;  %22449 = vst [vmem:[#allocation5_spill] sm:$0xff] %v16793_v52  ;;  %v2585_v31 = vld [vmem:[%s22360_s1 + $0x408] sm:$0xff] }
 0x125   : > { %v16791_v51 = vpop.f32.mrf.mxu0  ;;  %13211 = vmatprep.mubr.f32.mxu1 %v16781_v27  ;;  %13250 = vmatpush3.msra.mxu0 %v2589_v19  ;;  %v12733_v16 = vpop.f32.mrf.mxu1 }
 0x126   : > { %22448 = vst [vmem:[#allocation4_spill] sm:$0xff] %v16791_v51  ;;  %13251 = vmatprep.subr.mxu0 %v2588_v37 }
 0x127   : > { %v12653_v10 = vpop.f32.mrf.mxu0  ;;  %13132 = vmatmul.mubr.f32.gmra.mxu0 %v16779_v26  ;;  %v16810_v43 = vpop.f32.mrf.mxu1 }
 0x128   : > { %v16804_v30 = vadd.f32 %v12733_v16, %v12653_v10  ;;  %13212 = vmatmul.mubr.f32.gmra.mxu1 %v16796_v55  ;;  %13134 = vmatprep.mubr.f32.mxu0 %v16781_v27  ;;  %22451 = vst [vmem:[#allocation7_spill] sm:$0xff] %v16810_v43  ;;  %v16847_v16 = vld [vmem:[#allocation2 + $0x15a] sm:$0xff] }
 0x129   : > { %v16808_v35 = vpop.f32.mrf.mxu0  ;;  %13214 = vmatprep.mubr.f32.mxu1 %v16798_v28  ;;  %13252 = vmatpush3.msra.mxu0 %v2588_v37  ;;  %v12736_v5 = vpop.f32.mrf.mxu1 }
 0x12a   : > { %22450 = vst [vmem:[#allocation6_spill] sm:$0xff] %v16808_v35  ;;  %13253 = vmatprep.subr.mxu0 %v2587_v20 }
 0x12b   : > { %v12656_v3 = vpop.f32.mrf.mxu0  ;;  %13135 = vmatmul.mubr.f32.gmra.mxu0 %v16796_v55  ;;  %v16827_v53 = vpop.f32.mrf.mxu1 }
 0x12c   : > { %v16821_v24 = vadd.f32 %v12736_v5, %v12656_v3  ;;  %13215 = vmatmul.mubr.f32.gmra.mxu1 %v16813_v50  ;;  %13137 = vmatprep.mubr.f32.mxu0 %v16798_v28  ;;  %22453 = vst [vmem:[#allocation9_spill] sm:$0xff] %v16827_v53  ;;  %v16866_v53 = vld [vmem:[#allocation2 + $0x182] sm:$0xff] }
 0x12d   : > { %v16825_v39 = vpop.f32.mrf.mxu0  ;;  %13217 = vmatprep.mubr.f32.mxu1 %v16815_v60  ;;  %13254 = vmatpush3.msra.mxu0 %v2587_v20  ;;  %v12739_v19 = vpop.f32.mrf.mxu1  ;;  %v16849_v20 = vld [vmem:[#allocation2 + $0x16a] sm:$0xff] }
 0x12e   : > { %22452 = vst [vmem:[#allocation8_spill] sm:$0xff] %v16825_v39  ;;  %13255 = vmatprep.subr.mxu0 %v2586_v17 }
 0x12f   : > { %v12659_v57 = vpop.f32.mrf.mxu0  ;;  %13138 = vmatmul.mubr.f32.gmra.mxu0 %v16813_v50  ;;  %v16844_v10 = vpop.f32.mrf.mxu1 }
 0x130   : > { %v16838_v36 = vadd.f32 %v12739_v19, %v12659_v57  ;;  %13218 = vmatmul.mubr.f32.gmra.mxu1 %v16830_v12  ;;  %13140 = vmatprep.mubr.f32.mxu0 %v16815_v60  ;;  %22455 = vst [vmem:[#allocation11_spill] sm:$0xff] %v16844_v10  ;;  %v2584_v57 = vld [vmem:[%s22360_s1 + $0x400] sm:$0xff] }
 0x131   : > { %v16842_v37 = vpop.f32.mrf.mxu0  ;;  %13220 = vmatprep.mubr.f32.mxu1 %v16832_v6  ;;  %13256 = vmatpush3.msra.mxu0 %v2586_v17  ;;  %v12742_v5 = vpop.f32.mrf.mxu1 }
 0x132   : > { %22454 = vst [vmem:[#allocation10_spill] sm:$0xff] %v16842_v37  ;;  %13257 = vmatprep.subr.mxu0 %v2585_v31  ;;  %v16864_v37 = vld [vmem:[#allocation2 + $0x172] sm:$0xff] }
 0x133   : > { %v12662_v3 = vpop.f32.mrf.mxu0  ;;  %13141 = vmatmul.mubr.f32.gmra.mxu0 %v16830_v12  ;;  %v16861_v10 = vpop.f32.mrf.mxu1 }
 0x134   : > { %v16855_v19 = vadd.f32 %v12742_v5, %v12662_v3  ;;  %13221 = vmatmul.mubr.f32.gmra.mxu1 %v16847_v16  ;;  %13143 = vmatprep.mubr.f32.mxu0 %v16832_v6  ;;  %22457 = vst [vmem:[#allocation13_spill] sm:$0xff] %v16861_v10 }
 0x135   : > { %v16859_v17 = vpop.f32.mrf.mxu0  ;;  %13223 = vmatprep.mubr.f32.mxu1 %v16849_v20  ;;  %13258 = vmatpush3.msra.mxu0 %v2585_v31  ;;  %v12745_v43 = vpop.f32.mrf.mxu1  ;;  %v16878_v31 = vld [vmem:[#allocation2 + $0x18a] sm:$0xff] }
 0x136   : > { %22456 = vst [vmem:[#allocation12_spill] sm:$0xff] %v16859_v17  ;;  %13259 = vmatprep.subr.mxu0 %v2584_v57 }
 0x137   : > { %v12665_v39 = vpop.f32.mrf.mxu0  ;;  %13144 = vmatmul.mubr.f32.gmra.mxu0 %v16847_v16  ;;  %v16875_v10 = vpop.f32.mrf.mxu1 }
 0x138   : > { %v16869_v3 = vadd.f32 %v12745_v43, %v12665_v39  ;;  %13224 = vmatmul.mubr.f32.gmra.mxu1 %v16864_v37  ;;  %13146 = vmatprep.mubr.f32.mxu0 %v16849_v20  ;;  %22459 = vst [vmem:[#allocation15_spill] sm:$0xff] %v16875_v10 }
 0x139   : > { %v16873_v5 = vpop.f32.mrf.mxu0  ;;  %13226 = vmatprep.mubr.f32.mxu1 %v16866_v53  ;;  %13260 = vmatpush3.msra.mxu0 %v2584_v57  ;;  %v12748_v35 = vpop.f32.mrf.mxu1 }
 0x13a   : > { %22458 = vst [vmem:[#allocation14_spill] sm:$0xff] %v16873_v5 }
 0x13b   : > { %v12668_v17 = vpop.f32.mrf.mxu0  ;;  %13147 = vmatmul.mubr.f32.gmra.mxu0 %v16864_v37  ;;  %v16887_v39 = vpop.f32.mrf.mxu1 }
 0x13c   : > { %v16881_v52 = vadd.f32 %v12748_v35, %v12668_v17  ;;  %13227 = vmatmul.mubr.f32.gmra.mxu1 %v16878_v31  ;;  %13261 = vmatprep.mubr.f32.mxu0 %v16648_v25  ;;  %22462 = vst [vmem:[#allocation18_spill] sm:$0xff] %v16887_v39 }
 0x13d   : > { %v16885_v43 = vpop.f32.mrf.mxu0  ;;  %v12863_v5 = vpop.f32.mrf.mxu1 }
 0x13e   : > { %22460 = vst [vmem:[#allocation16_spill] sm:$0xff] %v16881_v52  ;;  %22461 = vst [vmem:[#allocation17_spill] sm:$0xff] %v16885_v43 }
 0x13f   : > { %v12783_v10 = vpop.f32.mrf.mxu0  ;;  %13262 = vmatmul.mubr.f32.vlgmr.msra.gmra.mxu0 %v16655_v62  ;;  %v16897_v52 = vpop.f32.mrf.mxu1 }
 0x140   : > { %v1116_v57 = vadd.f32 %v12783_v10, %v16650_v38  ;;  %13264 = vmatprep.mubr.f32.mxu0 %v16660_v7 }
 0x141   : > { %v956_v51 = vpop.f32.mrf.mxu0  ;;  %v12866_v43 = vpop.f32.mrf.mxu1 }
 0x142   : > { %v16893_v35 = vadd.f32 %v956_v51, %v16657_v0  ;;  %v16895_v17 = vadd.f32 %v12863_v5, %v1116_v57 }
 0x143   : > { %v12786_v25 = vpop.f32.mrf.mxu0  ;;  %13265 = vmatmul.mubr.f32.gmra.mxu0 %v16670_v13  ;;  %v16907_v0 = vpop.f32.mrf.mxu1 }
 0x144   : > { %v1118_v39 = vadd.f32 %v12786_v25, %v16665_v44  ;;  %13267 = vmatprep.mubr.f32.mxu0 %v16674_v58 }
 0x145   : > { %v966_v38 = vpop.f32.mrf.mxu0 }
 0x146   : > { %v16903_v62 = vadd.f32 %v966_v38, %v16672_v40  ;;  %v16905_v7 = vadd.f32 %v12866_v43, %v1118_v39 }
 0x147   : > { %v12789_v51 = vpop.f32.mrf.mxu0  ;;  %13268 = vmatmul.mubr.f32.gmra.mxu0 %v16685_v59  ;;  %v12869_v5 = vpop.f32.mrf.mxu1 }
 0x148   : > { %v1120_v10 = vadd.f32 %v12789_v51, %v16680_v2  ;;  %13270 = vmatprep.mubr.f32.mxu0 %v16689_v22 }
 0x149   : > { %v976_v44 = vpop.f32.mrf.mxu0  ;;  %v16917_v40 = vpop.f32.mrf.mxu1 }
 0x14a   : > { %v16913_v13 = vadd.f32 %v976_v44, %v16687_v21  ;;  %v16915_v58 = vadd.f32 %v12869_v5, %v1120_v10  ;;  %v3025_v10 = vld [vmem:[%s22360_s1 + $0x678] sm:$0xff] }
 0x14b   : > { %v12792_v43 = vpop.f32.mrf.mxu0  ;;  %13271 = vmatmul.mubr.f32.gmra.mxu0 %v16700_v41  ;;  %v12872_v57 = vpop.f32.mrf.mxu1  ;;  %13309 = vmatprep.subr.mxu1 %v3025_v10 }
 0x14c   : > { %v1122_v39 = vadd.f32 %v12792_v43, %v16695_v32  ;;  %13273 = vmatprep.mubr.f32.mxu0 %v16704_v46  ;;  %13310 = vmatpush3.msra.mxu1 %v3025_v10 }
 0x14d   : > { %v986_v2 = vpop.f32.mrf.mxu0  ;;  %v16927_v21 = vpop.f32.mrf.mxu1 }
 0x14e   : > { %v16923_v59 = vadd.f32 %v986_v2, %v16702_v42  ;;  %v16925_v22 = vadd.f32 %v12872_v57, %v1122_v39  ;;  %v3024_v39 = vld [vmem:[%s22360_s1 + $0x670] sm:$0xff] }
 0x14f   : > { %v12795_v25 = vpop.f32.mrf.mxu0  ;;  %13274 = vmatmul.mubr.f32.gmra.mxu0 %v16715_v61  ;;  %v12875_v51 = vpop.f32.mrf.mxu1  ;;  %13311 = vmatprep.subr.mxu1 %v3024_v39 }
 0x150   : > { %v1124_v38 = vadd.f32 %v12795_v25, %v16710_v56  ;;  %13276 = vmatprep.mubr.f32.mxu0 %v16719_v8  ;;  %13312 = vmatpush3.msra.mxu1 %v3024_v39 }
 0x151   : > { %v996_v32 = vpop.f32.mrf.mxu0  ;;  %v16937_v42 = vpop.f32.mrf.mxu1 }
 0x152   : > { %v16933_v41 = vadd.f32 %v996_v32, %v16717_v1  ;;  %v16935_v46 = vadd.f32 %v12875_v51, %v1124_v38  ;;  %v3023_v38 = vld [vmem:[%s22360_s1 + $0x668] sm:$0xff] }
 0x153   : > { %v12798_v5 = vpop.f32.mrf.mxu0  ;;  %13277 = vmatmul.mubr.f32.gmra.mxu0 %v16730_v4  ;;  %v12878_v61 = vpop.f32.mrf.mxu1  ;;  %13313 = vmatprep.subr.mxu1 %v3023_v38 }
 0x154   : > { %v1126_v56 = vadd.f32 %v12798_v5, %v16725_v29  ;;  %13279 = vmatprep.mubr.f32.mxu0 %v16734_v48  ;;  %13314 = vmatpush3.msra.mxu1 %v3023_v38  ;;  %v3022_v5 = vld [vmem:[%s22360_s1 + $0x660] sm:$0xff] }
 0x155   : > { %v1006_v1 = vpop.f32.mrf.mxu0  ;;  %v16950_v43 = vpop.f32.mrf.mxu1  ;;  %13315 = vmatprep.subr.mxu1 %v3022_v5 }
 0x156   : > { %v16946_v8 = vadd.f32 %v1006_v1, %v16732_v45  ;;  %v16948_v44 = vadd.f32 %v12878_v61, %v1126_v56  ;;  %13316 = vmatpush3.msra.mxu1 %v3022_v5 }
 0x157   : > { %v12801_v4 = vpop.f32.mrf.mxu0  ;;  %13280 = vmatmul.mubr.f32.gmra.mxu0 %v16745_v9  ;;  %v12881_v48 = vpop.f32.mrf.mxu1 }
 0x158   : > { %v1128_v29 = vadd.f32 %v12801_v4, %v16740_v63  ;;  %13282 = vmatprep.mubr.f32.mxu0 %v16749_v14 }
 0x159   : > { %v1016_v45 = vpop.f32.mrf.mxu0  ;;  %v16963_v25 = vpop.f32.mrf.mxu1 }
 0x15a   : > { %v16959_v57 = vadd.f32 %v1016_v45, %v16747_v11  ;;  %v16961_v2 = vadd.f32 %v12881_v48, %v1128_v29  ;;  %v3020_v48 = vld [vmem:[%s22360_s1 + $0x650] sm:$0xff] }
 0x15b   : > { %v12804_v9 = vpop.f32.mrf.mxu0  ;;  %13283 = vmatmul.mubr.f32.gmra.mxu0 %v16760_v23  ;;  %v12884_v14 = vpop.f32.mrf.mxu1 }
 0x15c   : > { %v1130_v63 = vadd.f32 %v12804_v9, %v16755_v49  ;;  %13285 = vmatprep.mubr.f32.mxu0 %v16764_v54  ;;  %v796_v49 = vadd.f32 %v16776_v18, %v16774_v15 }
 0x15d   : > { %v1026_v11 = vpop.f32.mrf.mxu0  ;;  %v16976_v10 = vpop.f32.mrf.mxu1 }
 0x15e   : > { %v16972_v51 = vadd.f32 %v1026_v11, %v16762_v33  ;;  %v16974_v32 = vadd.f32 %v12884_v14, %v1130_v63  ;;  %22464 = vst [vmem:[#allocation20_spill] sm:$0xff] %v16976_v10  ;;  %v3019_v63 = vld [vmem:[%s22360_s1 + $0x648] sm:$0xff] }
 0x15f   : > { %v12807_v23 = vpop.f32.mrf.mxu0  ;;  %13286 = vmatmul.mubr.f32.gmra.mxu0 %v16779_v26  ;;  %v12887_v56 = vpop.f32.mrf.mxu1  ;;  %v3021_v26 = vld [vmem:[%s22360_s1 + $0x658] sm:$0xff] }
 0x160   : > { %22463 = vst [vmem:[#allocation19_spill] sm:$0xff] %v16972_v51  ;;  %v1132_v54 = vadd.f32 %v12807_v23, %v16770_v34  ;;  %13288 = vmatprep.mubr.f32.mxu0 %v16781_v27  ;;  %13317 = vmatprep.subr.mxu1 %v3021_v26 }
 0x161   : > { %v1036_v33 = vpop.f32.mrf.mxu0  ;;  %v16990_v39 = vpop.f32.mrf.mxu1  ;;  %13318 = vmatpush3.msra.mxu1 %v3021_v26 }
 0x162   : > { %v16986_v61 = vadd.f32 %v1036_v33, %v796_v49  ;;  %v16988_v1 = vadd.f32 %v12887_v56, %v1132_v54  ;;  %22466 = vst [vmem:[#allocation22_spill] sm:$0xff] %v16990_v39  ;;  %13319 = vmatprep.subr.mxu1 %v3020_v48  ;;  %v3007_v33 = vld [vmem:[%s22360_s1 + $0x4e8] sm:$0xff] }
 0x163   : > { %v12810_v4 = vpop.f32.mrf.mxu0  ;;  %13289 = vmatmul.mubr.f32.gmra.mxu0 %v16796_v55  ;;  %v12890_v15 = vpop.f32.mrf.mxu1  ;;  %13320 = vmatpush3.msra.mxu1 %v3020_v48 }
 0x164   : > { %22465 = vst [vmem:[#allocation21_spill] sm:$0xff] %v16986_v61  ;;  %v1134_v34 = vadd.f32 %v12810_v4, %v16787_v47  ;;  %13291 = vmatprep.mubr.f32.mxu0 %v16798_v28  ;;  %13321 = vmatprep.subr.mxu1 %v3019_v63 }
 0x165   : > { %v16998_v18 = vpop.f32.mrf.mxu0  ;;  %v17002_v29 = vpop.f32.mrf.mxu1  ;;  %13322 = vmatpush3.msra.mxu1 %v3019_v63 }
 0x166   : > { %22467 = vst [vmem:[#allocation23_spill] sm:$0xff] %v16998_v18  ;;  %v17000_v27 = vadd.f32 %v12890_v15, %v1134_v34  ;;  %22468 = vst [vmem:[#allocation24_spill] sm:$0xff] %v17002_v29 }
 0x167   : > { %v12813_v45 = vpop.f32.mrf.mxu0  ;;  %13292 = vmatmul.mubr.f32.gmra.mxu0 %v16813_v50  ;;  %v12893_v55 = vpop.f32.mrf.mxu1 }
 0x168   : > { %v1136_v47 = vadd.f32 %v12813_v45, %v16804_v30  ;;  %13294 = vmatprep.mubr.f32.mxu0 %v16815_v60  ;;  %v3009_v60 = vld [vmem:[%s22360_s1 + $0x4f8] sm:$0xff] }
 0x169   : > { %v17010_v28 = vpop.f32.mrf.mxu0  ;;  %v17014_v9 = vpop.f32.mrf.mxu1  ;;  %13389 = vmatprep.subr.mxu0 %v3009_v60  ;;  %v2036_v45 = vld [vmem:[#allocation2 + $0x19a] sm:$0xff] }
 0x16a   : > { %22469 = vst [vmem:[#allocation25_spill] sm:$0xff] %v17010_v28  ;;  %v17012_v38 = vadd.f32 %v12893_v55, %v1136_v47  ;;  %22470 = vst [vmem:[#allocation26_spill] sm:$0xff] %v17014_v9  ;;  %13390 = vmatpush3.msra.mxu0 %v3009_v60 }
 0x16b   : > { %v12816_v14 = vpop.f32.mrf.mxu0  ;;  %13295 = vmatmul.mubr.f32.gmra.mxu0 %v16830_v12  ;;  %v12896_v50 = vpop.f32.mrf.mxu1  ;;  %v3018_v12 = vld [vmem:[%s22360_s1 + $0x640] sm:$0xff] }
 0x16c   : > { %v1138_v30 = vadd.f32 %v12816_v14, %v16821_v24  ;;  %13297 = vmatprep.mubr.f32.mxu0 %v16832_v6  ;;  %v3008_v24 = vld [vmem:[%s22360_s1 + $0x4f0] sm:$0xff]  ;;  %13323 = vmatprep.subr.mxu1 %v3018_v12 }
 0x16d   : > { %v17025_v11 = vpop.f32.mrf.mxu0  ;;  %v17029_v23 = vpop.f32.mrf.mxu1  ;;  %13324 = vmatpush3.msra.mxu1 %v3018_v12  ;;  %13391 = vmatprep.subr.mxu0 %v3008_v24 }
 0x16e   : > { %22471 = vst [vmem:[#allocation27_spill] sm:$0xff] %v17025_v11  ;;  %v17027_v5 = vadd.f32 %v12896_v50, %v1138_v30  ;;  %22472 = vst [vmem:[#allocation28_spill] sm:$0xff] %v17029_v23  ;;  %13392 = vmatpush3.msra.mxu0 %v3008_v24  ;;  %v2037_v30 = vld [vmem:[#allocation2 + $0x1a2] sm:$0xff]  ;;  %v3004_v50 = vld [vmem:[%s22360_s1 + $0x4d0] sm:$0xff] }
 0x16f   : > { %v12819_v6 = vpop.f32.mrf.mxu0  ;;  %13298 = vmatmul.mubr.f32.gmra.mxu0 %v16847_v16  ;;  %v12899_v54 = vpop.f32.mrf.mxu1  ;;  %13393 = vmatprep.subr.mxu0 %v3007_v33 }
 0x170   : > { %v1140_v49 = vadd.f32 %v12819_v6, %v16838_v36  ;;  %13300 = vmatprep.mubr.f32.mxu0 %v16849_v20  ;;  %v3017_v36 = vld [vmem:[%s22360_s1 + $0x638] sm:$0xff]  ;;  %v3006_v20 = vld [vmem:[%s22360_s1 + $0x4e0] sm:$0xff]  ;;  %13394 = vmatpush3.msra.mxu0 %v3007_v33 }
 0x171   : > { %v17040_v56 = vpop.f32.mrf.mxu0  ;;  %v17047_v4 = vpop.f32.mrf.mxu1  ;;  %13325 = vmatprep.subr.mxu1 %v3017_v36  ;;  %13395 = vmatprep.subr.mxu0 %v3006_v20 }
 0x172   : > { %22473 = vst [vmem:[#allocation29_spill] sm:$0xff] %v17040_v56  ;;  %v17045_v26 = vadd.f32 %v12899_v54, %v1140_v49  ;;  %22474 = vst [vmem:[#allocation30_spill] sm:$0xff] %v17047_v4  ;;  %13326 = vmatpush3.msra.mxu1 %v3017_v36  ;;  %13396 = vmatpush3.msra.mxu0 %v3006_v20  ;;  %v22479_v49 = vld [vmem:[#allocation16_spill] sm:$0xff] }
 0x173   : > { %v12822_v16 = vpop.f32.mrf.mxu0  ;;  %13301 = vmatmul.mubr.f32.gmra.mxu0 %v16864_v37  ;;  %v12902_v15 = vpop.f32.mrf.mxu1  ;;  %v3016_v37 = vld [vmem:[%s22360_s1 + $0x630] sm:$0xff]  ;;  %v3002_v36 = vld [vmem:[%s22360_s1 + $0x4c0] sm:$0xff] }
 0x174   : > { %v1142_v34 = vadd.f32 %v12822_v16, %v16855_v19  ;;  %13303 = vmatprep.mubr.f32.mxu0 %v16866_v53  ;;  %v3005_v19 = vld [vmem:[%s22360_s1 + $0x4d8] sm:$0xff]  ;;  %13327 = vmatprep.subr.mxu1 %v3016_v37 }
 0x175   : > { %v17058_v48 = vpop.f32.mrf.mxu0  ;;  %v17062_v55 = vpop.f32.mrf.mxu1  ;;  %13397 = vmatprep.subr.mxu0 %v3005_v19  ;;  %13328 = vmatpush3.msra.mxu1 %v3016_v37 }
 0x176   : > { %22475 = vst [vmem:[#allocation31_spill] sm:$0xff] %v17058_v48  ;;  %v17060_v47 = vadd.f32 %v12902_v15, %v1142_v34  ;;  %22476 = vst [vmem:[#allocation32_spill] sm:$0xff] %v17062_v55  ;;  %13398 = vmatpush3.msra.mxu0 %v3005_v19  ;;  %v3014_v15 = vld [vmem:[%s22360_s1 + $0x620] sm:$0xff]  ;;  %v15480_v48 = vld [vmem:[#allocation2 + $0x8] sm:$0xff] }
 0x177   : > { %v12825_v53 = vpop.f32.mrf.mxu0  ;;  %13304 = vmatmul.mubr.f32.gmra.mxu0 %v16878_v31  ;;  %v12905_v14 = vpop.f32.mrf.mxu1  ;;  %v3003_v31 = vld [vmem:[%s22360_s1 + $0x4c8] sm:$0xff]  ;;  %13399 = vmatprep.subr.mxu0 %v3004_v50 }
 0x178   : > { %v1144_v63 = vadd.f32 %v12825_v53, %v16869_v3  ;;  %13306 = vmatprep.mubr.f32.mxu0 %v2036_v45  ;;  %v3015_v3 = vld [vmem:[%s22360_s1 + $0x628] sm:$0xff]  ;;  %13400 = vmatpush3.msra.mxu0 %v3004_v50  ;;  %v3001_v45 = vld [vmem:[%s22360_s1 + $0x4b8] sm:$0xff] }
 0x179   : > { %v17075_v60 = vpop.f32.mrf.mxu0  ;;  %v17079_v24 = vpop.f32.mrf.mxu1  ;;  %13329 = vmatprep.subr.mxu1 %v3015_v3  ;;  %13401 = vmatprep.subr.mxu0 %v3003_v31  ;;  %v2999_v50 = vld [vmem:[%s22360_s1 + $0x4a8] sm:$0xff] }
 0x17a   : > { %22477 = vst [vmem:[#allocation33_spill] sm:$0xff] %v17075_v60  ;;  %v17077_v12 = vadd.f32 %v12905_v14, %v1144_v63  ;;  %22478 = vst [vmem:[#allocation34_spill] sm:$0xff] %v17079_v24  ;;  %13330 = vmatpush3.msra.mxu1 %v3015_v3  ;;  %13402 = vmatpush3.msra.mxu0 %v3003_v31  ;;  %v3000_v63 = vld [vmem:[%s22360_s1 + $0x4b0] sm:$0xff] }
 0x17b   : > { %v12828_v6 = vpop.f32.mrf.mxu0  ;;  %13307 = vmatmul.mubr.f32.gmra.mxu0 %v2037_v30  ;;  %v12908_v33 = vpop.f32.mrf.mxu1  ;;  %13403 = vmatprep.subr.mxu0 %v3002_v36 }
 0x17c   : > { %v1146_v54 = vadd.f32 %v12828_v6, %v22479_v49  ;;  %13331 = vmatprep.subr.mxu1 %v3014_v15  ;;  %13404 = vmatpush3.msra.mxu0 %v3002_v36  ;;  %v2998_v6 = vld [vmem:[%s22360_s1 + $0x4a0] sm:$0xff] }
 0x17d   : > { %v17091_v16 = vpop.f32.mrf.mxu0  ;;  %v17095_v34 = vpop.f32.mrf.mxu1  ;;  %13332 = vmatpush3.msra.mxu1 %v3014_v15  ;;  %13405 = vmatprep.subr.mxu0 %v3001_v45 }
 0x17e   : > { %22480 = vst [vmem:[#allocation16_spill] sm:$0xff] %v17091_v16  ;;  %v17093_v20 = vadd.f32 %v12908_v33, %v1146_v54  ;;  %22481 = vst [vmem:[#allocation35_spill] sm:$0xff] %v17095_v34  ;;  %13406 = vmatpush3.msra.mxu0 %v3001_v45  ;;  %v2997_v33 = vld [vmem:[%s22360_s1 + $0x498] sm:$0xff]  ;;  %v2958_v16 = vld [vmem:[#allocation3] sm:$0xff] }
 0x17f   : > { %v12943_v37 = vpop.f32.mrf.mxu0  ;;  %v17106_v53 = vpop.f32.mrf.mxu1  ;;  %13407 = vmatprep.subr.mxu0 %v3000_v63  ;;  %v3013_v45 = vld [vmem:[%s22360_s1 + $0x618] sm:$0xff]  ;;  %13421 = vmatprep.mubr.f32.mxu0 %v2958_v16 }
 0x180   : > { %v17104_v19 = vadd.f32 %v12943_v37, %v16895_v17  ;;  %13408 = vmatpush3.msra.mxu0 %v3000_v63  ;;  %v2996_v37 = vld [vmem:[%s22360_s1 + $0x490] sm:$0xff]  ;;  %13333 = vmatprep.subr.mxu1 %v3013_v45 }
 0x181   : > { %v17111_v14 = vpop.f32.mrf.mxu0  ;;  %v17113_v30 = vpop.f32.mrf.mxu1  ;;  %13409 = vmatprep.subr.mxu0 %v2999_v50  ;;  %13334 = vmatpush3.msra.mxu1 %v3013_v45  ;;  %v3011_v45 = vld [vmem:[%s22360_s1 + $0x608] sm:$0xff] }
 0x182   : > { %13410 = vmatpush3.msra.mxu0 %v2999_v50 }
 0x183   : > { %v12946_v17 = vpop.f32.mrf.mxu0  ;;  %13411 = vmatprep.subr.mxu0 %v2998_v6 }
 0x184   : > { %v17119_v3 = vadd.f32 %v12946_v17, %v16905_v7  ;;  %v17121_v31 = vpop.f32.mrf.mxu1  ;;  %13412 = vmatpush3.msra.mxu0 %v2998_v6  ;;  %v2995_v17 = vld [vmem:[%s22360_s1 + $0x488] sm:$0xff] }
 0x185   : > { %v17126_v49 = vpop.f32.mrf.mxu0  ;;  %13413 = vmatprep.subr.mxu0 %v2997_v33 }
 0x186   : > { %v17128_v54 = vpop.f32.mrf.mxu1  ;;  %13414 = vmatpush3.msra.mxu0 %v2997_v33  ;;  %v2994_v33 = vld [vmem:[%s22360_s1 + $0x480] sm:$0xff] }
 0x187   : > { %v12949_v36 = vpop.f32.mrf.mxu0  ;;  %13415 = vmatprep.subr.mxu0 %v2996_v37 }
 0x188   : > { %v17134_v7 = vadd.f32 %v12949_v36, %v16915_v58  ;;  %v17136_v15 = vpop.f32.mrf.mxu1  ;;  %v3012_v58 = vld [vmem:[%s22360_s1 + $0x610] sm:$0xff]  ;;  %13416 = vmatpush3.msra.mxu0 %v2996_v37 }
 0x189   : > { %v17144_v63 = vpop.f32.mrf.mxu0  ;;  %13335 = vmatprep.subr.mxu1 %v3012_v58  ;;  %13417 = vmatprep.subr.mxu0 %v2995_v17 }
 0x18a   : > { %v17146_v50 = vpop.f32.mrf.mxu1  ;;  %13336 = vmatpush3.msra.mxu1 %v3012_v58  ;;  %13418 = vmatpush3.msra.mxu0 %v2995_v17 }
 0x18b   : > { %v12952_v6 = vpop.f32.mrf.mxu0  ;;  %13337 = vmatprep.subr.mxu1 %v3011_v45  ;;  %13419 = vmatprep.subr.mxu0 %v2994_v33 }
 0x18c   : > { %v17155_v36 = vadd.f32 %v12952_v6, %v16925_v22  ;;  %v17157_v34 = vpop.f32.mrf.mxu1  ;;  %13338 = vmatpush3.msra.mxu1 %v3011_v45  ;;  %v3010_v22 = vld [vmem:[%s22360_s1 + $0x600] sm:$0xff]  ;;  %13420 = vmatpush3.msra.mxu0 %v2994_v33 }
 0x18d   : > { %v17165_v24 = vpop.f32.mrf.mxu0  ;;  %13339 = vmatprep.subr.mxu1 %v3010_v22  ;;  %13422 = vmatmul.mubr.f32.vlgmr.msra.gmra.mxu0 %v15480_v48  ;;  %v17198_v48 = vld [vmem:[%s22360_s1 + $0x7f8] sm:$0xff] }
 0x18e   : > { %v17167_v60 = vpop.f32.mrf.mxu1  ;;  %13340 = vmatpush3.msra.mxu1 %v3010_v22  ;;  %22485 = vst [vmem:[#allocation39_spill] sm:$0xff] %v17198_v48 }
 0x18f   : > { %v12955_v37 = vpop.f32.mrf.mxu0  ;;  %13469 = vmatprep.subr.mxu1 %v17198_v48 }
 0x190   : > { %v17173_v58 = vadd.f32 %v12955_v37, %v16935_v46  ;;  %v17175_v6 = vpop.f32.mrf.mxu1 }
 0x191   : > { %v17177_v55 = vpop.f32.mrf.mxu0 }
 0x192   : > { %v17179_v17 = vpop.f32.mrf.mxu1 }
 0x193   : > { %v12958_v45 = vpop.f32.mrf.mxu0 }
 0x194   : > { %v17182_v4 = vadd.f32 %v12958_v45, %v16948_v44  ;;  %v17184_v56 = vpop.f32.mrf.mxu1 }
 0x195   : > { %v17186_v16 = vpop.f32.mrf.mxu0 }
 0x196   : > { %v17188_v46 = vpop.f32.mrf.mxu1 }
 0x197   : > { %22482 = vst [vmem:[#allocation36_spill] sm:$0xff] %v17188_v46  ;;  %v12961_v37 = vpop.f32.mrf.mxu0 }
 0x198   : > { %v17191_v33 = vadd.f32 %v12961_v37, %v16961_v2  ;;  %v17193_v23 = vpop.f32.mrf.mxu1 }
 0x199   : > { %22484 = vst [vmem:[#allocation38_spill] sm:$0xff] %v17193_v23  ;;  %v17200_v22 = vpop.f32.mrf.mxu0 }
 0x19a   : > { %22483 = vst [vmem:[#allocation37_spill] sm:$0xff] %v17191_v33  ;;  %22486 = vst [vmem:[#allocation40_spill] sm:$0xff] %v17200_v22  ;;  %v17203_v44 = vpop.f32.mrf.mxu1 }
 0x19b   : > { %22487 = vst [vmem:[#allocation41_spill] sm:$0xff] %v17203_v44  ;;  %v12964_v45 = vpop.f32.mrf.mxu0 }
 0x19c   : > { %v17206_v11 = vadd.f32 %v12964_v45, %v16974_v32  ;;  %v17208_v9 = vpop.f32.mrf.mxu1 }
 0x19d   : > { %22489 = vst [vmem:[#allocation43_spill] sm:$0xff] %v17208_v9  ;;  %v17210_v2 = vpop.f32.mrf.mxu0 }
 0x19e   : > { %22488 = vst [vmem:[#allocation42_spill] sm:$0xff] %v17206_v11  ;;  %22490 = vst [vmem:[#allocation44_spill] sm:$0xff] %v17210_v2  ;;  %v17212_v37 = vpop.f32.mrf.mxu1 }
 0x19f   : > { %22491 = vst [vmem:[#allocation45_spill] sm:$0xff] %v17212_v37  ;;  %v12967_v28 = vpop.f32.mrf.mxu0 }
 0x1a0   : > { %v17215_v29 = vadd.f32 %v12967_v28, %v16988_v1  ;;  %v17217_v18 = vpop.f32.mrf.mxu1 }
 0x1a1   : > { %22493 = vst [vmem:[#allocation47_spill] sm:$0xff] %v17217_v18  ;;  %v17219_v39 = vpop.f32.mrf.mxu0 }
 0x1a2   : > { %22492 = vst [vmem:[#allocation46_spill] sm:$0xff] %v17215_v29  ;;  %22494 = vst [vmem:[#allocation48_spill] sm:$0xff] %v17219_v39  ;;  %v17221_v61 = vpop.f32.mrf.mxu1 }
 0x1a3   : > { %22495 = vst [vmem:[#allocation49_spill] sm:$0xff] %v17221_v61  ;;  %v12970_v48 = vpop.f32.mrf.mxu0 }
 0x1a4   : > { %v17224_v32 = vadd.f32 %v12970_v48, %v17000_v27  ;;  %v17226_v45 = vpop.f32.mrf.mxu1 }
 0x1a5   : > { %22497 = vst [vmem:[#allocation51_spill] sm:$0xff] %v17226_v45  ;;  %v17228_v9 = vpop.f32.mrf.mxu0 }
 0x1a6   : > { %22496 = vst [vmem:[#allocation50_spill] sm:$0xff] %v17224_v32  ;;  %22498 = vst [vmem:[#allocation52_spill] sm:$0xff] %v17228_v9  ;;  %v17230_v11 = vpop.f32.mrf.mxu1 }
 0x1a7   : > { %22499 = vst [vmem:[#allocation53_spill] sm:$0xff] %v17230_v11  ;;  %v12973_v37 = vpop.f32.mrf.mxu0  ;;  %v3800_v11 = vld [vmem:[%s22360_s1 + $0x578] sm:$0xff] }
 0x1a8   : > { %v17233_v1 = vadd.f32 %v12973_v37, %v17012_v38  ;;  %v17235_v28 = vpop.f32.mrf.mxu1  ;;  %13549 = vmatprep.subr.mxu0 %v3800_v11  ;;  %v3799_v37 = vld [vmem:[%s22360_s1 + $0x570] sm:$0xff] }
 0x1a9   : > { %22501 = vst [vmem:[#allocation55_spill] sm:$0xff] %v17235_v28  ;;  %v17237_v18 = vpop.f32.mrf.mxu0  ;;  %13550 = vmatpush3.msra.mxu0 %v3800_v11 }
 0x1aa   : > { %22500 = vst [vmem:[#allocation54_spill] sm:$0xff] %v17233_v1  ;;  %22502 = vst [vmem:[#allocation56_spill] sm:$0xff] %v17237_v18  ;;  %v17239_v29 = vpop.f32.mrf.mxu1  ;;  %13551 = vmatprep.subr.mxu0 %v3799_v37 }
 0x1ab   : > { %22503 = vst [vmem:[#allocation57_spill] sm:$0xff] %v17239_v29  ;;  %v12976_v61 = vpop.f32.mrf.mxu0  ;;  %13552 = vmatpush3.msra.mxu0 %v3799_v37  ;;  %v3796_v37 = vld [vmem:[%s22360_s1 + $0x558] sm:$0xff] }
 0x1ac   : > { %v17242_v27 = vadd.f32 %v12976_v61, %v17027_v5  ;;  %v17244_v48 = vpop.f32.mrf.mxu1 }
 0x1ad   : > { %22505 = vst [vmem:[#allocation59_spill] sm:$0xff] %v17244_v48  ;;  %v17249_v45 = vpop.f32.mrf.mxu0  ;;  %v3798_v48 = vld [vmem:[%s22360_s1 + $0x568] sm:$0xff] }
 0x1ae   : > { %22504 = vst [vmem:[#allocation58_spill] sm:$0xff] %v17242_v27  ;;  %22506 = vst [vmem:[#allocation60_spill] sm:$0xff] %v17249_v45  ;;  %v17251_v38 = vpop.f32.mrf.mxu1  ;;  %13553 = vmatprep.subr.mxu0 %v3798_v48 }
 0x1af   : > { %22507 = vst [vmem:[#allocation61_spill] sm:$0xff] %v17251_v38  ;;  %v12979_v29 = vpop.f32.mrf.mxu0  ;;  %13554 = vmatpush3.msra.mxu0 %v3798_v48  ;;  %v3797_v38 = vld [vmem:[%s22360_s1 + $0x560] sm:$0xff] }
 0x1b0   : > { %v17257_v61 = vadd.f32 %v12979_v29, %v17045_v26  ;;  %v17259_v5 = vpop.f32.mrf.mxu1  ;;  %13555 = vmatprep.subr.mxu0 %v3797_v38 }
 0x1b1   : > { %22509 = vst [vmem:[#allocation63_spill] sm:$0xff] %v17259_v5  ;;  %v17264_v27 = vpop.f32.mrf.mxu0  ;;  %13556 = vmatpush3.msra.mxu0 %v3797_v38  ;;  %v3794_v38 = vld [vmem:[%s22360_s1 + $0x548] sm:$0xff] }
 0x1b2   : > { %22508 = vst [vmem:[#allocation62_spill] sm:$0xff] %v17257_v61  ;;  %22510 = vst [vmem:[#allocation64_spill] sm:$0xff] %v17264_v27  ;;  %v17266_v11 = vpop.f32.mrf.mxu1  ;;  %13557 = vmatprep.subr.mxu0 %v3796_v37 }
 0x1b3   : > { %22511 = vst [vmem:[#allocation65_spill] sm:$0xff] %v17266_v11  ;;  %v12982_v45 = vpop.f32.mrf.mxu0  ;;  %13558 = vmatpush3.msra.mxu0 %v3796_v37  ;;  %v3795_v11 = vld [vmem:[%s22360_s1 + $0x550] sm:$0xff] }
 0x1b4   : > { %v17272_v29 = vadd.f32 %v12982_v45, %v17060_v47  ;;  %v17274_v26 = vpop.f32.mrf.mxu1  ;;  %13559 = vmatprep.subr.mxu0 %v3795_v11 }
 0x1b5   : > { %22513 = vst [vmem:[#allocation67_spill] sm:$0xff] %v17274_v26  ;;  %v17279_v5 = vpop.f32.mrf.mxu0  ;;  %13560 = vmatpush3.msra.mxu0 %v3795_v11  ;;  %v3792_v11 = vld [vmem:[%s22360_s1 + $0x538] sm:$0xff] }
 0x1b6   : > { %22512 = vst [vmem:[#allocation66_spill] sm:$0xff] %v17272_v29  ;;  %22514 = vst [vmem:[#allocation68_spill] sm:$0xff] %v17279_v5  ;;  %v17281_v48 = vpop.f32.mrf.mxu1  ;;  %13561 = vmatprep.subr.mxu0 %v3794_v38 }
 0x1b7   : > { %22515 = vst [vmem:[#allocation69_spill] sm:$0xff] %v17281_v48  ;;  %v12985_v61 = vpop.f32.mrf.mxu0  ;;  %13562 = vmatpush3.msra.mxu0 %v3794_v38  ;;  %v3793_v48 = vld [vmem:[%s22360_s1 + $0x540] sm:$0xff] }
 0x1b8   : > { %v17287_v47 = vadd.f32 %v12985_v61, %v17077_v12  ;;  %v17289_v45 = vpop.f32.mrf.mxu1  ;;  %13563 = vmatprep.subr.mxu0 %v3793_v48 }
 0x1b9   : > { %22517 = vst [vmem:[#allocation71_spill] sm:$0xff] %v17289_v45  ;;  %v17294_v26 = vpop.f32.mrf.mxu0  ;;  %13564 = vmatpush3.msra.mxu0 %v3793_v48 }
 0x1ba   : > { %22516 = vst [vmem:[#allocation70_spill] sm:$0xff] %v17287_v47  ;;  %22518 = vst [vmem:[#allocation72_spill] sm:$0xff] %v17294_v26  ;;  %v17296_v37 = vpop.f32.mrf.mxu1  ;;  %13565 = vmatprep.subr.mxu0 %v3792_v11 }
 0x1bb   : > { %22519 = vst [vmem:[#allocation73_spill] sm:$0xff] %v17296_v37  ;;  %v12988_v29 = vpop.f32.mrf.mxu0  ;;  %13566 = vmatpush3.msra.mxu0 %v3792_v11  ;;  %v3791_v37 = vld [vmem:[%s22360_s1 + $0x530] sm:$0xff]  ;;  %v3789_v11 = vld [vmem:[%s22360_s1 + $0x520] sm:$0xff] }
 0x1bc   : > { %v17302_v12 = vadd.f32 %v12988_v29, %v17093_v20  ;;  %v17304_v61 = vpop.f32.mrf.mxu1  ;;  %13567 = vmatprep.subr.mxu0 %v3791_v37  ;;  %v3790_v29 = vld [vmem:[%s22360_s1 + $0x528] sm:$0xff] }
 0x1bd   : > { %22521 = vst [vmem:[#allocation75_spill] sm:$0xff] %v17304_v61  ;;  %v17309_v45 = vpop.f32.mrf.mxu0  ;;  %13568 = vmatpush3.msra.mxu0 %v3791_v37  ;;  %v3788_v37 = vld [vmem:[%s22360_s1 + $0x518] sm:$0xff] }
 0x1be   : > { %22520 = vst [vmem:[#allocation74_spill] sm:$0xff] %v17302_v12  ;;  %22522 = vst [vmem:[#allocation76_spill] sm:$0xff] %v17309_v45  ;;  %v17311_v38 = vpop.f32.mrf.mxu1  ;;  %13569 = vmatprep.subr.mxu0 %v3790_v29 }
 0x1bf   : > { %22523 = vst [vmem:[#allocation77_spill] sm:$0xff] %v17311_v38  ;;  %v17316_v47 = vpop.f32.mrf.mxu0  ;;  %13570 = vmatpush3.msra.mxu0 %v3790_v29  ;;  %v3787_v29 = vld [vmem:[%s22360_s1 + $0x510] sm:$0xff] }
 0x1c0   : > { %v17318_v20 = vpop.f32.mrf.mxu1  ;;  %13571 = vmatprep.subr.mxu0 %v3789_v11 }
 0x1c1   : > { %v17323_v48 = vpop.f32.mrf.mxu0  ;;  %13572 = vmatpush3.msra.mxu0 %v3789_v11  ;;  %v3786_v11 = vld [vmem:[%s22360_s1 + $0x508] sm:$0xff] }
 0x1c2   : > { %v17325_v61 = vpop.f32.mrf.mxu1  ;;  %13573 = vmatprep.subr.mxu0 %v3788_v37 }
 0x1c3   : > { %v17330_v38 = vpop.f32.mrf.mxu0  ;;  %13574 = vmatpush3.msra.mxu0 %v3788_v37  ;;  %v3785_v37 = vld [vmem:[%s22360_s1 + $0x500] sm:$0xff] }
 0x1c4   : > { %v17337_v45 = vpop.f32.mrf.mxu1  ;;  %13575 = vmatprep.subr.mxu0 %v3787_v29 }
 0x1c5   : > { %v17335_v12 = vpop.f32.mrf.mxu0  ;;  %13576 = vmatpush3.msra.mxu0 %v3787_v29 }
 0x1c6   : > { %v17347_v5 = vpop.f32.mrf.mxu1  ;;  %13577 = vmatprep.subr.mxu0 %v3786_v11 }
 0x1c7   : > { %v17342_v26 = vpop.f32.mrf.mxu0  ;;  %13578 = vmatpush3.msra.mxu0 %v3786_v11 }
 0x1c8   : > { %13579 = vmatprep.subr.mxu0 %v3785_v37  ;;  %v17356_v1 = vpop.f32.mrf.mxu1 }
 0x1c9   : > { %v17349_v27 = vpop.f32.mrf.mxu0  ;;  %13580 = vmatpush3.msra.mxu0 %v3785_v37 }
 0x1ca   : > { %v17362_v32 = vpop.f32.mrf.mxu1 }
 0x1cb   : > { %v17354_v28 = vpop.f32.mrf.mxu0 }
 0x1cc   : > { %v17368_v11 = vpop.f32.mrf.mxu1 }
 0x1cd   : > { %v17358_v29 = vpop.f32.mrf.mxu0 }
 0x1ce   : > { %v17374_v23 = vpop.f32.mrf.mxu1 }
 0x1cf   : > { %v17360_v18 = vpop.f32.mrf.mxu0  ;;  %22528 = vst [vmem:[#allocation82_spill] sm:$0xff] %v17374_v23 }
 0x1d0   : > { %v17380_v10 = vpop.f32.mrf.mxu1 }
 0x1d1   : > { %v17364_v9 = vpop.f32.mrf.mxu0  ;;  %22531 = vst [vmem:[#allocation85_spill] sm:$0xff] %v17380_v10 }
 0x1d2   : > { %22524 = vst [vmem:[#allocation78_spill] sm:$0xff] %v17364_v9  ;;  %v17386_v46 = vpop.f32.mrf.mxu1 }
 0x1d3   : > { %v17366_v39 = vpop.f32.mrf.mxu0  ;;  %22534 = vst [vmem:[#allocation88_spill] sm:$0xff] %v17386_v46 }
 0x1d4   : > { %22525 = vst [vmem:[#allocation79_spill] sm:$0xff] %v17366_v39 }
 0x1d5   : > { %v17370_v2 = vpop.f32.mrf.mxu0 }
 0x1d6   : > { %22526 = vst [vmem:[#allocation80_spill] sm:$0xff] %v17370_v2  ;;  %v17392_v2 = vpop.f32.mrf.mxu1 }
 0x1d7   : > { %v17372_v44 = vpop.f32.mrf.mxu0  ;;  %22537 = vst [vmem:[#allocation91_spill] sm:$0xff] %v17392_v2 }
 0x1d8   : > { %22527 = vst [vmem:[#allocation81_spill] sm:$0xff] %v17372_v44 }
 0x1d9   : > { %v17376_v37 = vpop.f32.mrf.mxu0 }
 0x1da   : > { %22529 = vst [vmem:[#allocation83_spill] sm:$0xff] %v17376_v37  ;;  %v17398_v37 = vpop.f32.mrf.mxu1 }
 0x1db   : > { %v17378_v33 = vpop.f32.mrf.mxu0  ;;  %22540 = vst [vmem:[#allocation94_spill] sm:$0xff] %v17398_v37 }
 0x1dc   : > { %22530 = vst [vmem:[#allocation84_spill] sm:$0xff] %v17378_v33 }
 0x1dd   : > { %v17382_v51 = vpop.f32.mrf.mxu0 }
 0x1de   : > { %22532 = vst [vmem:[#allocation86_spill] sm:$0xff] %v17382_v51 }
 0x1df   : > { %v17384_v22 = vpop.f32.mrf.mxu0 }
 0x1e0   : > { %22533 = vst [vmem:[#allocation87_spill] sm:$0xff] %v17384_v22  ;;  %v17407_v22 = vld [vmem:[%s22360_s1 + $0x878] sm:$0xff] }
 0x1e1   : > { %v17388_v39 = vpop.f32.mrf.mxu0  ;;  %22543 = vst [vmem:[#allocation97_spill] sm:$0xff] %v17407_v22  ;;  %13709 = vmatprep.subr.mxu0 %v17407_v22 }
 0x1e2   : > { %22535 = vst [vmem:[#allocation89_spill] sm:$0xff] %v17388_v39  ;;  %v17409_v39 = vpop.f32.mrf.mxu1 }
 0x1e3   : > { %v17390_v9 = vpop.f32.mrf.mxu0  ;;  %22544 = vst [vmem:[#allocation98_spill] sm:$0xff] %v17409_v39 }
 0x1e4   : > { %22536 = vst [vmem:[#allocation90_spill] sm:$0xff] %v17390_v9 }
 0x1e5   : > { %v17394_v44 = vpop.f32.mrf.mxu0 }
 0x1e6   : > { %22538 = vst [vmem:[#allocation92_spill] sm:$0xff] %v17394_v44 }
 0x1e7   : > { %v17396_v23 = vpop.f32.mrf.mxu0 }
 0x1e8   : > { %22539 = vst [vmem:[#allocation93_spill] sm:$0xff] %v17396_v23  ;;  %v17416_v23 = vpop.f32.mrf.mxu1 }
 0x1e9   : > { %v17400_v33 = vpop.f32.mrf.mxu0  ;;  %22547 = vst [vmem:[#allocation101_spill] sm:$0xff] %v17416_v23 }
 0x1ea   : > { %22541 = vst [vmem:[#allocation95_spill] sm:$0xff] %v17400_v33  ;;  %v2857_v33 = vlaneseq  ;;  %v17424_v2 = vpop.f32.mrf.mxu1 }
 0x1eb   : > { %v17402_v10 = vpop.f32.mrf.mxu0 }
 0x1ec   : > { %22542 = vst [vmem:[#allocation96_spill] sm:$0xff] %v17402_v10  ;;  %v1424_v10 = vadd.f32 %v16897_v52, %v16893_v35  ;;  %v17429_v39 = vshrl.u32 %v2857_v33, 7  ;;  %v1428_v33 = vadd.f32 %v16917_v40, %v16913_v13 }
 0x1ed   : > { %v17411_v9 = vpop.f32.mrf.mxu0 }
 0x1ee   : > { %22545 = vst [vmem:[#allocation99_spill] sm:$0xff] %v17411_v9  ;;  %v1697_v9 = vadd.f32 %v17111_v14, %v1424_v10  ;;  %22550 = vst [vmem:[#allocation104_spill] sm:$0xff] %v17429_v39  ;;  %v2859_v14 = vsub.s32 0, %v17429_v39 }
 0x1ef   : > { %v17414_v44 = vpop.f32.mrf.mxu0 }
 0x1f0   : > { %22546 = vst [vmem:[#allocation100_spill] sm:$0xff] %v17414_v44  ;;  %v1426_v44 = vadd.f32 %v16907_v0, %v16903_v62  ;;  %v1970_v52 = vadd.f32 %v17113_v30, %v1697_v9  ;;  %v171_v62 = vld [vmem:[%s22361_s2] sm:$0xf]  ;;  %v1973_v0 = vadd.f32 %v17121_v31, %v17119_v3  ;;  %v1975_v3 = vadd.f32 %v17136_v15, %v17134_v7 }
 0x1f1   : > { %v17418_v51 = vpop.f32.mrf.mxu0  ;;  %v22552_v15 = vld [vmem:[#allocation4_spill] sm:$0xff] }
 0x1f2   : > { %22548 = vst [vmem:[#allocation102_spill] sm:$0xff] %v17418_v51  ;;  %v1971_v51 = vadd.f32 %v17106_v53, %v17104_v19  ;;  %v1699_v35 = vadd.f32 %v17126_v49, %v1426_v44  ;;  %v2279_v9 = vadd.f32 %v17323_v48, %v1970_v52  ;;  %v1701_v19 = vadd.f32 %v17144_v63, %v1428_v33 }
 0x1f3   : > { %v17420_v37 = vpop.f32.mrf.mxu0  ;;  %v2282_v40 = vadd.f32 %v17330_v38, %v1973_v0  ;;  %v17463_v49 = vrot.slane %v171_v62, %v2859_v14  ;;  %v1430_v44 = vadd.f32 %v16927_v21, %v16923_v59  ;;  %v2284_v38 = vadd.f32 %v17342_v26, %v1975_v3  ;;  %v22554_v0 = vld [vmem:[#allocation6_spill] sm:$0xff] }
 0x1f4   : > { %22549 = vst [vmem:[#allocation103_spill] sm:$0xff] %v17420_v37  ;;  %v17437_v37 = vpop.f32.mrf.mxu1  ;;  %v2280_v10 = vadd.f32 %v17316_v47, %v1971_v51  ;;  %v1972_v30 = vadd.f32 %v17128_v54, %v1699_v35  ;;  %v2552_v63 = vadd.f32 %v17325_v61, %v2279_v9  ;;  %v1974_v54 = vadd.f32 %v17146_v50, %v1701_v19  ;;  %v22553_v61 = vld [vmem:[#allocation5_spill] sm:$0xff]  ;;  %v22555_v9 = vld [vmem:[#allocation7_spill] sm:$0xff] }
 0x1f5   : > { %v17426_v46 = vpop.f32.mrf.mxu0  ;;  %v2555_v59 = vadd.f32 %v17337_v45, %v2282_v40  ;;  %v1432_v50 = vadd.f32 %v16937_v42, %v16933_v41  ;;  %v17496_v19 = vadd.f32 %v22555_v9, %v22554_v0 }
 0x1f6   : > { %v17456_v53 = vpop.f32.mrf.mxu1  ;;  %v2553_v13 = vadd.f32 %v17318_v20, %v2280_v10  ;;  %v2281_v47 = vadd.f32 %v17335_v12, %v1972_v30  ;;  %v1703_v20 = vadd.f32 %v17165_v24, %v1430_v44  ;;  %v17482_v10 = vadd.f32 %v22553_v61, %v22552_v15  ;;  %v22556_v44 = vld [vmem:[#allocation8_spill] sm:$0xff] }
 0x1f7   : > { %v17431_v22 = vpop.f32.mrf.mxu0  ;;  %v1977_v24 = vadd.f32 %v17157_v34, %v17155_v36  ;;  %v2283_v26 = vadd.f32 %v17349_v27, %v1974_v54  ;;  %v1705_v42 = vadd.f32 %v17177_v55, %v1432_v50  ;;  %v2557_v34 = vadd.f32 %v17356_v1, %v2284_v38  ;;  %v22559_v38 = vld [vmem:[#allocation11_spill] sm:$0xff]  ;;  %v22560_v61 = vld [vmem:[#allocation12_spill] sm:$0xff] }
 0x1f8   : > { %22551 = vst [vmem:[#allocation105_spill] sm:$0xff] %v17431_v22  ;;  %v17474_v52 = vpop.f32.mrf.mxu1  ;;  %v2554_v14 = vadd.f32 %v17347_v5, %v2281_v47  ;;  %v1976_v41 = vadd.f32 %v17167_v60, %v1703_v20  ;;  %v22557_v60 = vld [vmem:[#allocation9_spill] sm:$0xff]  ;;  %v1434_v55 = vadd.f32 %v16950_v43, %v16946_v8  ;;  %v1979_v1 = vadd.f32 %v17175_v6, %v17173_v58  ;;  %v22558_v20 = vld [vmem:[#allocation10_spill] sm:$0xff] }
 0x1f9   : > { %v17439_v23 = vpop.f32.mrf.mxu0  ;;  %v2286_v5 = vadd.f32 %v17354_v28, %v1977_v24  ;;  %v17512_v3 = vadd.f32 %v22557_v60, %v22556_v44  ;;  %v2556_v28 = vadd.f32 %v17362_v32, %v2283_v26  ;;  %v17528_v8 = vadd.f32 %v22559_v38, %v22558_v20  ;;  %v22569_v60 = vld [vmem:[#allocation79_spill] sm:$0xff] }
 0x1fa   : > { %v17501_v36 = vpop.f32.mrf.mxu1  ;;  %v1978_v43 = vadd.f32 %v17179_v17, %v1705_v42  ;;  %v1707_v58 = vadd.f32 %v17186_v16, %v1434_v55  ;;  %v2288_v6 = vadd.f32 %v17360_v18, %v1979_v1  ;;  %v22561_v17 = vld [vmem:[#allocation13_spill] sm:$0xff]  ;;  %v1436_v18 = vadd.f32 %v16963_v25, %v16959_v57  ;;  %v22565_v42 = vld [vmem:[#allocation15_spill] sm:$0xff]  ;;  %v22566_v25 = vld [vmem:[#allocation36_spill] sm:$0xff] }
 0x1fb   : > { %v17447_v22 = vpop.f32.mrf.mxu0  ;;  %v17544_v50 = vadd.f32 %v22561_v17, %v22560_v61  ;;  %v1981_v16 = vadd.f32 %v17184_v56, %v17182_v4  ;;  %v22567_v4 = vld [vmem:[#allocation40_spill] sm:$0xff]  ;;  %v22572_v38 = vld [vmem:[#allocation19_spill] sm:$0xff] }
 0x1fc   : > { %v17533_v32 = vpop.f32.mrf.mxu1  ;;  %v1980_v56 = vadd.f32 %v22566_v25, %v1707_v58  ;;  %v22579_v25 = vld [vmem:[#allocation44_spill] sm:$0xff] }
 0x1fd   : > { %v17458_v51 = vpop.f32.mrf.mxu0  ;;  %v2290_v55 = vadd.f32 %v22569_v60, %v1981_v16 }
 0x1ff   : > { %v13263_v31 = vpop.f32.mrf.mxu0 }
 0x200   : > { %v2826_v48 = vadd.f32 %v13263_v31, %v2553_v13 }
 0x201   : > { %v2666_v35 = vpop.f32.mrf.mxu0 }
 0x202   : > { %v17478_v21 = vadd.f32 %v17463_v49, %v2826_v48  ;;  %v2825_v7 = vadd.f32 %v2666_v35, %v2552_v63  ;;  %v2285_v63 = vadd.f32 %v17358_v29, %v1976_v41  ;;  %v2559_v35 = vadd.f32 %v17368_v11, %v2286_v5  ;;  %v22562_v11 = vld [vmem:[#allocation78_spill] sm:$0xff] }
 0x203   : > { %v13266_v12 = vpop.f32.mrf.mxu0  ;;  %v2287_v24 = vadd.f32 %v22562_v11, %v1978_v43  ;;  %v22564_v41 = vld [vmem:[#allocation14_spill] sm:$0xff]  ;;  %v22573_v43 = vld [vmem:[#allocation20_spill] sm:$0xff] }
 0x204   : > { %v22380_v45 = vmax.f32 %v17478_v21, 0.0  ;;  %v17492_v33 = vadd.f32 %v17463_v49, %v2825_v7  ;;  %v2828_v62 = vadd.f32 %v13266_v12, %v2555_v59  ;;  %v22563_v12 = vld [vmem:[#allocation82_spill] sm:$0xff]  ;;  %v17560_v57 = vadd.f32 %v22565_v42, %v22564_v41  ;;  %v22577_v11 = vld [vmem:[#allocation80_spill] sm:$0xff] }
 0x205   : > { %v2676_v27 = vpop.f32.mrf.mxu0  ;;  %v1438_v58 = vadd.f32 %v22573_v43, %v22572_v38  ;;  %v3490_v41 = vld [vmem:[%s22360_s1 + $0x7f0] sm:$0xff]  ;;  %v22583_v43 = vld [vmem:[#allocation21_spill] sm:$0xff] }
 0x206   : > { %2927 = vst [vmem:[#allocation3 + $0x21] sm:$0xff] %v22380_v45  ;;  %v22381_v30 = vmax.f32 %v17492_v33, 0.0  ;;  %v17508_v13 = vadd.f32 %v17463_v49, %v2828_v62  ;;  %v2827_v40 = vadd.f32 %v2676_v27, %v2554_v14  ;;  %v2558_v14 = vadd.f32 %v22563_v12, %v2285_v63  ;;  %v22568_v27 = vld [vmem:[#allocation85_spill] sm:$0xff] }
 0x207   : > { %v13269_v31 = vpop.f32.mrf.mxu0  ;;  %v2561_v5 = vadd.f32 %v22568_v27, %v2288_v6  ;;  %v22570_v63 = vld [vmem:[#allocation17_spill] sm:$0xff] }
 0x208   : > { %2926 = vst [vmem:[#allocation3 + $0x19] sm:$0xff] %v22381_v30  ;;  %v22378_v47 = vmax.f32 %v17508_v13, 0.0  ;;  %v17524_v48 = vadd.f32 %v17463_v49, %v2827_v40  ;;  %v2830_v54 = vadd.f32 %v13269_v31, %v2557_v34  ;;  %v1709_v34 = vadd.f32 %v22567_v4, %v1436_v18  ;;  %v17565_v40 = vpop.f32.mrf.mxu1  ;;  %v22574_v6 = vld [vmem:[#allocation37_spill] sm:$0xff]  ;;  %v22626_v30 = vld [vmem:[#allocation95_spill] sm:$0xff] }
 0x209   : > { %v2686_v29 = vpop.f32.mrf.mxu0  ;;  %v1711_v4 = vadd.f32 %v22579_v25, %v1438_v58  ;;  %v22580_v27 = vld [vmem:[#allocation81_spill] sm:$0xff]  ;;  %v22584_v58 = vld [vmem:[#allocation22_spill] sm:$0xff] }
 0x20a   : > { %2929 = vst [vmem:[#allocation3 + $0x39] sm:$0xff] %v22378_v47  ;;  %v22379_v59 = vmax.f32 %v17524_v48, 0.0  ;;  %v17540_v7 = vadd.f32 %v17463_v49, %v2830_v54  ;;  %v2829_v15 = vadd.f32 %v2686_v29, %v2556_v28  ;;  %v22571_v54 = vld [vmem:[#allocation18_spill] sm:$0xff] }
 0x20b   : > { %v13272_v26 = vpop.f32.mrf.mxu0  ;;  %v17576_v20 = vadd.f32 %v22571_v54, %v22570_v63  ;;  %v22575_v29 = vld [vmem:[#allocation38_spill] sm:$0xff]  ;;  %v22581_v63 = vld [vmem:[#allocation91_spill] sm:$0xff] }
 0x20c   : > { %2928 = vst [vmem:[#allocation3 + $0x31] sm:$0xff] %v22379_v59  ;;  %v22376_v62 = vmax.f32 %v17540_v7, 0.0  ;;  %v17556_v0 = vadd.f32 %v17463_v49, %v2829_v15  ;;  %v2832_v9 = vadd.f32 %v13272_v26, %v2559_v35  ;;  %v1983_v35 = vadd.f32 %v22575_v29, %v22574_v6  ;;  %v22576_v15 = vld [vmem:[#allocation88_spill] sm:$0xff]  ;;  %v22585_v29 = vld [vmem:[#allocation23_spill] sm:$0xff] }
 0x20d   : > { %v2696_v44 = vpop.f32.mrf.mxu0  ;;  %v2560_v61 = vadd.f32 %v22576_v15, %v2287_v24  ;;  %v2289_v26 = vadd.f32 %v22577_v11, %v1980_v56  ;;  %v22578_v24 = vld [vmem:[#allocation41_spill] sm:$0xff]  ;;  %v1440_v6 = vadd.f32 %v22584_v58, %v22583_v43  ;;  %v22586_v15 = vld [vmem:[#allocation42_spill] sm:$0xff] }
 0x20e   : > { %2931 = vst [vmem:[#allocation3 + $0x51] sm:$0xff] %v22376_v62  ;;  %v22377_v1 = vmax.f32 %v17556_v0, 0.0  ;;  %v17572_v28 = vadd.f32 %v17463_v49, %v2832_v9  ;;  %v2831_v31 = vadd.f32 %v2696_v44, %v2558_v14  ;;  %v1982_v42 = vadd.f32 %v22578_v24, %v1709_v34  ;;  %v17594_v44 = vpop.f32.mrf.mxu1  ;;  %v22582_v34 = vld [vmem:[#allocation39_spill] sm:$0xff] }
 0x20f   : > { %v13275_v17 = vpop.f32.mrf.mxu0  ;;  %v2960_v18 = vld [vmem:[#allocation3 + $0x18] sm:$0xff]  ;;  %v2961_v16 = vld [vmem:[#allocation3 + $0x20] sm:$0xff]  ;;  %v2292_v56 = vadd.f32 %v22580_v27, %v1983_v35  ;;  %v1133_v35 = vadd.f32 %v22585_v29, %v17482_v10 }
 0x210   : > { %2930 = vst [vmem:[#allocation3 + $0x49] sm:$0xff] %v22377_v1  ;;  %v22375_v12 = vmax.f32 %v17572_v28, 0.0  ;;  %v2867_v14 = vadd.f32 %v17463_v49, %v2831_v31  ;;  %v2834_v9 = vadd.f32 %v13275_v17, %v2561_v5  ;;  %13341 = vmatprep.mubr.f32.mxu1 %v2960_v18  ;;  %13424 = vmatprep.mubr.f32.mxu0 %v2960_v18  ;;  %v22587_v17 = vld [vmem:[#allocation43_spill] sm:$0xff]  ;;  %v17627_v29 = vpop.f32.mrf.mxu1  ;;  %v22607_v1 = vld [vmem:[#allocation89_spill] sm:$0xff] }
 0x211   : > { %v2706_v60 = vpop.f32.mrf.mxu0  ;;  %13342 = vmatmul.mubr.f32.vlgmr.msra.gmra.mxu1 %v2961_v16  ;;  %13425 = vmatmul.mubr.f32.gmra.mxu0 %v2961_v16  ;;  %v2563_v31 = vadd.f32 %v22581_v63, %v2290_v55  ;;  %v1985_v18 = vadd.f32 %v22587_v17, %v22586_v15  ;;  %v22588_v55 = vld [vmem:[#allocation83_spill] sm:$0xff] }
 0x212   : > { %2933 = vst [vmem:[#allocation3 + $0x69] sm:$0xff] %v22375_v12  ;;  %v17599_v5 = vmax.f32 %v2867_v14, 0.0  ;;  %v2870_v54 = vadd.f32 %v17463_v49, %v2834_v9  ;;  %v2833_v38 = vadd.f32 %v2706_v60, %v2560_v61  ;;  %13470 = vmatpush3.msra.mxu1 %v22582_v34  ;;  %v2291_v16 = vadd.f32 %v22588_v55, %v1982_v42  ;;  %v22589_v61 = vld [vmem:[#allocation94_spill] sm:$0xff]  ;;  %v3489_v42 = vld [vmem:[%s22360_s1 + $0x7e8] sm:$0xff]  ;;  %v22591_v34 = vld [vmem:[#allocation48_spill] sm:$0xff] }
 0x213   : > { %v13278_v11 = vpop.f32.mrf.mxu0  ;;  %v17610_v24 = vld [vmem:[#allocation3 + $0x30] sm:$0xff]  ;;  %v17612_v14 = vld [vmem:[#allocation3 + $0x38] sm:$0xff]  ;;  %13471 = vmatprep.subr.mxu1 %v3490_v41  ;;  %v2562_v9 = vadd.f32 %v22589_v61, %v2289_v26  ;;  %v1713_v43 = vadd.f32 %v22591_v34, %v1440_v6  ;;  %v22592_v26 = vld [vmem:[#allocation98_spill] sm:$0xff] }
 0x214   : > { %2932 = vst [vmem:[#allocation3 + $0x61] sm:$0xff] %v17599_v5  ;;  %v17616_v25 = vmax.f32 %v2870_v54, 0.0  ;;  %v2869_v27 = vadd.f32 %v17463_v49, %v2833_v38  ;;  %v2836_v10 = vadd.f32 %v13278_v11, %v2563_v31  ;;  %13344 = vmatprep.mubr.f32.mxu1 %v17610_v24  ;;  %13427 = vmatprep.mubr.f32.mxu0 %v17610_v24  ;;  %v22590_v60 = vld [vmem:[#allocation45_spill] sm:$0xff]  ;;  %v22593_v31 = vld [vmem:[#allocation84_spill] sm:$0xff]  ;;  %v22596_v61 = vld [vmem:[#allocation46_spill] sm:$0xff] }
 0x215   : > { %v1984_v63 = vadd.f32 %v22590_v60, %v1711_v4  ;;  %v2565_v58 = vadd.f32 %v22592_v26, %v2292_v56  ;;  %v2716_v54 = vpop.f32.mrf.mxu0  ;;  %13345 = vmatmul.mubr.f32.gmra.mxu1 %v17612_v14  ;;  %13428 = vmatmul.mubr.f32.gmra.mxu0 %v17612_v14  ;;  %v2294_v38 = vadd.f32 %v22593_v31, %v1985_v18  ;;  %v22594_v6 = vld [vmem:[#allocation24_spill] sm:$0xff]  ;;  %v22595_v56 = vld [vmem:[#allocation25_spill] sm:$0xff]  ;;  %v22597_v60 = vld [vmem:[#allocation47_spill] sm:$0xff] }
 0x216   : > { %2935 = vst [vmem:[#allocation3 + $0x81] sm:$0xff] %v17616_v25  ;;  %v17633_v15 = vmax.f32 %v2869_v27, 0.0  ;;  %v2872_v17 = vadd.f32 %v17463_v49, %v2836_v10  ;;  %v2835_v4 = vadd.f32 %v2716_v54, %v2562_v9  ;;  %13472 = vmatpush3.msra.mxu1 %v3490_v41  ;;  %v1442_v55 = vadd.f32 %v22594_v6, %v1133_v35  ;;  %v22598_v26 = vld [vmem:[#allocation101_spill] sm:$0xff]  ;;  %v22599_v27 = vld [vmem:[#allocation86_spill] sm:$0xff]  ;;  %v22601_v6 = vld [vmem:[#allocation52_spill] sm:$0xff] }
 0x217   : > { %v1135_v11 = vadd.f32 %v22595_v56, %v17496_v19  ;;  %v1987_v34 = vadd.f32 %v22597_v60, %v22596_v61  ;;  %v2564_v12 = vadd.f32 %v22598_v26, %v2291_v16  ;;  %v13281_v62 = vpop.f32.mrf.mxu0  ;;  %v17642_v18 = vld [vmem:[#allocation3 + $0x48] sm:$0xff]  ;;  %v17644_v31 = vld [vmem:[#allocation3 + $0x50] sm:$0xff]  ;;  %13473 = vmatprep.subr.mxu1 %v3489_v42  ;;  %v2293_v10 = vadd.f32 %v22599_v27, %v1984_v63  ;;  %v22600_v9 = vld [vmem:[#allocation49_spill] sm:$0xff]  ;;  %v17659_v60 = vpop.f32.mrf.mxu1 }
 0x218   : > { %2934 = vst [vmem:[#allocation3 + $0x79] sm:$0xff] %v17633_v15  ;;  %v17648_v41 = vmax.f32 %v2872_v17, 0.0  ;;  %v2871_v35 = vadd.f32 %v17463_v49, %v2835_v4  ;;  %v2838_v19 = vadd.f32 %v13281_v62, %v2565_v58  ;;  %13347 = vmatprep.mubr.f32.mxu1 %v17642_v18  ;;  %13430 = vmatprep.mubr.f32.mxu0 %v17642_v18  ;;  %v3488_v16 = vld [vmem:[%s22360_s1 + $0x7e0] sm:$0xff]  ;;  %v22602_v63 = vld [vmem:[#allocation87_spill] sm:$0xff] }
 0x219   : > { %v1986_v54 = vadd.f32 %v22600_v9, %v1713_v43  ;;  %v1715_v56 = vadd.f32 %v22601_v6, %v1442_v55  ;;  %v2296_v61 = vadd.f32 %v22602_v63, %v1987_v34  ;;  %v2726_v17 = vpop.f32.mrf.mxu0  ;;  %13348 = vmatmul.mubr.f32.gmra.mxu1 %v17644_v31  ;;  %13431 = vmatmul.mubr.f32.gmra.mxu0 %v17644_v31  ;;  %v22603_v55 = vld [vmem:[#allocation26_spill] sm:$0xff]  ;;  %v22604_v34 = vld [vmem:[#allocation27_spill] sm:$0xff] }
 0x21a   : > { %v2567_v62 = vadd.f32 %v17424_v2, %v2294_v38  ;;  %2937 = vst [vmem:[#allocation3 + $0x99] sm:$0xff] %v17648_v41  ;;  %v17665_v58 = vmax.f32 %v2871_v35, 0.0  ;;  %v2874_v4 = vadd.f32 %v17463_v49, %v2838_v19  ;;  %v2837_v43 = vadd.f32 %v2726_v17, %v2564_v12  ;;  %13474 = vmatpush3.msra.mxu1 %v3489_v42  ;;  %v22605_v9 = vld [vmem:[#allocation50_spill] sm:$0xff]  ;;  %v22606_v6 = vld [vmem:[#allocation51_spill] sm:$0xff] }
 0x21b   : > { %v1444_v26 = vadd.f32 %v22603_v55, %v1135_v11  ;;  %v1137_v27 = vadd.f32 %v22604_v34, %v17512_v3  ;;  %v1989_v63 = vadd.f32 %v22606_v6, %v22605_v9  ;;  %v2295_v47 = vadd.f32 %v22607_v1, %v1986_v54  ;;  %v13284_v59 = vpop.f32.mrf.mxu0  ;;  %v17674_v2 = vld [vmem:[#allocation3 + $0x60] sm:$0xff]  ;;  %v17676_v38 = vld [vmem:[#allocation3 + $0x68] sm:$0xff]  ;;  %13475 = vmatprep.subr.mxu1 %v3488_v16  ;;  %v22609_v11 = vld [vmem:[#allocation53_spill] sm:$0xff] }
 0x21c   : > { %v2566_v35 = vadd.f32 %v17437_v37, %v2293_v10  ;;  %2936 = vst [vmem:[#allocation3 + $0x91] sm:$0xff] %v17665_v58  ;;  %v17680_v12 = vmax.f32 %v2874_v4, 0.0  ;;  %v2873_v42 = vadd.f32 %v17463_v49, %v2837_v43  ;;  %v2840_v3 = vadd.f32 %v13284_v59, %v2567_v62  ;;  %13350 = vmatprep.mubr.f32.mxu1 %v17674_v2  ;;  %v3487_v1 = vld [vmem:[%s22360_s1 + $0x7d8] sm:$0xff]  ;;  %v22610_v54 = vld [vmem:[#allocation56_spill] sm:$0xff]  ;;  %v17691_v10 = vpop.f32.mrf.mxu1  ;;  %v22611_v59 = vld [vmem:[#allocation90_spill] sm:$0xff] }
 0x21d   : > { %13433 = vmatprep.mubr.f32.mxu0 %v17674_v2  ;;  %v1988_v19 = vadd.f32 %v22609_v11, %v1715_v56  ;;  %v1717_v17 = vadd.f32 %v22610_v54, %v1444_v26  ;;  %v2569_v37 = vadd.f32 %v17456_v53, %v2296_v61  ;;  %v2736_v4 = vpop.f32.mrf.mxu0  ;;  %13351 = vmatmul.mubr.f32.gmra.mxu1 %v17676_v38  ;;  %v22612_v26 = vld [vmem:[#allocation28_spill] sm:$0xff]  ;;  %v22613_v53 = vld [vmem:[#allocation29_spill] sm:$0xff]  ;;  %v22614_v9 = vld [vmem:[#allocation54_spill] sm:$0xff] }
 0x21e   : > { %22608 = vst [vmem:[#allocation4_spill] sm:$0xff] %v17680_v12  ;;  %13434 = vmatmul.mubr.f32.gmra.mxu0 %v17676_v38  ;;  %v2298_v62 = vadd.f32 %v22611_v59, %v1989_v63  ;;  %2939 = vst [vmem:[#allocation3 + $0xb1] sm:$0xff] %v17680_v12  ;;  %v17697_v43 = vmax.f32 %v2873_v42, 0.0  ;;  %v2876_v55 = vadd.f32 %v17463_v49, %v2840_v3  ;;  %13476 = vmatpush3.msra.mxu1 %v3488_v16  ;;  %v22615_v6 = vld [vmem:[#allocation55_spill] sm:$0xff]  ;;  %v22616_v42 = vld [vmem:[#allocation92_spill] sm:$0xff] }
 0x21f   : > { %v2839_v56 = vadd.f32 %v2736_v4, %v2566_v35  ;;  %v1446_v34 = vadd.f32 %v22612_v26, %v1137_v27  ;;  %v1139_v61 = vadd.f32 %v22613_v53, %v17528_v8  ;;  %v1991_v11 = vadd.f32 %v22615_v6, %v22614_v9  ;;  %v13287_v45 = vpop.f32.mrf.mxu0  ;;  %v17706_v63 = vld [vmem:[#allocation3 + $0x78] sm:$0xff]  ;;  %v17708_v59 = vld [vmem:[#allocation3 + $0x80] sm:$0xff]  ;;  %13477 = vmatprep.subr.mxu1 %v3487_v1  ;;  %v22619_v4 = vld [vmem:[#allocation60_spill] sm:$0xff]  ;;  %v17723_v9 = vpop.f32.mrf.mxu1 }
 0x220   : > { %v2568_v54 = vadd.f32 %v17474_v52, %v2295_v47  ;;  %v2297_v3 = vadd.f32 %v22616_v42, %v1988_v19  ;;  %2938 = vst [vmem:[#allocation3 + $0xa9] sm:$0xff] %v17697_v43  ;;  %v17712_v16 = vmax.f32 %v2876_v55, 0.0  ;;  %v2842_v8 = vadd.f32 %v13287_v45, %v2569_v37  ;;  %13353 = vmatprep.mubr.f32.mxu1 %v17706_v63  ;;  %v3486_v52 = vld [vmem:[%s22360_s1 + $0x7d0] sm:$0xff]  ;;  %v22618_v47 = vld [vmem:[#allocation57_spill] sm:$0xff] }
 0x221   : > { %v2875_v27 = vadd.f32 %v17463_v49, %v2839_v56  ;;  %13436 = vmatprep.mubr.f32.mxu0 %v17706_v63  ;;  %v1990_v35 = vadd.f32 %v22618_v47, %v1717_v17  ;;  %v1719_v26 = vadd.f32 %v22619_v4, %v1446_v34  ;;  %v22620_v19 = vld [vmem:[#allocation93_spill] sm:$0xff]  ;;  %v2746_v55 = vpop.f32.mrf.mxu0  ;;  %13354 = vmatmul.mubr.f32.gmra.mxu1 %v17708_v59  ;;  %v22622_v34 = vld [vmem:[#allocation30_spill] sm:$0xff]  ;;  %v22625_v4 = vld [vmem:[#allocation59_spill] sm:$0xff] }
 0x222   : > { %22617 = vst [vmem:[#allocation5_spill] sm:$0xff] %v17712_v16  ;;  %v2300_v53 = vadd.f32 %v22620_v19, %v1991_v11  ;;  %13437 = vmatmul.mubr.f32.gmra.mxu0 %v17708_v59  ;;  %v2571_v45 = vadd.f32 %v17501_v36, %v2298_v62  ;;  %2941 = vst [vmem:[#allocation3 + $0xc9] sm:$0xff] %v17712_v16  ;;  %v2878_v56 = vadd.f32 %v17463_v49, %v2842_v8  ;;  %v22623_v11 = vld [vmem:[#allocation31_spill] sm:$0xff]  ;;  %v22624_v47 = vld [vmem:[#allocation58_spill] sm:$0xff] }
 0x223   : > { %v17729_v37 = vmax.f32 %v2875_v27, 0.0  ;;  %v2841_v17 = vadd.f32 %v2746_v55, %v2568_v54  ;;  %13478 = vmatpush3.msra.mxu1 %v3487_v1  ;;  %v1448_v6 = vadd.f32 %v22622_v34, %v1139_v61  ;;  %v1141_v42 = vadd.f32 %v22623_v11, %v17544_v50  ;;  %v13290_v12 = vpop.f32.mrf.mxu0  ;;  %v17738_v36 = vld [vmem:[#allocation3 + $0x90] sm:$0xff]  ;;  %v17740_v62 = vld [vmem:[#allocation3 + $0x98] sm:$0xff] }
 0x224   : > { %v1993_v19 = vadd.f32 %v22625_v4, %v22624_v47  ;;  %v2299_v39 = vadd.f32 %v22626_v30, %v1990_v35  ;;  %13479 = vmatprep.subr.mxu1 %v3486_v52  ;;  %v2570_v27 = vadd.f32 %v17533_v32, %v2297_v3  ;;  %v17744_v1 = vmax.f32 %v2878_v56, 0.0  ;;  %13356 = vmatprep.mubr.f32.mxu1 %v17738_v36  ;;  %v3485_v30 = vld [vmem:[%s22360_s1 + $0x7c8] sm:$0xff]  ;;  %v22629_v35 = vld [vmem:[#allocation64_spill] sm:$0xff]  ;;  %v17755_v3 = vpop.f32.mrf.mxu1  ;;  %v22634_v47 = vld [vmem:[#allocation62_spill] sm:$0xff] }
 0x225   : > { %22621 = vst [vmem:[#allocation6_spill] sm:$0xff] %v17729_v37  ;;  %2940 = vst [vmem:[#allocation3 + $0xc1] sm:$0xff] %v17729_v37  ;;  %v2877_v61 = vadd.f32 %v17463_v49, %v2841_v17  ;;  %v2844_v50 = vadd.f32 %v13290_v12, %v2571_v45  ;;  %13439 = vmatprep.mubr.f32.mxu0 %v17738_v36  ;;  %v22628_v54 = vld [vmem:[#allocation61_spill] sm:$0xff]  ;;  %v1721_v55 = vadd.f32 %v22629_v35, %v1448_v6  ;;  %v2756_v56 = vpop.f32.mrf.mxu0  ;;  %v22630_v12 = vld [vmem:[#allocation96_spill] sm:$0xff] }
 0x226   : > { %22627 = vst [vmem:[#allocation7_spill] sm:$0xff] %v17744_v1  ;;  %v1992_v8 = vadd.f32 %v22628_v54, %v1719_v26  ;;  %v2573_v32 = vadd.f32 %v17565_v40, %v2300_v53  ;;  %13357 = vmatmul.mubr.f32.gmra.mxu1 %v17740_v62  ;;  %13440 = vmatmul.mubr.f32.gmra.mxu0 %v17740_v62  ;;  %2943 = vst [vmem:[#allocation3 + $0xe1] sm:$0xff] %v17744_v1  ;;  %v22632_v6 = vld [vmem:[#allocation32_spill] sm:$0xff]  ;;  %v22633_v40 = vld [vmem:[#allocation33_spill] sm:$0xff] }
 0x227   : > { %v2302_v45 = vadd.f32 %v22630_v12, %v1993_v19  ;;  %v17761_v17 = vmax.f32 %v2877_v61, 0.0  ;;  %v2880_v34 = vadd.f32 %v17463_v49, %v2844_v50  ;;  %v2843_v26 = vadd.f32 %v2756_v56, %v2570_v27  ;;  %13480 = vmatpush3.msra.mxu1 %v3486_v52  ;;  %v22635_v4 = vld [vmem:[#allocation63_spill] sm:$0xff]  ;;  %v13293_v16 = vpop.f32.mrf.mxu0  ;;  %v17772_v12 = vld [vmem:[#allocation3 + $0xb0] sm:$0xff]  ;;  %v22645_v1 = vld [vmem:[#allocation102_spill] sm:$0xff] }
 0x228   : > { %v1450_v11 = vadd.f32 %v22632_v6, %v1141_v42  ;;  %v1143_v53 = vadd.f32 %v22633_v40, %v17560_v57  ;;  %v1995_v54 = vadd.f32 %v22635_v4, %v22634_v47  ;;  %v2572_v35 = vadd.f32 %v17594_v44, %v2299_v39  ;;  %v17770_v19 = vld [vmem:[#allocation3 + $0xa8] sm:$0xff]  ;;  %13481 = vmatprep.subr.mxu1 %v3485_v30  ;;  %v3484_v39 = vld [vmem:[%s22360_s1 + $0x7c0] sm:$0xff]  ;;  %v22638_v44 = vld [vmem:[#allocation65_spill] sm:$0xff]  ;;  %v17787_v47 = vpop.f32.mrf.mxu1 }
 0x229   : > { %22631 = vst [vmem:[#allocation8_spill] sm:$0xff] %v17761_v17  ;;  %v22636_v61 = vld [vmem:[#allocation99_spill] sm:$0xff]  ;;  %2942 = vst [vmem:[#allocation3 + $0xd9] sm:$0xff] %v17761_v17  ;;  %v17776_v52 = vmax.f32 %v2880_v34, 0.0  ;;  %v2879_v42 = vadd.f32 %v17463_v49, %v2843_v26  ;;  %v2846_v57 = vadd.f32 %v13293_v16, %v2573_v32  ;;  %13359 = vmatprep.mubr.f32.mxu1 %v17770_v19  ;;  %13442 = vmatprep.mubr.f32.mxu0 %v17770_v19  ;;  %v22639_v56 = vld [vmem:[#allocation68_spill] sm:$0xff]  ;;  %v2766_v34 = vpop.f32.mrf.mxu0 }
 0x22a   : > { %v2301_v50 = vadd.f32 %v22636_v61, %v1992_v8  ;;  %v1994_v27 = vadd.f32 %v22638_v44, %v1721_v55  ;;  %v1723_v6 = vadd.f32 %v22639_v56, %v1450_v11  ;;  %v22640_v8 = vld [vmem:[#allocation100_spill] sm:$0xff]  ;;  %13360 = vmatmul.mubr.f32.gmra.mxu1 %v17772_v12  ;;  %13443 = vmatmul.mubr.f32.gmra.mxu0 %v17772_v12  ;;  %v22641_v11 = vld [vmem:[#allocation34_spill] sm:$0xff]  ;;  %v22644_v56 = vld [vmem:[#allocation67_spill] sm:$0xff] }
 0x22b   : > { %22637 = vst [vmem:[#allocation9_spill] sm:$0xff] %v17776_v52  ;;  %v2304_v40 = vadd.f32 %v22640_v8, %v1995_v54  ;;  %v2575_v16 = vadd.f32 %v17627_v29, %v2302_v45  ;;  %2945 = vst [vmem:[#allocation3 + $0xf9] sm:$0xff] %v17776_v52  ;;  %v17793_v32 = vmax.f32 %v2879_v42, 0.0  ;;  %v2882_v26 = vadd.f32 %v17463_v49, %v2846_v57  ;;  %v22642_v54 = vld [vmem:[#allocation16_spill] sm:$0xff]  ;;  %v22643_v44 = vld [vmem:[#allocation66_spill] sm:$0xff]  ;;  %v13296_v37 = vpop.f32.mrf.mxu0 }
 0x22c   : > { %v2845_v55 = vadd.f32 %v2766_v34, %v2572_v35  ;;  %13482 = vmatpush3.msra.mxu1 %v3485_v30  ;;  %v1452_v4 = vadd.f32 %v22641_v11, %v1143_v53  ;;  %v1145_v61 = vadd.f32 %v22642_v54, %v17576_v20  ;;  %v1997_v8 = vadd.f32 %v22644_v56, %v22643_v44  ;;  %v17802_v29 = vld [vmem:[#allocation3 + $0xc0] sm:$0xff]  ;;  %v17804_v45 = vld [vmem:[#allocation3 + $0xc8] sm:$0xff]  ;;  %v22646_v35 = vld [vmem:[#allocation69_spill] sm:$0xff] }
 0x22d   : > { %v2303_v17 = vadd.f32 %v22645_v1, %v1994_v27  ;;  %13483 = vmatprep.subr.mxu1 %v3484_v39  ;;  %v2574_v42 = vadd.f32 %v17659_v60, %v2301_v50  ;;  %2944 = vst [vmem:[#allocation3 + $0xf1] sm:$0xff] %v17793_v32  ;;  %v17808_v30 = vmax.f32 %v2882_v26, 0.0  ;;  %v2848_v20 = vadd.f32 %v13296_v37, %v2575_v16  ;;  %v3483_v1 = vld [vmem:[%s22360_s1 + $0x7b8] sm:$0xff]  ;;  %v22647_v27 = vld [vmem:[#allocation72_spill] sm:$0xff]  ;;  %v13225_v50 = vpop.f32.mrf.mxu1  ;;  %v2776_v26 = vpop.f32.mrf.mxu0  ;;  %v22650_v44 = vld [vmem:[#allocation70_spill] sm:$0xff] }
 0x22e   : > { %v2881_v53 = vadd.f32 %v17463_v49, %v2845_v55  ;;  %13362 = vmatprep.mubr.f32.mxu1 %v17802_v29  ;;  %13445 = vmatprep.mubr.f32.mxu0 %v17802_v29  ;;  %v1996_v57 = vadd.f32 %v22646_v35, %v1723_v6  ;;  %v1725_v34 = vadd.f32 %v22647_v27, %v1452_v4  ;;  %v22648_v37 = vld [vmem:[#allocation103_spill] sm:$0xff] }
 0x22f   : > { %v2577_v60 = vadd.f32 %v17691_v10, %v2304_v40  ;;  %13363 = vmatmul.mubr.f32.gmra.mxu1 %v17804_v45  ;;  %13446 = vmatmul.mubr.f32.gmra.mxu0 %v17804_v45  ;;  %v2306_v16 = vadd.f32 %v22648_v37, %v1997_v8  ;;  %2947 = vst [vmem:[#allocation3 + $0x111] sm:$0xff] %v17808_v30  ;;  %v22649_v6 = vld [vmem:[#allocation35_spill] sm:$0xff]  ;;  %v13299_v35 = vpop.f32.mrf.mxu0  ;;  %v2533_v37 = vpop.f32.mrf.mxu1 }
 0x230   : > { %v17823_v55 = vmax.f32 %v2881_v53, 0.0  ;;  %v2884_v11 = vadd.f32 %v17463_v49, %v2848_v20  ;;  %v2847_v54 = vadd.f32 %v2776_v26, %v2574_v42  ;;  %13484 = vmatpush3.msra.mxu1 %v3484_v39  ;;  %v1454_v4 = vadd.f32 %v22649_v6, %v1145_v61  ;;  %v22651_v10 = vld [vmem:[#allocation71_spill] sm:$0xff]  ;;  %v17830_v27 = vld [vmem:[#allocation3 + $0xd8] sm:$0xff]  ;;  %v17832_v52 = vld [vmem:[#allocation3 + $0xe0] sm:$0xff] }
 0x231   : > { %v1999_v40 = vadd.f32 %v22651_v10, %v22650_v44  ;;  %v2576_v56 = vadd.f32 %v17723_v9, %v2303_v17  ;;  %13485 = vmatprep.subr.mxu1 %v3483_v1  ;;  %v2305_v8 = vadd.f32 %v17426_v46, %v1996_v57  ;;  %v2850_v61 = vadd.f32 %v13299_v35, %v2577_v60  ;;  %v3482_v9 = vld [vmem:[%s22360_s1 + $0x7b0] sm:$0xff]  ;;  %v22652_v17 = vld [vmem:[#allocation73_spill] sm:$0xff]  ;;  %v22653_v20 = vld [vmem:[#allocation76_spill] sm:$0xff] }
 0x232   : > { %2946 = vst [vmem:[#allocation3 + $0x109] sm:$0xff] %v17823_v55  ;;  %v17836_v53 = vmax.f32 %v2884_v11, 0.0  ;;  %v2883_v39 = vadd.f32 %v17463_v49, %v2847_v54  ;;  %13365 = vmatprep.mubr.f32.mxu1 %v17830_v27  ;;  %13448 = vmatprep.mubr.f32.mxu0 %v17830_v27  ;;  %v1998_v42 = vadd.f32 %v22652_v17, %v1725_v34  ;;  %v22654_v46 = vld [vmem:[#allocation105_spill] sm:$0xff]  ;;  %v2786_v11 = vpop.f32.mrf.mxu0  ;;  %v22655_v34 = vld [vmem:[#allocation74_spill] sm:$0xff] }
 0x233   : > { %v1727_v26 = vadd.f32 %v22653_v20, %v1454_v4  ;;  %v2308_v57 = vadd.f32 %v22654_v46, %v1999_v40  ;;  %13366 = vmatmul.mubr.f32.gmra.mxu1 %v17832_v52  ;;  %13449 = vmatmul.mubr.f32.gmra.mxu0 %v17832_v52  ;;  %v2579_v60 = vadd.f32 %v17755_v3, %v2306_v16  ;;  %v22656_v4 = vld [vmem:[#allocation75_spill] sm:$0xff]  ;;  %v13228_v46 = vpop.f32.mrf.mxu1 }
 0x234   : > { %2949 = vst [vmem:[#allocation3 + $0x129] sm:$0xff] %v17836_v53  ;;  %v17851_v54 = vmax.f32 %v2883_v39, 0.0  ;;  %v2886_v6 = vadd.f32 %v17463_v49, %v2850_v61  ;;  %v2849_v44 = vadd.f32 %v2786_v11, %v2576_v56  ;;  %13486 = vmatpush3.msra.mxu1 %v3483_v1  ;;  %v2001_v10 = vadd.f32 %v22656_v4, %v22655_v34  ;;  %v13302_v35 = vpop.f32.mrf.mxu0  ;;  %v17857_v17 = vld [vmem:[#allocation3 + $0xf0] sm:$0xff]  ;;  %v17859_v20 = vld [vmem:[#allocation3 + $0xf8] sm:$0xff] }
 0x235   : > { %v2307_v40 = vadd.f32 %v17439_v23, %v1998_v42  ;;  %13487 = vmatprep.subr.mxu1 %v3482_v9  ;;  %v2578_v3 = vadd.f32 %v17787_v47, %v2305_v8  ;;  %v2852_v1 = vadd.f32 %v13302_v35, %v2579_v60  ;;  %13368 = vmatprep.mubr.f32.mxu1 %v17857_v17  ;;  %v3481_v23 = vld [vmem:[%s22360_s1 + $0x7a8] sm:$0xff] }
 0x236   : > { %2948 = vst [vmem:[#allocation3 + $0x121] sm:$0xff] %v17851_v54  ;;  %v17863_v16 = vmax.f32 %v2886_v6, 0.0  ;;  %v2885_v56 = vadd.f32 %v17463_v49, %v2849_v44  ;;  %13451 = vmatprep.mubr.f32.mxu0 %v17857_v17  ;;  %v22657_v39 = vld [vmem:[#allocation77_spill] sm:$0xff]  ;;  %v2581_v42 = vadd.f32 %v13225_v50, %v2308_v57  ;;  %v2796_v47 = vpop.f32.mrf.mxu0  ;;  %v2310_v8 = vadd.f32 %v17447_v22, %v2001_v10 }
 0x237   : > { %v2000_v61 = vadd.f32 %v22657_v39, %v1727_v26  ;;  %13369 = vmatmul.mubr.f32.gmra.mxu1 %v17859_v20  ;;  %13452 = vmatmul.mubr.f32.gmra.mxu0 %v17859_v20  ;;  %v2888_v60 = vadd.f32 %v17463_v49, %v2852_v1  ;;  %v2851_v6 = vadd.f32 %v2796_v47, %v2578_v3 }
 0x238   : > { %2951 = vst [vmem:[#allocation3 + $0x141] sm:$0xff] %v17863_v16  ;;  %v17876_v11 = vmax.f32 %v2885_v56, 0.0  ;;  %13488 = vmatpush3.msra.mxu1 %v3482_v9  ;;  %v2580_v44 = vadd.f32 %v2533_v37, %v2307_v40  ;;  %v13305_v34 = vpop.f32.mrf.mxu0  ;;  %v3480_v9 = vld [vmem:[%s22360_s1 + $0x7a0] sm:$0xff]  ;;  %v2543_v37 = vpop.f32.mrf.mxu1 }
 0x239   : > { %v17879_v26 = vld [vmem:[#allocation3 + $0x108] sm:$0xff]  ;;  %v17881_v50 = vld [vmem:[#allocation3 + $0x110] sm:$0xff]  ;;  %13489 = vmatprep.subr.mxu1 %v3481_v23  ;;  %v2309_v57 = vadd.f32 %v17458_v51, %v2000_v61  ;;  %v17885_v22 = vmax.f32 %v2888_v60, 0.0  ;;  %v2887_v4 = vadd.f32 %v17463_v49, %v2851_v6  ;;  %v2854_v10 = vadd.f32 %v13305_v34, %v2581_v42 }
 0x23a   : > { %2950 = vst [vmem:[#allocation3 + $0x139] sm:$0xff] %v17876_v11  ;;  %13371 = vmatprep.mubr.f32.mxu1 %v17879_v26  ;;  %13454 = vmatprep.mubr.f32.mxu0 %v17879_v26  ;;  %v2806_v40 = vpop.f32.mrf.mxu0  ;;  %v2583_v51 = vadd.f32 %v13228_v46, %v2310_v8 }
 0x23b   : > { %13372 = vmatmul.mubr.f32.gmra.mxu1 %v17881_v50  ;;  %13455 = vmatmul.mubr.f32.gmra.mxu0 %v17881_v50  ;;  %2953 = vst [vmem:[#allocation3 + $0x159] sm:$0xff] %v17885_v22  ;;  %v17896_v35 = vmax.f32 %v2887_v4, 0.0  ;;  %v2890_v3 = vadd.f32 %v17463_v49, %v2854_v10  ;;  %v2853_v56 = vadd.f32 %v2806_v40, %v2580_v44  ;;  %v3478_v40 = vld [vmem:[%s22360_s1 + $0x790] sm:$0xff] }
 0x23c   : > { %13490 = vmatpush3.msra.mxu1 %v3481_v23  ;;  %v13308_v1 = vpop.f32.mrf.mxu0  ;;  %v2582_v42 = vadd.f32 %v2543_v37, %v2309_v57  ;;  %v3479_v23 = vld [vmem:[%s22360_s1 + $0x798] sm:$0xff] }
 0x23d   : > { %v17899_v39 = vld [vmem:[#allocation3 + $0x120] sm:$0xff]  ;;  %v17901_v61 = vld [vmem:[#allocation3 + $0x128] sm:$0xff]  ;;  %13491 = vmatprep.subr.mxu1 %v3480_v9  ;;  %2952 = vst [vmem:[#allocation3 + $0x151] sm:$0xff] %v17896_v35  ;;  %v17904_v47 = vmax.f32 %v2890_v3, 0.0  ;;  %v2889_v46 = vadd.f32 %v17463_v49, %v2853_v56  ;;  %v2856_v8 = vadd.f32 %v13308_v1, %v2583_v51  ;;  %v3477_v3 = vld [vmem:[%s22360_s1 + $0x788] sm:$0xff] }
 0x23e   : > { %13374 = vmatprep.mubr.f32.mxu1 %v17899_v39  ;;  %13457 = vmatprep.mubr.f32.mxu0 %v17899_v39  ;;  %v2816_v60 = vpop.f32.mrf.mxu0 }
 0x23f   : > { %13375 = vmatmul.mubr.f32.gmra.mxu1 %v17901_v61  ;;  %13458 = vmatmul.mubr.f32.gmra.mxu0 %v17901_v61  ;;  %2955 = vst [vmem:[#allocation3 + $0x171] sm:$0xff] %v17904_v47  ;;  %v17915_v6 = vmax.f32 %v2889_v46, 0.0  ;;  %v2892_v44 = vadd.f32 %v17463_v49, %v2856_v8  ;;  %v2855_v34 = vadd.f32 %v2816_v60, %v2582_v42  ;;  %v3749_v42 = vld [vmem:[#allocation3 + $0x1] sm:$0xff]  ;;  %v3476_v46 = vld [vmem:[%s22360_s1 + $0x780] sm:$0xff] }
 0x240   : > { %13492 = vmatpush3.msra.mxu1 %v3480_v9  ;;  %v3750_v8 = vld [vmem:[#allocation3 + $0x9] sm:$0xff] }
 0x241   : > { %v17918_v57 = vld [vmem:[#allocation3 + $0x138] sm:$0xff]  ;;  %v17920_v4 = vld [vmem:[#allocation3 + $0x140] sm:$0xff]  ;;  %13493 = vmatprep.subr.mxu1 %v3479_v23  ;;  %2954 = vst [vmem:[#allocation3 + $0x169] sm:$0xff] %v17915_v6  ;;  %v17923_v10 = vmax.f32 %v2892_v44, 0.0  ;;  %v2891_v37 = vadd.f32 %v17463_v49, %v2855_v34  ;;  %v4073_v44 = vld [vmem:[%s22360_s1 + $0x6f8] sm:$0xff] }
 0x242   : > { %13377 = vmatprep.mubr.f32.mxu1 %v17918_v57  ;;  %13460 = vmatprep.mubr.f32.mxu0 %v17918_v57  ;;  %v4345_v34 = vld [vmem:[%s22360_s1 + $0x870] sm:$0xff] }
 0x243   : > { %13378 = vmatmul.mubr.f32.gmra.mxu1 %v17920_v4  ;;  %13461 = vmatmul.mubr.f32.gmra.mxu0 %v17920_v4  ;;  %2957 = vst [vmem:[#allocation3 + $0x189] sm:$0xff] %v17923_v10  ;;  %v17934_v9 = vmax.f32 %v2891_v37, 0.0  ;;  %v22658_v37 = vmax.f32 %v17492_v33, 0.0  ;;  %v22661_v33 = vmax.f32 %v17524_v48, 0.0  ;;  %v22663_v48 = vmax.f32 %v17556_v0, 0.0  ;;  %v4069_v0 = vld [vmem:[%s22360_s1 + $0x6d8] sm:$0xff] }
 0x244   : > { %13494 = vmatpush3.msra.mxu1 %v3479_v23  ;;  %v17936_v51 = vld [vmem:[#allocation3 + $0x150] sm:$0xff]  ;;  %v17938_v49 = vld [vmem:[#allocation3 + $0x158] sm:$0xff] }
 0x245   : > { %13495 = vmatprep.subr.mxu1 %v3478_v40  ;;  %2956 = vst [vmem:[#allocation3 + $0x181] sm:$0xff] %v17934_v9  ;;  %13380 = vmatprep.mubr.f32.mxu1 %v17936_v51 }
 0x246   : > { %13463 = vmatprep.mubr.f32.mxu0 %v17936_v51  ;;  %13496 = vmatpush3.msra.mxu1 %v3478_v40  ;;  %v22659_v40 = vld [vmem:[#allocation97_spill] sm:$0xff] }
 0x247   : > { %13381 = vmatmul.mubr.f32.gmra.mxu1 %v17938_v49  ;;  %13464 = vmatmul.mubr.f32.gmra.mxu0 %v17938_v49 }
 0x248   : > { %v17948_v56 = vld [vmem:[#allocation3 + $0x168] sm:$0xff]  ;;  %v17950_v1 = vld [vmem:[#allocation3 + $0x170] sm:$0xff]  ;;  %13497 = vmatprep.subr.mxu1 %v3477_v3 }
 0x249   : > { %13383 = vmatprep.mubr.f32.mxu1 %v17948_v56  ;;  %13466 = vmatprep.mubr.f32.mxu0 %v17948_v56 }
 0x24a   : > { %13498 = vmatpush3.msra.mxu1 %v3477_v3  ;;  %v22660_v3 = vmax.f32 %v17478_v21, 0.0  ;;  %v22662_v21 = vmax.f32 %v17508_v13, 0.0  ;;  %v22664_v13 = vmax.f32 %v17540_v7, 0.0  ;;  %v22665_v7 = vmax.f32 %v17572_v28, 0.0  ;;  %v4068_v28 = vld [vmem:[%s22360_s1 + $0x6d0] sm:$0xff] }
 0x24b   : > { %13384 = vmatmul.mubr.f32.gmra.mxu1 %v17950_v1  ;;  %13467 = vmatmul.mubr.f32.gmra.mxu0 %v17950_v1 }
 0x24c   : > { %13581 = vmatprep.mubr.f32.mxu0 %v3749_v42  ;;  %v17959_v23 = vld [vmem:[#allocation3 + $0x180] sm:$0xff]  ;;  %v17961_v60 = vld [vmem:[#allocation3 + $0x188] sm:$0xff]  ;;  %13499 = vmatprep.subr.mxu1 %v3476_v46 }
 0x24d   : > { %13386 = vmatprep.mubr.f32.mxu1 %v17959_v23  ;;  %13500 = vmatpush3.msra.mxu1 %v3476_v46  ;;  %v4072_v42 = vld [vmem:[%s22360_s1 + $0x6f0] sm:$0xff]  ;;  %v4065_v46 = vld [vmem:[%s22360_s1 + $0x6b8] sm:$0xff] }
 0x24e   : > { %13629 = vmatprep.subr.mxu1 %v4073_v44 }
 0x24f   : > { %13387 = vmatmul.mubr.f32.gmra.mxu1 %v17961_v60  ;;  %13582 = vmatmul.mubr.f32.vlgmr.msra.gmra.mxu0 %v3750_v8  ;;  %v4337_v8 = vld [vmem:[%s22360_s1 + $0x830] sm:$0xff] }
 0x250   : > { %13501 = vmatprep.mubr.f32.mxu1 %v17610_v24  ;;  %13584 = vmatprep.mubr.f32.mxu0 %v22658_v37  ;;  %v4344_v24 = vld [vmem:[%s22360_s1 + $0x868] sm:$0xff]  ;;  %v4335_v37 = vld [vmem:[%s22360_s1 + $0x820] sm:$0xff] }
 0x251   : > { %13710 = vmatpush3.msra.mxu0 %v22659_v40  ;;  %v4928_v40 = vld [vmem:[%s22360_s1 + $0x778] sm:$0xff] }
 0x252   : > { %13711 = vmatprep.subr.mxu0 %v4345_v34 }
 0x253   : > { %13502 = vmatmul.mubr.f32.vlgmr.msra.gmra.mxu1 %v17612_v14  ;;  %13585 = vmatmul.mubr.f32.gmra.mxu0 %v22660_v3  ;;  %v4071_v14 = vld [vmem:[%s22360_s1 + $0x6e8] sm:$0xff] }
 0x254   : > { %13504 = vmatprep.mubr.f32.mxu1 %v17642_v18  ;;  %13587 = vmatprep.mubr.f32.mxu0 %v22661_v33  ;;  %v4343_v18 = vld [vmem:[%s22360_s1 + $0x860] sm:$0xff]  ;;  %v15482_v3 = vld [vmem:[#allocation2 + $0x8] sm:$0xff] }
 0x255   : > { %13630 = vmatpush3.msra.mxu1 %v4073_v44  ;;  %13712 = vmatpush3.msra.mxu0 %v4345_v34  ;;  %v4064_v44 = vld [vmem:[%s22360_s1 + $0x6b0] sm:$0xff]  ;;  %v4336_v34 = vld [vmem:[%s22360_s1 + $0x828] sm:$0xff]  ;;  %v15485_v33 = vld [vmem:[#allocation3 + $0x49] sm:$0xff] }
 0x256   : > { %13631 = vmatprep.subr.mxu1 %v4072_v42  ;;  %13713 = vmatprep.subr.mxu0 %v4344_v24 }
 0x257   : > { %13505 = vmatmul.mubr.f32.gmra.mxu1 %v17644_v31  ;;  %13588 = vmatmul.mubr.f32.gmra.mxu0 %v22662_v21  ;;  %v4070_v31 = vld [vmem:[%s22360_s1 + $0x6e0] sm:$0xff]  ;;  %v4927_v21 = vld [vmem:[%s22360_s1 + $0x770] sm:$0xff] }
 0x258   : > { %13507 = vmatprep.mubr.f32.mxu1 %v17674_v2  ;;  %13590 = vmatprep.mubr.f32.mxu0 %v22663_v48  ;;  %v4342_v2 = vld [vmem:[%s22360_s1 + $0x858] sm:$0xff]  ;;  %v4654_v48 = vld [vmem:[%s22360_s1 + $0x5f0] sm:$0xff] }
 0x259   : > { %13632 = vmatpush3.msra.mxu1 %v4072_v42  ;;  %13714 = vmatpush3.msra.mxu0 %v4344_v24  ;;  %v15483_v42 = vld [vmem:[#allocation3 + $0x39] sm:$0xff] }
 0x25a   : > { %13633 = vmatprep.subr.mxu1 %v4071_v14  ;;  %13715 = vmatprep.subr.mxu0 %v4343_v18  ;;  %v15484_v24 = vld [vmem:[#allocation3 + $0x19] sm:$0xff] }
 0x25b   : > { %13508 = vmatmul.mubr.f32.gmra.mxu1 %v17676_v38  ;;  %13591 = vmatmul.mubr.f32.gmra.mxu0 %v22664_v13  ;;  %v4341_v38 = vld [vmem:[%s22360_s1 + $0x850] sm:$0xff]  ;;  %v4926_v13 = vld [vmem:[%s22360_s1 + $0x768] sm:$0xff] }
 0x25c   : > { %13510 = vmatprep.mubr.f32.mxu1 %v17706_v63  ;;  %13593 = vmatprep.mubr.f32.mxu0 %v17599_v5  ;;  %v4340_v63 = vld [vmem:[%s22360_s1 + $0x848] sm:$0xff] }
 0x25d   : > { %13634 = vmatpush3.msra.mxu1 %v4071_v14  ;;  %13716 = vmatpush3.msra.mxu0 %v4343_v18  ;;  %v15486_v14 = vld [vmem:[#allocation3 + $0x21] sm:$0xff]  ;;  %v15487_v18 = vld [vmem:[#allocation3 + $0x51] sm:$0xff] }
 0x25e   : > { %13635 = vmatprep.subr.mxu1 %v4070_v31  ;;  %13717 = vmatprep.subr.mxu0 %v4342_v2 }
 0x25f   : > { %13511 = vmatmul.mubr.f32.gmra.mxu1 %v17708_v59  ;;  %13594 = vmatmul.mubr.f32.gmra.mxu0 %v22665_v7  ;;  %v4067_v59 = vld [vmem:[%s22360_s1 + $0x6c8] sm:$0xff]  ;;  %v4652_v7 = vld [vmem:[%s22360_s1 + $0x5e0] sm:$0xff] }
 0x260   : > { %13513 = vmatprep.mubr.f32.mxu1 %v17738_v36  ;;  %13596 = vmatprep.mubr.f32.mxu0 %v17633_v15  ;;  %v4339_v36 = vld [vmem:[%s22360_s1 + $0x840] sm:$0xff] }
 0x261   : > { %13636 = vmatpush3.msra.mxu1 %v4070_v31  ;;  %13718 = vmatpush3.msra.mxu0 %v4342_v2  ;;  %v15488_v31 = vld [vmem:[#allocation3 + $0x69] sm:$0xff]  ;;  %v4653_v2 = vld [vmem:[%s22360_s1 + $0x5e8] sm:$0xff] }
 0x262   : > { %13637 = vmatprep.subr.mxu1 %v4069_v0  ;;  %13719 = vmatprep.subr.mxu0 %v4341_v38 }
 0x263   : > { %13514 = vmatmul.mubr.f32.gmra.mxu1 %v17740_v62  ;;  %13597 = vmatmul.mubr.f32.gmra.mxu0 %v17616_v25  ;;  %v22666_v62 = vld [vmem:[#allocation4_spill] sm:$0xff] }
 0x264   : > { %13516 = vmatprep.mubr.f32.mxu1 %v17770_v19  ;;  %13599 = vmatprep.mubr.f32.mxu0 %v17665_v58  ;;  %v4066_v19 = vld [vmem:[%s22360_s1 + $0x6c0] sm:$0xff] }
 0x265   : > { %13638 = vmatpush3.msra.mxu1 %v4069_v0  ;;  %13720 = vmatpush3.msra.mxu0 %v4341_v38  ;;  %v15489_v0 = vld [vmem:[#allocation3 + $0x61] sm:$0xff] }
 0x266   : > { %13639 = vmatprep.subr.mxu1 %v4068_v28  ;;  %13721 = vmatprep.subr.mxu0 %v4340_v63  ;;  %v4924_v38 = vld [vmem:[%s22360_s1 + $0x758] sm:$0xff] }
 0x267   : > { %13517 = vmatmul.mubr.f32.gmra.mxu1 %v17772_v12  ;;  %13600 = vmatmul.mubr.f32.gmra.mxu0 %v17648_v41  ;;  %v4338_v12 = vld [vmem:[%s22360_s1 + $0x838] sm:$0xff] }
 0x268   : > { %13519 = vmatprep.mubr.f32.mxu1 %v17802_v29  ;;  %13602 = vmatprep.mubr.f32.mxu0 %v17697_v43  ;;  %v22667_v29 = vld [vmem:[#allocation6_spill] sm:$0xff] }
 0x269   : > { %13640 = vmatpush3.msra.mxu1 %v4068_v28  ;;  %13722 = vmatpush3.msra.mxu0 %v4340_v63  ;;  %v4923_v28 = vld [vmem:[%s22360_s1 + $0x750] sm:$0xff] }
 0x26a   : > { %13641 = vmatprep.subr.mxu1 %v4067_v59  ;;  %13723 = vmatprep.subr.mxu0 %v4339_v36  ;;  %v15490_v63 = vld [vmem:[#allocation3 + $0x81] sm:$0xff] }
 0x26b   : > { %13520 = vmatmul.mubr.f32.gmra.mxu1 %v17804_v45  ;;  %13603 = vmatmul.mubr.f32.gmra.mxu0 %v22666_v62  ;;  %v22668_v45 = vld [vmem:[#allocation5_spill] sm:$0xff] }
 0x26c   : > { %13522 = vmatprep.mubr.f32.mxu1 %v17830_v27  ;;  %13605 = vmatprep.mubr.f32.mxu0 %v22667_v29  ;;  %v22669_v27 = vld [vmem:[#allocation8_spill] sm:$0xff] }
 0x26d   : > { %13642 = vmatpush3.msra.mxu1 %v4067_v59  ;;  %13724 = vmatpush3.msra.mxu0 %v4339_v36  ;;  %v4650_v59 = vld [vmem:[%s22360_s1 + $0x5d0] sm:$0xff]  ;;  %v4649_v36 = vld [vmem:[%s22360_s1 + $0x5c8] sm:$0xff] }
 0x26e   : > { %13643 = vmatprep.subr.mxu1 %v4066_v19  ;;  %13725 = vmatprep.subr.mxu0 %v4338_v12 }
 0x26f   : > { %13523 = vmatmul.mubr.f32.gmra.mxu1 %v17832_v52  ;;  %13606 = vmatmul.mubr.f32.gmra.mxu0 %v22668_v45  ;;  %v22670_v52 = vld [vmem:[#allocation7_spill] sm:$0xff] }
 0x270   : > { %13525 = vmatprep.mubr.f32.mxu1 %v17857_v17  ;;  %13608 = vmatprep.mubr.f32.mxu0 %v22669_v27  ;;  %v22671_v17 = vld [vmem:[#allocation9_spill] sm:$0xff] }
 0x271   : > { %13644 = vmatpush3.msra.mxu1 %v4066_v19  ;;  %13726 = vmatpush3.msra.mxu0 %v4338_v12  ;;  %v4919_v19 = vld [vmem:[%s22360_s1 + $0x730] sm:$0xff] }
 0x272   : > { %13645 = vmatprep.subr.mxu1 %v4065_v46  ;;  %13727 = vmatprep.subr.mxu0 %v4337_v8  ;;  %v4646_v12 = vld [vmem:[%s22360_s1 + $0x5b0] sm:$0xff] }
 0x273   : > { %13526 = vmatmul.mubr.f32.gmra.mxu1 %v17859_v20  ;;  %13609 = vmatmul.mubr.f32.gmra.mxu0 %v22670_v52  ;;  %v4063_v20 = vld [vmem:[%s22360_s1 + $0x6a8] sm:$0xff] }
 0x274   : > { %13528 = vmatprep.mubr.f32.mxu1 %v17879_v26  ;;  %13611 = vmatprep.mubr.f32.mxu0 %v17793_v32  ;;  %v4062_v26 = vld [vmem:[%s22360_s1 + $0x6a0] sm:$0xff] }
 0x275   : > { %13646 = vmatpush3.msra.mxu1 %v4065_v46  ;;  %13728 = vmatpush3.msra.mxu0 %v4337_v8  ;;  %v4644_v46 = vld [vmem:[%s22360_s1 + $0x5a0] sm:$0xff]  ;;  %v4641_v8 = vld [vmem:[%s22360_s1 + $0x588] sm:$0xff] }
 0x276   : > { %13647 = vmatprep.subr.mxu1 %v4064_v44  ;;  %13729 = vmatprep.subr.mxu0 %v4336_v34 }
 0x277   : > { %13529 = vmatmul.mubr.f32.gmra.mxu1 %v17881_v50  ;;  %13612 = vmatmul.mubr.f32.gmra.mxu0 %v22671_v17  ;;  %v4334_v50 = vld [vmem:[%s22360_s1 + $0x818] sm:$0xff] }
 0x278   : > { %13531 = vmatprep.mubr.f32.mxu1 %v17899_v39  ;;  %13614 = vmatprep.mubr.f32.mxu0 %v17823_v55  ;;  %v4061_v39 = vld [vmem:[%s22360_s1 + $0x698] sm:$0xff] }
 0x279   : > { %13648 = vmatpush3.msra.mxu1 %v4064_v44  ;;  %13730 = vmatpush3.msra.mxu0 %v4336_v34  ;;  %v4607_v44 = vld [vmem:[#allocation3 + $0x22] sm:$0xff] }
 0x27a   : > { %13649 = vmatprep.subr.mxu1 %v4063_v20  ;;  %13731 = vmatprep.subr.mxu0 %v4335_v37  ;;  %v4604_v34 = vld [vmem:[#allocation3 + $0x2] sm:$0xff] }
 0x27b   : > { %13532 = vmatmul.mubr.f32.gmra.mxu1 %v17901_v61  ;;  %13615 = vmatmul.mubr.f32.gmra.mxu0 %v17808_v30  ;;  %v4333_v61 = vld [vmem:[%s22360_s1 + $0x810] sm:$0xff] }
 0x27c   : > { %13534 = vmatprep.mubr.f32.mxu1 %v17918_v57  ;;  %13617 = vmatprep.mubr.f32.mxu0 %v17851_v54  ;;  %v4060_v57 = vld [vmem:[%s22360_s1 + $0x690] sm:$0xff] }
 0x27d   : > { %13650 = vmatpush3.msra.mxu1 %v4063_v20  ;;  %13732 = vmatpush3.msra.mxu0 %v4335_v37  ;;  %v18278_v37 = vld [vmem:[#allocation3 + $0x3a] sm:$0xff] }
 0x27e   : > { %13651 = vmatprep.subr.mxu1 %v4062_v26  ;;  %13733 = vmatprep.subr.mxu0 %v4334_v50 }
 0x27f   : > { %13535 = vmatmul.mubr.f32.gmra.mxu1 %v17920_v4  ;;  %13618 = vmatmul.mubr.f32.gmra.mxu0 %v17836_v53  ;;  %v4332_v4 = vld [vmem:[%s22360_s1 + $0x808] sm:$0xff] }
 0x280   : > { %13537 = vmatprep.mubr.f32.mxu1 %v17936_v51  ;;  %13620 = vmatprep.mubr.f32.mxu0 %v17876_v11  ;;  %v4059_v51 = vld [vmem:[%s22360_s1 + $0x688] sm:$0xff] }
 0x281   : > { %13652 = vmatpush3.msra.mxu1 %v4062_v26  ;;  %13734 = vmatpush3.msra.mxu0 %v4334_v50 }
 0x282   : > { %13653 = vmatprep.subr.mxu1 %v4061_v39  ;;  %13735 = vmatprep.subr.mxu0 %v4333_v61 }
 0x283   : > { %13538 = vmatmul.mubr.f32.gmra.mxu1 %v17938_v49  ;;  %13621 = vmatmul.mubr.f32.gmra.mxu0 %v17863_v16  ;;  %v4331_v49 = vld [vmem:[%s22360_s1 + $0x800] sm:$0xff] }
 0x284   : > { %13540 = vmatprep.mubr.f32.mxu1 %v17948_v56  ;;  %13623 = vmatprep.mubr.f32.mxu0 %v17896_v35  ;;  %v2992_v56 = vld [vmem:[#allocation3 + $0x198] sm:$0xff] }
 0x285   : > { %13654 = vmatpush3.msra.mxu1 %v4061_v39  ;;  %13736 = vmatpush3.msra.mxu0 %v4333_v61  ;;  %v18283_v39 = vld [vmem:[#allocation3 + $0x4a] sm:$0xff] }
 0x286   : > { %13655 = vmatprep.subr.mxu1 %v4060_v57  ;;  %13737 = vmatprep.subr.mxu0 %v4332_v4 }
 0x287   : > { %13541 = vmatmul.mubr.f32.gmra.mxu1 %v17950_v1  ;;  %13624 = vmatmul.mubr.f32.gmra.mxu0 %v17885_v22  ;;  %v4058_v1 = vld [vmem:[%s22360_s1 + $0x680] sm:$0xff] }
 0x288   : > { %13543 = vmatprep.mubr.f32.mxu1 %v17959_v23  ;;  %13626 = vmatprep.mubr.f32.mxu0 %v17915_v6  ;;  %v15481_v23 = vld [vmem:[#allocation3 + $0x31] sm:$0xff] }
 0x289   : > { %13656 = vmatpush3.msra.mxu1 %v4060_v57  ;;  %13738 = vmatpush3.msra.mxu0 %v4332_v4 }
 0x28a   : > { %13657 = vmatprep.subr.mxu1 %v4059_v51  ;;  %13739 = vmatprep.subr.mxu0 %v4331_v49 }
 0x28b   : > { %13544 = vmatmul.mubr.f32.gmra.mxu1 %v17961_v60  ;;  %13627 = vmatmul.mubr.f32.gmra.mxu0 %v17904_v47  ;;  %v4655_v60 = vld [vmem:[%s22360_s1 + $0x5f8] sm:$0xff] }
 0x28c   : > { %13658 = vmatpush3.msra.mxu1 %v4059_v51  ;;  %13741 = vmatprep.mubr.f32.mxu0 %v15481_v23  ;;  %v18291_v51 = vld [vmem:[#allocation3 + $0x52] sm:$0xff] }
 0x28d   : > { %13546 = vmatprep.mubr.f32.mxu1 %v2992_v56  ;;  %13740 = vmatpush3.msra.mxu0 %v4331_v49 }
 0x28e   : > { %13659 = vmatprep.subr.mxu1 %v4058_v1  ;;  %13869 = vmatprep.subr.mxu0 %v4928_v40 }
 0x28f   : > { %13547 = vmatmul.mubr.f32.gmra.mxu1 %v15482_v3  ;;  %13742 = vmatmul.mubr.f32.vlgmr.msra.gmra.mxu0 %v15483_v42 }
 0x290   : > { %13660 = vmatpush3.msra.mxu1 %v4058_v1  ;;  %13661 = vmatprep.mubr.f32.mxu1 %v15484_v24  ;;  %v18294_v1 = vld [vmem:[#allocation3 + $0x62] sm:$0xff]  ;;  %v18305_v24 = vld [vmem:[#allocation3 + $0x6a] sm:$0xff] }
 0x291   : > { %13744 = vmatprep.mubr.f32.mxu0 %v15485_v33  ;;  %13789 = vmatprep.subr.mxu1 %v4655_v60 }
 0x292   : > { %13870 = vmatpush3.msra.mxu0 %v4928_v40  ;;  %v5199_v40 = vld [vmem:[%s22360_s1 + $0x8e8] sm:$0xff] }
 0x293   : > { %13662 = vmatmul.mubr.f32.vlgmr.msra.gmra.mxu1 %v15486_v14  ;;  %13745 = vmatmul.mubr.f32.gmra.mxu0 %v15487_v18  ;;  %v18309_v14 = vld [vmem:[#allocation3 + $0x7a] sm:$0xff] }
 0x294   : > { %13664 = vmatprep.mubr.f32.mxu1 %v15481_v23  ;;  %13747 = vmatprep.mubr.f32.mxu0 %v17599_v5  ;;  %v4925_v5 = vld [vmem:[%s22360_s1 + $0x760] sm:$0xff] }
 0x295   : > { %13790 = vmatpush3.msra.mxu1 %v4655_v60  ;;  %13871 = vmatprep.subr.mxu0 %v4927_v21 }
 0x296   : > { %13791 = vmatprep.subr.mxu1 %v4654_v48  ;;  %13872 = vmatpush3.msra.mxu0 %v4927_v21 }
 0x297   : > { %13665 = vmatmul.mubr.f32.gmra.mxu1 %v15483_v42  ;;  %13748 = vmatmul.mubr.f32.gmra.mxu0 %v15488_v31 }
 0x298   : > { %13667 = vmatprep.mubr.f32.mxu1 %v15485_v33  ;;  %13750 = vmatprep.mubr.f32.mxu0 %v17633_v15 }
 0x299   : > { %13792 = vmatpush3.msra.mxu1 %v4654_v48  ;;  %13873 = vmatprep.subr.mxu0 %v4926_v13 }
 0x29a   : > { %13793 = vmatprep.subr.mxu1 %v4653_v2  ;;  %13874 = vmatpush3.msra.mxu0 %v4926_v13 }
 0x29b   : > { %13668 = vmatmul.mubr.f32.gmra.mxu1 %v15487_v18  ;;  %13751 = vmatmul.mubr.f32.gmra.mxu0 %v17616_v25  ;;  %v4651_v25 = vld [vmem:[%s22360_s1 + $0x5d8] sm:$0xff]  ;;  %v5198_v18 = vld [vmem:[%s22360_s1 + $0x8e0] sm:$0xff] }
 0x29c   : > { %13670 = vmatprep.mubr.f32.mxu1 %v15489_v0  ;;  %13753 = vmatprep.mubr.f32.mxu0 %v17665_v58 }
 0x29d   : > { %13794 = vmatpush3.msra.mxu1 %v4653_v2  ;;  %13875 = vmatprep.subr.mxu0 %v4925_v5 }
 0x29e   : > { %13795 = vmatprep.subr.mxu1 %v4652_v7  ;;  %13876 = vmatpush3.msra.mxu0 %v4925_v5  ;;  %v18320_v5 = vld [vmem:[#allocation3 + $0x82] sm:$0xff] }
 0x29f   : > { %13671 = vmatmul.mubr.f32.gmra.mxu1 %v15488_v31  ;;  %13754 = vmatmul.mubr.f32.gmra.mxu0 %v17648_v41 }
 0x2a0   : > { %13673 = vmatprep.mubr.f32.mxu1 %v17633_v15  ;;  %13756 = vmatprep.mubr.f32.mxu0 %v17697_v43  ;;  %v4922_v15 = vld [vmem:[%s22360_s1 + $0x748] sm:$0xff] }
 0x2a1   : > { %13796 = vmatpush3.msra.mxu1 %v4652_v7  ;;  %13877 = vmatprep.subr.mxu0 %v4924_v38 }
 0x2a2   : > { %13797 = vmatprep.subr.mxu1 %v4651_v25  ;;  %13878 = vmatpush3.msra.mxu0 %v4924_v38  ;;  %v18324_v38 = vld [vmem:[#allocation3 + $0x92] sm:$0xff] }
 0x2a3   : > { %13674 = vmatmul.mubr.f32.gmra.mxu1 %v15490_v63  ;;  %13757 = vmatmul.mubr.f32.gmra.mxu0 %v22666_v62 }
 0x2a4   : > { %13676 = vmatprep.mubr.f32.mxu1 %v17665_v58  ;;  %13759 = vmatprep.mubr.f32.mxu0 %v22667_v29  ;;  %v4921_v58 = vld [vmem:[%s22360_s1 + $0x740] sm:$0xff] }
 0x2a5   : > { %13798 = vmatpush3.msra.mxu1 %v4651_v25  ;;  %13879 = vmatprep.subr.mxu0 %v4923_v28  ;;  %v5197_v25 = vld [vmem:[%s22360_s1 + $0x8d8] sm:$0xff] }
 0x2a6   : > { %13799 = vmatprep.subr.mxu1 %v4650_v59  ;;  %13880 = vmatpush3.msra.mxu0 %v4923_v28 }
 0x2a7   : > { %13677 = vmatmul.mubr.f32.gmra.mxu1 %v17648_v41  ;;  %13760 = vmatmul.mubr.f32.gmra.mxu0 %v22668_v45  ;;  %v4648_v41 = vld [vmem:[%s22360_s1 + $0x5c0] sm:$0xff] }
 0x2a8   : > { %13679 = vmatprep.mubr.f32.mxu1 %v17697_v43  ;;  %13762 = vmatprep.mubr.f32.mxu0 %v22669_v27  ;;  %v4920_v43 = vld [vmem:[%s22360_s1 + $0x738] sm:$0xff] }
 0x2a9   : > { %13800 = vmatpush3.msra.mxu1 %v4650_v59  ;;  %13881 = vmatprep.subr.mxu0 %v4922_v15 }
 0x2aa   : > { %13801 = vmatprep.subr.mxu1 %v4649_v36  ;;  %13882 = vmatpush3.msra.mxu0 %v4922_v15 }
 0x2ab   : > { %13680 = vmatmul.mubr.f32.gmra.mxu1 %v22666_v62  ;;  %13763 = vmatmul.mubr.f32.gmra.mxu0 %v22670_v52  ;;  %v4647_v62 = vld [vmem:[%s22360_s1 + $0x5b8] sm:$0xff] }
 0x2ac   : > { %13682 = vmatprep.mubr.f32.mxu1 %v22667_v29  ;;  %13765 = vmatprep.mubr.f32.mxu0 %v17793_v32  ;;  %v4918_v29 = vld [vmem:[%s22360_s1 + $0x728] sm:$0xff] }
 0x2ad   : > { %13802 = vmatpush3.msra.mxu1 %v4649_v36  ;;  %13883 = vmatprep.subr.mxu0 %v4921_v58  ;;  %v18335_v36 = vld [vmem:[#allocation3 + $0x9a] sm:$0xff] }
 0x2ae   : > { %13803 = vmatprep.subr.mxu1 %v4648_v41  ;;  %13884 = vmatpush3.msra.mxu0 %v4921_v58 }
 0x2af   : > { %13683 = vmatmul.mubr.f32.gmra.mxu1 %v22668_v45  ;;  %13766 = vmatmul.mubr.f32.gmra.mxu0 %v22671_v17  ;;  %v4645_v45 = vld [vmem:[%s22360_s1 + $0x5a8] sm:$0xff] }
 0x2b0   : > { %13685 = vmatprep.mubr.f32.mxu1 %v22669_v27  ;;  %13768 = vmatprep.mubr.f32.mxu0 %v17823_v55  ;;  %v4913_v27 = vld [vmem:[%s22360_s1 + $0x700] sm:$0xff] }
 0x2b1   : > { %13804 = vmatpush3.msra.mxu1 %v4648_v41  ;;  %13885 = vmatprep.subr.mxu0 %v4920_v43 }
 0x2b2   : > { %13805 = vmatprep.subr.mxu1 %v4647_v62  ;;  %13886 = vmatpush3.msra.mxu0 %v4920_v43  ;;  %v18339_v43 = vld [vmem:[#allocation3 + $0xaa] sm:$0xff] }
 0x2b3   : > { %13686 = vmatmul.mubr.f32.gmra.mxu1 %v22670_v52  ;;  %13769 = vmatmul.mubr.f32.gmra.mxu0 %v17808_v30  ;;  %v4640_v52 = vld [vmem:[%s22360_s1 + $0x580] sm:$0xff] }
 0x2b4   : > { %13688 = vmatprep.mubr.f32.mxu1 %v17793_v32  ;;  %13771 = vmatprep.mubr.f32.mxu0 %v17851_v54  ;;  %v4917_v32 = vld [vmem:[%s22360_s1 + $0x720] sm:$0xff] }
 0x2b5   : > { %13806 = vmatpush3.msra.mxu1 %v4647_v62  ;;  %13887 = vmatprep.subr.mxu0 %v4919_v19  ;;  %v5196_v62 = vld [vmem:[%s22360_s1 + $0x8d0] sm:$0xff] }
 0x2b6   : > { %13807 = vmatprep.subr.mxu1 %v4646_v12  ;;  %13888 = vmatpush3.msra.mxu0 %v4919_v19 }
 0x2b7   : > { %13689 = vmatmul.mubr.f32.gmra.mxu1 %v22671_v17  ;;  %13772 = vmatmul.mubr.f32.gmra.mxu0 %v17836_v53  ;;  %v18275_v17 = vld [vmem:[#allocation3 + $0x32] sm:$0xff] }
 0x2b8   : > { %13691 = vmatprep.mubr.f32.mxu1 %v17823_v55  ;;  %13774 = vmatprep.mubr.f32.mxu0 %v17876_v11  ;;  %v4916_v55 = vld [vmem:[%s22360_s1 + $0x718] sm:$0xff] }
 0x2b9   : > { %13808 = vmatpush3.msra.mxu1 %v4646_v12  ;;  %13889 = vmatprep.subr.mxu0 %v4918_v29 }
 0x2ba   : > { %13809 = vmatprep.subr.mxu1 %v4645_v45  ;;  %13890 = vmatpush3.msra.mxu0 %v4918_v29 }
 0x2bb   : > { %13692 = vmatmul.mubr.f32.gmra.mxu1 %v17808_v30  ;;  %13775 = vmatmul.mubr.f32.gmra.mxu0 %v17863_v16  ;;  %v4643_v30 = vld [vmem:[%s22360_s1 + $0x598] sm:$0xff] }
 0x2bc   : > { %13694 = vmatprep.mubr.f32.mxu1 %v17851_v54  ;;  %13777 = vmatprep.mubr.f32.mxu0 %v17896_v35  ;;  %v4915_v54 = vld [vmem:[%s22360_s1 + $0x710] sm:$0xff] }
 0x2bd   : > { %13810 = vmatpush3.msra.mxu1 %v4645_v45  ;;  %13891 = vmatprep.subr.mxu0 %v4917_v32 }
 0x2be   : > { %13811 = vmatprep.subr.mxu1 %v4644_v46  ;;  %13892 = vmatpush3.msra.mxu0 %v4917_v32  ;;  %v18350_v32 = vld [vmem:[#allocation3 + $0xb2] sm:$0xff] }
 0x2bf   : > { %13695 = vmatmul.mubr.f32.gmra.mxu1 %v17836_v53  ;;  %13778 = vmatmul.mubr.f32.gmra.mxu0 %v17885_v22  ;;  %v4642_v53 = vld [vmem:[%s22360_s1 + $0x590] sm:$0xff] }
 0x2c0   : > { %13697 = vmatprep.mubr.f32.mxu1 %v17876_v11  ;;  %13780 = vmatprep.mubr.f32.mxu0 %v17915_v6  ;;  %v3783_v11 = vld [vmem:[#allocation3 + $0x199] sm:$0xff] }
 0x2c1   : > { %13812 = vmatpush3.msra.mxu1 %v4644_v46  ;;  %13893 = vmatprep.subr.mxu0 %v4916_v55 }
 0x2c2   : > { %13813 = vmatprep.subr.mxu1 %v4643_v30  ;;  %13894 = vmatpush3.msra.mxu0 %v4916_v55 }
 0x2c3   : > { %13698 = vmatmul.mubr.f32.gmra.mxu1 %v17863_v16  ;;  %13781 = vmatmul.mubr.f32.gmra.mxu0 %v17904_v47  ;;  %v4914_v16 = vld [vmem:[%s22360_s1 + $0x708] sm:$0xff] }
 0x2c4   : > { %13700 = vmatprep.mubr.f32.mxu1 %v17896_v35  ;;  %13783 = vmatprep.mubr.f32.mxu0 %v17934_v9  ;;  %v3784_v35 = vld [vmem:[#allocation3 + $0x1a1] sm:$0xff] }
 0x2c5   : > { %13814 = vmatpush3.msra.mxu1 %v4643_v30  ;;  %13895 = vmatprep.subr.mxu0 %v4915_v54  ;;  %v18354_v30 = vld [vmem:[#allocation3 + $0xc2] sm:$0xff] }
 0x2c6   : > { %13815 = vmatprep.subr.mxu1 %v4642_v53  ;;  %13896 = vmatpush3.msra.mxu0 %v4915_v54  ;;  %v5195_v54 = vld [vmem:[%s22360_s1 + $0x8c8] sm:$0xff] }
 0x2c7   : > { %13701 = vmatmul.mubr.f32.gmra.mxu1 %v17885_v22  ;;  %13784 = vmatmul.mubr.f32.gmra.mxu0 %v17923_v10  ;;  %v18265_v22 = vpop.f32.mrf.mxu0 }
 0x2c8   : > { %13703 = vmatprep.mubr.f32.mxu1 %v17915_v6  ;;  %13816 = vmatpush3.msra.mxu1 %v4642_v53  ;;  %v4606_v6 = vld [vmem:[#allocation3 + $0x1a] sm:$0xff] }
 0x2c9   : > { %13786 = vmatprep.mubr.f32.mxu0 %v3783_v11  ;;  %13817 = vmatprep.subr.mxu1 %v4641_v8  ;;  %v3317_v20 = vpop.f32.mrf.mxu0 }
 0x2ca   : > { %13897 = vmatprep.subr.mxu0 %v4914_v16  ;;  %13818 = vmatpush3.msra.mxu1 %v4641_v8 }
 0x2cb   : > { %13704 = vmatmul.mubr.f32.gmra.mxu1 %v17904_v47  ;;  %13787 = vmatmul.mubr.f32.gmra.mxu0 %v3784_v35  ;;  %v5201_v47 = vld [vmem:[%s22360_s1 + $0x8f8] sm:$0xff] }
 0x2cc   : > { %13706 = vmatprep.mubr.f32.mxu1 %v17934_v9  ;;  %13898 = vmatpush3.msra.mxu0 %v4914_v16  ;;  %v4605_v9 = vld [vmem:[#allocation3 + $0xa] sm:$0xff] }
 0x2cd   : > { %13901 = vmatprep.mubr.f32.mxu0 %v4606_v6  ;;  %13899 = vmatprep.subr.mxu0 %v4913_v27  ;;  %v18365_v35 = vld [vmem:[#allocation3 + $0xca] sm:$0xff] }
 0x2ce   : > { %13900 = vmatpush3.msra.mxu0 %v4913_v27  ;;  %13819 = vmatprep.subr.mxu1 %v4640_v52 }
 0x2cf   : > { %13707 = vmatmul.mubr.f32.gmra.mxu1 %v17923_v10  ;;  %13902 = vmatmul.mubr.f32.vlgmr.msra.gmra.mxu0 %v4607_v44  ;;  %v5200_v10 = vld [vmem:[%s22360_s1 + $0x8f0] sm:$0xff] }
 0x2d0   : > { %13820 = vmatpush3.msra.mxu1 %v4640_v52  ;;  %13904 = vmatprep.mubr.f32.mxu0 %v18275_v17 }
 0x2d1   : > { %13821 = vmatprep.mubr.f32.mxu1 %v4604_v34  ;;  %13949 = vmatprep.subr.mxu1 %v5201_v47  ;;  %v18280_v26 = vpop.f32.mrf.mxu1  ;;  %v13426_v50 = vpop.f32.mrf.mxu0 }
 0x2d3   : > { %13822 = vmatmul.mubr.f32.vlgmr.msra.gmra.mxu1 %v4605_v9  ;;  %13905 = vmatmul.mubr.f32.gmra.mxu0 %v18278_v37  ;;  %v3092_v61 = vpop.f32.mrf.mxu1  ;;  %v3327_v57 = vpop.f32.mrf.mxu0 }
 0x2d4   : > { %13824 = vmatprep.mubr.f32.mxu1 %v4606_v6  ;;  %13907 = vmatprep.mubr.f32.mxu0 %v18283_v39  ;;  %v18289_v4 = vadd.f32 %v3317_v20, %v3092_v61  ;;  %v18369_v6 = vld [vmem:[#allocation3 + $0xda] sm:$0xff] }
 0x2d5   : > { %13950 = vmatpush3.msra.mxu1 %v5201_v47  ;;  %v13346_v49 = vpop.f32.mrf.mxu1  ;;  %v13429_v56 = vpop.f32.mrf.mxu0 }
 0x2d6   : > { %13951 = vmatprep.subr.mxu1 %v5200_v10  ;;  %v18299_v23 = vadd.f32 %v13426_v50, %v13346_v49  ;;  %v18380_v50 = vld [vmem:[#allocation3 + $0xe2] sm:$0xff] }
 0x2d7   : > { %13825 = vmatmul.mubr.f32.gmra.mxu1 %v4607_v44  ;;  %13908 = vmatmul.mubr.f32.gmra.mxu0 %v18291_v51  ;;  %v3102_v60 = vpop.f32.mrf.mxu1  ;;  %v3337_v3 = vpop.f32.mrf.mxu0  ;;  %v5194_v44 = vld [vmem:[%s22360_s1 + $0x8c0] sm:$0xff]  ;;  %v5193_v49 = vld [vmem:[%s22360_s1 + $0x8b8] sm:$0xff] }
 0x2d8   : > { %13827 = vmatprep.mubr.f32.mxu1 %v18275_v17  ;;  %13910 = vmatprep.mubr.f32.mxu0 %v18294_v1  ;;  %v18303_v42 = vadd.f32 %v3327_v57, %v3102_v60  ;;  %v18384_v57 = vld [vmem:[#allocation3 + $0xf2] sm:$0xff] }
 0x2d9   : > { %13952 = vmatpush3.msra.mxu1 %v5200_v10  ;;  %v13349_v33 = vpop.f32.mrf.mxu1  ;;  %v13432_v21 = vpop.f32.mrf.mxu0 }
 0x2da   : > { %13953 = vmatprep.subr.mxu1 %v5199_v40  ;;  %v18314_v48 = vadd.f32 %v13429_v56, %v13349_v33  ;;  %v18397_v33 = vld [vmem:[#allocation3 + $0xfa] sm:$0xff] }
 0x2db   : > { %13828 = vmatmul.mubr.f32.gmra.mxu1 %v18278_v37  ;;  %13911 = vmatmul.mubr.f32.gmra.mxu0 %v18305_v24  ;;  %v3112_v13 = vpop.f32.mrf.mxu1  ;;  %v3347_v31 = vpop.f32.mrf.mxu0 }
 0x2dc   : > { %13830 = vmatprep.mubr.f32.mxu1 %v18283_v39  ;;  %13913 = vmatprep.mubr.f32.mxu0 %v18309_v14  ;;  %v18318_v2 = vadd.f32 %v3337_v3, %v3112_v13  ;;  %v18401_v13 = vld [vmem:[#allocation3 + $0x10a] sm:$0xff] }
 0x2dd   : > { %13954 = vmatpush3.msra.mxu1 %v5199_v40  ;;  %v13352_v7 = vpop.f32.mrf.mxu1 }
 0x2de   : > { %13955 = vmatprep.subr.mxu1 %v5198_v18  ;;  %v13435_v0 = vpop.f32.mrf.mxu0  ;;  %v18329_v28 = vadd.f32 %v13432_v21, %v13352_v7 }
 0x2df   : > { %13831 = vmatmul.mubr.f32.gmra.mxu1 %v18291_v51  ;;  %13914 = vmatmul.mubr.f32.gmra.mxu0 %v18320_v5  ;;  %v3122_v63 = vpop.f32.mrf.mxu1 }
 0x2e0   : > { %13833 = vmatprep.mubr.f32.mxu1 %v18294_v1  ;;  %13916 = vmatprep.mubr.f32.mxu0 %v18324_v38  ;;  %v3357_v59 = vpop.f32.mrf.mxu0  ;;  %v18333_v15 = vadd.f32 %v3347_v31, %v3122_v63  ;;  %v5192_v31 = vld [vmem:[%s22360_s1 + $0x8b0] sm:$0xff]  ;;  %v18414_v63 = vld [vmem:[#allocation3 + $0x112] sm:$0xff] }
 0x2e1   : > { %13956 = vmatpush3.msra.mxu1 %v5198_v18  ;;  %v13355_v58 = vpop.f32.mrf.mxu1 }
 0x2e2   : > { %13957 = vmatprep.subr.mxu1 %v5197_v25  ;;  %v13438_v41 = vpop.f32.mrf.mxu0  ;;  %v18344_v19 = vadd.f32 %v13435_v0, %v13355_v58 }
 0x2e3   : > { %13834 = vmatmul.mubr.f32.gmra.mxu1 %v18305_v24  ;;  %13917 = vmatmul.mubr.f32.gmra.mxu0 %v18335_v36  ;;  %v3132_v12 = vpop.f32.mrf.mxu1 }
 0x2e4   : > { %13836 = vmatprep.mubr.f32.mxu1 %v18309_v14  ;;  %13919 = vmatprep.mubr.f32.mxu0 %v18339_v43  ;;  %v3367_v29 = vpop.f32.mrf.mxu0  ;;  %v18348_v45 = vadd.f32 %v3357_v59, %v3132_v12 }
 0x2e5   : > { %13958 = vmatpush3.msra.mxu1 %v5197_v25 }
 0x2e6   : > { %13959 = vmatprep.subr.mxu1 %v5196_v62  ;;  %v13358_v46 = vpop.f32.mrf.mxu1  ;;  %v13441_v55 = vpop.f32.mrf.mxu0 }
 0x2e7   : > { %13837 = vmatmul.mubr.f32.gmra.mxu1 %v18320_v5  ;;  %13920 = vmatmul.mubr.f32.gmra.mxu0 %v18350_v32  ;;  %v18359_v53 = vadd.f32 %v13438_v41, %v13358_v46  ;;  %v18418_v41 = vld [vmem:[#allocation3 + $0x122] sm:$0xff] }
 0x2e8   : > { %13839 = vmatprep.mubr.f32.mxu1 %v18324_v38  ;;  %13922 = vmatprep.mubr.f32.mxu0 %v18354_v30  ;;  %v3142_v11 = vpop.f32.mrf.mxu1  ;;  %v3377_v8 = vpop.f32.mrf.mxu0 }
 0x2e9   : > { %13960 = vmatpush3.msra.mxu1 %v5196_v62  ;;  %v18363_v16 = vadd.f32 %v3367_v29, %v3142_v11  ;;  %v5191_v62 = vld [vmem:[%s22360_s1 + $0x8a8] sm:$0xff] }
 0x2ea   : > { %13961 = vmatprep.subr.mxu1 %v5195_v54  ;;  %v13361_v27 = vpop.f32.mrf.mxu1  ;;  %v13444_v52 = vpop.f32.mrf.mxu0 }
 0x2eb   : > { %13840 = vmatmul.mubr.f32.gmra.mxu1 %v18335_v36  ;;  %13923 = vmatmul.mubr.f32.gmra.mxu0 %v18365_v35  ;;  %v18374_v34 = vadd.f32 %v13441_v55, %v13361_v27  ;;  %v18431_v55 = vld [vmem:[#allocation3 + $0x12a] sm:$0xff] }
 0x2ec   : > { %13842 = vmatprep.mubr.f32.mxu1 %v18339_v43  ;;  %13925 = vmatprep.mubr.f32.mxu0 %v18369_v6  ;;  %v3152_v47 = vpop.f32.mrf.mxu1  ;;  %v3387_v20 = vpop.f32.mrf.mxu0  ;;  %v5190_v27 = vld [vmem:[%s22360_s1 + $0x8a0] sm:$0xff] }
 0x2ed   : > { %13962 = vmatpush3.msra.mxu1 %v5195_v54  ;;  %v18378_v9 = vadd.f32 %v3377_v8, %v3152_v47  ;;  %v18435_v8 = vld [vmem:[#allocation3 + $0x13a] sm:$0xff] }
 0x2ee   : > { %13963 = vmatprep.subr.mxu1 %v5194_v44 }
 0x2ef   : > { %v13364_v10 = vpop.f32.mrf.mxu1  ;;  %v13447_v61 = vpop.f32.mrf.mxu0  ;;  %13843 = vmatmul.mubr.f32.gmra.mxu1 %v18350_v32  ;;  %13926 = vmatmul.mubr.f32.gmra.mxu0 %v18380_v50 }
 0x2f0   : > { %v18389_v56 = vadd.f32 %v13444_v52, %v13364_v10  ;;  %13845 = vmatprep.mubr.f32.mxu1 %v18354_v30  ;;  %13928 = vmatprep.mubr.f32.mxu0 %v18384_v57 }
 0x2f1   : > { %13964 = vmatpush3.msra.mxu1 %v5194_v44  ;;  %v3162_v40 = vpop.f32.mrf.mxu1  ;;  %v18393_v60 = vpop.f32.mrf.mxu0 }
 0x2f2   : > { %v18395_v3 = vadd.f32 %v3387_v20, %v3162_v40  ;;  %13965 = vmatprep.subr.mxu1 %v5193_v49  ;;  %v18448_v20 = vld [vmem:[#allocation3 + $0x142] sm:$0xff] }
 0x2f3   : > { %v13367_v21 = vpop.f32.mrf.mxu1  ;;  %v13450_v18 = vpop.f32.mrf.mxu0  ;;  %13846 = vmatmul.mubr.f32.gmra.mxu1 %v18365_v35  ;;  %13929 = vmatmul.mubr.f32.gmra.mxu0 %v18397_v33  ;;  %v5189_v40 = vld [vmem:[%s22360_s1 + $0x898] sm:$0xff] }
 0x2f4   : > { %v18406_v7 = vadd.f32 %v13447_v61, %v13367_v21  ;;  %13848 = vmatprep.mubr.f32.mxu1 %v18369_v6  ;;  %13931 = vmatprep.mubr.f32.mxu0 %v18401_v13 }
 0x2f5   : > { %13966 = vmatpush3.msra.mxu1 %v5193_v49  ;;  %v18410_v0 = vpop.f32.mrf.mxu1  ;;  %v18412_v25 = vpop.f32.mrf.mxu0  ;;  %v18452_v49 = vld [vmem:[#allocation3 + $0x152] sm:$0xff] }
 0x2f6   : > { %22672 = vst [vmem:[#allocation10_spill] sm:$0xff] %v18412_v25  ;;  %13967 = vmatprep.subr.mxu1 %v5192_v31  ;;  %v5186_v25 = vld [vmem:[%s22360_s1 + $0x880] sm:$0xff] }
 0x2f7   : > { %v13370_v59 = vpop.f32.mrf.mxu1  ;;  %v13453_v58 = vpop.f32.mrf.mxu0  ;;  %13849 = vmatmul.mubr.f32.gmra.mxu1 %v18380_v50  ;;  %13932 = vmatmul.mubr.f32.gmra.mxu0 %v18414_v63 }
 0x2f8   : > { %v18423_v12 = vadd.f32 %v13450_v18, %v13370_v59  ;;  %13851 = vmatprep.mubr.f32.mxu1 %v18384_v57  ;;  %13934 = vmatprep.mubr.f32.mxu0 %v18418_v41  ;;  %v18465_v59 = vld [vmem:[#allocation3 + $0x15a] sm:$0xff] }
 0x2f9   : > { %13968 = vmatpush3.msra.mxu1 %v5192_v31  ;;  %v18427_v29 = vpop.f32.mrf.mxu1  ;;  %v18429_v46 = vpop.f32.mrf.mxu0 }
 0x2fa   : > { %22673 = vst [vmem:[#allocation11_spill] sm:$0xff] %v18427_v29  ;;  %22674 = vst [vmem:[#allocation12_spill] sm:$0xff] %v18429_v46  ;;  %13969 = vmatprep.subr.mxu1 %v5191_v62 }
 0x2fb   : > { %v13373_v54 = vpop.f32.mrf.mxu1  ;;  %v13456_v11 = vpop.f32.mrf.mxu0  ;;  %13852 = vmatmul.mubr.f32.gmra.mxu1 %v18397_v33  ;;  %13935 = vmatmul.mubr.f32.gmra.mxu0 %v18431_v55 }
 0x2fc   : > { %v18440_v52 = vadd.f32 %v13453_v58, %v13373_v54  ;;  %13854 = vmatprep.mubr.f32.mxu1 %v18401_v13  ;;  %13937 = vmatprep.mubr.f32.mxu0 %v18435_v8  ;;  %v18469_v54 = vld [vmem:[#allocation3 + $0x16a] sm:$0xff] }
 0x2fd   : > { %13970 = vmatpush3.msra.mxu1 %v5191_v62  ;;  %v18444_v44 = vpop.f32.mrf.mxu1  ;;  %v18446_v47 = vpop.f32.mrf.mxu0 }
 0x2fe   : > { %22675 = vst [vmem:[#allocation13_spill] sm:$0xff] %v18444_v44  ;;  %22676 = vst [vmem:[#allocation78_spill] sm:$0xff] %v18446_v47  ;;  %13971 = vmatprep.subr.mxu1 %v5190_v27  ;;  %v18482_v47 = vld [vmem:[#allocation3 + $0x172] sm:$0xff]  ;;  %v18499_v44 = vld [vmem:[#allocation3 + $0x18a] sm:$0xff] }
 0x2ff   : > { %v13376_v10 = vpop.f32.mrf.mxu1  ;;  %v13459_v61 = vpop.f32.mrf.mxu0  ;;  %13855 = vmatmul.mubr.f32.gmra.mxu1 %v18414_v63  ;;  %13938 = vmatmul.mubr.f32.gmra.mxu0 %v18448_v20  ;;  %22685 = vst [vmem:[#allocation18_spill] sm:$0xff] %v18499_v44 }
 0x300   : > { %v18457_v21 = vadd.f32 %v13456_v11, %v13376_v10  ;;  %13857 = vmatprep.mubr.f32.mxu1 %v18418_v41  ;;  %13940 = vmatprep.mubr.f32.mxu0 %v18452_v49  ;;  %v5188_v11 = vld [vmem:[%s22360_s1 + $0x890] sm:$0xff] }
 0x301   : > { %13972 = vmatpush3.msra.mxu1 %v5190_v27  ;;  %v18461_v18 = vpop.f32.mrf.mxu1  ;;  %v18463_v31 = vpop.f32.mrf.mxu0 }
 0x302   : > { %22677 = vst [vmem:[#allocation82_spill] sm:$0xff] %v18461_v18  ;;  %22678 = vst [vmem:[#allocation14_spill] sm:$0xff] %v18463_v31  ;;  %13973 = vmatprep.subr.mxu1 %v5189_v40 }
 0x303   : > { %v13379_v58 = vpop.f32.mrf.mxu1  ;;  %v13462_v62 = vpop.f32.mrf.mxu0  ;;  %13858 = vmatmul.mubr.f32.gmra.mxu1 %v18431_v55  ;;  %13941 = vmatmul.mubr.f32.gmra.mxu0 %v18465_v59 }
 0x304   : > { %v18474_v27 = vadd.f32 %v13459_v61, %v13379_v58  ;;  %13860 = vmatprep.mubr.f32.mxu1 %v18435_v8  ;;  %13943 = vmatprep.mubr.f32.mxu0 %v18469_v54  ;;  %v18486_v61 = vld [vmem:[#allocation3 + $0x182] sm:$0xff]  ;;  %v5187_v58 = vld [vmem:[%s22360_s1 + $0x888] sm:$0xff] }
 0x305   : > { %13974 = vmatpush3.msra.mxu1 %v5189_v40  ;;  %v18478_v10 = vpop.f32.mrf.mxu1  ;;  %v18480_v31 = vpop.f32.mrf.mxu0  ;;  %22682 = vst [vmem:[#allocation85_spill] sm:$0xff] %v18486_v61 }
 0x306   : > { %22679 = vst [vmem:[#allocation15_spill] sm:$0xff] %v18474_v27  ;;  %22680 = vst [vmem:[#allocation36_spill] sm:$0xff] %v18478_v10  ;;  %13975 = vmatprep.subr.mxu1 %v5188_v11 }
 0x307   : > { %22681 = vst [vmem:[#allocation40_spill] sm:$0xff] %v18480_v31  ;;  %v13382_v18 = vpop.f32.mrf.mxu1  ;;  %v13465_v46 = vpop.f32.mrf.mxu0  ;;  %13861 = vmatmul.mubr.f32.gmra.mxu1 %v18448_v20  ;;  %13944 = vmatmul.mubr.f32.gmra.mxu0 %v18482_v47 }
 0x308   : > { %v18491_v40 = vadd.f32 %v13462_v62, %v13382_v18  ;;  %13863 = vmatprep.mubr.f32.mxu1 %v18452_v49  ;;  %13946 = vmatprep.mubr.f32.mxu0 %v18486_v61 }
 0x309   : > { %13976 = vmatpush3.msra.mxu1 %v5188_v11  ;;  %v18495_v31 = vpop.f32.mrf.mxu1  ;;  %v18497_v10 = vpop.f32.mrf.mxu0 }
 0x30a   : > { %22683 = vst [vmem:[#allocation79_spill] sm:$0xff] %v18495_v31  ;;  %22684 = vst [vmem:[#allocation17_spill] sm:$0xff] %v18497_v10  ;;  %13977 = vmatprep.subr.mxu1 %v5187_v58 }
 0x30b   : > { %v13385_v29 = vpop.f32.mrf.mxu1  ;;  %v13468_v27 = vpop.f32.mrf.mxu0  ;;  %13864 = vmatmul.mubr.f32.gmra.mxu1 %v18465_v59  ;;  %13947 = vmatmul.mubr.f32.gmra.mxu0 %v18499_v44 }
 0x30c   : > { %v18506_v18 = vadd.f32 %v13465_v46, %v13385_v29  ;;  %13866 = vmatprep.mubr.f32.mxu1 %v18469_v54  ;;  %13978 = vmatpush3.msra.mxu1 %v5187_v58  ;;  %v3323_v46 = vadd.f32 %v18265_v22, %v18280_v26 }
 0x30d   : > { %v18509_v62 = vpop.f32.mrf.mxu1  ;;  %v18511_v11 = vpop.f32.mrf.mxu0  ;;  %13979 = vmatprep.subr.mxu1 %v5186_v25 }
 0x30e   : > { %22686 = vst [vmem:[#allocation19_spill] sm:$0xff] %v18506_v18  ;;  %22687 = vst [vmem:[#allocation20_spill] sm:$0xff] %v18509_v62  ;;  %13980 = vmatpush3.msra.mxu1 %v5186_v25 }
 0x30f   : > { %22688 = vst [vmem:[#allocation37_spill] sm:$0xff] %v18511_v11  ;;  %v13388_v10 = vpop.f32.mrf.mxu1  ;;  %v13583_v31 = vpop.f32.mrf.mxu0  ;;  %13867 = vmatmul.mubr.f32.gmra.mxu1 %v18482_v47 }
 0x310   : > { %v18514_v61 = vadd.f32 %v13468_v27, %v13388_v10  ;;  %13981 = vmatprep.mubr.f32.mxu1 %v18275_v17 }
 0x311   : > { %v18517_v44 = vpop.f32.mrf.mxu1  ;;  %v18519_v29 = vpop.f32.mrf.mxu0 }
 0x312   : > { %22689 = vst [vmem:[#allocation38_spill] sm:$0xff] %v18517_v44 }
 0x313   : > { %v13503_v58 = vpop.f32.mrf.mxu1  ;;  %v13586_v62 = vpop.f32.mrf.mxu0  ;;  %13982 = vmatmul.mubr.f32.vlgmr.msra.gmra.mxu1 %v18278_v37 }
 0x314   : > { %v3718_v25 = vadd.f32 %v13503_v58, %v3323_v46  ;;  %13984 = vmatprep.mubr.f32.mxu1 %v18283_v39 }
 0x315   : > { %v3558_v11 = vpop.f32.mrf.mxu1  ;;  %v18525_v18 = vpop.f32.mrf.mxu0 }
 0x316   : > { %v18528_v27 = vadd.f32 %v3558_v11, %v18289_v4  ;;  %v18530_v17 = vadd.f32 %v13583_v31, %v3718_v25 }
 0x317   : > { %v13506_v10 = vpop.f32.mrf.mxu1  ;;  %v13589_v44 = vpop.f32.mrf.mxu0  ;;  %13985 = vmatmul.mubr.f32.gmra.mxu1 %v18291_v51 }
 0x318   : > { %v3720_v22 = vadd.f32 %v13506_v10, %v18299_v23  ;;  %13987 = vmatprep.mubr.f32.mxu1 %v18294_v1 }
 0x319   : > { %v3568_v37 = vpop.f32.mrf.mxu1  ;;  %v18535_v26 = vpop.f32.mrf.mxu0 }
 0x31a   : > { %v18538_v39 = vadd.f32 %v3568_v37, %v18303_v42  ;;  %v18540_v46 = vadd.f32 %v13586_v62, %v3720_v22 }
 0x31b   : > { %v13509_v4 = vpop.f32.mrf.mxu1  ;;  %v13592_v11 = vpop.f32.mrf.mxu0  ;;  %13988 = vmatmul.mubr.f32.gmra.mxu1 %v18305_v24 }
 0x31c   : > { %v3722_v31 = vadd.f32 %v13509_v4, %v18314_v48  ;;  %13990 = vmatprep.mubr.f32.mxu1 %v18309_v14 }
 0x31d   : > { %v3578_v51 = vpop.f32.mrf.mxu1  ;;  %v18545_v23 = vpop.f32.mrf.mxu0 }
 0x31e   : > { %v18548_v1 = vadd.f32 %v3578_v51, %v18318_v2  ;;  %v18550_v58 = vadd.f32 %v13589_v44, %v3722_v31  ;;  %v5657_v51 = vld [vmem:[%s22360_s1 + $0xaf0] sm:$0xff] }
 0x31f   : > { %v13512_v42 = vpop.f32.mrf.mxu1  ;;  %v13595_v25 = vpop.f32.mrf.mxu0  ;;  %13991 = vmatmul.mubr.f32.gmra.mxu1 %v18320_v5 }
 0x320   : > { %v3724_v62 = vadd.f32 %v13512_v42, %v18329_v28  ;;  %13993 = vmatprep.mubr.f32.mxu1 %v18324_v38 }
 0x321   : > { %v3588_v24 = vpop.f32.mrf.mxu1  ;;  %v18555_v48 = vpop.f32.mrf.mxu0 }
 0x322   : > { %v18558_v14 = vadd.f32 %v3588_v24, %v18333_v15  ;;  %v18560_v10 = vadd.f32 %v13592_v11, %v3724_v62  ;;  %v5658_v15 = vld [vmem:[%s22360_s1 + $0xaf8] sm:$0xff]  ;;  %v5656_v24 = vld [vmem:[%s22360_s1 + $0xae8] sm:$0xff] }
 0x323   : > { %v13515_v2 = vpop.f32.mrf.mxu1  ;;  %v13598_v22 = vpop.f32.mrf.mxu0  ;;  %13994 = vmatmul.mubr.f32.gmra.mxu1 %v18335_v36  ;;  %14029 = vmatprep.subr.mxu0 %v5658_v15 }
 0x324   : > { %v3726_v44 = vadd.f32 %v13515_v2, %v18344_v19  ;;  %13996 = vmatprep.mubr.f32.mxu1 %v18339_v43  ;;  %14030 = vmatpush3.msra.mxu0 %v5658_v15 }
 0x325   : > { %v3598_v5 = vpop.f32.mrf.mxu1  ;;  %v18565_v28 = vpop.f32.mrf.mxu0  ;;  %14031 = vmatprep.subr.mxu0 %v5657_v51 }
 0x326   : > { %v18568_v38 = vadd.f32 %v3598_v5, %v18348_v45  ;;  %v18570_v37 = vadd.f32 %v13595_v25, %v3726_v44  ;;  %14032 = vmatpush3.msra.mxu0 %v5657_v51  ;;  %v5655_v5 = vld [vmem:[%s22360_s1 + $0xae0] sm:$0xff] }
 0x327   : > { %v13518_v4 = vpop.f32.mrf.mxu1  ;;  %v13601_v11 = vpop.f32.mrf.mxu0  ;;  %13997 = vmatmul.mubr.f32.gmra.mxu1 %v18350_v32  ;;  %14033 = vmatprep.subr.mxu0 %v5656_v24 }
 0x328   : > { %v3728_v36 = vadd.f32 %v13518_v4, %v18359_v53  ;;  %13999 = vmatprep.mubr.f32.mxu1 %v18354_v30  ;;  %14034 = vmatpush3.msra.mxu0 %v5656_v24  ;;  %v5652_v24 = vld [vmem:[%s22360_s1 + $0xac8] sm:$0xff] }
 0x329   : > { %v3608_v43 = vpop.f32.mrf.mxu1  ;;  %v18578_v19 = vpop.f32.mrf.mxu0  ;;  %14035 = vmatprep.subr.mxu0 %v5655_v5 }
 0x32a   : > { %v18581_v45 = vadd.f32 %v3608_v43, %v18363_v16  ;;  %v18583_v31 = vadd.f32 %v13598_v22, %v3728_v36  ;;  %14036 = vmatpush3.msra.mxu0 %v5655_v5 }
 0x32b   : > { %v13521_v42 = vpop.f32.mrf.mxu1  ;;  %v13604_v32 = vpop.f32.mrf.mxu0  ;;  %14000 = vmatmul.mubr.f32.gmra.mxu1 %v18365_v35 }
 0x32c   : > { %v3730_v30 = vadd.f32 %v13521_v42, %v18374_v34  ;;  %14002 = vmatprep.mubr.f32.mxu1 %v18369_v6  ;;  %v5653_v42 = vld [vmem:[%s22360_s1 + $0xad0] sm:$0xff] }
 0x32d   : > { %v3618_v53 = vpop.f32.mrf.mxu1  ;;  %v18591_v25 = vpop.f32.mrf.mxu0 }
 0x32e   : > { %22690 = vst [vmem:[#allocation88_spill] sm:$0xff] %v18591_v25  ;;  %v18594_v16 = vadd.f32 %v3618_v53, %v18378_v9  ;;  %v18596_v62 = vadd.f32 %v13601_v11, %v3730_v30 }
 0x32f   : > { %v13524_v2 = vpop.f32.mrf.mxu1  ;;  %v13607_v35 = vpop.f32.mrf.mxu0  ;;  %14003 = vmatmul.mubr.f32.gmra.mxu1 %v18380_v50 }
 0x330   : > { %v3732_v6 = vadd.f32 %v13524_v2, %v18389_v56  ;;  %14005 = vmatprep.mubr.f32.mxu1 %v18384_v57  ;;  %v3398_v57 = vadd.f32 %v18393_v60, %v18410_v0 }
 0x331   : > { %v3628_v34 = vpop.f32.mrf.mxu1  ;;  %v18604_v22 = vpop.f32.mrf.mxu0 }
 0x332   : > { %22691 = vst [vmem:[#allocation80_spill] sm:$0xff] %v18604_v22  ;;  %v18607_v9 = vadd.f32 %v3628_v34, %v18395_v3  ;;  %v18609_v44 = vadd.f32 %v13604_v32, %v3732_v6  ;;  %v5642_v6 = vld [vmem:[%s22360_s1 + $0x978] sm:$0xff] }
 0x333   : > { %v13527_v15 = vpop.f32.mrf.mxu1  ;;  %v13610_v50 = vpop.f32.mrf.mxu0  ;;  %14006 = vmatmul.mubr.f32.gmra.mxu1 %v18397_v33  ;;  %v5654_v33 = vld [vmem:[%s22360_s1 + $0xad8] sm:$0xff]  ;;  %14109 = vmatprep.subr.mxu1 %v5642_v6 }
 0x334   : > { %22692 = vst [vmem:[#allocation41_spill] sm:$0xff] %v18607_v9  ;;  %v3734_v56 = vadd.f32 %v13527_v15, %v18406_v7  ;;  %14008 = vmatprep.mubr.f32.mxu1 %v18401_v13  ;;  %14037 = vmatprep.subr.mxu0 %v5654_v33  ;;  %v22701_v15 = vld [vmem:[#allocation15_spill] sm:$0xff] }
 0x335   : > { %v3638_v3 = vpop.f32.mrf.mxu1  ;;  %v18619_v4 = vpop.f32.mrf.mxu0  ;;  %14038 = vmatpush3.msra.mxu0 %v5654_v33  ;;  %14110 = vmatpush3.msra.mxu1 %v5642_v6  ;;  %v5640_v33 = vld [vmem:[%s22360_s1 + $0x968] sm:$0xff]  ;;  %v22708_v6 = vld [vmem:[#allocation19_spill] sm:$0xff] }
 0x336   : > { %22693 = vst [vmem:[#allocation44_spill] sm:$0xff] %v18619_v4  ;;  %v18621_v11 = vadd.f32 %v3638_v3, %v3398_v57  ;;  %v18623_v36 = vadd.f32 %v13607_v35, %v3734_v56  ;;  %14039 = vmatprep.subr.mxu0 %v5653_v42 }
 0x337   : > { %v13530_v43 = vpop.f32.mrf.mxu1  ;;  %v13613_v51 = vpop.f32.mrf.mxu0  ;;  %14009 = vmatmul.mubr.f32.gmra.mxu1 %v18414_v63  ;;  %14040 = vmatpush3.msra.mxu0 %v5653_v42  ;;  %v5639_v42 = vld [vmem:[%s22360_s1 + $0x960] sm:$0xff] }
 0x338   : > { %22694 = vst [vmem:[#allocation81_spill] sm:$0xff] %v18621_v11  ;;  %v3736_v60 = vadd.f32 %v13530_v43, %v18423_v12  ;;  %14011 = vmatprep.mubr.f32.mxu1 %v18418_v41  ;;  %14041 = vmatprep.subr.mxu0 %v5652_v24 }
 0x339   : > { %v18631_v13 = vpop.f32.mrf.mxu1  ;;  %v18633_v7 = vpop.f32.mrf.mxu0  ;;  %14042 = vmatpush3.msra.mxu0 %v5652_v24 }
 0x33a   : > { %22695 = vst [vmem:[#allocation91_spill] sm:$0xff] %v18631_v13  ;;  %22696 = vst [vmem:[#allocation39_spill] sm:$0xff] %v18633_v7  ;;  %v18635_v0 = vadd.f32 %v13610_v50, %v3736_v60  ;;  %v22704_v60 = vld [vmem:[#allocation85_spill] sm:$0xff] }
 0x33b   : > { %v13533_v32 = vpop.f32.mrf.mxu1  ;;  %v13616_v30 = vpop.f32.mrf.mxu0  ;;  %14012 = vmatmul.mubr.f32.gmra.mxu1 %v18431_v55 }
 0x33c   : > { %v3738_v63 = vadd.f32 %v13533_v32, %v18440_v52  ;;  %14014 = vmatprep.mubr.f32.mxu1 %v18435_v8 }
 0x33d   : > { %v18643_v41 = vpop.f32.mrf.mxu1  ;;  %v18645_v12 = vpop.f32.mrf.mxu0 }
 0x33e   : > { %22697 = vst [vmem:[#allocation21_spill] sm:$0xff] %v18643_v41  ;;  %22698 = vst [vmem:[#allocation22_spill] sm:$0xff] %v18645_v12  ;;  %v18647_v53 = vadd.f32 %v13613_v51, %v3738_v63  ;;  %v4638_v63 = vld [vmem:[#allocation3 + $0x19a] sm:$0xff] }
 0x33f   : > { %v13536_v2 = vpop.f32.mrf.mxu1  ;;  %v13619_v35 = vpop.f32.mrf.mxu0  ;;  %14015 = vmatmul.mubr.f32.gmra.mxu1 %v18448_v20  ;;  %v5651_v20 = vld [vmem:[%s22360_s1 + $0xac0] sm:$0xff] }
 0x340   : > { %v3740_v55 = vadd.f32 %v13536_v2, %v18457_v21  ;;  %14017 = vmatprep.mubr.f32.mxu1 %v18452_v49  ;;  %14043 = vmatprep.subr.mxu0 %v5651_v20  ;;  %v5641_v49 = vld [vmem:[%s22360_s1 + $0x970] sm:$0xff] }
 0x341   : > { %v18655_v8 = vpop.f32.mrf.mxu1  ;;  %v18657_v52 = vpop.f32.mrf.mxu0  ;;  %14044 = vmatpush3.msra.mxu0 %v5651_v20  ;;  %14111 = vmatprep.subr.mxu1 %v5641_v49 }
 0x342   : > { %22699 = vst [vmem:[#allocation23_spill] sm:$0xff] %v18655_v8  ;;  %22700 = vst [vmem:[#allocation42_spill] sm:$0xff] %v18657_v52  ;;  %v18662_v34 = vadd.f32 %v13616_v30, %v3740_v55  ;;  %14112 = vmatpush3.msra.mxu1 %v5641_v49  ;;  %v22707_v55 = vld [vmem:[#allocation18_spill] sm:$0xff]  ;;  %v5591_v52 = vld [vmem:[#allocation2] sm:$0xff] }
 0x343   : > { %v13539_v5 = vpop.f32.mrf.mxu1  ;;  %v13622_v21 = vpop.f32.mrf.mxu0  ;;  %14018 = vmatmul.mubr.f32.gmra.mxu1 %v18465_v59  ;;  %v5650_v59 = vld [vmem:[%s22360_s1 + $0xab8] sm:$0xff]  ;;  %14113 = vmatprep.subr.mxu1 %v5640_v33 }
 0x344   : > { %v3742_v50 = vadd.f32 %v13539_v5, %v22701_v15  ;;  %14020 = vmatprep.mubr.f32.mxu1 %v18469_v54  ;;  %14045 = vmatprep.subr.mxu0 %v5650_v59  ;;  %v4639_v5 = vld [vmem:[#allocation3 + $0x1a2] sm:$0xff] }
 0x345   : > { %v18673_v57 = vpop.f32.mrf.mxu1  ;;  %v18675_v56 = vpop.f32.mrf.mxu0  ;;  %14046 = vmatpush3.msra.mxu0 %v5650_v59  ;;  %14114 = vmatpush3.msra.mxu1 %v5640_v33  ;;  %v5648_v59 = vld [vmem:[%s22360_s1 + $0xaa8] sm:$0xff] }
 0x346   : > { %22702 = vst [vmem:[#allocation43_spill] sm:$0xff] %v18673_v57  ;;  %22703 = vst [vmem:[#allocation83_spill] sm:$0xff] %v18675_v56  ;;  %v18677_v3 = vadd.f32 %v13619_v35, %v3742_v50  ;;  %14115 = vmatprep.subr.mxu1 %v5639_v42  ;;  %v5636_v33 = vld [vmem:[%s22360_s1 + $0x948] sm:$0xff] }
 0x347   : > { %v13542_v43 = vpop.f32.mrf.mxu1  ;;  %v13625_v51 = vpop.f32.mrf.mxu0  ;;  %14021 = vmatmul.mubr.f32.gmra.mxu1 %v18482_v47  ;;  %v5649_v47 = vld [vmem:[%s22360_s1 + $0xab0] sm:$0xff] }
 0x348   : > { %v3744_v54 = vadd.f32 %v13542_v43, %v18491_v40  ;;  %14023 = vmatprep.mubr.f32.mxu1 %v22704_v60  ;;  %v5638_v40 = vld [vmem:[%s22360_s1 + $0x958] sm:$0xff]  ;;  %14116 = vmatpush3.msra.mxu1 %v5639_v42 }
 0x349   : > { %v18691_v32 = vpop.f32.mrf.mxu1  ;;  %v18693_v30 = vpop.f32.mrf.mxu0  ;;  %14047 = vmatprep.subr.mxu0 %v5649_v47  ;;  %14117 = vmatprep.subr.mxu1 %v5638_v40 }
 0x34a   : > { %22705 = vst [vmem:[#allocation94_spill] sm:$0xff] %v18691_v32  ;;  %22706 = vst [vmem:[#allocation45_spill] sm:$0xff] %v18693_v30  ;;  %v18695_v24 = vadd.f32 %v13622_v21, %v3744_v54  ;;  %v5637_v21 = vld [vmem:[%s22360_s1 + $0x950] sm:$0xff]  ;;  %14048 = vmatpush3.msra.mxu0 %v5649_v47  ;;  %14118 = vmatpush3.msra.mxu1 %v5638_v40  ;;  %v5647_v40 = vld [vmem:[%s22360_s1 + $0xaa0] sm:$0xff] }
 0x34b   : > { %v13545_v2 = vpop.f32.mrf.mxu1  ;;  %v13628_v35 = vpop.f32.mrf.mxu0  ;;  %14024 = vmatmul.mubr.f32.gmra.mxu1 %v22707_v55  ;;  %14119 = vmatprep.subr.mxu1 %v5637_v21 }
 0x34c   : > { %v3746_v20 = vadd.f32 %v13545_v2, %v22708_v6  ;;  %14026 = vmatprep.mubr.f32.mxu1 %v4638_v63  ;;  %14120 = vmatpush3.msra.mxu1 %v5637_v21  ;;  %v5632_v21 = vld [vmem:[%s22360_s1 + $0x928] sm:$0xff] }
 0x34d   : > { %v18708_v49 = vpop.f32.mrf.mxu1  ;;  %v18710_v15 = vpop.f32.mrf.mxu0  ;;  %14049 = vmatprep.subr.mxu0 %v5648_v59  ;;  %14121 = vmatprep.subr.mxu1 %v5636_v33 }
 0x34e   : > { %22709 = vst [vmem:[#allocation48_spill] sm:$0xff] %v18708_v49  ;;  %22710 = vst [vmem:[#allocation98_spill] sm:$0xff] %v18710_v15  ;;  %v18712_v50 = vadd.f32 %v13625_v51, %v3746_v20  ;;  %v5635_v51 = vld [vmem:[%s22360_s1 + $0x940] sm:$0xff]  ;;  %14050 = vmatpush3.msra.mxu0 %v5648_v59  ;;  %14122 = vmatpush3.msra.mxu1 %v5636_v33  ;;  %v5644_v49 = vld [vmem:[%s22360_s1 + $0xa88] sm:$0xff] }
 0x34f   : > { %v13548_v43 = vpop.f32.mrf.mxu1  ;;  %v18720_v54 = vpop.f32.mrf.mxu0  ;;  %14027 = vmatmul.mubr.f32.gmra.mxu1 %v4639_v5  ;;  %14123 = vmatprep.subr.mxu1 %v5635_v51 }
 0x350   : > { %v3748_v60 = vadd.f32 %v13548_v43, %v18514_v61  ;;  %v5634_v61 = vld [vmem:[%s22360_s1 + $0x938] sm:$0xff]  ;;  %14051 = vmatprep.subr.mxu0 %v5647_v40  ;;  %14124 = vmatpush3.msra.mxu1 %v5635_v51  ;;  %v5631_v43 = vld [vmem:[%s22360_s1 + $0x920] sm:$0xff] }
 0x351   : > { %v18726_v42 = vpop.f32.mrf.mxu1  ;;  %v18728_v63 = vpop.f32.mrf.mxu0  ;;  %14052 = vmatpush3.msra.mxu0 %v5647_v40  ;;  %14125 = vmatprep.subr.mxu1 %v5634_v61  ;;  %v5630_v40 = vld [vmem:[%s22360_s1 + $0x918] sm:$0xff] }
 0x352   : > { %22711 = vst [vmem:[#allocation84_spill] sm:$0xff] %v18726_v42  ;;  %v18730_v47 = vadd.f32 %v13628_v35, %v3748_v60  ;;  %v5633_v35 = vld [vmem:[%s22360_s1 + $0x930] sm:$0xff]  ;;  %14126 = vmatpush3.msra.mxu1 %v5634_v61  ;;  %14141 = vmatprep.mubr.f32.mxu1 %v5591_v52 }
 0x353   : > { %v13663_v2 = vpop.f32.mrf.mxu1  ;;  %v18738_v55 = vpop.f32.mrf.mxu0  ;;  %14127 = vmatprep.subr.mxu1 %v5633_v35 }
 0x354   : > { %v18741_v6 = vadd.f32 %v13663_v2, %v18530_v17  ;;  %14128 = vmatpush3.msra.mxu1 %v5633_v35  ;;  %v5646_v35 = vld [vmem:[%s22360_s1 + $0xa98] sm:$0xff] }
 0x355   : > { %v18746_v20 = vpop.f32.mrf.mxu1  ;;  %v18748_v5 = vpop.f32.mrf.mxu0  ;;  %14129 = vmatprep.subr.mxu1 %v5632_v21  ;;  %14053 = vmatprep.subr.mxu0 %v5646_v35 }
 0x356   : > { %14130 = vmatpush3.msra.mxu1 %v5632_v21  ;;  %v5629_v21 = vld [vmem:[%s22360_s1 + $0x910] sm:$0xff]  ;;  %14054 = vmatpush3.msra.mxu0 %v5646_v35 }
 0x357   : > { %v13666_v59 = vpop.f32.mrf.mxu1  ;;  %v18753_v33 = vpop.f32.mrf.mxu0  ;;  %14131 = vmatprep.subr.mxu1 %v5631_v43 }
 0x358   : > { %v18756_v17 = vadd.f32 %v13666_v59, %v18540_v46  ;;  %14132 = vmatpush3.msra.mxu1 %v5631_v43  ;;  %v5645_v43 = vld [vmem:[%s22360_s1 + $0xa90] sm:$0xff] }
 0x359   : > { %v18761_v60 = vpop.f32.mrf.mxu1  ;;  %v18763_v51 = vpop.f32.mrf.mxu0  ;;  %14133 = vmatprep.subr.mxu1 %v5630_v40  ;;  %14055 = vmatprep.subr.mxu0 %v5645_v43 }
 0x35a   : > { %14134 = vmatpush3.msra.mxu1 %v5630_v40  ;;  %v5627_v40 = vld [vmem:[%s22360_s1 + $0x900] sm:$0xff]  ;;  %14056 = vmatpush3.msra.mxu0 %v5645_v43 }
 0x35b   : > { %v13669_v61 = vpop.f32.mrf.mxu1  ;;  %v18768_v2 = vpop.f32.mrf.mxu0  ;;  %14135 = vmatprep.subr.mxu1 %v5629_v21  ;;  %14057 = vmatprep.subr.mxu0 %v5644_v49 }
 0x35c   : > { %v18771_v46 = vadd.f32 %v13669_v61, %v18550_v58  ;;  %v5628_v58 = vld [vmem:[%s22360_s1 + $0x908] sm:$0xff]  ;;  %14136 = vmatpush3.msra.mxu1 %v5629_v21  ;;  %14058 = vmatpush3.msra.mxu0 %v5644_v49  ;;  %v5643_v21 = vld [vmem:[%s22360_s1 + $0xa80] sm:$0xff] }
 0x35d   : > { %v18779_v59 = vpop.f32.mrf.mxu1  ;;  %v18781_v15 = vpop.f32.mrf.mxu0  ;;  %14137 = vmatprep.subr.mxu1 %v5628_v58  ;;  %14059 = vmatprep.subr.mxu0 %v5643_v21 }
 0x35e   : > { %14138 = vmatpush3.msra.mxu1 %v5628_v58  ;;  %v15491_v58 = vld [vmem:[#allocation2 + $0x8] sm:$0xff]  ;;  %14060 = vmatpush3.msra.mxu0 %v5643_v21  ;;  %v18833_v21 = vld [vmem:[%s22360_s1 + $0xc78] sm:$0xff] }
 0x35f   : > { %v13672_v61 = vpop.f32.mrf.mxu1  ;;  %v18786_v30 = vpop.f32.mrf.mxu0  ;;  %14139 = vmatprep.subr.mxu1 %v5627_v40  ;;  %22718 = vst [vmem:[#allocation49_spill] sm:$0xff] %v18833_v21  ;;  %14189 = vmatprep.subr.mxu0 %v18833_v21 }
 0x360   : > { %v18792_v42 = vadd.f32 %v13672_v61, %v18560_v10  ;;  %14140 = vmatpush3.msra.mxu1 %v5627_v40 }
 0x361   : > { %v18797_v35 = vpop.f32.mrf.mxu1  ;;  %v18799_v56 = vpop.f32.mrf.mxu0  ;;  %14142 = vmatmul.mubr.f32.vlgmr.msra.gmra.mxu1 %v15491_v58 }
 0x363   : > { %v13675_v10 = vpop.f32.mrf.mxu1  ;;  %v18804_v61 = vpop.f32.mrf.mxu0 }
 0x364   : > { %22712 = vst [vmem:[#allocation24_spill] sm:$0xff] %v18804_v61  ;;  %v18810_v32 = vadd.f32 %v13675_v10, %v18570_v37 }
 0x365   : > { %v18812_v43 = vpop.f32.mrf.mxu1  ;;  %v18814_v12 = vpop.f32.mrf.mxu0 }
 0x366   : > { %22713 = vst [vmem:[#allocation25_spill] sm:$0xff] %v18814_v12 }
 0x367   : > { %v13678_v57 = vpop.f32.mrf.mxu1  ;;  %v18816_v49 = vpop.f32.mrf.mxu0 }
 0x368   : > { %22714 = vst [vmem:[#allocation46_spill] sm:$0xff] %v18816_v49  ;;  %v18819_v7 = vadd.f32 %v13678_v57, %v18583_v31 }
 0x369   : > { %v18821_v8 = vpop.f32.mrf.mxu1  ;;  %v18823_v37 = vpop.f32.mrf.mxu0 }
 0x36a   : > { %22715 = vst [vmem:[#allocation47_spill] sm:$0xff] %v18823_v37 }
 0x36b   : > { %v13681_v40 = vpop.f32.mrf.mxu1  ;;  %v18825_v52 = vpop.f32.mrf.mxu0 }
 0x36c   : > { %22716 = vst [vmem:[#allocation101_spill] sm:$0xff] %v18825_v52  ;;  %v18828_v10 = vadd.f32 %v13681_v40, %v18596_v62 }
 0x36d   : > { %v18835_v58 = vpop.f32.mrf.mxu1  ;;  %v18837_v4 = vpop.f32.mrf.mxu0 }
 0x36e   : > { %22717 = vst [vmem:[#allocation86_spill] sm:$0xff] %v18828_v10  ;;  %22719 = vst [vmem:[#allocation52_spill] sm:$0xff] %v18835_v58 }
 0x36f   : > { %22720 = vst [vmem:[#allocation87_spill] sm:$0xff] %v18837_v4  ;;  %v13684_v31 = vpop.f32.mrf.mxu1  ;;  %v18840_v57 = vpop.f32.mrf.mxu0 }
 0x370   : > { %22721 = vst [vmem:[#allocation26_spill] sm:$0xff] %v18840_v57  ;;  %v18843_v41 = vadd.f32 %v13684_v31, %v18609_v44 }
 0x371   : > { %v18845_v52 = vpop.f32.mrf.mxu1  ;;  %v18847_v62 = vpop.f32.mrf.mxu0 }
 0x372   : > { %22722 = vst [vmem:[#allocation27_spill] sm:$0xff] %v18843_v41  ;;  %22723 = vst [vmem:[#allocation50_spill] sm:$0xff] %v18845_v52 }
 0x373   : > { %22724 = vst [vmem:[#allocation51_spill] sm:$0xff] %v18847_v62  ;;  %v13687_v40 = vpop.f32.mrf.mxu1  ;;  %v18849_v22 = vpop.f32.mrf.mxu0 }
 0x374   : > { %22725 = vst [vmem:[#allocation89_spill] sm:$0xff] %v18849_v22  ;;  %v18852_v11 = vadd.f32 %v13687_v40, %v18623_v36 }
 0x375   : > { %v18854_v13 = vpop.f32.mrf.mxu1  ;;  %v18856_v4 = vpop.f32.mrf.mxu0 }
 0x376   : > { %22726 = vst [vmem:[#allocation53_spill] sm:$0xff] %v18852_v11  ;;  %22727 = vst [vmem:[#allocation56_spill] sm:$0xff] %v18854_v13 }
 0x377   : > { %22728 = vst [vmem:[#allocation90_spill] sm:$0xff] %v18856_v4  ;;  %v13690_v21 = vpop.f32.mrf.mxu1  ;;  %v18858_v37 = vpop.f32.mrf.mxu0 }
 0x378   : > { %22729 = vst [vmem:[#allocation28_spill] sm:$0xff] %v18858_v37  ;;  %v18861_v44 = vadd.f32 %v13690_v21, %v18635_v0 }
 0x379   : > { %v18863_v31 = vpop.f32.mrf.mxu1  ;;  %v18865_v57 = vpop.f32.mrf.mxu0 }
 0x37a   : > { %22730 = vst [vmem:[#allocation29_spill] sm:$0xff] %v18861_v44  ;;  %22731 = vst [vmem:[#allocation54_spill] sm:$0xff] %v18863_v31 }
 0x37b   : > { %22732 = vst [vmem:[#allocation55_spill] sm:$0xff] %v18865_v57  ;;  %v13693_v62 = vpop.f32.mrf.mxu1  ;;  %v18867_v41 = vpop.f32.mrf.mxu0 }
 0x37c   : > { %22733 = vst [vmem:[#allocation92_spill] sm:$0xff] %v18867_v41  ;;  %v18870_v36 = vadd.f32 %v13693_v62, %v18647_v53  ;;  %v6433_v41 = vld [vmem:[%s22360_s1 + $0x9f8] sm:$0xff] }
 0x37d   : > { %v18872_v40 = vpop.f32.mrf.mxu1  ;;  %v18874_v22 = vpop.f32.mrf.mxu0  ;;  %14269 = vmatprep.subr.mxu1 %v6433_v41 }
 0x37e   : > { %22734 = vst [vmem:[#allocation57_spill] sm:$0xff] %v18870_v36  ;;  %22735 = vst [vmem:[#allocation60_spill] sm:$0xff] %v18872_v40  ;;  %14270 = vmatpush3.msra.mxu1 %v6433_v41 }
 0x37f   : > { %22736 = vst [vmem:[#allocation93_spill] sm:$0xff] %v18874_v22  ;;  %v13696_v4 = vpop.f32.mrf.mxu1  ;;  %v18876_v11 = vpop.f32.mrf.mxu0  ;;  %v6431_v22 = vld [vmem:[%s22360_s1 + $0x9e8] sm:$0xff] }
 0x380   : > { %22737 = vst [vmem:[#allocation30_spill] sm:$0xff] %v18876_v11  ;;  %v18879_v0 = vadd.f32 %v13696_v4, %v18662_v34  ;;  %v6432_v11 = vld [vmem:[%s22360_s1 + $0x9f0] sm:$0xff] }
 0x381   : > { %v18881_v21 = vpop.f32.mrf.mxu1  ;;  %v18883_v37 = vpop.f32.mrf.mxu0  ;;  %14271 = vmatprep.subr.mxu1 %v6432_v11 }
 0x382   : > { %22738 = vst [vmem:[#allocation31_spill] sm:$0xff] %v18879_v0  ;;  %22739 = vst [vmem:[#allocation58_spill] sm:$0xff] %v18881_v21  ;;  %14272 = vmatpush3.msra.mxu1 %v6432_v11  ;;  %v6418_v0 = vld [vmem:[%s22360_s1 + $0x980] sm:$0xff] }
 0x383   : > { %22740 = vst [vmem:[#allocation59_spill] sm:$0xff] %v18883_v37  ;;  %v13699_v53 = vpop.f32.mrf.mxu1  ;;  %v18888_v62 = vpop.f32.mrf.mxu0  ;;  %14273 = vmatprep.subr.mxu1 %v6431_v22 }
 0x384   : > { %22741 = vst [vmem:[#allocation95_spill] sm:$0xff] %v18888_v62  ;;  %v18894_v4 = vadd.f32 %v13699_v53, %v18677_v3  ;;  %14274 = vmatpush3.msra.mxu1 %v6431_v22  ;;  %v6430_v3 = vld [vmem:[%s22360_s1 + $0x9e0] sm:$0xff] }
 0x385   : > { %v18896_v34 = vpop.f32.mrf.mxu1  ;;  %v18898_v37 = vpop.f32.mrf.mxu0  ;;  %14275 = vmatprep.subr.mxu1 %v6430_v3 }
 0x386   : > { %22742 = vst [vmem:[#allocation61_spill] sm:$0xff] %v18894_v4  ;;  %22743 = vst [vmem:[#allocation64_spill] sm:$0xff] %v18896_v34  ;;  %14276 = vmatpush3.msra.mxu1 %v6430_v3  ;;  %v6427_v3 = vld [vmem:[%s22360_s1 + $0x9c8] sm:$0xff] }
 0x387   : > { %22744 = vst [vmem:[#allocation96_spill] sm:$0xff] %v18898_v37  ;;  %v13702_v62 = vpop.f32.mrf.mxu1  ;;  %v18903_v41 = vpop.f32.mrf.mxu0  ;;  %v6429_v37 = vld [vmem:[%s22360_s1 + $0x9d8] sm:$0xff] }
 0x388   : > { %22745 = vst [vmem:[#allocation32_spill] sm:$0xff] %v18903_v41  ;;  %v18909_v53 = vadd.f32 %v13702_v62, %v18695_v24  ;;  %14277 = vmatprep.subr.mxu1 %v6429_v37  ;;  %v6428_v24 = vld [vmem:[%s22360_s1 + $0x9d0] sm:$0xff] }
 0x389   : > { %v18911_v4 = vpop.f32.mrf.mxu1  ;;  %v18913_v11 = vpop.f32.mrf.mxu0  ;;  %14278 = vmatpush3.msra.mxu1 %v6429_v37  ;;  %v6426_v37 = vld [vmem:[%s22360_s1 + $0x9c0] sm:$0xff] }
 0x38a   : > { %22746 = vst [vmem:[#allocation33_spill] sm:$0xff] %v18909_v53  ;;  %22747 = vst [vmem:[#allocation62_spill] sm:$0xff] %v18911_v4  ;;  %14279 = vmatprep.subr.mxu1 %v6428_v24 }
 0x38b   : > { %22748 = vst [vmem:[#allocation63_spill] sm:$0xff] %v18913_v11  ;;  %v13705_v41 = vpop.f32.mrf.mxu1  ;;  %v18918_v22 = vpop.f32.mrf.mxu0  ;;  %14280 = vmatpush3.msra.mxu1 %v6428_v24  ;;  %v6425_v24 = vld [vmem:[%s22360_s1 + $0x9b8] sm:$0xff] }
 0x38c   : > { %22749 = vst [vmem:[#allocation99_spill] sm:$0xff] %v18918_v22  ;;  %v18924_v62 = vadd.f32 %v13705_v41, %v18712_v50  ;;  %14281 = vmatprep.subr.mxu1 %v6427_v3 }
 0x38d   : > { %v18926_v53 = vpop.f32.mrf.mxu1  ;;  %v18931_v11 = vpop.f32.mrf.mxu0  ;;  %14282 = vmatpush3.msra.mxu1 %v6427_v3  ;;  %v6424_v3 = vld [vmem:[%s22360_s1 + $0x9b0] sm:$0xff] }
 0x38e   : > { %22750 = vst [vmem:[#allocation65_spill] sm:$0xff] %v18924_v62  ;;  %22751 = vst [vmem:[#allocation68_spill] sm:$0xff] %v18926_v53  ;;  %14283 = vmatprep.subr.mxu1 %v6426_v37  ;;  %v6420_v53 = vld [vmem:[%s22360_s1 + $0x990] sm:$0xff] }
 0x38f   : > { %22752 = vst [vmem:[#allocation100_spill] sm:$0xff] %v18931_v11  ;;  %v13708_v22 = vpop.f32.mrf.mxu1  ;;  %14284 = vmatpush3.msra.mxu1 %v6426_v37  ;;  %v18944_v62 = vpop.f32.mrf.mxu0 }
 0x390   : > { %v18937_v50 = vadd.f32 %v13708_v22, %v18730_v47  ;;  %14285 = vmatprep.subr.mxu1 %v6425_v24  ;;  %v6423_v22 = vld [vmem:[%s22360_s1 + $0x9a8] sm:$0xff] }
 0x391   : > { %v18939_v41 = vpop.f32.mrf.mxu1  ;;  %14286 = vmatpush3.msra.mxu1 %v6425_v24  ;;  %v18956_v37 = vpop.f32.mrf.mxu0  ;;  %v6422_v24 = vld [vmem:[%s22360_s1 + $0x9a0] sm:$0xff] }
 0x392   : > { %22753 = vst [vmem:[#allocation34_spill] sm:$0xff] %v18937_v50  ;;  %22754 = vst [vmem:[#allocation16_spill] sm:$0xff] %v18939_v41  ;;  %14287 = vmatprep.subr.mxu1 %v6424_v3 }
 0x393   : > { %v18946_v11 = vpop.f32.mrf.mxu1  ;;  %14288 = vmatpush3.msra.mxu1 %v6424_v3  ;;  %v6421_v3 = vld [vmem:[%s22360_s1 + $0x998] sm:$0xff]  ;;  %v18971_v4 = vpop.f32.mrf.mxu0 }
 0x394   : > { %14289 = vmatprep.subr.mxu1 %v6423_v22 }
 0x395   : > { %v18951_v47 = vpop.f32.mrf.mxu1  ;;  %14290 = vmatpush3.msra.mxu1 %v6423_v22  ;;  %v18983_v57 = vpop.f32.mrf.mxu0 }
 0x396   : > { %14291 = vmatprep.subr.mxu1 %v6422_v24 }
 0x397   : > { %v18958_v50 = vpop.f32.mrf.mxu1  ;;  %14292 = vmatpush3.msra.mxu1 %v6422_v24  ;;  %v6419_v24 = vld [vmem:[%s22360_s1 + $0x988] sm:$0xff]  ;;  %v18989_v36 = vpop.f32.mrf.mxu0 }
 0x398   : > { %14293 = vmatprep.subr.mxu1 %v6421_v3 }
 0x399   : > { %v18963_v41 = vpop.f32.mrf.mxu1  ;;  %14294 = vmatpush3.msra.mxu1 %v6421_v3  ;;  %v18995_v44 = vpop.f32.mrf.mxu0 }
 0x39a   : > { %14295 = vmatprep.subr.mxu1 %v6420_v53 }
 0x39b   : > { %v18973_v22 = vpop.f32.mrf.mxu1  ;;  %14296 = vmatpush3.msra.mxu1 %v6420_v53  ;;  %v19001_v52 = vpop.f32.mrf.mxu0 }
 0x39c   : > { %14297 = vmatprep.subr.mxu1 %v6419_v24 }
 0x39d   : > { %v18975_v34 = vpop.f32.mrf.mxu1  ;;  %14298 = vmatpush3.msra.mxu1 %v6419_v24  ;;  %v19007_v10 = vpop.f32.mrf.mxu0 }
 0x39e   : > { %14299 = vmatprep.subr.mxu1 %v6418_v0  ;;  %22759 = vst [vmem:[#allocation72_spill] sm:$0xff] %v19007_v10 }
 0x39f   : > { %v18985_v21 = vpop.f32.mrf.mxu1  ;;  %14300 = vmatpush3.msra.mxu1 %v6418_v0  ;;  %v19013_v9 = vpop.f32.mrf.mxu0 }
 0x3a0   : > { %22762 = vst [vmem:[#allocation70_spill] sm:$0xff] %v19013_v9 }
 0x3a1   : > { %v18987_v3 = vpop.f32.mrf.mxu1 }
 0x3a3   : > { %v18991_v53 = vpop.f32.mrf.mxu1 }
 0x3a5   : > { %v18993_v40 = vpop.f32.mrf.mxu1 }
 0x3a7   : > { %v18997_v31 = vpop.f32.mrf.mxu1 }
 0x3a8   : > { %22755 = vst [vmem:[#allocation66_spill] sm:$0xff] %v18997_v31  ;;  %v19019_v31 = vpop.f32.mrf.mxu0 }
 0x3a9   : > { %v18999_v13 = vpop.f32.mrf.mxu1 }
 0x3aa   : > { %22756 = vst [vmem:[#allocation67_spill] sm:$0xff] %v18999_v13 }
 0x3ab   : > { %v19003_v49 = vpop.f32.mrf.mxu1 }
 0x3ac   : > { %22757 = vst [vmem:[#allocation102_spill] sm:$0xff] %v19003_v49  ;;  %v19025_v49 = vpop.f32.mrf.mxu0 }
 0x3ad   : > { %v19005_v24 = vpop.f32.mrf.mxu1  ;;  %22767 = vst [vmem:[#allocation74_spill] sm:$0xff] %v19025_v49 }
 0x3ae   : > { %22758 = vst [vmem:[#allocation69_spill] sm:$0xff] %v19005_v24 }
 0x3af   : > { %v19009_v0 = vpop.f32.mrf.mxu1 }
 0x3b0   : > { %22760 = vst [vmem:[#allocation103_spill] sm:$0xff] %v19009_v0  ;;  %v19031_v0 = vpop.f32.mrf.mxu0 }
 0x3b1   : > { %v19011_v25 = vpop.f32.mrf.mxu1  ;;  %22770 = vst [vmem:[#allocation97_spill] sm:$0xff] %v19031_v0 }
 0x3b2   : > { %22761 = vst [vmem:[#allocation35_spill] sm:$0xff] %v19011_v25 }
 0x3b3   : > { %v19015_v12 = vpop.f32.mrf.mxu1 }
 0x3b4   : > { %22763 = vst [vmem:[#allocation71_spill] sm:$0xff] %v19015_v12 }
 0x3b5   : > { %v19017_v58 = vpop.f32.mrf.mxu1 }
 0x3b6   : > { %22764 = vst [vmem:[#allocation73_spill] sm:$0xff] %v19017_v58  ;;  %v19040_v58 = vld [vmem:[%s22360_s1 + $0xcf8] sm:$0xff] }
 0x3b7   : > { %v19021_v13 = vpop.f32.mrf.mxu1  ;;  %22773 = vst [vmem:[#allocation5_spill] sm:$0xff] %v19040_v58  ;;  %14429 = vmatprep.subr.mxu1 %v19040_v58 }
 0x3b8   : > { %22765 = vst [vmem:[#allocation76_spill] sm:$0xff] %v19021_v13 }
 0x3b9   : > { %v19023_v61 = vpop.f32.mrf.mxu1 }
 0x3ba   : > { %22766 = vst [vmem:[#allocation105_spill] sm:$0xff] %v19023_v61  ;;  %v19043_v61 = vpop.f32.mrf.mxu0 }
 0x3bb   : > { %v19027_v24 = vpop.f32.mrf.mxu1  ;;  %22774 = vst [vmem:[#allocation8_spill] sm:$0xff] %v19043_v61 }
 0x3bc   : > { %22768 = vst [vmem:[#allocation75_spill] sm:$0xff] %v19027_v24 }
 0x3bd   : > { %v19029_v10 = vpop.f32.mrf.mxu1 }
 0x3be   : > { %22769 = vst [vmem:[#allocation77_spill] sm:$0xff] %v19029_v10  ;;  %v19049_v10 = vpop.f32.mrf.mxu0 }
 0x3bf   : > { %v19033_v25 = vpop.f32.mrf.mxu1  ;;  %22777 = vst [vmem:[#allocation15_spill] sm:$0xff] %v19049_v10 }
 0x3c0   : > { %22771 = vst [vmem:[#allocation4_spill] sm:$0xff] %v19033_v25  ;;  %v19058_v49 = vpop.f32.mrf.mxu0 }
 0x3c1   : > { %v19035_v9 = vpop.f32.mrf.mxu1 }
 0x3c2   : > { %22772 = vst [vmem:[#allocation6_spill] sm:$0xff] %v19035_v9  ;;  %v4026_v9 = vadd.f32 %v18519_v29, %v18528_v27 }
 0x3c3   : > { %v19045_v13 = vpop.f32.mrf.mxu1 }
 0x3c4   : > { %22775 = vst [vmem:[#allocation7_spill] sm:$0xff] %v19045_v13  ;;  %v4299_v0 = vadd.f32 %v18746_v20, %v4026_v9  ;;  %v4028_v13 = vadd.f32 %v18525_v18, %v18538_v39  ;;  %v4030_v20 = vadd.f32 %v18535_v26, %v18548_v1  ;;  %v4575_v39 = vadd.f32 %v18738_v55, %v18756_v17  ;;  %v15492_v26 = vld [vmem:[%s22361_s2] sm:$0xf] }
 0x3c5   : > { %v19047_v24 = vpop.f32.mrf.mxu1  ;;  %v4577_v55 = vadd.f32 %v18753_v33, %v18771_v46  ;;  %v22782_v46 = vld [vmem:[#allocation11_spill] sm:$0xff] }
 0x3c6   : > { %22776 = vst [vmem:[#allocation9_spill] sm:$0xff] %v19047_v24  ;;  %v4573_v24 = vadd.f32 %v18720_v54, %v18741_v6  ;;  %v4301_v29 = vadd.f32 %v18761_v60, %v4028_v13  ;;  %v4572_v9 = vadd.f32 %v18728_v63, %v4299_v0  ;;  %v4303_v54 = vadd.f32 %v18779_v59, %v4030_v20 }
 0x3c7   : > { %v19051_v12 = vpop.f32.mrf.mxu1  ;;  %v4884_v13 = vadd.f32 %v18958_v50, %v4575_v39  ;;  %v22784_v39 = vld [vmem:[#allocation13_spill] sm:$0xff] }
 0x3c8   : > { %22778 = vst [vmem:[#allocation85_spill] sm:$0xff] %v19051_v12  ;;  %v22781_v12 = vld [vmem:[#allocation104_spill] sm:$0xff]  ;;  %v4882_v27 = vadd.f32 %v18946_v11, %v4573_v24  ;;  %v4881_v18 = vadd.f32 %v18951_v47, %v4572_v9  ;;  %v4574_v63 = vadd.f32 %v18748_v5, %v4301_v29  ;;  %v4032_v11 = vadd.f32 %v18545_v23, %v18558_v14  ;;  %v22783_v29 = vld [vmem:[#allocation10_spill] sm:$0xff] }
 0x3c9   : > { %v19055_v25 = vpop.f32.mrf.mxu1  ;;  %v5461_v61 = vsub.s32 1, %v22781_v12  ;;  %v4886_v24 = vadd.f32 %v18973_v22, %v4577_v55  ;;  %v5157_v33 = vadd.f32 %v18971_v4, %v4884_v13 }
 0x3ca   : > { %22779 = vst [vmem:[#allocation18_spill] sm:$0xff] %v19055_v25  ;;  %v5155_v60 = vadd.f32 %v18944_v62, %v4882_v27  ;;  %v4883_v50 = vadd.f32 %v18963_v41, %v4574_v63  ;;  %v5154_v62 = vadd.f32 %v18956_v37, %v4881_v18  ;;  %v4305_v47 = vadd.f32 %v18797_v35, %v4032_v11  ;;  %v22787_v11 = vld [vmem:[#allocation78_spill] sm:$0xff] }
 0x3cb   : > { %v19060_v58 = vpop.f32.mrf.mxu1  ;;  %v19090_v1 = vrot.slane %v15492_v26, %v5461_v61  ;;  %v4576_v61 = vadd.f32 %v18763_v51, %v4303_v54  ;;  %v19109_v27 = vadd.f32 %v22783_v29, %v22782_v46  ;;  %v4034_v41 = vadd.f32 %v18555_v48, %v18568_v38  ;;  %v22785_v54 = vld [vmem:[#allocation12_spill] sm:$0xff]  ;;  %v22786_v26 = vld [vmem:[#allocation82_spill] sm:$0xff]  ;;  %v22790_v46 = vld [vmem:[#allocation79_spill] sm:$0xff] }
 0x3cc   : > { %22780 = vst [vmem:[#allocation19_spill] sm:$0xff] %v19060_v58  ;;  %v19074_v58 = vpop.f32.mrf.mxu0  ;;  %v4579_v37 = vadd.f32 %v18768_v2, %v18792_v42  ;;  %v5156_v18 = vadd.f32 %v18983_v57, %v4883_v50  ;;  %v19125_v13 = vadd.f32 %v22785_v54, %v22784_v39  ;;  %v4578_v38 = vadd.f32 %v18781_v15, %v4305_v47  ;;  %v22791_v29 = vld [vmem:[#allocation40_spill] sm:$0xff] }
 0x3cd   : > { %v19066_v10 = vpop.f32.mrf.mxu1  ;;  %v4885_v35 = vadd.f32 %v18975_v34, %v4576_v61  ;;  %v4307_v48 = vadd.f32 %v18812_v43, %v4034_v41  ;;  %v5159_v2 = vadd.f32 %v18989_v36, %v4886_v24  ;;  %v19139_v55 = vadd.f32 %v22787_v11, %v22786_v26  ;;  %v22793_v39 = vld [vmem:[#allocation72_spill] sm:$0xff]  ;;  %v22799_v26 = vld [vmem:[#allocation66_spill] sm:$0xff] }
 0x3ce   : > { %v19096_v17 = vpop.f32.mrf.mxu0  ;;  %v4888_v34 = vadd.f32 %v18985_v21, %v4579_v37  ;;  %v4036_v15 = vadd.f32 %v18565_v28, %v18581_v45  ;;  %v4581_v43 = vadd.f32 %v18786_v30, %v18810_v32  ;;  %v4887_v50 = vadd.f32 %v18987_v3, %v4578_v38  ;;  %v22788_v28 = vld [vmem:[#allocation36_spill] sm:$0xff]  ;;  %v22789_v45 = vld [vmem:[#allocation14_spill] sm:$0xff]  ;;  %v22797_v38 = vld [vmem:[#allocation25_spill] sm:$0xff] }
 0x3cf   : > { %v19076_v25 = vpop.f32.mrf.mxu1  ;;  %v19157_v24 = vadd.f32 %v22789_v45, %v22788_v28  ;;  %v19171_v41 = vadd.f32 %v22791_v29, %v22790_v46  ;;  %v22802_v28 = vld [vmem:[#allocation41_spill] sm:$0xff]  ;;  %v22803_v45 = vld [vmem:[#allocation88_spill] sm:$0xff] }
 0x3d0   : > { %v19116_v51 = vpop.f32.mrf.mxu0  ;;  %v4309_v32 = vadd.f32 %v18821_v8, %v4036_v15  ;;  %v4890_v30 = vadd.f32 %v18991_v53, %v4581_v43  ;;  %v4038_v8 = vadd.f32 %v18578_v19, %v18594_v16  ;;  %v22792_v53 = vld [vmem:[#allocation24_spill] sm:$0xff]  ;;  %v5160_v54 = vadd.f32 %v22793_v39, %v4887_v50  ;;  %v22795_v16 = vld [vmem:[#allocation17_spill] sm:$0xff] }
 0x3d1   : > { %v19082_v6 = vpop.f32.mrf.mxu1  ;;  %v22794_v19 = vld [vmem:[#allocation20_spill] sm:$0xff]  ;;  %v22801_v50 = vld [vmem:[#allocation37_spill] sm:$0xff] }
 0x3d2   : > { %v19145_v36 = vpop.f32.mrf.mxu0 }
 0x3d3   : > { %v13983_v59 = vpop.f32.mrf.mxu1 }
 0x3d4   : > { %v5428_v5 = vadd.f32 %v13983_v59, %v5155_v60  ;;  %v5158_v59 = vadd.f32 %v18995_v44, %v4885_v35  ;;  %v4580_v44 = vadd.f32 %v18799_v56, %v4307_v48  ;;  %v4583_v35 = vadd.f32 %v22792_v53, %v18819_v7  ;;  %v19178_v37 = vpop.f32.mrf.mxu0  ;;  %v22796_v48 = vld [vmem:[#allocation52_spill] sm:$0xff]  ;;  %v22806_v53 = vld [vmem:[#allocation67_spill] sm:$0xff] }
 0x3d5   : > { %v5268_v0 = vpop.f32.mrf.mxu1  ;;  %v4311_v7 = vadd.f32 %v22796_v48, %v4038_v8  ;;  %v22809_v48 = vld [vmem:[#allocation47_spill] sm:$0xff] }
 0x3d6   : > { %v19104_v23 = vadd.f32 %v19090_v1, %v5428_v5  ;;  %v5427_v14 = vadd.f32 %v5268_v0, %v5154_v62  ;;  %v4889_v56 = vadd.f32 %v18993_v40, %v4580_v44  ;;  %v19189_v40 = vadd.f32 %v22795_v16, %v22794_v19  ;;  %v22804_v44 = vld [vmem:[#allocation86_spill] sm:$0xff] }
 0x3d7   : > { %v13986_v22 = vpop.f32.mrf.mxu1  ;;  %v4892_v11 = vadd.f32 %v22799_v26, %v4583_v35  ;;  %v22807_v19 = vld [vmem:[#allocation50_spill] sm:$0xff]  ;;  %v22810_v26 = vld [vmem:[#allocation49_spill] sm:$0xff] }
 0x3d8   : > { %v22405_v9 = vmax.f32 %v19104_v23, 0.0  ;;  %v19120_v20 = vadd.f32 %v19090_v1, %v5427_v14  ;;  %v5430_v4 = vadd.f32 %v13986_v22, %v5157_v33  ;;  %v5161_v33 = vadd.f32 %v19001_v52, %v4888_v34  ;;  %v22798_v34 = vld [vmem:[#allocation70_spill] sm:$0xff] }
 0x3d9   : > { %v5278_v42 = vpop.f32.mrf.mxu1  ;;  %v5162_v29 = vadd.f32 %v19019_v31, %v4889_v56  ;;  %v22808_v31 = vld [vmem:[#allocation102_spill] sm:$0xff] }
 0x3da   : > { %5528 = vst [vmem:[#allocation2 + $0x21] sm:$0xff] %v22405_v9  ;;  %v22406_v63 = vmax.f32 %v19120_v20, 0.0  ;;  %v19135_v57 = vadd.f32 %v19090_v1, %v5430_v4  ;;  %v5429_v60 = vadd.f32 %v5278_v42, %v5156_v18  ;;  %v4582_v42 = vadd.f32 %v22797_v38, %v4309_v32 }
 0x3db   : > { %v13989_v21 = vpop.f32.mrf.mxu1  ;;  %v4040_v32 = vadd.f32 %v22803_v45, %v22802_v28  ;;  %v4584_v38 = vadd.f32 %v22809_v48, %v4311_v7  ;;  %v22813_v45 = vld [vmem:[#allocation81_spill] sm:$0xff]  ;;  %v22814_v7 = vld [vmem:[#allocation80_spill] sm:$0xff] }
 0x3dc   : > { %5527 = vst [vmem:[#allocation2 + $0x19] sm:$0xff] %v22406_v63  ;;  %v22403_v5 = vmax.f32 %v19135_v57, 0.0  ;;  %v19153_v62 = vadd.f32 %v19090_v1, %v5429_v60  ;;  %v5432_v47 = vadd.f32 %v13989_v21, %v5159_v2  ;;  %v5163_v60 = vadd.f32 %v22798_v34, %v4890_v30  ;;  %v22805_v30 = vld [vmem:[#allocation46_spill] sm:$0xff]  ;;  %v6122_v48 = vld [vmem:[%s22360_s1 + $0xc68] sm:$0xff] }
 0x3dd   : > { %v5288_v3 = vpop.f32.mrf.mxu1  ;;  %v4891_v35 = vadd.f32 %v22806_v53, %v4582_v42  ;;  %v4313_v16 = vadd.f32 %v22807_v19, %v4040_v32  ;;  %v4042_v32 = vadd.f32 %v22814_v7, %v22813_v45  ;;  %v22818_v19 = vld [vmem:[#allocation97_spill] sm:$0xff] }
 0x3de   : > { %5530 = vst [vmem:[#allocation2 + $0x39] sm:$0xff] %v22403_v5  ;;  %v22404_v61 = vmax.f32 %v19153_v62, 0.0  ;;  %v19166_v0 = vadd.f32 %v19090_v1, %v5432_v47  ;;  %v5431_v14 = vadd.f32 %v5288_v3, %v5158_v59  ;;  %v22800_v59 = vld [vmem:[#allocation38_spill] sm:$0xff]  ;;  %v4585_v3 = vadd.f32 %v22805_v30, %v22804_v44  ;;  %v22815_v44 = vld [vmem:[#allocation69_spill] sm:$0xff] }
 0x3df   : > { %v13992_v22 = vpop.f32.mrf.mxu1  ;;  %v19203_v47 = vadd.f32 %v22801_v50, %v22800_v59  ;;  %v22812_v50 = vld [vmem:[#allocation91_spill] sm:$0xff]  ;;  %v4893_v30 = vadd.f32 %v22815_v44, %v4584_v38  ;;  %v22819_v38 = vld [vmem:[#allocation56_spill] sm:$0xff] }
 0x3e0   : > { %5529 = vst [vmem:[#allocation2 + $0x31] sm:$0xff] %v22404_v61  ;;  %v22401_v52 = vmax.f32 %v19166_v0, 0.0  ;;  %v19184_v4 = vadd.f32 %v19090_v1, %v5431_v14  ;;  %v5434_v18 = vadd.f32 %v13992_v22, %v5161_v33  ;;  %v19209_v14 = vpop.f32.mrf.mxu0  ;;  %v4894_v56 = vadd.f32 %v22808_v31, %v4585_v3  ;;  %v22816_v3 = vld [vmem:[#allocation27_spill] sm:$0xff] }
 0x3e1   : > { %v5298_v2 = vpop.f32.mrf.mxu1  ;;  %v3735_v28 = vadd.f32 %v22812_v50, %v19109_v27  ;;  %v5164_v31 = vadd.f32 %v22818_v19, %v4891_v35  ;;  %v22826_v19 = vld [vmem:[#allocation26_spill] sm:$0xff] }
 0x3e2   : > { %5532 = vst [vmem:[#allocation2 + $0x51] sm:$0xff] %v22401_v52  ;;  %v22402_v15 = vmax.f32 %v19184_v4, 0.0  ;;  %v19199_v43 = vadd.f32 %v19090_v1, %v5434_v18  ;;  %v5433_v21 = vadd.f32 %v5298_v2, %v5160_v54  ;;  %v6123_v54 = vld [vmem:[%s22360_s1 + $0xc70] sm:$0xff] }
 0x3e3   : > { %v13995_v33 = vpop.f32.mrf.mxu1  ;;  %v5593_v46 = vld [vmem:[#allocation2 + $0x18] sm:$0xff]  ;;  %v5594_v8 = vld [vmem:[#allocation2 + $0x20] sm:$0xff] }
 0x3e4   : > { %5531 = vst [vmem:[#allocation2 + $0x49] sm:$0xff] %v22402_v15  ;;  %v22400_v22 = vmax.f32 %v19199_v43, 0.0  ;;  %v5469_v18 = vadd.f32 %v19090_v1, %v5433_v21  ;;  %v5436_v39 = vadd.f32 %v13995_v33, %v5163_v60  ;;  %14061 = vmatprep.mubr.f32.mxu0 %v5593_v46  ;;  %14144 = vmatprep.mubr.f32.mxu1 %v5593_v46  ;;  %v22811_v21 = vld [vmem:[#allocation74_spill] sm:$0xff]  ;;  %v22817_v33 = vld [vmem:[#allocation101_spill] sm:$0xff] }
 0x3e5   : > { %v5308_v42 = vpop.f32.mrf.mxu1  ;;  %14062 = vmatmul.mubr.f32.vlgmr.msra.gmra.mxu0 %v5594_v8  ;;  %14145 = vmatmul.mubr.f32.gmra.mxu1 %v5594_v8  ;;  %v5165_v59 = vadd.f32 %v22811_v21, %v4892_v11  ;;  %v4587_v46 = vadd.f32 %v22817_v33, %v22816_v3  ;;  %v19237_v8 = vpop.f32.mrf.mxu0  ;;  %v22824_v3 = vld [vmem:[#allocation44_spill] sm:$0xff] }
 0x3e6   : > { %5534 = vst [vmem:[#allocation2 + $0x69] sm:$0xff] %v22400_v22  ;;  %v19225_v2 = vmax.f32 %v5469_v18, 0.0  ;;  %v5472_v34 = vadd.f32 %v19090_v1, %v5436_v39  ;;  %v5435_v60 = vadd.f32 %v5308_v42, %v5162_v29  ;;  %14190 = vmatpush3.msra.mxu0 %v22810_v26  ;;  %v4315_v42 = vadd.f32 %v22819_v38, %v4042_v32  ;;  %v22820_v26 = vld [vmem:[#allocation87_spill] sm:$0xff]  ;;  %v22823_v32 = vld [vmem:[#allocation21_spill] sm:$0xff] }
 0x3e7   : > { %v13998_v53 = vpop.f32.mrf.mxu1  ;;  %v19239_v18 = vld [vmem:[#allocation2 + $0x30] sm:$0xff]  ;;  %v19241_v29 = vld [vmem:[#allocation2 + $0x38] sm:$0xff]  ;;  %14191 = vmatprep.subr.mxu0 %v6123_v54  ;;  %v4586_v21 = vadd.f32 %v22820_v26, %v4313_v16  ;;  %v3737_v16 = vadd.f32 %v22823_v32, %v19125_v13  ;;  %v4044_v33 = vadd.f32 %v22824_v3, %v3735_v28  ;;  %v19268_v26 = vpop.f32.mrf.mxu0  ;;  %v22836_v22 = vld [vmem:[#allocation89_spill] sm:$0xff] }
 0x3e8   : > { %5533 = vst [vmem:[#allocation2 + $0x61] sm:$0xff] %v19225_v2  ;;  %v19244_v11 = vmax.f32 %v5472_v34, 0.0  ;;  %v5471_v27 = vadd.f32 %v19090_v1, %v5435_v60  ;;  %v5438_v39 = vadd.f32 %v13998_v53, %v5165_v59  ;;  %14064 = vmatprep.mubr.f32.mxu0 %v19239_v18  ;;  %14147 = vmatprep.mubr.f32.mxu1 %v19239_v18  ;;  %v22821_v34 = vld [vmem:[#allocation8_spill] sm:$0xff]  ;;  %v22822_v59 = vld [vmem:[#allocation103_spill] sm:$0xff]  ;;  %v22825_v53 = vld [vmem:[#allocation53_spill] sm:$0xff] }
 0x3e9   : > { %v5318_v50 = vpop.f32.mrf.mxu1  ;;  %14065 = vmatmul.mubr.f32.gmra.mxu0 %v19241_v29  ;;  %14148 = vmatmul.mubr.f32.gmra.mxu1 %v19241_v29  ;;  %v5167_v60 = vadd.f32 %v22821_v34, %v4894_v56  ;;  %v4896_v45 = vadd.f32 %v22822_v59, %v4587_v46  ;;  %v4589_v38 = vadd.f32 %v22826_v19, %v22825_v53  ;;  %v22827_v34 = vld [vmem:[#allocation15_spill] sm:$0xff]  ;;  %v19301_v15 = vpop.f32.mrf.mxu0 }
 0x3ea   : > { %5536 = vst [vmem:[#allocation2 + $0x81] sm:$0xff] %v19244_v11  ;;  %v19260_v35 = vmax.f32 %v5471_v27, 0.0  ;;  %v5474_v7 = vadd.f32 %v19090_v1, %v5438_v39  ;;  %v5437_v44 = vadd.f32 %v5318_v50, %v5164_v31  ;;  %14192 = vmatpush3.msra.mxu0 %v6123_v54  ;;  %v5166_v27 = vadd.f32 %v22827_v34, %v4893_v30  ;;  %v22828_v39 = vld [vmem:[#allocation35_spill] sm:$0xff]  ;;  %v6121_v30 = vld [vmem:[%s22360_s1 + $0xc60] sm:$0xff]  ;;  %v22829_v50 = vld [vmem:[#allocation54_spill] sm:$0xff] }
 0x3eb   : > { %v14001_v56 = vpop.f32.mrf.mxu1  ;;  %v19270_v46 = vld [vmem:[#allocation2 + $0x48] sm:$0xff]  ;;  %v19273_v59 = vld [vmem:[#allocation2 + $0x50] sm:$0xff]  ;;  %14193 = vmatprep.subr.mxu0 %v6122_v48  ;;  %v4895_v54 = vadd.f32 %v22828_v39, %v4586_v21  ;;  %v4317_v32 = vadd.f32 %v22829_v50, %v4044_v33  ;;  %v22830_v3 = vld [vmem:[#allocation71_spill] sm:$0xff]  ;;  %v19332_v61 = vpop.f32.mrf.mxu0 }
 0x3ec   : > { %5535 = vst [vmem:[#allocation2 + $0x79] sm:$0xff] %v19260_v35  ;;  %v19277_v13 = vmax.f32 %v5474_v7, 0.0  ;;  %v5473_v28 = vadd.f32 %v19090_v1, %v5437_v44  ;;  %v5440_v31 = vadd.f32 %v14001_v56, %v5167_v60  ;;  %14067 = vmatprep.mubr.f32.mxu0 %v19270_v46  ;;  %14150 = vmatprep.mubr.f32.mxu1 %v19270_v46  ;;  %v22831_v21 = vld [vmem:[#allocation51_spill] sm:$0xff]  ;;  %v22834_v50 = vld [vmem:[#allocation73_spill] sm:$0xff] }
 0x3ed   : > { %v4898_v53 = vadd.f32 %v22830_v3, %v4589_v38  ;;  %v4588_v19 = vadd.f32 %v22831_v21, %v4315_v42  ;;  %v5328_v34 = vpop.f32.mrf.mxu1  ;;  %14068 = vmatmul.mubr.f32.gmra.mxu0 %v19273_v59  ;;  %14151 = vmatmul.mubr.f32.gmra.mxu1 %v19273_v59  ;;  %v5169_v56 = vadd.f32 %v19058_v49, %v4896_v45  ;;  %v22832_v33 = vld [vmem:[#allocation23_spill] sm:$0xff]  ;;  %v22835_v21 = vld [vmem:[#allocation29_spill] sm:$0xff]  ;;  %v19365_v63 = vpop.f32.mrf.mxu0 }
 0x3ee   : > { %5538 = vst [vmem:[#allocation2 + $0x99] sm:$0xff] %v19277_v13  ;;  %v19291_v60 = vmax.f32 %v5473_v28, 0.0  ;;  %v5476_v7 = vadd.f32 %v19090_v1, %v5440_v31  ;;  %v5439_v44 = vadd.f32 %v5328_v34, %v5166_v27  ;;  %14194 = vmatpush3.msra.mxu0 %v6122_v48  ;;  %v3739_v38 = vadd.f32 %v22832_v33, %v19139_v55  ;;  %v22833_v39 = vld [vmem:[#allocation39_spill] sm:$0xff] }
 0x3ef   : > { %v4046_v42 = vadd.f32 %v22833_v39, %v3737_v16  ;;  %v4897_v3 = vadd.f32 %v22834_v50, %v4588_v19  ;;  %v4591_v52 = vadd.f32 %v22836_v22, %v22835_v21  ;;  %v14004_v28 = vpop.f32.mrf.mxu1  ;;  %v19303_v5 = vld [vmem:[#allocation2 + $0x60] sm:$0xff]  ;;  %v19305_v31 = vld [vmem:[#allocation2 + $0x68] sm:$0xff]  ;;  %14195 = vmatprep.subr.mxu0 %v6121_v30  ;;  %v5168_v22 = vadd.f32 %v19074_v58, %v4895_v54  ;;  %v6120_v45 = vld [vmem:[%s22360_s1 + $0xc58] sm:$0xff] }
 0x3f0   : > { %5537 = vst [vmem:[#allocation2 + $0x91] sm:$0xff] %v19291_v60  ;;  %v19308_v49 = vmax.f32 %v5476_v7, 0.0  ;;  %v5475_v55 = vadd.f32 %v19090_v1, %v5439_v44  ;;  %v5442_v48 = vadd.f32 %v14004_v28, %v5169_v56  ;;  %14070 = vmatprep.mubr.f32.mxu0 %v19303_v5  ;;  %14153 = vmatprep.mubr.f32.mxu1 %v19303_v5  ;;  %v22837_v16 = vld [vmem:[#allocation60_spill] sm:$0xff]  ;;  %v22838_v19 = vld [vmem:[#allocation90_spill] sm:$0xff]  ;;  %v22842_v28 = vld [vmem:[#allocation57_spill] sm:$0xff] }
 0x3f1   : > { %v4319_v27 = vadd.f32 %v22837_v16, %v4046_v42  ;;  %v4590_v34 = vadd.f32 %v22838_v19, %v4317_v32  ;;  %v5338_v33 = vpop.f32.mrf.mxu1  ;;  %14071 = vmatmul.mubr.f32.gmra.mxu0 %v19305_v31  ;;  %14154 = vmatmul.mubr.f32.gmra.mxu1 %v19305_v31  ;;  %v5171_v7 = vadd.f32 %v19096_v17, %v4898_v53  ;;  %v22839_v44 = vld [vmem:[#allocation76_spill] sm:$0xff]  ;;  %v22840_v42 = vld [vmem:[#allocation43_spill] sm:$0xff]  ;;  %v22841_v50 = vld [vmem:[#allocation22_spill] sm:$0xff] }
 0x3f2   : > { %v4900_v56 = vadd.f32 %v22839_v44, %v4591_v52  ;;  %5540 = vst [vmem:[#allocation2 + $0xb1] sm:$0xff] %v19308_v49  ;;  %v19324_v58 = vmax.f32 %v5475_v55, 0.0  ;;  %v5478_v54 = vadd.f32 %v19090_v1, %v5442_v48  ;;  %v5441_v39 = vadd.f32 %v5338_v33, %v5168_v22  ;;  %14196 = vmatpush3.msra.mxu0 %v6121_v30  ;;  %v22843_v16 = vld [vmem:[#allocation28_spill] sm:$0xff]  ;;  %v22844_v48 = vld [vmem:[#allocation105_spill] sm:$0xff]  ;;  %v22847_v44 = vld [vmem:[#allocation75_spill] sm:$0xff] }
 0x3f3   : > { %v3741_v32 = vadd.f32 %v22840_v42, %v19157_v24  ;;  %v4048_v21 = vadd.f32 %v22841_v50, %v3739_v38  ;;  %v4593_v19 = vadd.f32 %v22843_v16, %v22842_v28  ;;  %v14007_v17 = vpop.f32.mrf.mxu1  ;;  %v19334_v52 = vld [vmem:[#allocation2 + $0x78] sm:$0xff]  ;;  %v5170_v53 = vadd.f32 %v19116_v51, %v4897_v3  ;;  %v19337_v55 = vld [vmem:[#allocation2 + $0x80] sm:$0xff]  ;;  %14197 = vmatprep.subr.mxu0 %v6120_v45  ;;  %v6119_v51 = vld [vmem:[%s22360_s1 + $0xc50] sm:$0xff] }
 0x3f4   : > { %v4899_v30 = vadd.f32 %v22844_v48, %v4590_v34  ;;  %5539 = vst [vmem:[#allocation2 + $0xa9] sm:$0xff] %v19324_v58  ;;  %v19341_v24 = vmax.f32 %v5478_v54, 0.0  ;;  %v5477_v38 = vadd.f32 %v19090_v1, %v5441_v39  ;;  %v5444_v22 = vadd.f32 %v14007_v17, %v5171_v7  ;;  %14073 = vmatprep.mubr.f32.mxu0 %v19334_v52  ;;  %v22846_v3 = vld [vmem:[#allocation58_spill] sm:$0xff]  ;;  %v22848_v34 = vld [vmem:[#allocation55_spill] sm:$0xff]  ;;  %v22851_v48 = vld [vmem:[#allocation77_spill] sm:$0xff] }
 0x3f5   : > { %14156 = vmatprep.mubr.f32.mxu1 %v19334_v52  ;;  %v4321_v33 = vadd.f32 %v22846_v3, %v4048_v21  ;;  %v4902_v42 = vadd.f32 %v22847_v44, %v4593_v19  ;;  %v4592_v50 = vadd.f32 %v22848_v34, %v4319_v27  ;;  %v5348_v28 = vpop.f32.mrf.mxu1  ;;  %14074 = vmatmul.mubr.f32.gmra.mxu0 %v19337_v55  ;;  %v22849_v21 = vld [vmem:[#allocation94_spill] sm:$0xff]  ;;  %v22852_v44 = vld [vmem:[#allocation31_spill] sm:$0xff]  ;;  %v22853_v34 = vld [vmem:[#allocation92_spill] sm:$0xff] }
 0x3f6   : > { %22845 = vst [vmem:[#allocation11_spill] sm:$0xff] %v19341_v24  ;;  %14157 = vmatmul.mubr.f32.gmra.mxu1 %v19337_v55  ;;  %5542 = vst [vmem:[#allocation2 + $0xc9] sm:$0xff] %v19341_v24  ;;  %v19355_v7 = vmax.f32 %v5477_v38, 0.0  ;;  %v5480_v54 = vadd.f32 %v19090_v1, %v5444_v22  ;;  %v5443_v39 = vadd.f32 %v5348_v28, %v5170_v53  ;;  %14198 = vmatpush3.msra.mxu0 %v6120_v45  ;;  %v22850_v17 = vld [vmem:[#allocation42_spill] sm:$0xff]  ;;  %v22855_v53 = vld [vmem:[#allocation64_spill] sm:$0xff]  ;;  %v19396_v24 = vpop.f32.mrf.mxu0 }
 0x3f7   : > { %v5173_v16 = vadd.f32 %v19145_v36, %v4900_v56  ;;  %v3743_v19 = vadd.f32 %v22849_v21, %v19171_v41  ;;  %v4050_v27 = vadd.f32 %v22850_v17, %v3741_v32  ;;  %v4901_v3 = vadd.f32 %v22851_v48, %v4592_v50  ;;  %v14010_v38 = vpop.f32.mrf.mxu1  ;;  %v19367_v12 = vld [vmem:[#allocation2 + $0x90] sm:$0xff]  ;;  %v19369_v22 = vld [vmem:[#allocation2 + $0x98] sm:$0xff]  ;;  %14199 = vmatprep.subr.mxu0 %v6119_v51  ;;  %v6118_v32 = vld [vmem:[%s22360_s1 + $0xc48] sm:$0xff] }
 0x3f8   : > { %v4595_v9 = vadd.f32 %v22853_v34, %v22852_v44  ;;  %5541 = vst [vmem:[#allocation2 + $0xc1] sm:$0xff] %v19355_v7  ;;  %v19372_v36 = vmax.f32 %v5480_v54, 0.0  ;;  %v5479_v41 = vadd.f32 %v19090_v1, %v5443_v39  ;;  %14076 = vmatprep.mubr.f32.mxu0 %v19367_v12  ;;  %14159 = vmatprep.mubr.f32.mxu1 %v19367_v12  ;;  %v22856_v28 = vld [vmem:[#allocation93_spill] sm:$0xff]  ;;  %v22857_v39 = vld [vmem:[#allocation4_spill] sm:$0xff]  ;;  %v22860_v44 = vld [vmem:[#allocation83_spill] sm:$0xff] }
 0x3f9   : > { %v5446_v45 = vadd.f32 %v14010_v38, %v5173_v16  ;;  %v5172_v56 = vadd.f32 %v19178_v37, %v4899_v30  ;;  %v4323_v50 = vadd.f32 %v22855_v53, %v4050_v27  ;;  %v4594_v21 = vadd.f32 %v22856_v28, %v4321_v33  ;;  %v5358_v17 = vpop.f32.mrf.mxu1  ;;  %14077 = vmatmul.mubr.f32.gmra.mxu0 %v19369_v22  ;;  %v22859_v27 = vld [vmem:[#allocation48_spill] sm:$0xff]  ;;  %v22861_v38 = vld [vmem:[#allocation61_spill] sm:$0xff]  ;;  %v22862_v53 = vld [vmem:[#allocation30_spill] sm:$0xff] }
 0x3fa   : > { %22854 = vst [vmem:[#allocation10_spill] sm:$0xff] %v19372_v36  ;;  %14160 = vmatmul.mubr.f32.gmra.mxu1 %v19369_v22  ;;  %v5175_v54 = vadd.f32 %v19209_v14, %v4902_v42  ;;  %v4904_v16 = vadd.f32 %v22857_v39, %v4595_v9  ;;  %5544 = vst [vmem:[#allocation2 + $0xe1] sm:$0xff] %v19372_v36  ;;  %v19388_v37 = vmax.f32 %v5479_v41, 0.0  ;;  %14200 = vmatpush3.msra.mxu0 %v6119_v51  ;;  %v22866_v39 = vld [vmem:[#allocation7_spill] sm:$0xff] }
 0x3fb   : > { %v5482_v30 = vadd.f32 %v19090_v1, %v5446_v45  ;;  %v5445_v48 = vadd.f32 %v5358_v17, %v5172_v56  ;;  %v3745_v33 = vadd.f32 %v22859_v27, %v19189_v40  ;;  %v4052_v34 = vadd.f32 %v22860_v44, %v3743_v19  ;;  %v14013_v14 = vpop.f32.mrf.mxu1  ;;  %v19398_v9 = vld [vmem:[#allocation2 + $0xa8] sm:$0xff]  ;;  %v19401_v41 = vld [vmem:[#allocation2 + $0xb0] sm:$0xff]  ;;  %14201 = vmatprep.subr.mxu0 %v6118_v32  ;;  %v22873_v36 = vld [vmem:[#allocation95_spill] sm:$0xff] }
 0x3fc   : > { %22858 = vst [vmem:[#allocation13_spill] sm:$0xff] %v19388_v37  ;;  %v4597_v28 = vadd.f32 %v22862_v53, %v22861_v38  ;;  %v5174_v42 = vadd.f32 %v19237_v8, %v4901_v3  ;;  %v22863_v45 = vld [vmem:[#allocation6_spill] sm:$0xff]  ;;  %5543 = vst [vmem:[#allocation2 + $0xd9] sm:$0xff] %v19388_v37  ;;  %v5448_v56 = vadd.f32 %v14013_v14, %v5175_v54  ;;  %14079 = vmatprep.mubr.f32.mxu0 %v19398_v9  ;;  %v6117_v8 = vld [vmem:[%s22360_s1 + $0xc40] sm:$0xff] }
 0x3fd   : > { %v4903_v51 = vadd.f32 %v22863_v45, %v4594_v21  ;;  %v19405_v40 = vmax.f32 %v5482_v30, 0.0  ;;  %v5481_v19 = vadd.f32 %v19090_v1, %v5445_v48  ;;  %14162 = vmatprep.mubr.f32.mxu1 %v19398_v9  ;;  %v22865_v3 = vld [vmem:[#allocation62_spill] sm:$0xff]  ;;  %v22867_v21 = vld [vmem:[#allocation59_spill] sm:$0xff]  ;;  %v5368_v38 = vpop.f32.mrf.mxu1  ;;  %14080 = vmatmul.mubr.f32.gmra.mxu0 %v19401_v41  ;;  %v5177_v53 = vadd.f32 %v19268_v26, %v4904_v16  ;;  %v22870_v14 = vld [vmem:[#allocation45_spill] sm:$0xff] }
 0x3fe   : > { %v4325_v17 = vadd.f32 %v22865_v3, %v4052_v34  ;;  %v4906_v27 = vadd.f32 %v22866_v39, %v4597_v28  ;;  %v4596_v44 = vadd.f32 %v22867_v21, %v4323_v50  ;;  %14163 = vmatmul.mubr.f32.gmra.mxu1 %v19401_v41  ;;  %v5484_v30 = vadd.f32 %v19090_v1, %v5448_v56  ;;  %v22869_v34 = vld [vmem:[#allocation84_spill] sm:$0xff]  ;;  %v22871_v45 = vld [vmem:[#allocation9_spill] sm:$0xff]  ;;  %v19427_v39 = vpop.f32.mrf.mxu0 }
 0x3ff   : > { %22864 = vst [vmem:[#allocation12_spill] sm:$0xff] %v19405_v40  ;;  %5546 = vst [vmem:[#allocation2 + $0xf9] sm:$0xff] %v19405_v40  ;;  %v19419_v54 = vmax.f32 %v5481_v19, 0.0  ;;  %v5447_v48 = vadd.f32 %v5368_v38, %v5174_v42  ;;  %14202 = vmatpush3.msra.mxu0 %v6118_v32  ;;  %v3747_v28 = vadd.f32 %v22869_v34, %v19203_v47  ;;  %v22872_v21 = vld [vmem:[#allocation33_spill] sm:$0xff]  ;;  %v14016_v19 = vpop.f32.mrf.mxu1  ;;  %v19431_v37 = vld [vmem:[#allocation2 + $0xc0] sm:$0xff] }
 0x400   : > { %v4054_v50 = vadd.f32 %v22870_v14, %v3745_v33  ;;  %v4905_v3 = vadd.f32 %v22871_v45, %v4596_v44  ;;  %v4599_v40 = vadd.f32 %v22873_v36, %v22872_v21  ;;  %v19433_v56 = vld [vmem:[#allocation2 + $0xc8] sm:$0xff]  ;;  %14203 = vmatprep.subr.mxu0 %v6117_v8  ;;  %v19436_v26 = vmax.f32 %v5484_v30, 0.0  ;;  %14082 = vmatprep.mubr.f32.mxu0 %v19431_v37  ;;  %v6116_v36 = vld [vmem:[%s22360_s1 + $0xc38] sm:$0xff]  ;;  %v22874_v33 = vld [vmem:[#allocation68_spill] sm:$0xff] }
 0x401   : > { %22868 = vst [vmem:[#allocation82_spill] sm:$0xff] %v19419_v54  ;;  %5545 = vst [vmem:[#allocation2 + $0xf1] sm:$0xff] %v19419_v54  ;;  %v5483_v47 = vadd.f32 %v19090_v1, %v5447_v48  ;;  %v5450_v32 = vadd.f32 %v14016_v19, %v5177_v53  ;;  %14165 = vmatprep.mubr.f32.mxu1 %v19431_v37  ;;  %v5176_v16 = vadd.f32 %v19301_v15, %v4903_v51  ;;  %v22875_v44 = vld [vmem:[#allocation96_spill] sm:$0xff]  ;;  %v5378_v34 = vpop.f32.mrf.mxu1  ;;  %v22876_v48 = vld [vmem:[#allocation85_spill] sm:$0xff] }
 0x402   : > { %v4327_v42 = vadd.f32 %v22874_v33, %v4054_v50  ;;  %v4598_v38 = vadd.f32 %v22875_v44, %v4325_v17  ;;  %14083 = vmatmul.mubr.f32.gmra.mxu0 %v19433_v56  ;;  %14166 = vmatmul.mubr.f32.gmra.mxu1 %v19433_v56  ;;  %v5179_v30 = vadd.f32 %v19332_v61, %v4906_v27  ;;  %v22877_v50 = vld [vmem:[#allocation98_spill] sm:$0xff]  ;;  %v13945_v17 = vpop.f32.mrf.mxu0  ;;  %v22878_v21 = vld [vmem:[#allocation65_spill] sm:$0xff]  ;;  %v22879_v19 = vld [vmem:[#allocation32_spill] sm:$0xff] }
 0x403   : > { %v4908_v53 = vadd.f32 %v22876_v48, %v4599_v40  ;;  %5548 = vst [vmem:[#allocation2 + $0x111] sm:$0xff] %v19436_v26  ;;  %v19452_v15 = vmax.f32 %v5483_v47, 0.0  ;;  %v5486_v51 = vadd.f32 %v19090_v1, %v5450_v32  ;;  %v5449_v14 = vadd.f32 %v5378_v34, %v5176_v16  ;;  %14204 = vmatpush3.msra.mxu0 %v6117_v8  ;;  %v14019_v44 = vpop.f32.mrf.mxu1  ;;  %v19458_v54 = vld [vmem:[#allocation2 + $0xd8] sm:$0xff]  ;;  %v19461_v40 = vld [vmem:[#allocation2 + $0xe0] sm:$0xff]  ;;  %v22880_v27 = vld [vmem:[#allocation18_spill] sm:$0xff] }
 0x404   : > { %v4056_v45 = vadd.f32 %v22877_v50, %v3747_v28  ;;  %v4601_v33 = vadd.f32 %v22879_v19, %v22878_v21  ;;  %v5178_v61 = vadd.f32 %v19365_v63, %v4905_v3  ;;  %14205 = vmatprep.subr.mxu0 %v6116_v36  ;;  %v4907_v47 = vadd.f32 %v22880_v27, %v4598_v38  ;;  %v6115_v63 = vld [vmem:[%s22360_s1 + $0xc30] sm:$0xff]  ;;  %v22881_v3 = vld [vmem:[#allocation16_spill] sm:$0xff]  ;;  %v22882_v34 = vld [vmem:[#allocation19_spill] sm:$0xff] }
 0x405   : > { %5547 = vst [vmem:[#allocation2 + $0x109] sm:$0xff] %v19452_v15  ;;  %v19465_v32 = vmax.f32 %v5486_v51, 0.0  ;;  %v5485_v8 = vadd.f32 %v19090_v1, %v5449_v14  ;;  %v5452_v28 = vadd.f32 %v14019_v44, %v5179_v30  ;;  %14085 = vmatprep.mubr.f32.mxu0 %v19458_v54  ;;  %14168 = vmatprep.mubr.f32.mxu1 %v19458_v54  ;;  %v22883_v38 = vld [vmem:[#allocation63_spill] sm:$0xff]  ;;  %v5388_v21 = vpop.f32.mrf.mxu1  ;;  %v22884_v44 = vld [vmem:[#allocation34_spill] sm:$0xff] }
 0x406   : > { %v4329_v16 = vadd.f32 %v22881_v3, %v4056_v45  ;;  %v4910_v48 = vadd.f32 %v22882_v34, %v4601_v33  ;;  %v4600_v50 = vadd.f32 %v22883_v38, %v4327_v42  ;;  %14086 = vmatmul.mubr.f32.gmra.mxu0 %v19461_v40  ;;  %14169 = vmatmul.mubr.f32.gmra.mxu1 %v19461_v40  ;;  %v5135_v45 = vpop.f32.mrf.mxu0  ;;  %v22885_v42 = vld [vmem:[#allocation99_spill] sm:$0xff] }
 0x407   : > { %5550 = vst [vmem:[#allocation2 + $0x129] sm:$0xff] %v19465_v32  ;;  %v19479_v30 = vmax.f32 %v5485_v8, 0.0  ;;  %v5488_v51 = vadd.f32 %v19090_v1, %v5452_v28  ;;  %v5451_v14 = vadd.f32 %v5388_v21, %v5178_v61  ;;  %14206 = vmatpush3.msra.mxu0 %v6116_v36  ;;  %v5181_v19 = vadd.f32 %v19396_v24, %v4908_v53  ;;  %v14022_v3 = vpop.f32.mrf.mxu1  ;;  %v6114_v24 = vld [vmem:[%s22360_s1 + $0xc28] sm:$0xff]  ;;  %v22886_v53 = vld [vmem:[#allocation100_spill] sm:$0xff] }
 0x408   : > { %v4909_v33 = vadd.f32 %v19066_v10, %v4600_v50  ;;  %v4603_v27 = vadd.f32 %v22885_v42, %v22884_v44  ;;  %v19486_v34 = vld [vmem:[#allocation2 + $0xf0] sm:$0xff]  ;;  %v19488_v38 = vld [vmem:[#allocation2 + $0xf8] sm:$0xff]  ;;  %14207 = vmatprep.subr.mxu0 %v6115_v63  ;;  %v5180_v10 = vadd.f32 %v19427_v39, %v4907_v47  ;;  %v4602_v28 = vadd.f32 %v22886_v53, %v4329_v16 }
 0x409   : > { %5549 = vst [vmem:[#allocation2 + $0x121] sm:$0xff] %v19479_v30  ;;  %v19491_v8 = vmax.f32 %v5488_v51, 0.0  ;;  %v5487_v36 = vadd.f32 %v19090_v1, %v5451_v14  ;;  %v5454_v61 = vadd.f32 %v14022_v3, %v5181_v19  ;;  %14088 = vmatprep.mubr.f32.mxu0 %v19486_v34  ;;  %14171 = vmatprep.mubr.f32.mxu1 %v19486_v34  ;;  %v5398_v50 = vpop.f32.mrf.mxu1  ;;  %v13948_v19 = vpop.f32.mrf.mxu0 }
 0x40a   : > { %14089 = vmatmul.mubr.f32.gmra.mxu0 %v19488_v38  ;;  %14172 = vmatmul.mubr.f32.gmra.mxu1 %v19488_v38  ;;  %v5183_v21 = vadd.f32 %v13945_v17, %v4910_v48  ;;  %v4912_v51 = vadd.f32 %v19076_v25, %v4603_v27  ;;  %v5453_v47 = vadd.f32 %v5398_v50, %v5180_v10 }
 0x40b   : > { %5552 = vst [vmem:[#allocation2 + $0x141] sm:$0xff] %v19491_v8  ;;  %v19505_v14 = vmax.f32 %v5487_v36, 0.0  ;;  %v5490_v39 = vadd.f32 %v19090_v1, %v5454_v61  ;;  %14208 = vmatpush3.msra.mxu0 %v6115_v63  ;;  %v14025_v44 = vpop.f32.mrf.mxu1  ;;  %v5182_v16 = vadd.f32 %v5135_v45, %v4909_v33  ;;  %v4911_v17 = vadd.f32 %v19082_v6, %v4602_v28  ;;  %v6113_v63 = vld [vmem:[%s22360_s1 + $0xc20] sm:$0xff]  ;;  %v5145_v10 = vpop.f32.mrf.mxu0 }
 0x40c   : > { %v19508_v42 = vld [vmem:[#allocation2 + $0x108] sm:$0xff]  ;;  %v19510_v3 = vld [vmem:[#allocation2 + $0x110] sm:$0xff]  ;;  %14209 = vmatprep.subr.mxu0 %v6114_v24  ;;  %v5489_v48 = vadd.f32 %v19090_v1, %v5453_v47  ;;  %v5456_v27 = vadd.f32 %v14025_v44, %v5183_v21  ;;  %v5185_v61 = vadd.f32 %v13948_v19, %v4912_v51  ;;  %v6112_v51 = vld [vmem:[%s22360_s1 + $0xc18] sm:$0xff] }
 0x40d   : > { %5551 = vst [vmem:[#allocation2 + $0x139] sm:$0xff] %v19505_v14  ;;  %v19514_v25 = vmax.f32 %v5490_v39, 0.0  ;;  %14091 = vmatprep.mubr.f32.mxu0 %v19508_v42  ;;  %14174 = vmatprep.mubr.f32.mxu1 %v19508_v42  ;;  %v5408_v45 = vpop.f32.mrf.mxu1 }
 0x40e   : > { %14092 = vmatmul.mubr.f32.gmra.mxu0 %v19510_v3  ;;  %14175 = vmatmul.mubr.f32.gmra.mxu1 %v19510_v3  ;;  %v19525_v6 = vmax.f32 %v5489_v48, 0.0  ;;  %v5492_v33 = vadd.f32 %v19090_v1, %v5456_v27  ;;  %v5455_v36 = vadd.f32 %v5408_v45, %v5182_v16 }
 0x40f   : > { %5554 = vst [vmem:[#allocation2 + $0x159] sm:$0xff] %v19514_v25  ;;  %14210 = vmatpush3.msra.mxu0 %v6114_v24  ;;  %v14028_v53 = vpop.f32.mrf.mxu1  ;;  %v5184_v24 = vadd.f32 %v5145_v10, %v4911_v17  ;;  %v6110_v10 = vld [vmem:[%s22360_s1 + $0xc08] sm:$0xff] }
 0x410   : > { %v19528_v28 = vld [vmem:[#allocation2 + $0x120] sm:$0xff]  ;;  %v19530_v50 = vld [vmem:[#allocation2 + $0x128] sm:$0xff]  ;;  %14211 = vmatprep.subr.mxu0 %v6113_v63  ;;  %5553 = vst [vmem:[#allocation2 + $0x151] sm:$0xff] %v19525_v6  ;;  %v19533_v21 = vmax.f32 %v5492_v33, 0.0  ;;  %v5491_v39 = vadd.f32 %v19090_v1, %v5455_v36  ;;  %v5458_v47 = vadd.f32 %v14028_v53, %v5185_v61  ;;  %v6111_v36 = vld [vmem:[%s22360_s1 + $0xc10] sm:$0xff] }
 0x411   : > { %14094 = vmatprep.mubr.f32.mxu0 %v19528_v28  ;;  %14177 = vmatprep.mubr.f32.mxu1 %v19528_v28  ;;  %v5418_v19 = vpop.f32.mrf.mxu1 }
 0x412   : > { %14095 = vmatmul.mubr.f32.gmra.mxu0 %v19530_v50  ;;  %14178 = vmatmul.mubr.f32.gmra.mxu1 %v19530_v50  ;;  %5556 = vst [vmem:[#allocation2 + $0x171] sm:$0xff] %v19533_v21  ;;  %v19544_v44 = vmax.f32 %v5491_v39, 0.0  ;;  %v5494_v16 = vadd.f32 %v19090_v1, %v5458_v47  ;;  %v5457_v48 = vadd.f32 %v5418_v19, %v5184_v24  ;;  %v6382_v47 = vld [vmem:[#allocation2 + $0x1] sm:$0xff] }
 0x413   : > { %14212 = vmatpush3.msra.mxu0 %v6113_v63  ;;  %v6109_v24 = vld [vmem:[%s22360_s1 + $0xc00] sm:$0xff] }
 0x414   : > { %v19547_v27 = vld [vmem:[#allocation2 + $0x138] sm:$0xff]  ;;  %v19549_v17 = vld [vmem:[#allocation2 + $0x140] sm:$0xff]  ;;  %14213 = vmatprep.subr.mxu0 %v6112_v51  ;;  %5555 = vst [vmem:[#allocation2 + $0x169] sm:$0xff] %v19544_v44  ;;  %v19552_v45 = vmax.f32 %v5494_v16, 0.0  ;;  %v5493_v33 = vadd.f32 %v19090_v1, %v5457_v48 }
 0x415   : > { %14097 = vmatprep.mubr.f32.mxu0 %v19547_v27  ;;  %14180 = vmatprep.mubr.f32.mxu1 %v19547_v27  ;;  %v6706_v48 = vld [vmem:[%s22360_s1 + $0xb78] sm:$0xff] }
 0x416   : > { %14098 = vmatmul.mubr.f32.gmra.mxu0 %v19549_v17  ;;  %14181 = vmatmul.mubr.f32.gmra.mxu1 %v19549_v17  ;;  %5558 = vst [vmem:[#allocation2 + $0x189] sm:$0xff] %v19552_v45  ;;  %v19563_v63 = vmax.f32 %v5493_v33, 0.0  ;;  %v6978_v33 = vld [vmem:[%s22360_s1 + $0xcf0] sm:$0xff] }
 0x417   : > { %14214 = vmatpush3.msra.mxu0 %v6112_v51  ;;  %v19565_v61 = vld [vmem:[#allocation2 + $0x150] sm:$0xff]  ;;  %v19567_v1 = vld [vmem:[#allocation2 + $0x158] sm:$0xff] }
 0x418   : > { %14215 = vmatprep.subr.mxu0 %v6111_v36  ;;  %5557 = vst [vmem:[#allocation2 + $0x181] sm:$0xff] %v19563_v63  ;;  %14100 = vmatprep.mubr.f32.mxu0 %v19565_v61  ;;  %v6383_v51 = vld [vmem:[#allocation2 + $0x9] sm:$0xff] }
 0x419   : > { %14183 = vmatprep.mubr.f32.mxu1 %v19565_v61  ;;  %14216 = vmatpush3.msra.mxu0 %v6111_v36  ;;  %v22887_v36 = vmax.f32 %v19120_v20, 0.0  ;;  %v22890_v20 = vmax.f32 %v19153_v62, 0.0  ;;  %v22892_v62 = vmax.f32 %v19184_v4, 0.0  ;;  %v6702_v4 = vld [vmem:[%s22360_s1 + $0xb58] sm:$0xff] }
 0x41a   : > { %14101 = vmatmul.mubr.f32.gmra.mxu0 %v19567_v1  ;;  %14184 = vmatmul.mubr.f32.gmra.mxu1 %v19567_v1 }
 0x41b   : > { %v19577_v53 = vld [vmem:[#allocation2 + $0x168] sm:$0xff]  ;;  %v19579_v39 = vld [vmem:[#allocation2 + $0x170] sm:$0xff]  ;;  %14217 = vmatprep.subr.mxu0 %v6110_v10 }
 0x41c   : > { %14103 = vmatprep.mubr.f32.mxu0 %v19577_v53  ;;  %14186 = vmatprep.mubr.f32.mxu1 %v19577_v53 }
 0x41d   : > { %14218 = vmatpush3.msra.mxu0 %v6110_v10  ;;  %v22888_v10 = vld [vmem:[#allocation5_spill] sm:$0xff] }
 0x41e   : > { %14104 = vmatmul.mubr.f32.gmra.mxu0 %v19579_v39  ;;  %14187 = vmatmul.mubr.f32.gmra.mxu1 %v19579_v39 }
 0x41f   : > { %14301 = vmatprep.mubr.f32.mxu1 %v6382_v47  ;;  %v19588_v19 = vld [vmem:[#allocation2 + $0x180] sm:$0xff]  ;;  %v19590_v16 = vld [vmem:[#allocation2 + $0x188] sm:$0xff]  ;;  %14219 = vmatprep.subr.mxu0 %v6109_v24  ;;  %v22889_v47 = vmax.f32 %v19104_v23, 0.0  ;;  %v22891_v23 = vmax.f32 %v19135_v57, 0.0  ;;  %v22893_v57 = vmax.f32 %v19166_v0, 0.0  ;;  %v22894_v0 = vmax.f32 %v19199_v43, 0.0 }
 0x420   : > { %14106 = vmatprep.mubr.f32.mxu0 %v19588_v19  ;;  %14220 = vmatpush3.msra.mxu0 %v6109_v24  ;;  %v6705_v24 = vld [vmem:[%s22360_s1 + $0xb70] sm:$0xff] }
 0x421   : > { %14349 = vmatprep.subr.mxu0 %v6706_v48  ;;  %v6701_v43 = vld [vmem:[%s22360_s1 + $0xb50] sm:$0xff] }
 0x422   : > { %14107 = vmatmul.mubr.f32.gmra.mxu0 %v19590_v16  ;;  %14302 = vmatmul.mubr.f32.vlgmr.msra.gmra.mxu1 %v6383_v51  ;;  %v6697_v51 = vld [vmem:[%s22360_s1 + $0xb30] sm:$0xff] }
 0x423   : > { %14221 = vmatprep.mubr.f32.mxu0 %v19239_v18  ;;  %14304 = vmatprep.mubr.f32.mxu1 %v22887_v36  ;;  %v6977_v18 = vld [vmem:[%s22360_s1 + $0xce8] sm:$0xff]  ;;  %v6968_v36 = vld [vmem:[%s22360_s1 + $0xca0] sm:$0xff] }
 0x424   : > { %14430 = vmatpush3.msra.mxu1 %v22888_v10  ;;  %v7561_v10 = vld [vmem:[%s22360_s1 + $0xbf8] sm:$0xff] }
 0x425   : > { %14431 = vmatprep.subr.mxu1 %v6978_v33 }
 0x426   : > { %14222 = vmatmul.mubr.f32.vlgmr.msra.gmra.mxu0 %v19241_v29  ;;  %14305 = vmatmul.mubr.f32.gmra.mxu1 %v22889_v47  ;;  %v6704_v29 = vld [vmem:[%s22360_s1 + $0xb68] sm:$0xff] }
 0x427   : > { %14224 = vmatprep.mubr.f32.mxu0 %v19270_v46  ;;  %14307 = vmatprep.mubr.f32.mxu1 %v22890_v20  ;;  %v6976_v46 = vld [vmem:[%s22360_s1 + $0xce0] sm:$0xff]  ;;  %v15494_v47 = vld [vmem:[#allocation2 + $0x8] sm:$0xff] }
 0x428   : > { %14350 = vmatpush3.msra.mxu0 %v6706_v48  ;;  %14432 = vmatpush3.msra.mxu1 %v6978_v33  ;;  %v6969_v48 = vld [vmem:[%s22360_s1 + $0xca8] sm:$0xff] }
 0x429   : > { %14351 = vmatprep.subr.mxu0 %v6705_v24  ;;  %14433 = vmatprep.subr.mxu1 %v6977_v18  ;;  %v6696_v33 = vld [vmem:[%s22360_s1 + $0xb28] sm:$0xff] }
 0x42a   : > { %14225 = vmatmul.mubr.f32.gmra.mxu0 %v19273_v59  ;;  %14308 = vmatmul.mubr.f32.gmra.mxu1 %v22891_v23  ;;  %v6703_v59 = vld [vmem:[%s22360_s1 + $0xb60] sm:$0xff]  ;;  %v15497_v20 = vld [vmem:[#allocation2 + $0x49] sm:$0xff] }
 0x42b   : > { %14227 = vmatprep.mubr.f32.mxu0 %v19303_v5  ;;  %14310 = vmatprep.mubr.f32.mxu1 %v22892_v62  ;;  %v6975_v5 = vld [vmem:[%s22360_s1 + $0xcd8] sm:$0xff]  ;;  %v7560_v23 = vld [vmem:[%s22360_s1 + $0xbf0] sm:$0xff] }
 0x42c   : > { %14352 = vmatpush3.msra.mxu0 %v6705_v24  ;;  %14434 = vmatpush3.msra.mxu1 %v6977_v18  ;;  %v15495_v24 = vld [vmem:[#allocation2 + $0x39] sm:$0xff]  ;;  %v7287_v62 = vld [vmem:[%s22360_s1 + $0xa70] sm:$0xff] }
 0x42d   : > { %14353 = vmatprep.subr.mxu0 %v6704_v29  ;;  %14435 = vmatprep.subr.mxu1 %v6976_v46  ;;  %v15496_v18 = vld [vmem:[#allocation2 + $0x19] sm:$0xff] }
 0x42e   : > { %14228 = vmatmul.mubr.f32.gmra.mxu0 %v19305_v31  ;;  %14311 = vmatmul.mubr.f32.gmra.mxu1 %v22893_v57  ;;  %v6974_v31 = vld [vmem:[%s22360_s1 + $0xcd0] sm:$0xff]  ;;  %v7559_v57 = vld [vmem:[%s22360_s1 + $0xbe8] sm:$0xff] }
 0x42f   : > { %14230 = vmatprep.mubr.f32.mxu0 %v19334_v52  ;;  %14313 = vmatprep.mubr.f32.mxu1 %v19225_v2  ;;  %v6973_v52 = vld [vmem:[%s22360_s1 + $0xcc8] sm:$0xff] }
 0x430   : > { %14354 = vmatpush3.msra.mxu0 %v6704_v29  ;;  %14436 = vmatpush3.msra.mxu1 %v6976_v46  ;;  %v15498_v29 = vld [vmem:[#allocation2 + $0x21] sm:$0xff]  ;;  %v15499_v46 = vld [vmem:[#allocation2 + $0x51] sm:$0xff] }
 0x431   : > { %14355 = vmatprep.subr.mxu0 %v6703_v59  ;;  %14437 = vmatprep.subr.mxu1 %v6975_v5 }
 0x432   : > { %14231 = vmatmul.mubr.f32.gmra.mxu0 %v19337_v55  ;;  %14314 = vmatmul.mubr.f32.gmra.mxu1 %v22894_v0  ;;  %v6972_v55 = vld [vmem:[%s22360_s1 + $0xcc0] sm:$0xff] }
 0x433   : > { %14233 = vmatprep.mubr.f32.mxu0 %v19367_v12  ;;  %14316 = vmatprep.mubr.f32.mxu1 %v19260_v35  ;;  %v6700_v12 = vld [vmem:[%s22360_s1 + $0xb48] sm:$0xff]  ;;  %v7285_v0 = vld [vmem:[%s22360_s1 + $0xa60] sm:$0xff] }
 0x434   : > { %14356 = vmatpush3.msra.mxu0 %v6703_v59  ;;  %14438 = vmatpush3.msra.mxu1 %v6975_v5  ;;  %v15500_v59 = vld [vmem:[#allocation2 + $0x69] sm:$0xff] }
 0x435   : > { %14357 = vmatprep.subr.mxu0 %v6702_v4  ;;  %14439 = vmatprep.subr.mxu1 %v6974_v31  ;;  %v7286_v5 = vld [vmem:[%s22360_s1 + $0xa68] sm:$0xff] }
 0x436   : > { %14234 = vmatmul.mubr.f32.gmra.mxu0 %v19369_v22  ;;  %14317 = vmatmul.mubr.f32.gmra.mxu1 %v19244_v11  ;;  %v6699_v22 = vld [vmem:[%s22360_s1 + $0xb40] sm:$0xff] }
 0x437   : > { %14236 = vmatprep.mubr.f32.mxu0 %v19398_v9  ;;  %14319 = vmatprep.mubr.f32.mxu1 %v19291_v60  ;;  %v6971_v9 = vld [vmem:[%s22360_s1 + $0xcb8] sm:$0xff] }
 0x438   : > { %14358 = vmatpush3.msra.mxu0 %v6702_v4  ;;  %14440 = vmatpush3.msra.mxu1 %v6974_v31  ;;  %v15501_v4 = vld [vmem:[#allocation2 + $0x61] sm:$0xff]  ;;  %v7557_v31 = vld [vmem:[%s22360_s1 + $0xbd8] sm:$0xff] }
 0x439   : > { %14359 = vmatprep.subr.mxu0 %v6701_v43  ;;  %14441 = vmatprep.subr.mxu1 %v6973_v52 }
 0x43a   : > { %14237 = vmatmul.mubr.f32.gmra.mxu0 %v19401_v41  ;;  %14320 = vmatmul.mubr.f32.gmra.mxu1 %v19277_v13  ;;  %v6698_v41 = vld [vmem:[%s22360_s1 + $0xb38] sm:$0xff] }
 0x43b   : > { %14239 = vmatprep.mubr.f32.mxu0 %v19431_v37  ;;  %14322 = vmatprep.mubr.f32.mxu1 %v19324_v58  ;;  %v22895_v37 = vld [vmem:[#allocation11_spill] sm:$0xff] }
 0x43c   : > { %14360 = vmatpush3.msra.mxu0 %v6701_v43  ;;  %14442 = vmatpush3.msra.mxu1 %v6973_v52  ;;  %v7556_v43 = vld [vmem:[%s22360_s1 + $0xbd0] sm:$0xff]  ;;  %v15502_v52 = vld [vmem:[#allocation2 + $0x81] sm:$0xff] }
 0x43d   : > { %14361 = vmatprep.subr.mxu0 %v6700_v12  ;;  %14443 = vmatprep.subr.mxu1 %v6972_v55 }
 0x43e   : > { %14240 = vmatmul.mubr.f32.gmra.mxu0 %v19433_v56  ;;  %14323 = vmatmul.mubr.f32.gmra.mxu1 %v19308_v49  ;;  %v6970_v56 = vld [vmem:[%s22360_s1 + $0xcb0] sm:$0xff] }
 0x43f   : > { %14242 = vmatprep.mubr.f32.mxu0 %v19458_v54  ;;  %14325 = vmatprep.mubr.f32.mxu1 %v19355_v7  ;;  %v22896_v54 = vld [vmem:[#allocation13_spill] sm:$0xff] }
 0x440   : > { %14362 = vmatpush3.msra.mxu0 %v6700_v12  ;;  %14444 = vmatpush3.msra.mxu1 %v6972_v55  ;;  %v7283_v12 = vld [vmem:[%s22360_s1 + $0xa50] sm:$0xff]  ;;  %v7282_v55 = vld [vmem:[%s22360_s1 + $0xa48] sm:$0xff] }
 0x441   : > { %14363 = vmatprep.subr.mxu0 %v6699_v22  ;;  %14445 = vmatprep.subr.mxu1 %v6971_v9 }
 0x442   : > { %14243 = vmatmul.mubr.f32.gmra.mxu0 %v19461_v40  ;;  %14326 = vmatmul.mubr.f32.gmra.mxu1 %v22895_v37  ;;  %v22897_v40 = vld [vmem:[#allocation10_spill] sm:$0xff] }
 0x443   : > { %14245 = vmatprep.mubr.f32.mxu0 %v19486_v34  ;;  %14328 = vmatprep.mubr.f32.mxu1 %v22896_v54  ;;  %v22898_v34 = vld [vmem:[#allocation82_spill] sm:$0xff] }
 0x444   : > { %14364 = vmatpush3.msra.mxu0 %v6699_v22  ;;  %14446 = vmatpush3.msra.mxu1 %v6971_v9  ;;  %v7279_v22 = vld [vmem:[%s22360_s1 + $0xa30] sm:$0xff]  ;;  %v7551_v9 = vld [vmem:[%s22360_s1 + $0xba8] sm:$0xff] }
 0x445   : > { %14365 = vmatprep.subr.mxu0 %v6698_v41  ;;  %14447 = vmatprep.subr.mxu1 %v6970_v56 }
 0x446   : > { %14246 = vmatmul.mubr.f32.gmra.mxu0 %v19488_v38  ;;  %14329 = vmatmul.mubr.f32.gmra.mxu1 %v22897_v40  ;;  %v22899_v38 = vld [vmem:[#allocation12_spill] sm:$0xff] }
 0x447   : > { %14248 = vmatprep.mubr.f32.mxu0 %v19508_v42  ;;  %14331 = vmatprep.mubr.f32.mxu1 %v22898_v34  ;;  %v6695_v42 = vld [vmem:[%s22360_s1 + $0xb20] sm:$0xff] }
 0x448   : > { %14366 = vmatpush3.msra.mxu0 %v6698_v41  ;;  %14448 = vmatpush3.msra.mxu1 %v6970_v56  ;;  %v7550_v41 = vld [vmem:[%s22360_s1 + $0xba0] sm:$0xff] }
 0x449   : > { %14367 = vmatprep.subr.mxu0 %v6697_v51  ;;  %14449 = vmatprep.subr.mxu1 %v6969_v48  ;;  %v7277_v56 = vld [vmem:[%s22360_s1 + $0xa20] sm:$0xff] }
 0x44a   : > { %14249 = vmatmul.mubr.f32.gmra.mxu0 %v19510_v3  ;;  %14332 = vmatmul.mubr.f32.gmra.mxu1 %v22899_v38  ;;  %v6967_v3 = vld [vmem:[%s22360_s1 + $0xc98] sm:$0xff] }
 0x44b   : > { %14251 = vmatprep.mubr.f32.mxu0 %v19528_v28  ;;  %14334 = vmatprep.mubr.f32.mxu1 %v19452_v15  ;;  %v6694_v28 = vld [vmem:[%s22360_s1 + $0xb18] sm:$0xff] }
 0x44c   : > { %14368 = vmatpush3.msra.mxu0 %v6697_v51  ;;  %14450 = vmatpush3.msra.mxu1 %v6969_v48  ;;  %v7273_v51 = vld [vmem:[%s22360_s1 + $0xa00] sm:$0xff] }
 0x44d   : > { %14369 = vmatprep.subr.mxu0 %v6696_v33  ;;  %14451 = vmatprep.subr.mxu1 %v6968_v36  ;;  %v7240_v48 = vld [vmem:[#allocation2 + $0x22] sm:$0xff] }
 0x44e   : > { %14252 = vmatmul.mubr.f32.gmra.mxu0 %v19530_v50  ;;  %14335 = vmatmul.mubr.f32.gmra.mxu1 %v19436_v26  ;;  %v6966_v50 = vld [vmem:[%s22360_s1 + $0xc90] sm:$0xff] }
 0x44f   : > { %14254 = vmatprep.mubr.f32.mxu0 %v19547_v27  ;;  %14337 = vmatprep.mubr.f32.mxu1 %v19479_v30  ;;  %v6693_v27 = vld [vmem:[%s22360_s1 + $0xb10] sm:$0xff] }
 0x450   : > { %14370 = vmatpush3.msra.mxu0 %v6696_v33  ;;  %14452 = vmatpush3.msra.mxu1 %v6968_v36  ;;  %v19907_v36 = vld [vmem:[#allocation2 + $0x3a] sm:$0xff] }
 0x451   : > { %14371 = vmatprep.subr.mxu0 %v6695_v42  ;;  %14453 = vmatprep.subr.mxu1 %v6967_v3 }
 0x452   : > { %14255 = vmatmul.mubr.f32.gmra.mxu0 %v19549_v17  ;;  %14338 = vmatmul.mubr.f32.gmra.mxu1 %v19465_v32  ;;  %v6965_v17 = vld [vmem:[%s22360_s1 + $0xc88] sm:$0xff] }
 0x453   : > { %14257 = vmatprep.mubr.f32.mxu0 %v19565_v61  ;;  %14340 = vmatprep.mubr.f32.mxu1 %v19505_v14  ;;  %v6692_v61 = vld [vmem:[%s22360_s1 + $0xb08] sm:$0xff] }
 0x454   : > { %14372 = vmatpush3.msra.mxu0 %v6695_v42  ;;  %14454 = vmatpush3.msra.mxu1 %v6967_v3 }
 0x455   : > { %14373 = vmatprep.subr.mxu0 %v6694_v28  ;;  %14455 = vmatprep.subr.mxu1 %v6966_v50 }
 0x456   : > { %14258 = vmatmul.mubr.f32.gmra.mxu0 %v19567_v1  ;;  %14341 = vmatmul.mubr.f32.gmra.mxu1 %v19491_v8  ;;  %v6964_v1 = vld [vmem:[%s22360_s1 + $0xc80] sm:$0xff] }
 0x457   : > { %14260 = vmatprep.mubr.f32.mxu0 %v19577_v53  ;;  %14343 = vmatprep.mubr.f32.mxu1 %v19525_v6  ;;  %v5625_v53 = vld [vmem:[#allocation2 + $0x198] sm:$0xff] }
 0x458   : > { %14374 = vmatpush3.msra.mxu0 %v6694_v28  ;;  %14456 = vmatpush3.msra.mxu1 %v6966_v50  ;;  %v19912_v28 = vld [vmem:[#allocation2 + $0x4a] sm:$0xff] }
 0x459   : > { %14375 = vmatprep.subr.mxu0 %v6693_v27  ;;  %14457 = vmatprep.subr.mxu1 %v6965_v17 }
 0x45a   : > { %14261 = vmatmul.mubr.f32.gmra.mxu0 %v19579_v39  ;;  %14344 = vmatmul.mubr.f32.gmra.mxu1 %v19514_v25  ;;  %v6691_v39 = vld [vmem:[%s22360_s1 + $0xb00] sm:$0xff] }
 0x45b   : > { %14263 = vmatprep.mubr.f32.mxu0 %v19588_v19  ;;  %14346 = vmatprep.mubr.f32.mxu1 %v19544_v44  ;;  %v15493_v19 = vld [vmem:[#allocation2 + $0x31] sm:$0xff] }
 0x45c   : > { %14376 = vmatpush3.msra.mxu0 %v6693_v27  ;;  %14458 = vmatpush3.msra.mxu1 %v6965_v17 }
 0x45d   : > { %14377 = vmatprep.subr.mxu0 %v6692_v61  ;;  %14459 = vmatprep.subr.mxu1 %v6964_v1 }
 0x45e   : > { %14264 = vmatmul.mubr.f32.gmra.mxu0 %v19590_v16  ;;  %14347 = vmatmul.mubr.f32.gmra.mxu1 %v19533_v21  ;;  %v7288_v16 = vld [vmem:[%s22360_s1 + $0xa78] sm:$0xff] }
 0x45f   : > { %14378 = vmatpush3.msra.mxu0 %v6692_v61  ;;  %14461 = vmatprep.mubr.f32.mxu1 %v15493_v19  ;;  %v19920_v61 = vld [vmem:[#allocation2 + $0x52] sm:$0xff] }
 0x460   : > { %14266 = vmatprep.mubr.f32.mxu0 %v5625_v53  ;;  %14460 = vmatpush3.msra.mxu1 %v6964_v1 }
 0x461   : > { %14379 = vmatprep.subr.mxu0 %v6691_v39  ;;  %14589 = vmatprep.subr.mxu1 %v7561_v10 }
 0x462   : > { %14267 = vmatmul.mubr.f32.gmra.mxu0 %v15494_v47  ;;  %14462 = vmatmul.mubr.f32.vlgmr.msra.gmra.mxu1 %v15495_v24 }
 0x463   : > { %14380 = vmatpush3.msra.mxu0 %v6691_v39  ;;  %14381 = vmatprep.mubr.f32.mxu0 %v15496_v18  ;;  %v19923_v39 = vld [vmem:[#allocation2 + $0x62] sm:$0xff]  ;;  %v19934_v18 = vld [vmem:[#allocation2 + $0x6a] sm:$0xff] }
 0x464   : > { %14464 = vmatprep.mubr.f32.mxu1 %v15497_v20  ;;  %14509 = vmatprep.subr.mxu0 %v7288_v16 }
 0x465   : > { %14590 = vmatpush3.msra.mxu1 %v7561_v10  ;;  %v7832_v10 = vld [vmem:[%s22360_s1 + $0xd68] sm:$0xff] }
 0x466   : > { %14382 = vmatmul.mubr.f32.vlgmr.msra.gmra.mxu0 %v15498_v29  ;;  %14465 = vmatmul.mubr.f32.gmra.mxu1 %v15499_v46  ;;  %v19938_v29 = vld [vmem:[#allocation2 + $0x7a] sm:$0xff] }
 0x467   : > { %14384 = vmatprep.mubr.f32.mxu0 %v15493_v19  ;;  %14467 = vmatprep.mubr.f32.mxu1 %v19225_v2  ;;  %v7558_v2 = vld [vmem:[%s22360_s1 + $0xbe0] sm:$0xff] }
 0x468   : > { %14510 = vmatpush3.msra.mxu0 %v7288_v16  ;;  %14591 = vmatprep.subr.mxu1 %v7560_v23 }
 0x469   : > { %14511 = vmatprep.subr.mxu0 %v7287_v62  ;;  %14592 = vmatpush3.msra.mxu1 %v7560_v23 }
 0x46a   : > { %14385 = vmatmul.mubr.f32.gmra.mxu0 %v15495_v24  ;;  %14468 = vmatmul.mubr.f32.gmra.mxu1 %v15500_v59 }
 0x46b   : > { %14387 = vmatprep.mubr.f32.mxu0 %v15497_v20  ;;  %14470 = vmatprep.mubr.f32.mxu1 %v19260_v35 }
 0x46c   : > { %14512 = vmatpush3.msra.mxu0 %v7287_v62  ;;  %14593 = vmatprep.subr.mxu1 %v7559_v57 }
 0x46d   : > { %14513 = vmatprep.subr.mxu0 %v7286_v5  ;;  %14594 = vmatpush3.msra.mxu1 %v7559_v57 }
 0x46e   : > { %14388 = vmatmul.mubr.f32.gmra.mxu0 %v15499_v46  ;;  %14471 = vmatmul.mubr.f32.gmra.mxu1 %v19244_v11  ;;  %v7284_v11 = vld [vmem:[%s22360_s1 + $0xa58] sm:$0xff]  ;;  %v7831_v46 = vld [vmem:[%s22360_s1 + $0xd60] sm:$0xff] }
 0x46f   : > { %14390 = vmatprep.mubr.f32.mxu0 %v15501_v4  ;;  %14473 = vmatprep.mubr.f32.mxu1 %v19291_v60 }
 0x470   : > { %14514 = vmatpush3.msra.mxu0 %v7286_v5  ;;  %14595 = vmatprep.subr.mxu1 %v7558_v2 }
 0x471   : > { %14515 = vmatprep.subr.mxu0 %v7285_v0  ;;  %14596 = vmatpush3.msra.mxu1 %v7558_v2  ;;  %v19949_v2 = vld [vmem:[#allocation2 + $0x82] sm:$0xff] }
 0x472   : > { %14391 = vmatmul.mubr.f32.gmra.mxu0 %v15500_v59  ;;  %14474 = vmatmul.mubr.f32.gmra.mxu1 %v19277_v13 }
 0x473   : > { %14393 = vmatprep.mubr.f32.mxu0 %v19260_v35  ;;  %14476 = vmatprep.mubr.f32.mxu1 %v19324_v58  ;;  %v7555_v35 = vld [vmem:[%s22360_s1 + $0xbc8] sm:$0xff] }
 0x474   : > { %14516 = vmatpush3.msra.mxu0 %v7285_v0  ;;  %14597 = vmatprep.subr.mxu1 %v7557_v31 }
 0x475   : > { %14517 = vmatprep.subr.mxu0 %v7284_v11  ;;  %14598 = vmatpush3.msra.mxu1 %v7557_v31  ;;  %v19953_v31 = vld [vmem:[#allocation2 + $0x92] sm:$0xff] }
 0x476   : > { %14394 = vmatmul.mubr.f32.gmra.mxu0 %v15502_v52  ;;  %14477 = vmatmul.mubr.f32.gmra.mxu1 %v19308_v49 }
 0x477   : > { %14396 = vmatprep.mubr.f32.mxu0 %v19291_v60  ;;  %14479 = vmatprep.mubr.f32.mxu1 %v19355_v7  ;;  %v7554_v60 = vld [vmem:[%s22360_s1 + $0xbc0] sm:$0xff] }
 0x478   : > { %14518 = vmatpush3.msra.mxu0 %v7284_v11  ;;  %14599 = vmatprep.subr.mxu1 %v7556_v43  ;;  %v7830_v11 = vld [vmem:[%s22360_s1 + $0xd58] sm:$0xff] }
 0x479   : > { %14519 = vmatprep.subr.mxu0 %v7283_v12  ;;  %14600 = vmatpush3.msra.mxu1 %v7556_v43 }
 0x47a   : > { %14397 = vmatmul.mubr.f32.gmra.mxu0 %v19277_v13  ;;  %14480 = vmatmul.mubr.f32.gmra.mxu1 %v22895_v37  ;;  %v7281_v13 = vld [vmem:[%s22360_s1 + $0xa40] sm:$0xff] }
 0x47b   : > { %14399 = vmatprep.mubr.f32.mxu0 %v19324_v58  ;;  %14482 = vmatprep.mubr.f32.mxu1 %v22896_v54  ;;  %v7553_v58 = vld [vmem:[%s22360_s1 + $0xbb8] sm:$0xff] }
 0x47c   : > { %14520 = vmatpush3.msra.mxu0 %v7283_v12  ;;  %14601 = vmatprep.subr.mxu1 %v7555_v35 }
 0x47d   : > { %14521 = vmatprep.subr.mxu0 %v7282_v55  ;;  %14602 = vmatpush3.msra.mxu1 %v7555_v35 }
 0x47e   : > { %14400 = vmatmul.mubr.f32.gmra.mxu0 %v19308_v49  ;;  %14483 = vmatmul.mubr.f32.gmra.mxu1 %v22897_v40  ;;  %v7280_v49 = vld [vmem:[%s22360_s1 + $0xa38] sm:$0xff] }
 0x47f   : > { %14402 = vmatprep.mubr.f32.mxu0 %v19355_v7  ;;  %14485 = vmatprep.mubr.f32.mxu1 %v22898_v34  ;;  %v7552_v7 = vld [vmem:[%s22360_s1 + $0xbb0] sm:$0xff] }
 0x480   : > { %14522 = vmatpush3.msra.mxu0 %v7282_v55  ;;  %14603 = vmatprep.subr.mxu1 %v7554_v60  ;;  %v19964_v55 = vld [vmem:[#allocation2 + $0x9a] sm:$0xff] }
 0x481   : > { %14523 = vmatprep.subr.mxu0 %v7281_v13  ;;  %14604 = vmatpush3.msra.mxu1 %v7554_v60 }
 0x482   : > { %14403 = vmatmul.mubr.f32.gmra.mxu0 %v22895_v37  ;;  %14486 = vmatmul.mubr.f32.gmra.mxu1 %v22899_v38  ;;  %v7278_v37 = vld [vmem:[%s22360_s1 + $0xa28] sm:$0xff] }
 0x483   : > { %14405 = vmatprep.mubr.f32.mxu0 %v22896_v54  ;;  %14488 = vmatprep.mubr.f32.mxu1 %v19452_v15  ;;  %v7274_v54 = vld [vmem:[%s22360_s1 + $0xa08] sm:$0xff] }
 0x484   : > { %14524 = vmatpush3.msra.mxu0 %v7281_v13  ;;  %14605 = vmatprep.subr.mxu1 %v7553_v58 }
 0x485   : > { %14525 = vmatprep.subr.mxu0 %v7280_v49  ;;  %14606 = vmatpush3.msra.mxu1 %v7553_v58  ;;  %v19968_v58 = vld [vmem:[#allocation2 + $0xaa] sm:$0xff] }
 0x486   : > { %14406 = vmatmul.mubr.f32.gmra.mxu0 %v22897_v40  ;;  %14489 = vmatmul.mubr.f32.gmra.mxu1 %v19436_v26  ;;  %v7546_v40 = vld [vmem:[%s22360_s1 + $0xb80] sm:$0xff] }
 0x487   : > { %14408 = vmatprep.mubr.f32.mxu0 %v22898_v34  ;;  %14491 = vmatprep.mubr.f32.mxu1 %v19479_v30  ;;  %v7237_v34 = vld [vmem:[#allocation2 + $0x2] sm:$0xff] }
 0x488   : > { %14526 = vmatpush3.msra.mxu0 %v7280_v49  ;;  %14607 = vmatprep.subr.mxu1 %v7552_v7  ;;  %v7829_v49 = vld [vmem:[%s22360_s1 + $0xd50] sm:$0xff] }
 0x489   : > { %14527 = vmatprep.subr.mxu0 %v7279_v22  ;;  %14608 = vmatpush3.msra.mxu1 %v7552_v7 }
 0x48a   : > { %14409 = vmatmul.mubr.f32.gmra.mxu0 %v22899_v38  ;;  %14492 = vmatmul.mubr.f32.gmra.mxu1 %v19465_v32  ;;  %v19904_v38 = vld [vmem:[#allocation2 + $0x32] sm:$0xff] }
 0x48b   : > { %14411 = vmatprep.mubr.f32.mxu0 %v19452_v15  ;;  %14494 = vmatprep.mubr.f32.mxu1 %v19505_v14  ;;  %v7549_v15 = vld [vmem:[%s22360_s1 + $0xb98] sm:$0xff] }
 0x48c   : > { %14528 = vmatpush3.msra.mxu0 %v7279_v22  ;;  %14609 = vmatprep.subr.mxu1 %v7551_v9 }
 0x48d   : > { %14529 = vmatprep.subr.mxu0 %v7278_v37  ;;  %14610 = vmatpush3.msra.mxu1 %v7551_v9 }
 0x48e   : > { %14412 = vmatmul.mubr.f32.gmra.mxu0 %v19436_v26  ;;  %14495 = vmatmul.mubr.f32.gmra.mxu1 %v19491_v8  ;;  %v7276_v26 = vld [vmem:[%s22360_s1 + $0xa18] sm:$0xff] }
 0x48f   : > { %14414 = vmatprep.mubr.f32.mxu0 %v19479_v30  ;;  %14497 = vmatprep.mubr.f32.mxu1 %v19525_v6  ;;  %v7548_v30 = vld [vmem:[%s22360_s1 + $0xb90] sm:$0xff] }
 0x490   : > { %14530 = vmatpush3.msra.mxu0 %v7278_v37  ;;  %14611 = vmatprep.subr.mxu1 %v7550_v41 }
 0x491   : > { %14531 = vmatprep.subr.mxu0 %v7277_v56  ;;  %14612 = vmatpush3.msra.mxu1 %v7550_v41  ;;  %v19979_v41 = vld [vmem:[#allocation2 + $0xb2] sm:$0xff] }
 0x492   : > { %14415 = vmatmul.mubr.f32.gmra.mxu0 %v19465_v32  ;;  %14498 = vmatmul.mubr.f32.gmra.mxu1 %v19514_v25  ;;  %v7275_v32 = vld [vmem:[%s22360_s1 + $0xa10] sm:$0xff] }
 0x493   : > { %14417 = vmatprep.mubr.f32.mxu0 %v19505_v14  ;;  %14500 = vmatprep.mubr.f32.mxu1 %v19544_v44  ;;  %v6416_v14 = vld [vmem:[#allocation2 + $0x199] sm:$0xff] }
 0x494   : > { %14532 = vmatpush3.msra.mxu0 %v7277_v56  ;;  %14613 = vmatprep.subr.mxu1 %v7549_v15 }
 0x495   : > { %14533 = vmatprep.subr.mxu0 %v7276_v26  ;;  %14614 = vmatpush3.msra.mxu1 %v7549_v15 }
 0x496   : > { %14418 = vmatmul.mubr.f32.gmra.mxu0 %v19491_v8  ;;  %14501 = vmatmul.mubr.f32.gmra.mxu1 %v19533_v21  ;;  %v7547_v8 = vld [vmem:[%s22360_s1 + $0xb88] sm:$0xff] }
 0x497   : > { %14420 = vmatprep.mubr.f32.mxu0 %v19525_v6  ;;  %14503 = vmatprep.mubr.f32.mxu1 %v19563_v63  ;;  %v6417_v6 = vld [vmem:[#allocation2 + $0x1a1] sm:$0xff] }
 0x498   : > { %14534 = vmatpush3.msra.mxu0 %v7276_v26  ;;  %14615 = vmatprep.subr.mxu1 %v7548_v30  ;;  %v19983_v26 = vld [vmem:[#allocation2 + $0xc2] sm:$0xff] }
 0x499   : > { %14535 = vmatprep.subr.mxu0 %v7275_v32  ;;  %14616 = vmatpush3.msra.mxu1 %v7548_v30  ;;  %v7828_v30 = vld [vmem:[%s22360_s1 + $0xd48] sm:$0xff] }
 0x49a   : > { %14421 = vmatmul.mubr.f32.gmra.mxu0 %v19514_v25  ;;  %14504 = vmatmul.mubr.f32.gmra.mxu1 %v19552_v45  ;;  %v19894_v25 = vpop.f32.mrf.mxu1 }
 0x49b   : > { %14423 = vmatprep.mubr.f32.mxu0 %v19544_v44  ;;  %14536 = vmatpush3.msra.mxu0 %v7275_v32  ;;  %v7239_v44 = vld [vmem:[#allocation2 + $0x1a] sm:$0xff] }
 0x49c   : > { %14506 = vmatprep.mubr.f32.mxu1 %v6416_v14  ;;  %14537 = vmatprep.subr.mxu0 %v7274_v54  ;;  %v5950_v33 = vpop.f32.mrf.mxu1 }
 0x49d   : > { %14617 = vmatprep.subr.mxu1 %v7547_v8  ;;  %14538 = vmatpush3.msra.mxu0 %v7274_v54 }
 0x49e   : > { %14424 = vmatmul.mubr.f32.gmra.mxu0 %v19533_v21  ;;  %14507 = vmatmul.mubr.f32.gmra.mxu1 %v6417_v6  ;;  %v7834_v21 = vld [vmem:[%s22360_s1 + $0xd78] sm:$0xff]  ;;  %v19994_v6 = vld [vmem:[#allocation2 + $0xca] sm:$0xff] }
 0x49f   : > { %14426 = vmatprep.mubr.f32.mxu0 %v19563_v63  ;;  %14618 = vmatpush3.msra.mxu1 %v7547_v8  ;;  %v7238_v63 = vld [vmem:[#allocation2 + $0xa] sm:$0xff] }
 0x4a0   : > { %14621 = vmatprep.mubr.f32.mxu1 %v7239_v44  ;;  %14619 = vmatprep.subr.mxu1 %v7546_v40 }
 0x4a1   : > { %14620 = vmatpush3.msra.mxu1 %v7546_v40  ;;  %14539 = vmatprep.subr.mxu0 %v7273_v51 }
 0x4a2   : > { %14427 = vmatmul.mubr.f32.gmra.mxu0 %v19552_v45  ;;  %14622 = vmatmul.mubr.f32.vlgmr.msra.gmra.mxu1 %v7240_v48  ;;  %v7833_v45 = vld [vmem:[%s22360_s1 + $0xd70] sm:$0xff] }
 0x4a3   : > { %14540 = vmatpush3.msra.mxu0 %v7273_v51  ;;  %14624 = vmatprep.mubr.f32.mxu1 %v19904_v38 }
 0x4a4   : > { %14541 = vmatprep.mubr.f32.mxu0 %v7237_v34  ;;  %14669 = vmatprep.subr.mxu0 %v7834_v21 }
 0x4a5   : > { %v19909_v42 = vpop.f32.mrf.mxu0  ;;  %v14146_v3 = vpop.f32.mrf.mxu1 }
 0x4a6   : > { %14542 = vmatmul.mubr.f32.vlgmr.msra.gmra.mxu0 %v7238_v63  ;;  %14625 = vmatmul.mubr.f32.gmra.mxu1 %v19907_v36 }
 0x4a7   : > { %14544 = vmatprep.mubr.f32.mxu0 %v7239_v44  ;;  %14627 = vmatprep.mubr.f32.mxu1 %v19912_v28  ;;  %v5725_v50 = vpop.f32.mrf.mxu0  ;;  %v5960_v27 = vpop.f32.mrf.mxu1  ;;  %v19998_v44 = vld [vmem:[#allocation2 + $0xda] sm:$0xff] }
 0x4a8   : > { %14670 = vmatpush3.msra.mxu0 %v7834_v21  ;;  %v19918_v17 = vadd.f32 %v5950_v33, %v5725_v50 }
 0x4a9   : > { %14671 = vmatprep.subr.mxu0 %v7833_v45  ;;  %v14066_v1 = vpop.f32.mrf.mxu0  ;;  %v14149_v53 = vpop.f32.mrf.mxu1 }
 0x4aa   : > { %14545 = vmatmul.mubr.f32.gmra.mxu0 %v7240_v48  ;;  %14628 = vmatmul.mubr.f32.gmra.mxu1 %v19920_v61  ;;  %v19928_v19 = vadd.f32 %v14146_v3, %v14066_v1  ;;  %v7827_v48 = vld [vmem:[%s22360_s1 + $0xd40] sm:$0xff]  ;;  %v7826_v1 = vld [vmem:[%s22360_s1 + $0xd38] sm:$0xff] }
 0x4ab   : > { %14547 = vmatprep.mubr.f32.mxu0 %v19904_v38  ;;  %14630 = vmatprep.mubr.f32.mxu1 %v19923_v39  ;;  %v5735_v16 = vpop.f32.mrf.mxu0  ;;  %v5970_v47 = vpop.f32.mrf.mxu1  ;;  %v20009_v3 = vld [vmem:[#allocation2 + $0xe2] sm:$0xff] }
 0x4ac   : > { %14672 = vmatpush3.msra.mxu0 %v7833_v45  ;;  %v19932_v24 = vadd.f32 %v5960_v27, %v5735_v16  ;;  %v20013_v27 = vld [vmem:[#allocation2 + $0xf2] sm:$0xff] }
 0x4ad   : > { %14673 = vmatprep.subr.mxu0 %v7832_v10  ;;  %v14069_v20 = vpop.f32.mrf.mxu0  ;;  %v14152_v23 = vpop.f32.mrf.mxu1 }
 0x4ae   : > { %14548 = vmatmul.mubr.f32.gmra.mxu0 %v19907_v36  ;;  %14631 = vmatmul.mubr.f32.gmra.mxu1 %v19934_v18  ;;  %v19943_v62 = vadd.f32 %v14149_v53, %v14069_v20  ;;  %v20026_v20 = vld [vmem:[#allocation2 + $0xfa] sm:$0xff] }
 0x4af   : > { %14550 = vmatprep.mubr.f32.mxu0 %v19912_v28  ;;  %14633 = vmatprep.mubr.f32.mxu1 %v19938_v29  ;;  %v5745_v57 = vpop.f32.mrf.mxu0  ;;  %v5980_v59 = vpop.f32.mrf.mxu1 }
 0x4b0   : > { %14674 = vmatpush3.msra.mxu0 %v7832_v10  ;;  %v19947_v5 = vadd.f32 %v5970_v47, %v5745_v57  ;;  %v20030_v57 = vld [vmem:[#allocation2 + $0x10a] sm:$0xff] }
 0x4b1   : > { %14675 = vmatprep.subr.mxu0 %v7831_v46  ;;  %v14072_v0 = vpop.f32.mrf.mxu0  ;;  %v14155_v4 = vpop.f32.mrf.mxu1 }
 0x4b2   : > { %14551 = vmatmul.mubr.f32.gmra.mxu0 %v19920_v61  ;;  %14634 = vmatmul.mubr.f32.gmra.mxu1 %v19949_v2  ;;  %v19958_v43 = vadd.f32 %v14152_v23, %v14072_v0 }
 0x4b3   : > { %14553 = vmatprep.mubr.f32.mxu0 %v19923_v39  ;;  %14636 = vmatprep.mubr.f32.mxu1 %v19953_v31  ;;  %v5755_v52 = vpop.f32.mrf.mxu0  ;;  %v5990_v12 = vpop.f32.mrf.mxu1 }
 0x4b4   : > { %14676 = vmatpush3.msra.mxu0 %v7831_v46  ;;  %v19962_v35 = vadd.f32 %v5980_v59, %v5755_v52  ;;  %v7825_v59 = vld [vmem:[%s22360_s1 + $0xd30] sm:$0xff] }
 0x4b5   : > { %14677 = vmatprep.subr.mxu0 %v7830_v11  ;;  %v14075_v60 = vpop.f32.mrf.mxu0  ;;  %v20043_v52 = vld [vmem:[#allocation2 + $0x112] sm:$0xff] }
 0x4b6   : > { %v14158_v13 = vpop.f32.mrf.mxu1  ;;  %14554 = vmatmul.mubr.f32.gmra.mxu0 %v19934_v18  ;;  %14637 = vmatmul.mubr.f32.gmra.mxu1 %v19964_v55  ;;  %v19973_v7 = vadd.f32 %v14155_v4, %v14075_v60 }
 0x4b7   : > { %14556 = vmatprep.mubr.f32.mxu0 %v19938_v29  ;;  %14639 = vmatprep.mubr.f32.mxu1 %v19968_v58  ;;  %v5765_v22 = vpop.f32.mrf.mxu0 }
 0x4b8   : > { %14678 = vmatpush3.msra.mxu0 %v7830_v11  ;;  %v6000_v9 = vpop.f32.mrf.mxu1  ;;  %v19977_v37 = vadd.f32 %v5990_v12, %v5765_v22 }
 0x4b9   : > { %14679 = vmatprep.subr.mxu0 %v7829_v49  ;;  %v14078_v56 = vpop.f32.mrf.mxu0 }
 0x4ba   : > { %v14161_v15 = vpop.f32.mrf.mxu1  ;;  %14557 = vmatmul.mubr.f32.gmra.mxu0 %v19949_v2  ;;  %14640 = vmatmul.mubr.f32.gmra.mxu1 %v19979_v41  ;;  %v19988_v32 = vadd.f32 %v14158_v13, %v14078_v56  ;;  %v20047_v13 = vld [vmem:[#allocation2 + $0x122] sm:$0xff] }
 0x4bb   : > { %14559 = vmatprep.mubr.f32.mxu0 %v19953_v31  ;;  %14642 = vmatprep.mubr.f32.mxu1 %v19983_v26  ;;  %v5775_v14 = vpop.f32.mrf.mxu0 }
 0x4bc   : > { %14680 = vmatpush3.msra.mxu0 %v7829_v49  ;;  %v6010_v54 = vpop.f32.mrf.mxu1  ;;  %v19992_v8 = vadd.f32 %v6000_v9, %v5775_v14  ;;  %v7824_v49 = vld [vmem:[%s22360_s1 + $0xd28] sm:$0xff] }
 0x4bd   : > { %14681 = vmatprep.subr.mxu0 %v7828_v30  ;;  %v14081_v40 = vpop.f32.mrf.mxu0 }
 0x4be   : > { %v14164_v51 = vpop.f32.mrf.mxu1  ;;  %14560 = vmatmul.mubr.f32.gmra.mxu0 %v19964_v55  ;;  %14643 = vmatmul.mubr.f32.gmra.mxu1 %v19994_v6  ;;  %v20003_v34 = vadd.f32 %v14161_v15, %v14081_v40  ;;  %v20060_v15 = vld [vmem:[#allocation2 + $0x12a] sm:$0xff]  ;;  %v7823_v40 = vld [vmem:[%s22360_s1 + $0xd20] sm:$0xff] }
 0x4bf   : > { %14562 = vmatprep.mubr.f32.mxu0 %v19968_v58  ;;  %14645 = vmatprep.mubr.f32.mxu1 %v19998_v44  ;;  %v5785_v21 = vpop.f32.mrf.mxu0 }
 0x4c0   : > { %14682 = vmatpush3.msra.mxu0 %v7828_v30  ;;  %v6020_v33 = vpop.f32.mrf.mxu1  ;;  %v20007_v63 = vadd.f32 %v6010_v54, %v5785_v21  ;;  %v20064_v54 = vld [vmem:[#allocation2 + $0x13a] sm:$0xff] }
 0x4c1   : > { %14683 = vmatprep.subr.mxu0 %v7827_v48 }
 0x4c2   : > { %v14084_v45 = vpop.f32.mrf.mxu0  ;;  %v14167_v50 = vpop.f32.mrf.mxu1  ;;  %14563 = vmatmul.mubr.f32.gmra.mxu0 %v19979_v41  ;;  %14646 = vmatmul.mubr.f32.gmra.mxu1 %v20009_v3 }
 0x4c3   : > { %v20018_v53 = vadd.f32 %v14164_v51, %v14084_v45  ;;  %14565 = vmatprep.mubr.f32.mxu0 %v19983_v26  ;;  %14648 = vmatprep.mubr.f32.mxu1 %v20013_v27 }
 0x4c4   : > { %14684 = vmatpush3.msra.mxu0 %v7827_v48  ;;  %v5795_v10 = vpop.f32.mrf.mxu0  ;;  %v20022_v16 = vpop.f32.mrf.mxu1 }
 0x4c5   : > { %v20024_v47 = vadd.f32 %v6020_v33, %v5795_v10  ;;  %14685 = vmatprep.subr.mxu0 %v7826_v1  ;;  %v20077_v33 = vld [vmem:[#allocation2 + $0x142] sm:$0xff]  ;;  %v7822_v10 = vld [vmem:[%s22360_s1 + $0xd18] sm:$0xff] }
 0x4c6   : > { %v14087_v23 = vpop.f32.mrf.mxu0  ;;  %v14170_v46 = vpop.f32.mrf.mxu1  ;;  %14566 = vmatmul.mubr.f32.gmra.mxu0 %v19994_v6  ;;  %14649 = vmatmul.mubr.f32.gmra.mxu1 %v20026_v20 }
 0x4c7   : > { %v20035_v0 = vadd.f32 %v14167_v50, %v14087_v23  ;;  %14568 = vmatprep.mubr.f32.mxu0 %v19998_v44  ;;  %14651 = vmatprep.mubr.f32.mxu1 %v20030_v57 }
 0x4c8   : > { %14686 = vmatpush3.msra.mxu0 %v7826_v1  ;;  %v20039_v4 = vpop.f32.mrf.mxu0  ;;  %v20041_v11 = vpop.f32.mrf.mxu1  ;;  %v20081_v1 = vld [vmem:[#allocation2 + $0x152] sm:$0xff] }
 0x4c9   : > { %22900 = vst [vmem:[#allocation78_spill] sm:$0xff] %v20041_v11  ;;  %14687 = vmatprep.subr.mxu0 %v7825_v59  ;;  %v7819_v11 = vld [vmem:[%s22360_s1 + $0xd00] sm:$0xff] }
 0x4ca   : > { %v14090_v12 = vpop.f32.mrf.mxu0  ;;  %v14173_v60 = vpop.f32.mrf.mxu1  ;;  %14569 = vmatmul.mubr.f32.gmra.mxu0 %v20009_v3  ;;  %14652 = vmatmul.mubr.f32.gmra.mxu1 %v20043_v52 }
 0x4cb   : > { %v20052_v22 = vadd.f32 %v14170_v46, %v14090_v12  ;;  %14571 = vmatprep.mubr.f32.mxu0 %v20013_v27  ;;  %14654 = vmatprep.mubr.f32.mxu1 %v20047_v13  ;;  %v20094_v12 = vld [vmem:[#allocation2 + $0x15a] sm:$0xff] }
 0x4cc   : > { %14688 = vmatpush3.msra.mxu0 %v7825_v59  ;;  %v20056_v9 = vpop.f32.mrf.mxu0  ;;  %v20058_v56 = vpop.f32.mrf.mxu1 }
 0x4cd   : > { %22901 = vst [vmem:[#allocation36_spill] sm:$0xff] %v20056_v9  ;;  %22902 = vst [vmem:[#allocation14_spill] sm:$0xff] %v20058_v56  ;;  %14689 = vmatprep.subr.mxu0 %v7824_v49 }
 0x4ce   : > { %v14093_v30 = vpop.f32.mrf.mxu0  ;;  %v14176_v14 = vpop.f32.mrf.mxu1  ;;  %14572 = vmatmul.mubr.f32.gmra.mxu0 %v20026_v20  ;;  %14655 = vmatmul.mubr.f32.gmra.mxu1 %v20060_v15 }
 0x4cf   : > { %v20069_v51 = vadd.f32 %v14173_v60, %v14093_v30  ;;  %14574 = vmatprep.mubr.f32.mxu0 %v20030_v57  ;;  %14657 = vmatprep.mubr.f32.mxu1 %v20064_v54  ;;  %v20098_v30 = vld [vmem:[#allocation2 + $0x16a] sm:$0xff] }
 0x4d0   : > { %14690 = vmatpush3.msra.mxu0 %v7824_v49  ;;  %v20073_v48 = vpop.f32.mrf.mxu0  ;;  %v20075_v21 = vpop.f32.mrf.mxu1 }
 0x4d1   : > { %22903 = vst [vmem:[#allocation79_spill] sm:$0xff] %v20073_v48  ;;  %22904 = vst [vmem:[#allocation40_spill] sm:$0xff] %v20075_v21  ;;  %14691 = vmatprep.subr.mxu0 %v7823_v40  ;;  %v20111_v21 = vld [vmem:[#allocation2 + $0x172] sm:$0xff]  ;;  %v20128_v48 = vld [vmem:[#allocation2 + $0x18a] sm:$0xff] }
 0x4d2   : > { %v14096_v45 = vpop.f32.mrf.mxu0  ;;  %v14179_v50 = vpop.f32.mrf.mxu1  ;;  %14575 = vmatmul.mubr.f32.gmra.mxu0 %v20043_v52  ;;  %14658 = vmatmul.mubr.f32.gmra.mxu1 %v20077_v33  ;;  %22913 = vst [vmem:[#allocation38_spill] sm:$0xff] %v20128_v48 }
 0x4d3   : > { %v20086_v23 = vadd.f32 %v14176_v14, %v14096_v45  ;;  %14577 = vmatprep.mubr.f32.mxu0 %v20047_v13  ;;  %14660 = vmatprep.mubr.f32.mxu1 %v20081_v1  ;;  %v7821_v14 = vld [vmem:[%s22360_s1 + $0xd10] sm:$0xff] }
 0x4d4   : > { %14692 = vmatpush3.msra.mxu0 %v7823_v40  ;;  %v20090_v46 = vpop.f32.mrf.mxu0  ;;  %v20092_v59 = vpop.f32.mrf.mxu1 }
 0x4d5   : > { %22905 = vst [vmem:[#allocation24_spill] sm:$0xff] %v20090_v46  ;;  %22906 = vst [vmem:[#allocation72_spill] sm:$0xff] %v20092_v59  ;;  %14693 = vmatprep.subr.mxu0 %v7822_v10 }
 0x4d6   : > { %v14099_v60 = vpop.f32.mrf.mxu0  ;;  %v14182_v49 = vpop.f32.mrf.mxu1  ;;  %14578 = vmatmul.mubr.f32.gmra.mxu0 %v20060_v15  ;;  %14661 = vmatmul.mubr.f32.gmra.mxu1 %v20094_v12 }
 0x4d7   : > { %v20103_v40 = vadd.f32 %v14179_v50, %v14099_v60  ;;  %14580 = vmatprep.mubr.f32.mxu0 %v20064_v54  ;;  %14663 = vmatprep.mubr.f32.mxu1 %v20098_v30  ;;  %v20115_v50 = vld [vmem:[#allocation2 + $0x182] sm:$0xff] }
 0x4d8   : > { %14694 = vmatpush3.msra.mxu0 %v7822_v10  ;;  %v20107_v45 = vpop.f32.mrf.mxu0  ;;  %v20109_v59 = vpop.f32.mrf.mxu1  ;;  %22910 = vst [vmem:[#allocation25_spill] sm:$0xff] %v20115_v50  ;;  %v7820_v60 = vld [vmem:[%s22360_s1 + $0xd08] sm:$0xff] }
 0x4d9   : > { %22907 = vst [vmem:[#allocation20_spill] sm:$0xff] %v20103_v40  ;;  %22908 = vst [vmem:[#allocation17_spill] sm:$0xff] %v20107_v45  ;;  %14695 = vmatprep.subr.mxu0 %v7821_v14 }
 0x4da   : > { %22909 = vst [vmem:[#allocation52_spill] sm:$0xff] %v20109_v59  ;;  %v14102_v46 = vpop.f32.mrf.mxu0  ;;  %v14185_v56 = vpop.f32.mrf.mxu1  ;;  %14581 = vmatmul.mubr.f32.gmra.mxu0 %v20077_v33  ;;  %14664 = vmatmul.mubr.f32.gmra.mxu1 %v20111_v21 }
 0x4db   : > { %v20120_v10 = vadd.f32 %v14182_v49, %v14102_v46  ;;  %14583 = vmatprep.mubr.f32.mxu0 %v20081_v1  ;;  %14666 = vmatprep.mubr.f32.mxu1 %v20115_v50 }
 0x4dc   : > { %14696 = vmatpush3.msra.mxu0 %v7821_v14  ;;  %v20124_v59 = vpop.f32.mrf.mxu0  ;;  %v20126_v45 = vpop.f32.mrf.mxu1 }
 0x4dd   : > { %22911 = vst [vmem:[#allocation70_spill] sm:$0xff] %v20124_v59  ;;  %22912 = vst [vmem:[#allocation66_spill] sm:$0xff] %v20126_v45  ;;  %14697 = vmatprep.subr.mxu0 %v7820_v60 }
 0x4de   : > { %v14105_v9 = vpop.f32.mrf.mxu0  ;;  %v14188_v40 = vpop.f32.mrf.mxu1  ;;  %14584 = vmatmul.mubr.f32.gmra.mxu0 %v20094_v12  ;;  %14667 = vmatmul.mubr.f32.gmra.mxu1 %v20128_v48 }
 0x4df   : > { %v20135_v46 = vadd.f32 %v14185_v56, %v14105_v9  ;;  %14586 = vmatprep.mubr.f32.mxu0 %v20098_v30  ;;  %14698 = vmatpush3.msra.mxu0 %v7820_v60  ;;  %v5956_v56 = vadd.f32 %v19894_v25, %v19909_v42 }
 0x4e0   : > { %v20138_v49 = vpop.f32.mrf.mxu0  ;;  %v20140_v14 = vpop.f32.mrf.mxu1  ;;  %14699 = vmatprep.subr.mxu0 %v7819_v11 }
 0x4e1   : > { %22914 = vst [vmem:[#allocation37_spill] sm:$0xff] %v20135_v46  ;;  %22915 = vst [vmem:[#allocation41_spill] sm:$0xff] %v20138_v49  ;;  %14700 = vmatpush3.msra.mxu0 %v7819_v11 }
 0x4e2   : > { %22916 = vst [vmem:[#allocation88_spill] sm:$0xff] %v20140_v14  ;;  %v14108_v45 = vpop.f32.mrf.mxu0  ;;  %v14303_v59 = vpop.f32.mrf.mxu1  ;;  %14587 = vmatmul.mubr.f32.gmra.mxu0 %v20111_v21 }
 0x4e3   : > { %v20143_v50 = vadd.f32 %v14188_v40, %v14108_v45  ;;  %14701 = vmatprep.mubr.f32.mxu0 %v19904_v38 }
 0x4e4   : > { %v20146_v48 = vpop.f32.mrf.mxu0  ;;  %v20148_v9 = vpop.f32.mrf.mxu1 }
 0x4e5   : > { %22917 = vst [vmem:[#allocation86_spill] sm:$0xff] %v20146_v48 }
 0x4e6   : > { %v14223_v60 = vpop.f32.mrf.mxu0  ;;  %v14306_v49 = vpop.f32.mrf.mxu1  ;;  %14702 = vmatmul.mubr.f32.vlgmr.msra.gmra.mxu0 %v19907_v36 }
 0x4e7   : > { %v6351_v11 = vadd.f32 %v14223_v60, %v5956_v56  ;;  %14704 = vmatprep.mubr.f32.mxu0 %v19912_v28 }
 0x4e8   : > { %v6191_v14 = vpop.f32.mrf.mxu0  ;;  %v20154_v46 = vpop.f32.mrf.mxu1 }
 0x4e9   : > { %v20157_v40 = vadd.f32 %v6191_v14, %v19918_v17  ;;  %v20159_v38 = vadd.f32 %v14303_v59, %v6351_v11 }
 0x4ea   : > { %v14226_v45 = vpop.f32.mrf.mxu0  ;;  %v14309_v48 = vpop.f32.mrf.mxu1  ;;  %14705 = vmatmul.mubr.f32.gmra.mxu0 %v19920_v61 }
 0x4eb   : > { %v6353_v25 = vadd.f32 %v14226_v45, %v19928_v19  ;;  %14707 = vmatprep.mubr.f32.mxu0 %v19923_v39 }
 0x4ec   : > { %v6201_v36 = vpop.f32.mrf.mxu0  ;;  %v20164_v42 = vpop.f32.mrf.mxu1 }
 0x4ed   : > { %v20167_v28 = vadd.f32 %v6201_v36, %v19932_v24  ;;  %v20169_v56 = vadd.f32 %v14306_v49, %v6353_v25 }
 0x4ee   : > { %v14229_v17 = vpop.f32.mrf.mxu0  ;;  %v14312_v14 = vpop.f32.mrf.mxu1  ;;  %14708 = vmatmul.mubr.f32.gmra.mxu0 %v19934_v18 }
 0x4ef   : > { %v6355_v59 = vadd.f32 %v14229_v17, %v19943_v62  ;;  %14710 = vmatprep.mubr.f32.mxu0 %v19938_v29 }
 0x4f0   : > { %v6211_v61 = vpop.f32.mrf.mxu0  ;;  %v20174_v19 = vpop.f32.mrf.mxu1 }
 0x4f1   : > { %v20177_v39 = vadd.f32 %v6211_v61, %v19947_v5  ;;  %v20179_v60 = vadd.f32 %v14309_v48, %v6355_v59 }
 0x4f2   : > { %v14232_v24 = vpop.f32.mrf.mxu0  ;;  %v14315_v11 = vpop.f32.mrf.mxu1  ;;  %14711 = vmatmul.mubr.f32.gmra.mxu0 %v19949_v2 }
 0x4f3   : > { %v6357_v49 = vadd.f32 %v14232_v24, %v19958_v43  ;;  %14713 = vmatprep.mubr.f32.mxu0 %v19953_v31 }
 0x4f4   : > { %v6221_v18 = vpop.f32.mrf.mxu0  ;;  %v20184_v62 = vpop.f32.mrf.mxu1 }
 0x4f5   : > { %v20187_v29 = vadd.f32 %v6221_v18, %v19962_v35  ;;  %v20189_v45 = vadd.f32 %v14312_v14, %v6357_v49 }
 0x4f6   : > { %v14235_v5 = vpop.f32.mrf.mxu0  ;;  %v14318_v25 = vpop.f32.mrf.mxu1  ;;  %14714 = vmatmul.mubr.f32.gmra.mxu0 %v19964_v55  ;;  %v8291_v55 = vld [vmem:[%s22360_s1 + $0xf78] sm:$0xff] }
 0x4f7   : > { %v6359_v48 = vadd.f32 %v14235_v5, %v19973_v7  ;;  %14716 = vmatprep.mubr.f32.mxu0 %v19968_v58  ;;  %14749 = vmatprep.subr.mxu1 %v8291_v55 }
 0x4f8   : > { %v6231_v2 = vpop.f32.mrf.mxu0  ;;  %v20194_v43 = vpop.f32.mrf.mxu1  ;;  %14750 = vmatpush3.msra.mxu1 %v8291_v55 }
 0x4f9   : > { %v20197_v31 = vadd.f32 %v6231_v2, %v19977_v37  ;;  %v20199_v36 = vadd.f32 %v14315_v11, %v6359_v48 }
 0x4fa   : > { %v14238_v35 = vpop.f32.mrf.mxu0  ;;  %v14321_v17 = vpop.f32.mrf.mxu1  ;;  %14717 = vmatmul.mubr.f32.gmra.mxu0 %v19979_v41 }
 0x4fb   : > { %v6361_v14 = vadd.f32 %v14238_v35, %v19988_v32  ;;  %14719 = vmatprep.mubr.f32.mxu0 %v19983_v26  ;;  %v8290_v32 = vld [vmem:[%s22360_s1 + $0xf70] sm:$0xff]  ;;  %v8288_v35 = vld [vmem:[%s22360_s1 + $0xf60] sm:$0xff] }
 0x4fc   : > { %v6241_v58 = vpop.f32.mrf.mxu0  ;;  %v20207_v7 = vpop.f32.mrf.mxu1  ;;  %14751 = vmatprep.subr.mxu1 %v8290_v32 }
 0x4fd   : > { %v20210_v37 = vadd.f32 %v6241_v58, %v19992_v8  ;;  %v20212_v59 = vadd.f32 %v14318_v25, %v6361_v14  ;;  %14752 = vmatpush3.msra.mxu1 %v8290_v32 }
 0x4fe   : > { %v14241_v61 = vpop.f32.mrf.mxu0  ;;  %v14324_v41 = vpop.f32.mrf.mxu1  ;;  %14720 = vmatmul.mubr.f32.gmra.mxu0 %v19994_v6 }
 0x4ff   : > { %v6363_v26 = vadd.f32 %v14241_v61, %v20003_v34  ;;  %14722 = vmatprep.mubr.f32.mxu0 %v19998_v44  ;;  %v8289_v34 = vld [vmem:[%s22360_s1 + $0xf68] sm:$0xff] }
 0x500   : > { %v6251_v24 = vpop.f32.mrf.mxu0  ;;  %v20220_v11 = vpop.f32.mrf.mxu1  ;;  %14753 = vmatprep.subr.mxu1 %v8289_v34 }
 0x501   : > { %v20223_v8 = vadd.f32 %v6251_v24, %v20007_v63  ;;  %v20225_v49 = vadd.f32 %v14321_v17, %v6363_v26  ;;  %14754 = vmatpush3.msra.mxu1 %v8289_v34 }
 0x502   : > { %v14244_v18 = vpop.f32.mrf.mxu0  ;;  %v14327_v6 = vpop.f32.mrf.mxu1  ;;  %14723 = vmatmul.mubr.f32.gmra.mxu0 %v20009_v3  ;;  %14755 = vmatprep.subr.mxu1 %v8288_v35 }
 0x503   : > { %v6365_v44 = vadd.f32 %v14244_v18, %v20018_v53  ;;  %14725 = vmatprep.mubr.f32.mxu0 %v20013_v27  ;;  %v6031_v27 = vadd.f32 %v20022_v16, %v20039_v4  ;;  %14756 = vmatpush3.msra.mxu1 %v8288_v35 }
 0x504   : > { %v6261_v5 = vpop.f32.mrf.mxu0  ;;  %v20233_v25 = vpop.f32.mrf.mxu1 }
 0x505   : > { %v20236_v63 = vadd.f32 %v6261_v5, %v20024_v47  ;;  %v20238_v48 = vadd.f32 %v14324_v41, %v6365_v44 }
 0x506   : > { %v14247_v2 = vpop.f32.mrf.mxu0  ;;  %v14330_v3 = vpop.f32.mrf.mxu1  ;;  %14726 = vmatmul.mubr.f32.gmra.mxu0 %v20026_v20 }
 0x507   : > { %v6367_v53 = vadd.f32 %v14247_v2, %v20035_v0  ;;  %14728 = vmatprep.mubr.f32.mxu0 %v20030_v57  ;;  %v8287_v57 = vld [vmem:[%s22360_s1 + $0xf58] sm:$0xff] }
 0x508   : > { %v6271_v47 = vpop.f32.mrf.mxu0  ;;  %v20248_v17 = vpop.f32.mrf.mxu1  ;;  %14757 = vmatprep.subr.mxu1 %v8287_v57 }
 0x509   : > { %v20250_v14 = vadd.f32 %v6271_v47, %v6031_v27  ;;  %v20252_v55 = vadd.f32 %v14327_v6, %v6367_v53  ;;  %14758 = vmatpush3.msra.mxu1 %v8287_v57  ;;  %v8283_v57 = vld [vmem:[%s22360_s1 + $0xf38] sm:$0xff] }
 0x50a   : > { %v14250_v20 = vpop.f32.mrf.mxu0  ;;  %v14333_v58 = vpop.f32.mrf.mxu1  ;;  %14729 = vmatmul.mubr.f32.gmra.mxu0 %v20043_v52 }
 0x50b   : > { %v6369_v16 = vadd.f32 %v14250_v20, %v20052_v22  ;;  %14731 = vmatprep.mubr.f32.mxu0 %v20047_v13  ;;  %v8286_v13 = vld [vmem:[%s22360_s1 + $0xf50] sm:$0xff]  ;;  %v8273_v20 = vld [vmem:[%s22360_s1 + $0xde8] sm:$0xff] }
 0x50c   : > { %v20260_v0 = vpop.f32.mrf.mxu0  ;;  %v20262_v4 = vpop.f32.mrf.mxu1  ;;  %14759 = vmatprep.subr.mxu1 %v8286_v13 }
 0x50d   : > { %v20264_v61 = vadd.f32 %v14330_v3, %v6369_v16  ;;  %14760 = vmatpush3.msra.mxu1 %v8286_v13  ;;  %v8284_v3 = vld [vmem:[%s22360_s1 + $0xf40] sm:$0xff]  ;;  %v22921_v16 = vld [vmem:[#allocation25_spill] sm:$0xff] }
 0x50e   : > { %v14253_v41 = vpop.f32.mrf.mxu0  ;;  %v14336_v26 = vpop.f32.mrf.mxu1  ;;  %14732 = vmatmul.mubr.f32.gmra.mxu0 %v20060_v15 }
 0x50f   : > { %v6371_v52 = vadd.f32 %v14253_v41, %v20069_v51  ;;  %14734 = vmatprep.mubr.f32.mxu0 %v20064_v54  ;;  %v8285_v54 = vld [vmem:[%s22360_s1 + $0xf48] sm:$0xff] }
 0x510   : > { %v20272_v22 = vpop.f32.mrf.mxu0  ;;  %v20274_v32 = vpop.f32.mrf.mxu1  ;;  %14761 = vmatprep.subr.mxu1 %v8285_v54 }
 0x511   : > { %v20276_v24 = vadd.f32 %v14333_v58, %v6371_v52  ;;  %14762 = vmatpush3.msra.mxu1 %v8285_v54  ;;  %v7271_v52 = vld [vmem:[#allocation2 + $0x19a] sm:$0xff]  ;;  %v22924_v54 = vld [vmem:[#allocation37_spill] sm:$0xff] }
 0x512   : > { %v14256_v18 = vpop.f32.mrf.mxu0  ;;  %v14339_v6 = vpop.f32.mrf.mxu1  ;;  %14735 = vmatmul.mubr.f32.gmra.mxu0 %v20077_v33  ;;  %v8275_v33 = vld [vmem:[%s22360_s1 + $0xdf8] sm:$0xff]  ;;  %14763 = vmatprep.subr.mxu1 %v8284_v3 }
 0x513   : > { %v6373_v15 = vadd.f32 %v14256_v18, %v20086_v23  ;;  %14737 = vmatprep.mubr.f32.mxu0 %v20081_v1  ;;  %v22919_v1 = vld [vmem:[#allocation20_spill] sm:$0xff]  ;;  %14829 = vmatprep.subr.mxu0 %v8275_v33 }
 0x514   : > { %v20284_v51 = vpop.f32.mrf.mxu0  ;;  %v20286_v44 = vpop.f32.mrf.mxu1  ;;  %14830 = vmatpush3.msra.mxu0 %v8275_v33  ;;  %14764 = vmatpush3.msra.mxu1 %v8284_v3  ;;  %v7272_v33 = vld [vmem:[#allocation2 + $0x1a2] sm:$0xff]  ;;  %v8270_v3 = vld [vmem:[%s22360_s1 + $0xdd0] sm:$0xff] }
 0x515   : > { %22918 = vst [vmem:[#allocation46_spill] sm:$0xff] %v20286_v44  ;;  %v20288_v34 = vadd.f32 %v14336_v26, %v6373_v15  ;;  %14765 = vmatprep.subr.mxu1 %v8283_v57  ;;  %v8271_v15 = vld [vmem:[%s22360_s1 + $0xdd8] sm:$0xff]  ;;  %v23030_v44 = vld [vmem:[#allocation86_spill] sm:$0xff] }
 0x516   : > { %v14259_v5 = vpop.f32.mrf.mxu0  ;;  %v14342_v2 = vpop.f32.mrf.mxu1  ;;  %14738 = vmatmul.mubr.f32.gmra.mxu0 %v20094_v12  ;;  %v8274_v12 = vld [vmem:[%s22360_s1 + $0xdf0] sm:$0xff]  ;;  %14766 = vmatpush3.msra.mxu1 %v8283_v57  ;;  %v8281_v57 = vld [vmem:[%s22360_s1 + $0xf28] sm:$0xff] }
 0x517   : > { %v6375_v23 = vadd.f32 %v14259_v5, %v22919_v1  ;;  %14740 = vmatprep.mubr.f32.mxu0 %v20098_v30  ;;  %14831 = vmatprep.subr.mxu0 %v8274_v12 }
 0x518   : > { %v20299_v27 = vpop.f32.mrf.mxu0  ;;  %v20301_v53 = vpop.f32.mrf.mxu1  ;;  %14832 = vmatpush3.msra.mxu0 %v8274_v12 }
 0x519   : > { %22920 = vst [vmem:[#allocation67_spill] sm:$0xff] %v20301_v53  ;;  %v20306_v35 = vadd.f32 %v14339_v6, %v6375_v23  ;;  %14833 = vmatprep.subr.mxu0 %v8273_v20  ;;  %v22923_v6 = vld [vmem:[#allocation38_spill] sm:$0xff] }
 0x51a   : > { %v14262_v30 = vpop.f32.mrf.mxu0  ;;  %v14345_v47 = vpop.f32.mrf.mxu1  ;;  %14741 = vmatmul.mubr.f32.gmra.mxu0 %v20111_v21  ;;  %v8272_v21 = vld [vmem:[%s22360_s1 + $0xde0] sm:$0xff] }
 0x51b   : > { %v6377_v58 = vadd.f32 %v14262_v30, %v20120_v10  ;;  %14743 = vmatprep.mubr.f32.mxu0 %v22921_v16  ;;  %14834 = vmatpush3.msra.mxu0 %v8273_v20 }
 0x51c   : > { %v20317_v41 = vpop.f32.mrf.mxu0  ;;  %v20319_v26 = vpop.f32.mrf.mxu1  ;;  %14835 = vmatprep.subr.mxu0 %v8272_v21 }
 0x51d   : > { %22922 = vst [vmem:[#allocation50_spill] sm:$0xff] %v20319_v26  ;;  %v20324_v13 = vadd.f32 %v14342_v2, %v6377_v58  ;;  %14836 = vmatpush3.msra.mxu0 %v8272_v21  ;;  %v8282_v2 = vld [vmem:[%s22360_s1 + $0xf30] sm:$0xff]  ;;  %v8269_v58 = vld [vmem:[%s22360_s1 + $0xdc8] sm:$0xff]  ;;  %v8268_v21 = vld [vmem:[%s22360_s1 + $0xdc0] sm:$0xff] }
 0x51e   : > { %v14265_v10 = vpop.f32.mrf.mxu0  ;;  %v14348_v18 = vpop.f32.mrf.mxu1  ;;  %14744 = vmatmul.mubr.f32.gmra.mxu0 %v22923_v6  ;;  %14767 = vmatprep.subr.mxu1 %v8282_v2 }
 0x51f   : > { %v6379_v5 = vadd.f32 %v14265_v10, %v22924_v54  ;;  %14746 = vmatprep.mubr.f32.mxu0 %v7271_v52  ;;  %14837 = vmatprep.subr.mxu0 %v8271_v15 }
 0x520   : > { %v20334_v1 = vpop.f32.mrf.mxu0  ;;  %v20336_v23 = vpop.f32.mrf.mxu1  ;;  %14768 = vmatpush3.msra.mxu1 %v8282_v2  ;;  %14838 = vmatpush3.msra.mxu0 %v8271_v15  ;;  %v8267_v15 = vld [vmem:[%s22360_s1 + $0xdb8] sm:$0xff] }
 0x521   : > { %22925 = vst [vmem:[#allocation102_spill] sm:$0xff] %v20334_v1  ;;  %22926 = vst [vmem:[#allocation47_spill] sm:$0xff] %v20336_v23  ;;  %v20341_v12 = vadd.f32 %v14345_v47, %v6379_v5  ;;  %14839 = vmatprep.subr.mxu0 %v8270_v3  ;;  %14769 = vmatprep.subr.mxu1 %v8281_v57 }
 0x522   : > { %v14268_v30 = vpop.f32.mrf.mxu0  ;;  %v20343_v20 = vpop.f32.mrf.mxu1  ;;  %14747 = vmatmul.mubr.f32.gmra.mxu0 %v7272_v33  ;;  %14770 = vmatpush3.msra.mxu1 %v8281_v57  ;;  %v8264_v57 = vld [vmem:[%s22360_s1 + $0xda0] sm:$0xff] }
 0x523   : > { %v6381_v16 = vadd.f32 %v14268_v30, %v20143_v50  ;;  %14840 = vmatpush3.msra.mxu0 %v8270_v3 }
 0x524   : > { %v20352_v47 = vpop.f32.mrf.mxu0  ;;  %v20354_v52 = vpop.f32.mrf.mxu1  ;;  %14841 = vmatprep.subr.mxu0 %v8269_v58 }
 0x525   : > { %22927 = vst [vmem:[#allocation49_spill] sm:$0xff] %v20352_v47  ;;  %v20359_v10 = vadd.f32 %v14348_v18, %v6381_v16  ;;  %14842 = vmatpush3.msra.mxu0 %v8269_v58  ;;  %v8266_v18 = vld [vmem:[%s22360_s1 + $0xdb0] sm:$0xff] }
 0x526   : > { %v14383_v50 = vpop.f32.mrf.mxu0  ;;  %v20361_v6 = vpop.f32.mrf.mxu1  ;;  %14843 = vmatprep.subr.mxu0 %v8268_v21 }
 0x527   : > { %v20367_v54 = vadd.f32 %v14383_v50, %v20159_v38  ;;  %14844 = vmatpush3.msra.mxu0 %v8268_v21  ;;  %v8265_v38 = vld [vmem:[%s22360_s1 + $0xda8] sm:$0xff] }
 0x528   : > { %v20369_v5 = vpop.f32.mrf.mxu0  ;;  %v20371_v33 = vpop.f32.mrf.mxu1  ;;  %14845 = vmatprep.subr.mxu0 %v8267_v15 }
 0x529   : > { %14846 = vmatpush3.msra.mxu0 %v8267_v15 }
 0x52a   : > { %v14386_v2 = vpop.f32.mrf.mxu0  ;;  %v20376_v3 = vpop.f32.mrf.mxu1  ;;  %14847 = vmatprep.subr.mxu0 %v8266_v18 }
 0x52b   : > { %v20382_v30 = vadd.f32 %v14386_v2, %v20169_v56  ;;  %14848 = vmatpush3.msra.mxu0 %v8266_v18  ;;  %v8263_v56 = vld [vmem:[%s22360_s1 + $0xd98] sm:$0xff]  ;;  %v8280_v18 = vld [vmem:[%s22360_s1 + $0xf20] sm:$0xff] }
 0x52c   : > { %v20384_v58 = vpop.f32.mrf.mxu0  ;;  %v20386_v16 = vpop.f32.mrf.mxu1  ;;  %14849 = vmatprep.subr.mxu0 %v8265_v38  ;;  %14771 = vmatprep.subr.mxu1 %v8280_v18 }
 0x52d   : > { %14850 = vmatpush3.msra.mxu0 %v8265_v38  ;;  %v8262_v38 = vld [vmem:[%s22360_s1 + $0xd90] sm:$0xff]  ;;  %14772 = vmatpush3.msra.mxu1 %v8280_v18 }
 0x52e   : > { %v14389_v21 = vpop.f32.mrf.mxu0  ;;  %v20391_v50 = vpop.f32.mrf.mxu1  ;;  %14851 = vmatprep.subr.mxu0 %v8264_v57  ;;  %v8278_v18 = vld [vmem:[%s22360_s1 + $0xf10] sm:$0xff] }
 0x52f   : > { %22928 = vst [vmem:[#allocation74_spill] sm:$0xff] %v20391_v50  ;;  %v20397_v15 = vadd.f32 %v14389_v21, %v20179_v60  ;;  %14852 = vmatpush3.msra.mxu0 %v8264_v57  ;;  %v8279_v21 = vld [vmem:[%s22360_s1 + $0xf18] sm:$0xff]  ;;  %v8261_v57 = vld [vmem:[%s22360_s1 + $0xd88] sm:$0xff] }
 0x530   : > { %v20402_v2 = vpop.f32.mrf.mxu0  ;;  %v20404_v23 = vpop.f32.mrf.mxu1  ;;  %14853 = vmatprep.subr.mxu0 %v8263_v56  ;;  %14773 = vmatprep.subr.mxu1 %v8279_v21 }
 0x531   : > { %22929 = vst [vmem:[#allocation91_spill] sm:$0xff] %v20404_v23  ;;  %14854 = vmatpush3.msra.mxu0 %v8263_v56  ;;  %14774 = vmatpush3.msra.mxu1 %v8279_v21 }
 0x532   : > { %v14392_v47 = vpop.f32.mrf.mxu0  ;;  %v20409_v60 = vpop.f32.mrf.mxu1  ;;  %14855 = vmatprep.subr.mxu0 %v8262_v38  ;;  %14775 = vmatprep.subr.mxu1 %v8278_v18 }
 0x533   : > { %22930 = vst [vmem:[#allocation81_spill] sm:$0xff] %v20409_v60  ;;  %v20418_v26 = vadd.f32 %v14392_v47, %v20189_v45  ;;  %14856 = vmatpush3.msra.mxu0 %v8262_v38  ;;  %v8260_v60 = vld [vmem:[%s22360_s1 + $0xd80] sm:$0xff]  ;;  %v8224_v45 = vld [vmem:[#allocation3] sm:$0xff]  ;;  %14776 = vmatpush3.msra.mxu1 %v8278_v18  ;;  %v8277_v38 = vld [vmem:[%s22360_s1 + $0xf08] sm:$0xff] }
 0x534   : > { %v20420_v23 = vpop.f32.mrf.mxu0  ;;  %v20422_v56 = vpop.f32.mrf.mxu1  ;;  %14857 = vmatprep.subr.mxu0 %v8261_v57  ;;  %14777 = vmatprep.subr.mxu1 %v8277_v38  ;;  %v15503_v18 = vld [vmem:[#allocation2 + $0x8] sm:$0xff] }
 0x535   : > { %22931 = vst [vmem:[#allocation80_spill] sm:$0xff] %v20418_v26  ;;  %22932 = vst [vmem:[#allocation69_spill] sm:$0xff] %v20422_v56  ;;  %14858 = vmatpush3.msra.mxu0 %v8261_v57  ;;  %14778 = vmatpush3.msra.mxu1 %v8277_v38  ;;  %v8276_v57 = vld [vmem:[%s22360_s1 + $0xf00] sm:$0xff] }
 0x536   : > { %v14395_v47 = vpop.f32.mrf.mxu0  ;;  %v20430_v50 = vpop.f32.mrf.mxu1  ;;  %14859 = vmatprep.subr.mxu0 %v8260_v60  ;;  %14861 = vmatprep.mubr.f32.mxu0 %v8224_v45 }
 0x537   : > { %22933 = vst [vmem:[#allocation27_spill] sm:$0xff] %v20430_v50  ;;  %v20436_v21 = vadd.f32 %v14395_v47, %v20199_v36  ;;  %14860 = vmatpush3.msra.mxu0 %v8260_v60  ;;  %14779 = vmatprep.subr.mxu1 %v8276_v57 }
 0x538   : > { %v20438_v56 = vpop.f32.mrf.mxu0  ;;  %v20440_v26 = vpop.f32.mrf.mxu1  ;;  %14862 = vmatmul.mubr.f32.vlgmr.msra.gmra.mxu0 %v15503_v18  ;;  %14780 = vmatpush3.msra.mxu1 %v8276_v57 }
 0x539   : > { %22934 = vst [vmem:[#allocation101_spill] sm:$0xff] %v20436_v21  ;;  %22935 = vst [vmem:[#allocation97_spill] sm:$0xff] %v20438_v56 }
 0x53a   : > { %22936 = vst [vmem:[#allocation56_spill] sm:$0xff] %v20440_v26  ;;  %v14398_v50 = vpop.f32.mrf.mxu0  ;;  %v20445_v53 = vpop.f32.mrf.mxu1 }
 0x53b   : > { %22937 = vst [vmem:[#allocation87_spill] sm:$0xff] %v20445_v53  ;;  %v20448_v36 = vadd.f32 %v14398_v50, %v20212_v59  ;;  %v20471_v50 = vld [vmem:[%s22360_s1 + $0x10f8] sm:$0xff] }
 0x53c   : > { %v20450_v60 = vpop.f32.mrf.mxu0  ;;  %v20452_v47 = vpop.f32.mrf.mxu1  ;;  %22947 = vst [vmem:[#allocation71_spill] sm:$0xff] %v20471_v50  ;;  %14909 = vmatprep.subr.mxu1 %v20471_v50 }
 0x53d   : > { %22938 = vst [vmem:[#allocation8_spill] sm:$0xff] %v20448_v36  ;;  %22939 = vst [vmem:[#allocation103_spill] sm:$0xff] %v20450_v60 }
 0x53e   : > { %22940 = vst [vmem:[#allocation21_spill] sm:$0xff] %v20452_v47  ;;  %v14401_v38 = vpop.f32.mrf.mxu0  ;;  %v20454_v45 = vpop.f32.mrf.mxu1 }
 0x53f   : > { %22941 = vst [vmem:[#allocation44_spill] sm:$0xff] %v20454_v45  ;;  %v20457_v26 = vadd.f32 %v14401_v38, %v20225_v49 }
 0x540   : > { %v20459_v21 = vpop.f32.mrf.mxu0  ;;  %v20461_v18 = vpop.f32.mrf.mxu1 }
 0x541   : > { %22942 = vst [vmem:[#allocation53_spill] sm:$0xff] %v20457_v26  ;;  %22943 = vst [vmem:[#allocation26_spill] sm:$0xff] %v20459_v21 }
 0x542   : > { %22944 = vst [vmem:[#allocation15_spill] sm:$0xff] %v20461_v18  ;;  %v14404_v56 = vpop.f32.mrf.mxu0  ;;  %v20463_v53 = vpop.f32.mrf.mxu1 }
 0x543   : > { %22945 = vst [vmem:[#allocation35_spill] sm:$0xff] %v20463_v53  ;;  %v20466_v59 = vadd.f32 %v14404_v56, %v20238_v48 }
 0x544   : > { %v20473_v57 = vpop.f32.mrf.mxu0  ;;  %v20475_v45 = vpop.f32.mrf.mxu1 }
 0x545   : > { %22946 = vst [vmem:[#allocation54_spill] sm:$0xff] %v20466_v59  ;;  %22948 = vst [vmem:[#allocation51_spill] sm:$0xff] %v20473_v57 }
 0x546   : > { %22949 = vst [vmem:[#allocation23_spill] sm:$0xff] %v20475_v45  ;;  %v14407_v49 = vpop.f32.mrf.mxu0  ;;  %v20478_v38 = vpop.f32.mrf.mxu1 }
 0x547   : > { %22950 = vst [vmem:[#allocation39_spill] sm:$0xff] %v20478_v38  ;;  %v20481_v18 = vadd.f32 %v14407_v49, %v20252_v55 }
 0x548   : > { %v20483_v53 = vpop.f32.mrf.mxu0  ;;  %v20485_v48 = vpop.f32.mrf.mxu1 }
 0x549   : > { %22951 = vst [vmem:[#allocation73_spill] sm:$0xff] %v20481_v18  ;;  %22952 = vst [vmem:[#allocation29_spill] sm:$0xff] %v20483_v53 }
 0x54a   : > { %22953 = vst [vmem:[#allocation89_spill] sm:$0xff] %v20485_v48  ;;  %v14410_v56 = vpop.f32.mrf.mxu0  ;;  %v20487_v59 = vpop.f32.mrf.mxu1 }
 0x54b   : > { %22954 = vst [vmem:[#allocation60_spill] sm:$0xff] %v20487_v59  ;;  %v20490_v47 = vadd.f32 %v14410_v56, %v20264_v61 }
 0x54c   : > { %v20492_v57 = vpop.f32.mrf.mxu0  ;;  %v20494_v45 = vpop.f32.mrf.mxu1 }
 0x54d   : > { %22955 = vst [vmem:[#allocation90_spill] sm:$0xff] %v20490_v47  ;;  %22956 = vst [vmem:[#allocation76_spill] sm:$0xff] %v20492_v57 }
 0x54e   : > { %22957 = vst [vmem:[#allocation43_spill] sm:$0xff] %v20494_v45  ;;  %v14413_v50 = vpop.f32.mrf.mxu0  ;;  %v20496_v26 = vpop.f32.mrf.mxu1 }
 0x54f   : > { %22958 = vst [vmem:[#allocation22_spill] sm:$0xff] %v20496_v26  ;;  %v20499_v55 = vadd.f32 %v14413_v50, %v20276_v24  ;;  %v9066_v24 = vld [vmem:[%s22360_s1 + $0xe78] sm:$0xff] }
 0x550   : > { %v20501_v49 = vpop.f32.mrf.mxu0  ;;  %v20503_v38 = vpop.f32.mrf.mxu1  ;;  %14989 = vmatprep.subr.mxu0 %v9066_v24 }
 0x551   : > { %22959 = vst [vmem:[#allocation57_spill] sm:$0xff] %v20499_v55  ;;  %22960 = vst [vmem:[#allocation28_spill] sm:$0xff] %v20501_v49  ;;  %14990 = vmatpush3.msra.mxu0 %v9066_v24 }
 0x552   : > { %22961 = vst [vmem:[#allocation105_spill] sm:$0xff] %v20503_v38  ;;  %v14416_v48 = vpop.f32.mrf.mxu0  ;;  %v20505_v18 = vpop.f32.mrf.mxu1 }
 0x553   : > { %22962 = vst [vmem:[#allocation58_spill] sm:$0xff] %v20505_v18  ;;  %v20508_v61 = vadd.f32 %v14416_v48, %v20288_v34  ;;  %v9065_v34 = vld [vmem:[%s22360_s1 + $0xe70] sm:$0xff] }
 0x554   : > { %v20510_v56 = vpop.f32.mrf.mxu0  ;;  %v20512_v59 = vpop.f32.mrf.mxu1  ;;  %14991 = vmatprep.subr.mxu0 %v9065_v34 }
 0x555   : > { %22963 = vst [vmem:[#allocation75_spill] sm:$0xff] %v20508_v61  ;;  %22964 = vst [vmem:[#allocation55_spill] sm:$0xff] %v20510_v56  ;;  %14992 = vmatpush3.msra.mxu0 %v9065_v34  ;;  %v9051_v61 = vld [vmem:[%s22360_s1 + $0xe00] sm:$0xff] }
 0x556   : > { %22965 = vst [vmem:[#allocation94_spill] sm:$0xff] %v20512_v59  ;;  %v14419_v45 = vpop.f32.mrf.mxu0  ;;  %v20514_v47 = vpop.f32.mrf.mxu1 }
 0x557   : > { %22966 = vst [vmem:[#allocation42_spill] sm:$0xff] %v20514_v47  ;;  %v20520_v50 = vadd.f32 %v14419_v45, %v20306_v35  ;;  %v9064_v35 = vld [vmem:[%s22360_s1 + $0xe68] sm:$0xff] }
 0x558   : > { %v20522_v38 = vpop.f32.mrf.mxu0  ;;  %v20524_v18 = vpop.f32.mrf.mxu1  ;;  %14993 = vmatprep.subr.mxu0 %v9064_v35 }
 0x559   : > { %22967 = vst [vmem:[#allocation77_spill] sm:$0xff] %v20520_v50  ;;  %22968 = vst [vmem:[#allocation31_spill] sm:$0xff] %v20522_v38  ;;  %14994 = vmatpush3.msra.mxu0 %v9064_v35  ;;  %v9061_v35 = vld [vmem:[%s22360_s1 + $0xe50] sm:$0xff] }
 0x55a   : > { %22969 = vst [vmem:[#allocation92_spill] sm:$0xff] %v20524_v18  ;;  %v14422_v48 = vpop.f32.mrf.mxu0  ;;  %v20529_v47 = vpop.f32.mrf.mxu1  ;;  %v9063_v18 = vld [vmem:[%s22360_s1 + $0xe60] sm:$0xff]  ;;  %v9053_v50 = vld [vmem:[%s22360_s1 + $0xe10] sm:$0xff] }
 0x55b   : > { %22970 = vst [vmem:[#allocation64_spill] sm:$0xff] %v20529_v47  ;;  %v20535_v45 = vadd.f32 %v14422_v48, %v20324_v13  ;;  %14995 = vmatprep.subr.mxu0 %v9063_v18  ;;  %v9062_v13 = vld [vmem:[%s22360_s1 + $0xe58] sm:$0xff] }
 0x55c   : > { %v20537_v59 = vpop.f32.mrf.mxu0  ;;  %v20539_v24 = vpop.f32.mrf.mxu1  ;;  %14996 = vmatpush3.msra.mxu0 %v9063_v18  ;;  %v9060_v18 = vld [vmem:[%s22360_s1 + $0xe48] sm:$0xff] }
 0x55d   : > { %22971 = vst [vmem:[#allocation93_spill] sm:$0xff] %v20535_v45  ;;  %22972 = vst [vmem:[#allocation4_spill] sm:$0xff] %v20537_v59  ;;  %14997 = vmatprep.subr.mxu0 %v9062_v13 }
 0x55e   : > { %22973 = vst [vmem:[#allocation48_spill] sm:$0xff] %v20539_v24  ;;  %v14425_v47 = vpop.f32.mrf.mxu0  ;;  %v20544_v34 = vpop.f32.mrf.mxu1  ;;  %14998 = vmatpush3.msra.mxu0 %v9062_v13  ;;  %v9059_v13 = vld [vmem:[%s22360_s1 + $0xe40] sm:$0xff] }
 0x55f   : > { %22974 = vst [vmem:[#allocation83_spill] sm:$0xff] %v20544_v34  ;;  %v20550_v48 = vadd.f32 %v14425_v47, %v20341_v12  ;;  %14999 = vmatprep.subr.mxu0 %v9061_v35 }
 0x560   : > { %v20552_v45 = vpop.f32.mrf.mxu0  ;;  %v20557_v24 = vpop.f32.mrf.mxu1  ;;  %15000 = vmatpush3.msra.mxu0 %v9061_v35  ;;  %v9058_v35 = vld [vmem:[%s22360_s1 + $0xe38] sm:$0xff] }
 0x561   : > { %22975 = vst [vmem:[#allocation61_spill] sm:$0xff] %v20550_v48  ;;  %22976 = vst [vmem:[#allocation30_spill] sm:$0xff] %v20552_v45  ;;  %15001 = vmatprep.subr.mxu0 %v9060_v18 }
 0x562   : > { %22977 = vst [vmem:[#allocation6_spill] sm:$0xff] %v20557_v24  ;;  %v14428_v34 = vpop.f32.mrf.mxu0  ;;  %15002 = vmatpush3.msra.mxu0 %v9060_v18  ;;  %v20570_v48 = vpop.f32.mrf.mxu1 }
 0x563   : > { %v20563_v12 = vadd.f32 %v14428_v34, %v20359_v10  ;;  %15003 = vmatprep.subr.mxu0 %v9059_v13  ;;  %v9057_v34 = vld [vmem:[%s22360_s1 + $0xe30] sm:$0xff] }
 0x564   : > { %v20565_v47 = vpop.f32.mrf.mxu0  ;;  %15004 = vmatpush3.msra.mxu0 %v9059_v13  ;;  %v20582_v18 = vpop.f32.mrf.mxu1  ;;  %v9056_v13 = vld [vmem:[%s22360_s1 + $0xe28] sm:$0xff] }
 0x565   : > { %22978 = vst [vmem:[#allocation62_spill] sm:$0xff] %v20563_v12  ;;  %22979 = vst [vmem:[#allocation7_spill] sm:$0xff] %v20565_v47  ;;  %15005 = vmatprep.subr.mxu0 %v9058_v35 }
 0x566   : > { %v20572_v24 = vpop.f32.mrf.mxu0  ;;  %15006 = vmatpush3.msra.mxu0 %v9058_v35  ;;  %v9055_v35 = vld [vmem:[%s22360_s1 + $0xe20] sm:$0xff]  ;;  %v20594_v45 = vpop.f32.mrf.mxu1 }
 0x567   : > { %15007 = vmatprep.subr.mxu0 %v9057_v34  ;;  %22980 = vst [vmem:[#allocation59_spill] sm:$0xff] %v20594_v45 }
 0x568   : > { %v20577_v10 = vpop.f32.mrf.mxu0  ;;  %15008 = vmatpush3.msra.mxu0 %v9057_v34  ;;  %v9054_v34 = vld [vmem:[%s22360_s1 + $0xe18] sm:$0xff]  ;;  %v20606_v38 = vpop.f32.mrf.mxu1 }
 0x569   : > { %15009 = vmatprep.subr.mxu0 %v9056_v13  ;;  %22982 = vst [vmem:[#allocation45_spill] sm:$0xff] %v20606_v38 }
 0x56a   : > { %v20584_v12 = vpop.f32.mrf.mxu0  ;;  %15010 = vmatpush3.msra.mxu0 %v9056_v13  ;;  %v20618_v55 = vpop.f32.mrf.mxu1 }
 0x56b   : > { %15011 = vmatprep.subr.mxu0 %v9055_v35  ;;  %22985 = vst [vmem:[#allocation95_spill] sm:$0xff] %v20618_v55  ;;  %v23018_v55 = vld [vmem:[#allocation78_spill] sm:$0xff] }
 0x56c   : > { %v20589_v47 = vpop.f32.mrf.mxu0  ;;  %15012 = vmatpush3.msra.mxu0 %v9055_v35  ;;  %v9052_v35 = vld [vmem:[%s22360_s1 + $0xe08] sm:$0xff] }
 0x56d   : > { %15013 = vmatprep.subr.mxu0 %v9054_v34 }
 0x56e   : > { %v20596_v59 = vpop.f32.mrf.mxu0  ;;  %15014 = vmatpush3.msra.mxu0 %v9054_v34 }
 0x56f   : > { %15015 = vmatprep.subr.mxu0 %v9053_v50 }
 0x570   : > { %v20604_v13 = vpop.f32.mrf.mxu0  ;;  %15016 = vmatpush3.msra.mxu0 %v9053_v50  ;;  %v20624_v50 = vpop.f32.mrf.mxu1 }
 0x571   : > { %22981 = vst [vmem:[#allocation84_spill] sm:$0xff] %v20604_v13  ;;  %15017 = vmatprep.subr.mxu0 %v9052_v35  ;;  %22988 = vst [vmem:[#allocation85_spill] sm:$0xff] %v20624_v50  ;;  %v23023_v13 = vld [vmem:[#allocation40_spill] sm:$0xff] }
 0x572   : > { %v20608_v26 = vpop.f32.mrf.mxu0  ;;  %15018 = vmatpush3.msra.mxu0 %v9052_v35  ;;  %v20630_v21 = vpop.f32.mrf.mxu1 }
 0x573   : > { %22983 = vst [vmem:[#allocation9_spill] sm:$0xff] %v20608_v26  ;;  %15019 = vmatprep.subr.mxu0 %v9051_v61  ;;  %22991 = vst [vmem:[#allocation32_spill] sm:$0xff] %v20630_v21 }
 0x574   : > { %v20616_v56 = vpop.f32.mrf.mxu0  ;;  %15020 = vmatpush3.msra.mxu0 %v9051_v61  ;;  %v20636_v35 = vpop.f32.mrf.mxu1 }
 0x575   : > { %22984 = vst [vmem:[#allocation33_spill] sm:$0xff] %v20616_v56  ;;  %22994 = vst [vmem:[#allocation19_spill] sm:$0xff] %v20636_v35 }
 0x576   : > { %v20620_v34 = vpop.f32.mrf.mxu0  ;;  %v20642_v61 = vpop.f32.mrf.mxu1 }
 0x577   : > { %22986 = vst [vmem:[#allocation68_spill] sm:$0xff] %v20620_v34  ;;  %22997 = vst [vmem:[#allocation99_spill] sm:$0xff] %v20642_v61 }
 0x578   : > { %v20622_v49 = vpop.f32.mrf.mxu0 }
 0x579   : > { %22987 = vst [vmem:[#allocation96_spill] sm:$0xff] %v20622_v49 }
 0x57a   : > { %v20626_v57 = vpop.f32.mrf.mxu0 }
 0x57b   : > { %22989 = vst [vmem:[#allocation98_spill] sm:$0xff] %v20626_v57  ;;  %v20648_v57 = vpop.f32.mrf.mxu1 }
 0x57c   : > { %v20628_v53 = vpop.f32.mrf.mxu0  ;;  %23000 = vst [vmem:[#allocation11_spill] sm:$0xff] %v20648_v57  ;;  %v23017_v57 = vld [vmem:[#allocation36_spill] sm:$0xff] }
 0x57d   : > { %22990 = vst [vmem:[#allocation65_spill] sm:$0xff] %v20628_v53 }
 0x57e   : > { %v20632_v36 = vpop.f32.mrf.mxu0 }
 0x57f   : > { %22992 = vst [vmem:[#allocation18_spill] sm:$0xff] %v20632_v36  ;;  %v20654_v36 = vpop.f32.mrf.mxu1 }
 0x580   : > { %v20634_v60 = vpop.f32.mrf.mxu0  ;;  %23003 = vst [vmem:[#allocation82_spill] sm:$0xff] %v20654_v36 }
 0x581   : > { %22993 = vst [vmem:[#allocation16_spill] sm:$0xff] %v20634_v60 }
 0x582   : > { %v20638_v56 = vpop.f32.mrf.mxu0 }
 0x583   : > { %22995 = vst [vmem:[#allocation63_spill] sm:$0xff] %v20638_v56  ;;  %v20660_v56 = vpop.f32.mrf.mxu1 }
 0x584   : > { %v20640_v34 = vpop.f32.mrf.mxu0  ;;  %23006 = vst [vmem:[#allocation25_spill] sm:$0xff] %v20660_v56 }
 0x585   : > { %22996 = vst [vmem:[#allocation34_spill] sm:$0xff] %v20640_v34 }
 0x586   : > { %v20644_v49 = vpop.f32.mrf.mxu0 }
 0x587   : > { %22998 = vst [vmem:[#allocation100_spill] sm:$0xff] %v20644_v49  ;;  %v20666_v49 = vpop.f32.mrf.mxu1 }
 0x588   : > { %v20646_v50 = vpop.f32.mrf.mxu0  ;;  %23009 = vst [vmem:[#allocation106_spill] sm:$0xff] %v20666_v49 }
 0x589   : > { %22999 = vst [vmem:[#allocation5_spill] sm:$0xff] %v20646_v50 }
 0x58a   : > { %v20650_v53 = vpop.f32.mrf.mxu0 }
 0x58b   : > { %23001 = vst [vmem:[#allocation13_spill] sm:$0xff] %v20650_v53 }
 0x58c   : > { %v20652_v21 = vpop.f32.mrf.mxu0 }
 0x58d   : > { %23002 = vst [vmem:[#allocation10_spill] sm:$0xff] %v20652_v21  ;;  %v9612_v21 = vld [vmem:[%s22360_s1 + $0x1178] sm:$0xff] }
 0x58e   : > { %v20656_v60 = vpop.f32.mrf.mxu0  ;;  %15149 = vmatprep.subr.mxu0 %v9612_v21  ;;  %v6041_v21 = vadd.f32 %v23018_v55, %v23017_v57  ;;  %v23028_v55 = vld [vmem:[#allocation41_spill] sm:$0xff] }
 0x58f   : > { %23004 = vst [vmem:[#allocation12_spill] sm:$0xff] %v20656_v60  ;;  %v20675_v60 = vpop.f32.mrf.mxu1 }
 0x590   : > { %v20658_v35 = vpop.f32.mrf.mxu0  ;;  %23012 = vst [vmem:[#allocation109_spill] sm:$0xff] %v20675_v60  ;;  %v23021_v60 = vld [vmem:[#allocation14_spill] sm:$0xff] }
 0x591   : > { %23005 = vst [vmem:[#allocation20_spill] sm:$0xff] %v20658_v35  ;;  %v20684_v49 = vpop.f32.mrf.mxu1 }
 0x592   : > { %v20662_v34 = vpop.f32.mrf.mxu0  ;;  %23015 = vst [vmem:[#allocation112_spill] sm:$0xff] %v20684_v49  ;;  %v23027_v49 = vld [vmem:[#allocation52_spill] sm:$0xff] }
 0x593   : > { %23007 = vst [vmem:[#allocation38_spill] sm:$0xff] %v20662_v34  ;;  %v6659_v34 = vadd.f32 %v20148_v9, %v20157_v40  ;;  %v6661_v9 = vadd.f32 %v20154_v46, %v20167_v28  ;;  %v7206_v40 = vadd.f32 %v20343_v20, %v20367_v54  ;;  %v6663_v28 = vadd.f32 %v20164_v42, %v20177_v39 }
 0x594   : > { %v20664_v61 = vpop.f32.mrf.mxu0  ;;  %v20732_v39 = vadd.f32 %v20207_v7, %v20223_v8 }
 0x595   : > { %23008 = vst [vmem:[#allocation37_spill] sm:$0xff] %v20664_v61  ;;  %v6932_v61 = vadd.f32 %v20369_v5, %v6659_v34  ;;  %v23024_v5 = vld [vmem:[#allocation17_spill] sm:$0xff]  ;;  %v23025_v34 = vld [vmem:[#allocation72_spill] sm:$0xff]  ;;  %v6934_v46 = vadd.f32 %v20384_v58, %v6661_v9  ;;  %v7515_v20 = vadd.f32 %v20572_v24, %v7206_v40  ;;  %v20725_v58 = vadd.f32 %v20194_v43, %v20210_v37 }
 0x596   : > { %v20668_v50 = vpop.f32.mrf.mxu0  ;;  %v6936_v43 = vadd.f32 %v20402_v2, %v6663_v28 }
 0x597   : > { %23010 = vst [vmem:[#allocation107_spill] sm:$0xff] %v20668_v50  ;;  %v23016_v50 = vld [vmem:[#allocation104_spill] sm:$0xff]  ;;  %v7205_v54 = vadd.f32 %v20354_v52, %v6932_v61  ;;  %v7207_v8 = vadd.f32 %v20371_v33, %v6934_v46  ;;  %v7788_v52 = vadd.f32 %v20570_v48, %v7515_v20  ;;  %v23040_v46 = vld [vmem:[#allocation97_spill] sm:$0xff] }
 0x598   : > { %v20673_v53 = vpop.f32.mrf.mxu0  ;;  %v8094_v36 = vsub.s32 2, %v23016_v50  ;;  %v6071_v50 = vadd.f32 %v23025_v34, %v23024_v5  ;;  %v23036_v61 = vld [vmem:[#allocation84_spill] sm:$0xff]  ;;  %v23041_v20 = vld [vmem:[#allocation9_spill] sm:$0xff] }
 0x599   : > { %23011 = vst [vmem:[#allocation108_spill] sm:$0xff] %v20673_v53  ;;  %v23020_v53 = vld [vmem:[#allocation79_spill] sm:$0xff]  ;;  %v7516_v2 = vadd.f32 %v20589_v47, %v7207_v8 }
 0x59a   : > { %v20677_v35 = vpop.f32.mrf.mxu0  ;;  %v6051_v38 = vadd.f32 %v23021_v60, %v23020_v53  ;;  %v23031_v53 = vld [vmem:[#allocation88_spill] sm:$0xff]  ;;  %v23033_v47 = vld [vmem:[#allocation59_spill] sm:$0xff] }
 0x59b   : > { %23013 = vst [vmem:[#allocation110_spill] sm:$0xff] %v20677_v35  ;;  %v23022_v35 = vld [vmem:[#allocation24_spill] sm:$0xff]  ;;  %v20707_v60 = vadd.f32 %v23031_v53, %v23030_v44  ;;  %v6667_v44 = vadd.f32 %v20184_v62, %v20197_v31  ;;  %v6374_v62 = vadd.f32 %v20299_v27, %v6071_v50  ;;  %v20742_v31 = vadd.f32 %v20220_v11, %v20236_v63  ;;  %v23035_v50 = vld [vmem:[#allocation67_spill] sm:$0xff] }
 0x59c   : > { %v20681_v56 = vpop.f32.mrf.mxu0  ;;  %v6061_v1 = vadd.f32 %v23023_v13, %v23022_v35  ;;  %v20716_v35 = vpop.f32.mrf.mxu1  ;;  %v6370_v42 = vadd.f32 %v20272_v22, %v6051_v38  ;;  %v20759_v11 = vadd.f32 %v20233_v25, %v20250_v14  ;;  %v7209_v14 = vadd.f32 %v20386_v16, %v6936_v43  ;;  %v23038_v16 = vld [vmem:[#allocation74_spill] sm:$0xff] }
 0x59d   : > { %23014 = vst [vmem:[#allocation111_spill] sm:$0xff] %v20681_v56  ;;  %v23026_v56 = vld [vmem:[#allocation70_spill] sm:$0xff]  ;;  %v6940_v28 = vadd.f32 %v23040_v46, %v6667_v44  ;;  %v23045_v44 = vld [vmem:[#allocation33_spill] sm:$0xff] }
 0x59e   : > { %v20689_v26 = vpop.f32.mrf.mxu0  ;;  %v6081_v57 = vadd.f32 %v23027_v49, %v23026_v56  ;;  %v6368_v49 = vadd.f32 %v20260_v0, %v6041_v21  ;;  %v7514_v0 = vadd.f32 %v20577_v10, %v7205_v54  ;;  %v20748_v22 = vpop.f32.mrf.mxu1  ;;  %v23037_v21 = vld [vmem:[#allocation80_spill] sm:$0xff] }
 0x59f   : > { %23019 = vst [vmem:[#allocation36_spill] sm:$0xff] %v20689_v26  ;;  %v23029_v26 = vld [vmem:[#allocation66_spill] sm:$0xff]  ;;  %v7212_v9 = vadd.f32 %v23038_v16, %v23037_v21  ;;  %v23052_v16 = vld [vmem:[#allocation32_spill] sm:$0xff] }
 0x5a0   : > { %v6091_v45 = vadd.f32 %v23029_v26, %v23028_v55  ;;  %v20709_v13 = vpop.f32.mrf.mxu0  ;;  %v6665_v26 = vadd.f32 %v20174_v19, %v20187_v29  ;;  %v7208_v19 = vadd.f32 %v20361_v6, %v20382_v30  ;;  %v6372_v29 = vadd.f32 %v20284_v51, %v6061_v1  ;;  %v15504_v51 = vld [vmem:[%s22361_s2] sm:$0xf]  ;;  %v23039_v55 = vld [vmem:[#allocation45_spill] sm:$0xff] }
 0x5a1   : > { %v20754_v27 = vrot.slane %v15504_v51, %v8094_v36  ;;  %v6376_v1 = vadd.f32 %v20317_v41, %v6081_v57  ;;  %v20762_v63 = vadd.f32 %v20248_v17, %v6368_v49  ;;  %v7210_v6 = vadd.f32 %v20376_v3, %v20397_v15  ;;  %v23032_v3 = vld [vmem:[#allocation46_spill] sm:$0xff] }
 0x5a2   : > { %v20727_v56 = vpop.f32.mrf.mxu0  ;;  %v7517_v7 = vadd.f32 %v20584_v12, %v7208_v19  ;;  %v20767_v30 = vadd.f32 %v20262_v4, %v6370_v42  ;;  %v7787_v38 = vadd.f32 %v20582_v18, %v7514_v0  ;;  %v6938_v41 = vadd.f32 %v20420_v23, %v6665_v26  ;;  %v20780_v4 = vpop.f32.mrf.mxu1  ;;  %v23034_v18 = vld [vmem:[#allocation102_spill] sm:$0xff]  ;;  %v23043_v0 = vld [vmem:[#allocation95_spill] sm:$0xff] }
 0x5a3   : > { %v20773_v25 = vadd.f32 %v20274_v32, %v6372_v29  ;;  %v7519_v17 = vadd.f32 %v20596_v59, %v7210_v6  ;;  %v20778_v15 = vadd.f32 %v23032_v3, %v6374_v62  ;;  %v6378_v23 = vadd.f32 %v23034_v18, %v6091_v45  ;;  %v23042_v45 = vld [vmem:[#allocation91_spill] sm:$0xff]  ;;  %v23046_v6 = vld [vmem:[#allocation101_spill] sm:$0xff] }
 0x5a4   : > { %v20744_v37 = vpop.f32.mrf.mxu0  ;;  %v7790_v10 = vadd.f32 %v23033_v47, %v7517_v7  ;;  %v20786_v32 = vadd.f32 %v23035_v50, %v6376_v1  ;;  %v7518_v59 = vadd.f32 %v23036_v61, %v7209_v14  ;;  %v7789_v53 = vadd.f32 %v23039_v55, %v7516_v2  ;;  %v5560_v26 = vld [vmem:[#allocation3 + $0x21] sm:$0xff]  ;;  %v20797_v29 = vpop.f32.mrf.mxu1  ;;  %v5562_v61 = vld [vmem:[#allocation3 + $0x39] sm:$0xff] }
 0x5a5   : > { %v7521_v54 = vadd.f32 %v23041_v20, %v7212_v9  ;;  %v7211_v49 = vadd.f32 %v23042_v45, %v6938_v41  ;;  %v7792_v19 = vadd.f32 %v23043_v0, %v7519_v17  ;;  %v23048_v41 = vld [vmem:[#allocation85_spill] sm:$0xff]  ;;  %v23056_v20 = vld [vmem:[#allocation27_spill] sm:$0xff] }
 0x5a6   : > { %v14703_v33 = vpop.f32.mrf.mxu0  ;;  %v7791_v17 = vadd.f32 %v23048_v41, %v7518_v59  ;;  %v20818_v59 = vpop.f32.mrf.mxu1 }
 0x5a7   : > { %v8061_v36 = vadd.f32 %v14703_v33, %v7788_v52  ;;  %v23044_v52 = vld [vmem:[#allocation50_spill] sm:$0xff]  ;;  %v7520_v1 = vadd.f32 %v23045_v44, %v7211_v49  ;;  %v23047_v33 = vld [vmem:[#allocation81_spill] sm:$0xff]  ;;  %v7794_v9 = vadd.f32 %v23052_v16, %v7521_v54  ;;  %v23066_v16 = vld [vmem:[#allocation11_spill] sm:$0xff] }
 0x5a8   : > { %v7901_v24 = vpop.f32.mrf.mxu0  ;;  %v20803_v51 = vadd.f32 %v23044_v52, %v6378_v23  ;;  %v7214_v2 = vadd.f32 %v23047_v33, %v23046_v6  ;;  %v23051_v23 = vld [vmem:[#allocation69_spill] sm:$0xff]  ;;  %v23059_v52 = vld [vmem:[#allocation98_spill] sm:$0xff]  ;;  %v23060_v6 = vld [vmem:[#allocation56_spill] sm:$0xff] }
 0x5a9   : > { %v8097_v48 = vadd.f32 %v20754_v27, %v8061_v36  ;;  %v8060_v12 = vadd.f32 %v7901_v24, %v7787_v38  ;;  %v5559_v36 = vld [vmem:[#allocation3 + $0x19] sm:$0xff]  ;;  %v7213_v50 = vadd.f32 %v23051_v23, %v6940_v28  ;;  %v23055_v28 = vld [vmem:[#allocation8_spill] sm:$0xff] }
 0x5aa   : > { %v14706_v40 = vpop.f32.mrf.mxu0  ;;  %v7216_v45 = vadd.f32 %v23056_v20, %v23055_v28  ;;  %v5561_v49 = vld [vmem:[#allocation3 + $0x31] sm:$0xff]  ;;  %v23068_v28 = vld [vmem:[#allocation18_spill] sm:$0xff] }
 0x5ab   : > { %v8129_v5 = vmax.f32 %v8097_v48, 0.0  ;;  %v8096_v34 = vadd.f32 %v20754_v27, %v8060_v12  ;;  %v8063_v57 = vadd.f32 %v14706_v40, %v7790_v10  ;;  %v23049_v12 = vld [vmem:[#allocation103_spill] sm:$0xff]  ;;  %v23050_v10 = vld [vmem:[#allocation68_spill] sm:$0xff] }
 0x5ac   : > { %v7911_v42 = vpop.f32.mrf.mxu0  ;;  %v6942_v47 = vadd.f32 %v23049_v12, %v20725_v58  ;;  %v7523_v18 = vadd.f32 %v23050_v10, %v7214_v2  ;;  %v23053_v58 = vld [vmem:[#allocation49_spill] sm:$0xff]  ;;  %v7525_v44 = vadd.f32 %v23059_v52, %v7216_v45  ;;  %v23062_v12 = vld [vmem:[#allocation47_spill] sm:$0xff] }
 0x5ad   : > { %v20799_v62 = vadd.f32 %v8129_v5, %v5560_v26  ;;  %v8128_v43 = vmax.f32 %v8096_v34, 0.0  ;;  %v8099_v7 = vadd.f32 %v20754_v27, %v8063_v57  ;;  %v8062_v8 = vadd.f32 %v7911_v42, %v7789_v53  ;;  %v23054_v53 = vld [vmem:[#allocation96_spill] sm:$0xff]  ;;  %v23057_v26 = vld [vmem:[#allocation19_spill] sm:$0xff]  ;;  %v23063_v10 = vld [vmem:[#allocation65_spill] sm:$0xff] }
 0x5ae   : > { %v14709_v38 = vpop.f32.mrf.mxu0  ;;  %v6380_v55 = vadd.f32 %v23053_v58, %v20707_v60  ;;  %v7522_v46 = vadd.f32 %v23054_v53, %v7213_v50  ;;  %v7793_v42 = vadd.f32 %v23057_v26, %v7520_v1  ;;  %v7215_v33 = vadd.f32 %v23060_v6, %v6942_v47  ;;  %v5564_v2 = vld [vmem:[#allocation3 + $0x51] sm:$0xff]  ;;  %v20839_v1 = vpop.f32.mrf.mxu1  ;;  %v23065_v50 = vld [vmem:[#allocation87_spill] sm:$0xff] }
 0x5af   : > { %8193 = vst [vmem:[#allocation3 + $0x21] sm:$0xff] %v20799_v62  ;;  %v20810_v14 = vadd.f32 %v8128_v43, %v5559_v36  ;;  %v8131_v24 = vmax.f32 %v8099_v7, 0.0  ;;  %v8098_v3 = vadd.f32 %v20754_v27, %v8062_v8  ;;  %v8065_v48 = vadd.f32 %v14709_v38, %v7792_v19  ;;  %v23058_v8 = vld [vmem:[#allocation26_spill] sm:$0xff]  ;;  %v23061_v38 = vld [vmem:[#allocation99_spill] sm:$0xff]  ;;  %v23064_v47 = vld [vmem:[#allocation53_spill] sm:$0xff] }
 0x5b0   : > { %v7921_v21 = vpop.f32.mrf.mxu0  ;;  %v6944_v60 = vadd.f32 %v23058_v8, %v20732_v39  ;;  %v7796_v41 = vadd.f32 %v23061_v38, %v7523_v18  ;;  %v20846_v39 = vadd.f32 %v23062_v12, %v6380_v55  ;;  %v7524_v23 = vadd.f32 %v23063_v10, %v7215_v33  ;;  %v23067_v55 = vld [vmem:[#allocation51_spill] sm:$0xff]  ;;  %v23069_v45 = vld [vmem:[#allocation21_spill] sm:$0xff]  ;;  %v23071_v33 = vld [vmem:[#allocation16_spill] sm:$0xff] }
 0x5b1   : > { %8192 = vst [vmem:[#allocation3 + $0x19] sm:$0xff] %v20810_v14  ;;  %v20821_v40 = vadd.f32 %v8131_v24, %v5562_v61  ;;  %v8130_v5 = vmax.f32 %v8098_v3, 0.0  ;;  %v8101_v34 = vadd.f32 %v20754_v27, %v8065_v48  ;;  %v8064_v57 = vadd.f32 %v7921_v21, %v7791_v17  ;;  %v5563_v21 = vld [vmem:[#allocation3 + $0x49] sm:$0xff] }
 0x5b2   : > { %v14712_v54 = vpop.f32.mrf.mxu0  ;;  %v7218_v61 = vadd.f32 %v23065_v50, %v23064_v47  ;;  %v6946_v53 = vadd.f32 %v23067_v55, %v20742_v31 }
 0x5b3   : > { %8195 = vst [vmem:[#allocation3 + $0x39] sm:$0xff] %v20821_v40  ;;  %v20831_v0 = vadd.f32 %v8130_v5, %v5561_v49  ;;  %v8133_v19 = vmax.f32 %v8101_v34, 0.0  ;;  %v8100_v43 = vadd.f32 %v20754_v27, %v8064_v57  ;;  %v8067_v7 = vadd.f32 %v14712_v54, %v7794_v9  ;;  %v5566_v54 = vld [vmem:[#allocation3 + $0x69] sm:$0xff] }
 0x5b4   : > { %v7931_v36 = vpop.f32.mrf.mxu0  ;;  %v7795_v9 = vadd.f32 %v23066_v16, %v7522_v46  ;;  %v7527_v20 = vadd.f32 %v23068_v28, %v7218_v61  ;;  %v7217_v49 = vadd.f32 %v23069_v45, %v6944_v60  ;;  %v8756_v60 = vld [vmem:[%s22360_s1 + $0x10f0] sm:$0xff]  ;;  %v23075_v61 = vld [vmem:[#allocation71_spill] sm:$0xff] }
 0x5b5   : > { %8194 = vst [vmem:[#allocation3 + $0x31] sm:$0xff] %v20831_v0  ;;  %v20842_v17 = vadd.f32 %v8133_v19, %v5564_v2  ;;  %v8132_v24 = vmax.f32 %v8100_v43, 0.0  ;;  %v8103_v3 = vadd.f32 %v20754_v27, %v8067_v7  ;;  %v8066_v48 = vadd.f32 %v7931_v36, %v7793_v42  ;;  %v23070_v19 = vld [vmem:[#allocation82_spill] sm:$0xff]  ;;  %v20861_v7 = vpop.f32.mrf.mxu1  ;;  %v23073_v36 = vld [vmem:[#allocation44_spill] sm:$0xff]  ;;  %v23077_v16 = vld [vmem:[#allocation63_spill] sm:$0xff] }
 0x5b6   : > { %v14715_v18 = vpop.f32.mrf.mxu0  ;;  %v7798_v46 = vadd.f32 %v23070_v19, %v7525_v44  ;;  %v7526_v2 = vadd.f32 %v23071_v33, %v7217_v49  ;;  %v23072_v44 = vld [vmem:[#allocation54_spill] sm:$0xff] }
 0x5b7   : > { %8197 = vst [vmem:[#allocation3 + $0x51] sm:$0xff] %v20842_v17  ;;  %v20853_v5 = vadd.f32 %v8132_v24, %v5563_v21  ;;  %v8135_v34 = vmax.f32 %v8103_v3, 0.0  ;;  %v8102_v57 = vadd.f32 %v20754_v27, %v8066_v48  ;;  %v8069_v58 = vadd.f32 %v14715_v18, %v7796_v41  ;;  %v5565_v41 = vld [vmem:[#allocation3 + $0x61] sm:$0xff]  ;;  %v23074_v3 = vld [vmem:[#allocation25_spill] sm:$0xff] }
 0x5b8   : > { %v7941_v26 = vpop.f32.mrf.mxu0  ;;  %v8226_v42 = vld [vmem:[#allocation3 + $0x18] sm:$0xff]  ;;  %v8227_v43 = vld [vmem:[#allocation3 + $0x20] sm:$0xff]  ;;  %v7220_v38 = vadd.f32 %v23073_v36, %v23072_v44  ;;  %v7797_v48 = vadd.f32 %v23074_v3, %v7524_v23 }
 0x5b9   : > { %8196 = vst [vmem:[#allocation3 + $0x49] sm:$0xff] %v20853_v5  ;;  %v20864_v8 = vadd.f32 %v8135_v34, %v5566_v54  ;;  %v8134_v52 = vmax.f32 %v8102_v57, 0.0  ;;  %v8105_v6 = vadd.f32 %v20754_v27, %v8069_v58  ;;  %v8068_v31 = vadd.f32 %v7941_v26, %v7795_v9  ;;  %14781 = vmatprep.mubr.f32.mxu1 %v8226_v42  ;;  %v23076_v21 = vld [vmem:[#allocation29_spill] sm:$0xff]  ;;  %v23078_v34 = vld [vmem:[#allocation15_spill] sm:$0xff]  ;;  %v23079_v28 = vld [vmem:[#allocation106_spill] sm:$0xff]  ;;  %v20888_v54 = vpop.f32.mrf.mxu1 }
 0x5ba   : > { %14864 = vmatprep.mubr.f32.mxu0 %v8226_v42  ;;  %v14718_v24 = vpop.f32.mrf.mxu0  ;;  %14782 = vmatmul.mubr.f32.vlgmr.msra.gmra.mxu1 %v8227_v43  ;;  %v6948_v18 = vadd.f32 %v23076_v21, %v20759_v11  ;;  %v7529_v9 = vadd.f32 %v23077_v16, %v7220_v38  ;;  %v7219_v57 = vadd.f32 %v23078_v34, %v6946_v53  ;;  %v5568_v58 = vld [vmem:[#allocation3 + $0x81] sm:$0xff]  ;;  %v8755_v53 = vld [vmem:[%s22360_s1 + $0x10e8] sm:$0xff] }
 0x5bb   : > { %14865 = vmatmul.mubr.f32.gmra.mxu0 %v8227_v43  ;;  %8199 = vst [vmem:[#allocation3 + $0x69] sm:$0xff] %v20864_v8  ;;  %v20875_v12 = vadd.f32 %v8134_v52, %v5565_v41  ;;  %v8137_v10 = vmax.f32 %v8105_v6, 0.0  ;;  %v8104_v47 = vadd.f32 %v20754_v27, %v8068_v31  ;;  %v8071_v50 = vadd.f32 %v14718_v24, %v7798_v46  ;;  %v23081_v43 = vld [vmem:[#allocation73_spill] sm:$0xff]  ;;  %v23082_v52 = vld [vmem:[#allocation35_spill] sm:$0xff] }
 0x5bc   : > { %14910 = vmatpush3.msra.mxu1 %v23075_v61  ;;  %v7951_v55 = vpop.f32.mrf.mxu0  ;;  %v20883_v23 = vld [vmem:[#allocation3 + $0x30] sm:$0xff]  ;;  %v7800_v45 = vadd.f32 %v23079_v28, %v7527_v20  ;;  %v20886_v49 = vld [vmem:[#allocation3 + $0x38] sm:$0xff]  ;;  %v23080_v20 = vld [vmem:[#allocation34_spill] sm:$0xff]  ;;  %v7222_v6 = vadd.f32 %v23082_v52, %v23081_v43  ;;  %v20918_v28 = vpop.f32.mrf.mxu1 }
 0x5bd   : > { %14911 = vmatprep.subr.mxu1 %v8756_v60  ;;  %8198 = vst [vmem:[#allocation3 + $0x61] sm:$0xff] %v20875_v12  ;;  %v20891_v26 = vadd.f32 %v8137_v10, %v5568_v58  ;;  %v8136_v11 = vmax.f32 %v8104_v47, 0.0  ;;  %v8107_v42 = vadd.f32 %v20754_v27, %v8071_v50  ;;  %v8070_v19 = vadd.f32 %v7951_v55, %v7797_v48  ;;  %v5567_v31 = vld [vmem:[#allocation3 + $0x79] sm:$0xff]  ;;  %v23084_v48 = vld [vmem:[#allocation76_spill] sm:$0xff]  ;;  %v23086_v61 = vld [vmem:[#allocation23_spill] sm:$0xff] }
 0x5be   : > { %14784 = vmatprep.mubr.f32.mxu1 %v20883_v23  ;;  %14867 = vmatprep.mubr.f32.mxu0 %v20883_v23  ;;  %v7528_v46 = vadd.f32 %v23080_v20, %v7219_v57  ;;  %v14721_v33 = vpop.f32.mrf.mxu0  ;;  %v23083_v44 = vld [vmem:[#allocation109_spill] sm:$0xff]  ;;  %v6950_v10 = vadd.f32 %v23084_v48, %v20762_v63  ;;  %v23085_v47 = vld [vmem:[#allocation100_spill] sm:$0xff]  ;;  %v7221_v21 = vadd.f32 %v23086_v61, %v6948_v18  ;;  %v23090_v20 = vld [vmem:[#allocation39_spill] sm:$0xff] }
 0x5bf   : > { %14785 = vmatmul.mubr.f32.gmra.mxu1 %v20886_v49  ;;  %14868 = vmatmul.mubr.f32.gmra.mxu0 %v20886_v49  ;;  %v7799_v36 = vadd.f32 %v23083_v44, %v7526_v2  ;;  %8201 = vst [vmem:[#allocation3 + $0x81] sm:$0xff] %v20891_v26  ;;  %v20906_v38 = vadd.f32 %v8136_v11, %v5567_v31  ;;  %v8139_v41 = vmax.f32 %v8107_v42, 0.0  ;;  %v5570_v16 = vld [vmem:[#allocation3 + $0x99] sm:$0xff]  ;;  %v23087_v2 = vld [vmem:[#allocation112_spill] sm:$0xff] }
 0x5c0   : > { %v8106_v24 = vadd.f32 %v20754_v27, %v8070_v19  ;;  %v8073_v3 = vadd.f32 %v14721_v33, %v7800_v45  ;;  %14912 = vmatpush3.msra.mxu1 %v8756_v60  ;;  %v7531_v50 = vadd.f32 %v23085_v47, %v7222_v6  ;;  %v7961_v34 = vpop.f32.mrf.mxu0  ;;  %v20913_v57 = vld [vmem:[#allocation3 + $0x48] sm:$0xff]  ;;  %v7802_v58 = vadd.f32 %v23087_v2, %v7529_v9  ;;  %v20916_v55 = vld [vmem:[#allocation3 + $0x50] sm:$0xff]  ;;  %v23088_v9 = vld [vmem:[#allocation5_spill] sm:$0xff] }
 0x5c1   : > { %14913 = vmatprep.subr.mxu1 %v8755_v53  ;;  %8200 = vst [vmem:[#allocation3 + $0x79] sm:$0xff] %v20906_v38  ;;  %v20921_v60 = vadd.f32 %v8139_v41, %v5570_v16  ;;  %v8072_v11 = vadd.f32 %v7961_v34, %v7799_v36  ;;  %14787 = vmatprep.mubr.f32.mxu1 %v20913_v57  ;;  %v8754_v18 = vld [vmem:[%s22360_s1 + $0x10e0] sm:$0xff]  ;;  %v23089_v19 = vld [vmem:[#allocation90_spill] sm:$0xff]  ;;  %v23092_v48 = vld [vmem:[#allocation13_spill] sm:$0xff] }
 0x5c2   : > { %v8138_v63 = vmax.f32 %v8106_v24, 0.0  ;;  %v8109_v45 = vadd.f32 %v20754_v27, %v8073_v3  ;;  %14870 = vmatprep.mubr.f32.mxu0 %v20913_v57  ;;  %v7530_v42 = vadd.f32 %v23088_v9, %v7221_v21  ;;  %v7224_v43 = vadd.f32 %v23090_v20, %v23089_v19  ;;  %v5569_v52 = vld [vmem:[#allocation3 + $0x91] sm:$0xff]  ;;  %v14724_v6 = vpop.f32.mrf.mxu0  ;;  %14914 = vmatpush3.msra.mxu1 %v8755_v53  ;;  %v5571_v20 = vld [vmem:[#allocation3 + $0xa9] sm:$0xff] }
 0x5c3   : > { %14788 = vmatmul.mubr.f32.gmra.mxu1 %v20916_v55  ;;  %14871 = vmatmul.mubr.f32.gmra.mxu0 %v20916_v55  ;;  %v7801_v31 = vadd.f32 %v20716_v35, %v7528_v46  ;;  %8203 = vst [vmem:[#allocation3 + $0x99] sm:$0xff] %v20921_v60  ;;  %v8108_v36 = vadd.f32 %v20754_v27, %v8072_v11  ;;  %v23091_v24 = vld [vmem:[#allocation28_spill] sm:$0xff]  ;;  %v23093_v61 = vld [vmem:[#allocation89_spill] sm:$0xff] }
 0x5c4   : > { %v20936_v33 = vadd.f32 %v8138_v63, %v5569_v52  ;;  %v8141_v44 = vmax.f32 %v8109_v45, 0.0  ;;  %v8075_v41 = vadd.f32 %v14724_v6, %v7802_v58  ;;  %v6952_v3 = vadd.f32 %v23091_v24, %v20767_v30  ;;  %v5572_v16 = vld [vmem:[#allocation3 + $0xb1] sm:$0xff]  ;;  %v7971_v34 = vpop.f32.mrf.mxu0  ;;  %v20943_v2 = vld [vmem:[#allocation3 + $0x60] sm:$0xff]  ;;  %v20946_v46 = vld [vmem:[#allocation3 + $0x68] sm:$0xff]  ;;  %14915 = vmatprep.subr.mxu1 %v8754_v18  ;;  %v20948_v63 = vpop.f32.mrf.mxu1 }
 0x5c5   : > { %v7533_v47 = vadd.f32 %v23092_v48, %v7224_v43  ;;  %v7223_v21 = vadd.f32 %v23093_v61, %v6950_v10  ;;  %v7804_v35 = vadd.f32 %v20748_v22, %v7531_v50  ;;  %v8140_v30 = vmax.f32 %v8108_v36, 0.0  ;;  %14790 = vmatprep.mubr.f32.mxu1 %v20943_v2  ;;  %14873 = vmatprep.mubr.f32.mxu0 %v20943_v2  ;;  %v8753_v22 = vld [vmem:[%s22360_s1 + $0x10d8] sm:$0xff]  ;;  %v23095_v10 = vld [vmem:[#allocation10_spill] sm:$0xff]  ;;  %v23096_v11 = vld [vmem:[#allocation57_spill] sm:$0xff] }
 0x5c6   : > { %8202 = vst [vmem:[#allocation3 + $0x91] sm:$0xff] %v20936_v33  ;;  %v20951_v53 = vadd.f32 %v8141_v44, %v5572_v16  ;;  %v8111_v58 = vadd.f32 %v20754_v27, %v8075_v41  ;;  %v8074_v45 = vadd.f32 %v7971_v34, %v7801_v31  ;;  %v23097_v9 = vld [vmem:[#allocation60_spill] sm:$0xff]  ;;  %v14727_v43 = vpop.f32.mrf.mxu0  ;;  %v7803_v52 = vadd.f32 %v20780_v4, %v7530_v42  ;;  %v23098_v41 = vld [vmem:[#allocation55_spill] sm:$0xff] }
 0x5c7   : > { %v7532_v50 = vadd.f32 %v23095_v10, %v7223_v21  ;;  %v7226_v19 = vadd.f32 %v23097_v9, %v23096_v11  ;;  %14791 = vmatmul.mubr.f32.gmra.mxu1 %v20946_v46  ;;  %14874 = vmatmul.mubr.f32.gmra.mxu0 %v20946_v46  ;;  %v20966_v6 = vadd.f32 %v8140_v30, %v5571_v20  ;;  %v23099_v48 = vld [vmem:[#allocation12_spill] sm:$0xff]  ;;  %v23100_v21 = vld [vmem:[#allocation43_spill] sm:$0xff]  ;;  %v20978_v30 = vpop.f32.mrf.mxu1  ;;  %v23104_v9 = vld [vmem:[#allocation22_spill] sm:$0xff] }
 0x5c8   : > { %23094 = vst [vmem:[#allocation78_spill] sm:$0xff] %v20951_v53  ;;  %8205 = vst [vmem:[#allocation3 + $0xb1] sm:$0xff] %v20951_v53  ;;  %v8143_v31 = vmax.f32 %v8111_v58, 0.0  ;;  %v8110_v44 = vadd.f32 %v20754_v27, %v8074_v45  ;;  %v8077_v36 = vadd.f32 %v14727_v43, %v7804_v35  ;;  %14916 = vmatpush3.msra.mxu1 %v8754_v18  ;;  %v5574_v34 = vld [vmem:[#allocation3 + $0xc9] sm:$0xff]  ;;  %v7981_v10 = vpop.f32.mrf.mxu0  ;;  %v20973_v11 = vld [vmem:[#allocation3 + $0x78] sm:$0xff] }
 0x5c9   : > { %v6954_v24 = vadd.f32 %v23098_v41, %v20773_v25  ;;  %v7535_v61 = vadd.f32 %v23099_v48, %v7226_v19  ;;  %v7225_v16 = vadd.f32 %v23100_v21, %v6952_v3  ;;  %v7806_v4 = vadd.f32 %v20797_v29, %v7533_v47  ;;  %v20976_v42 = vld [vmem:[#allocation3 + $0x80] sm:$0xff]  ;;  %14917 = vmatprep.subr.mxu1 %v8753_v22  ;;  %v23102_v3 = vld [vmem:[#allocation20_spill] sm:$0xff]  ;;  %v23103_v45 = vld [vmem:[#allocation75_spill] sm:$0xff] }
 0x5ca   : > { %8204 = vst [vmem:[#allocation3 + $0xa9] sm:$0xff] %v20966_v6  ;;  %v20981_v18 = vadd.f32 %v8143_v31, %v5574_v34  ;;  %v8142_v25 = vmax.f32 %v8110_v44, 0.0  ;;  %v8113_v35 = vadd.f32 %v20754_v27, %v8077_v36  ;;  %v8076_v58 = vadd.f32 %v7981_v10, %v7803_v52  ;;  %14793 = vmatprep.mubr.f32.mxu1 %v20973_v11  ;;  %v8752_v29 = vld [vmem:[%s22360_s1 + $0x10d0] sm:$0xff]  ;;  %v14730_v43 = vpop.f32.mrf.mxu0  ;;  %v23106_v48 = vld [vmem:[#allocation31_spill] sm:$0xff]  ;;  %v23108_v10 = vld [vmem:[#allocation105_spill] sm:$0xff] }
 0x5cb   : > { %14876 = vmatprep.mubr.f32.mxu0 %v20973_v11  ;;  %v7534_v47 = vadd.f32 %v23102_v3, %v7225_v16  ;;  %v7228_v19 = vadd.f32 %v23104_v9, %v23103_v45  ;;  %v5573_v20 = vld [vmem:[#allocation3 + $0xc1] sm:$0xff]  ;;  %14794 = vmatmul.mubr.f32.gmra.mxu1 %v20976_v42  ;;  %v7805_v52 = vadd.f32 %v20818_v59, %v7532_v50 }
 0x5cc   : > { %23101 = vst [vmem:[#allocation79_spill] sm:$0xff] %v20981_v18  ;;  %14877 = vmatmul.mubr.f32.gmra.mxu0 %v20976_v42  ;;  %8207 = vst [vmem:[#allocation3 + $0xc9] sm:$0xff] %v20981_v18  ;;  %v20996_v31 = vadd.f32 %v8142_v25, %v5573_v20  ;;  %v8145_v44 = vmax.f32 %v8113_v35, 0.0  ;;  %v8112_v36 = vadd.f32 %v20754_v27, %v8076_v58  ;;  %14918 = vmatpush3.msra.mxu1 %v8753_v22  ;;  %v23107_v16 = vld [vmem:[#allocation38_spill] sm:$0xff]  ;;  %v7991_v9 = vpop.f32.mrf.mxu0  ;;  %v21008_v25 = vpop.f32.mrf.mxu1  ;;  %v23111_v58 = vld [vmem:[#allocation77_spill] sm:$0xff] }
 0x5cd   : > { %v8079_v41 = vadd.f32 %v14730_v43, %v7806_v4  ;;  %v6956_v21 = vadd.f32 %v23106_v48, %v20778_v15  ;;  %v7537_v34 = vadd.f32 %v23107_v16, %v7228_v19  ;;  %v7227_v3 = vadd.f32 %v23108_v10, %v6954_v24  ;;  %v5576_v45 = vld [vmem:[#allocation3 + $0xe1] sm:$0xff]  ;;  %v21003_v53 = vld [vmem:[#allocation3 + $0x90] sm:$0xff]  ;;  %v21006_v50 = vld [vmem:[#allocation3 + $0x98] sm:$0xff]  ;;  %14919 = vmatprep.subr.mxu1 %v8752_v29 }
 0x5ce   : > { %23105 = vst [vmem:[#allocation14_spill] sm:$0xff] %v20996_v31  ;;  %v7808_v59 = vadd.f32 %v20839_v1, %v7535_v61  ;;  %8206 = vst [vmem:[#allocation3 + $0xc1] sm:$0xff] %v20996_v31  ;;  %v21011_v22 = vadd.f32 %v8145_v44, %v5576_v45  ;;  %v8144_v15 = vmax.f32 %v8112_v36, 0.0  ;;  %v8078_v35 = vadd.f32 %v7991_v9, %v7805_v52  ;;  %v8751_v1 = vld [vmem:[%s22360_s1 + $0x10c8] sm:$0xff]  ;;  %v23112_v19 = vld [vmem:[#allocation58_spill] sm:$0xff]  ;;  %v14733_v44 = vpop.f32.mrf.mxu0 }
 0x5cf   : > { %v8115_v4 = vadd.f32 %v20754_v27, %v8079_v41  ;;  %14796 = vmatprep.mubr.f32.mxu1 %v21003_v53  ;;  %14879 = vmatprep.mubr.f32.mxu0 %v21003_v53  ;;  %v23110_v24 = vld [vmem:[#allocation37_spill] sm:$0xff]  ;;  %v7230_v20 = vadd.f32 %v23112_v19, %v23111_v58  ;;  %v7807_v52 = vadd.f32 %v20861_v7, %v7534_v47  ;;  %v23114_v10 = vld [vmem:[#allocation4_spill] sm:$0xff]  ;;  %v23115_v45 = vld [vmem:[#allocation107_spill] sm:$0xff] }
 0x5d0   : > { %23109 = vst [vmem:[#allocation24_spill] sm:$0xff] %v21011_v22  ;;  %v7536_v61 = vadd.f32 %v23110_v24, %v7227_v3  ;;  %v5575_v43 = vld [vmem:[#allocation3 + $0xd9] sm:$0xff]  ;;  %14797 = vmatmul.mubr.f32.gmra.mxu1 %v21006_v50  ;;  %14880 = vmatmul.mubr.f32.gmra.mxu0 %v21006_v50  ;;  %8209 = vst [vmem:[#allocation3 + $0xe1] sm:$0xff] %v21011_v22  ;;  %v8114_v48 = vadd.f32 %v20754_v27, %v8078_v35  ;;  %v8001_v18 = vpop.f32.mrf.mxu0 }
 0x5d1   : > { %v21026_v36 = vadd.f32 %v8144_v15, %v5575_v43  ;;  %v8147_v41 = vmax.f32 %v8115_v4, 0.0  ;;  %v8081_v16 = vadd.f32 %v14733_v44, %v7808_v59  ;;  %14920 = vmatpush3.msra.mxu1 %v8752_v29  ;;  %v6958_v3 = vadd.f32 %v23114_v10, %v20786_v32  ;;  %v23116_v24 = vld [vmem:[#allocation94_spill] sm:$0xff]  ;;  %v21033_v31 = vld [vmem:[#allocation3 + $0xa8] sm:$0xff]  ;;  %v21036_v47 = vld [vmem:[#allocation3 + $0xb0] sm:$0xff]  ;;  %v21038_v15 = vpop.f32.mrf.mxu1 }
 0x5d2   : > { %v7539_v9 = vadd.f32 %v23115_v45, %v7230_v20  ;;  %v7229_v58 = vadd.f32 %v23116_v24, %v6956_v21  ;;  %v5578_v19 = vld [vmem:[#allocation3 + $0xf9] sm:$0xff]  ;;  %v7810_v7 = vadd.f32 %v20888_v54, %v7537_v34  ;;  %14921 = vmatprep.subr.mxu1 %v8751_v1  ;;  %v8146_v32 = vmax.f32 %v8114_v48, 0.0  ;;  %14799 = vmatprep.mubr.f32.mxu1 %v21033_v31  ;;  %v8750_v54 = vld [vmem:[%s22360_s1 + $0x10c0] sm:$0xff] }
 0x5d3   : > { %23113 = vst [vmem:[#allocation40_spill] sm:$0xff] %v21026_v36  ;;  %8208 = vst [vmem:[#allocation3 + $0xd9] sm:$0xff] %v21026_v36  ;;  %v21041_v29 = vadd.f32 %v8147_v41, %v5578_v19  ;;  %v8117_v59 = vadd.f32 %v20754_v27, %v8081_v16  ;;  %v8080_v4 = vadd.f32 %v8001_v18, %v7807_v52  ;;  %14882 = vmatprep.mubr.f32.mxu0 %v21033_v31  ;;  %v23118_v21 = vld [vmem:[#allocation108_spill] sm:$0xff]  ;;  %v23119_v35 = vld [vmem:[#allocation93_spill] sm:$0xff]  ;;  %v14736_v41 = vpop.f32.mrf.mxu0 }
 0x5d4   : > { %v7538_v34 = vadd.f32 %v23118_v21, %v7229_v58  ;;  %v23120_v20 = vld [vmem:[#allocation42_spill] sm:$0xff]  ;;  %v5577_v44 = vld [vmem:[#allocation3 + $0xf1] sm:$0xff]  ;;  %14800 = vmatmul.mubr.f32.gmra.mxu1 %v21036_v47  ;;  %14883 = vmatmul.mubr.f32.gmra.mxu0 %v21036_v47  ;;  %v7809_v18 = vadd.f32 %v20918_v28, %v7536_v61  ;;  %v8083_v10 = vadd.f32 %v14736_v41, %v7810_v7  ;;  %v5579_v41 = vld [vmem:[#allocation3 + $0x109] sm:$0xff] }
 0x5d5   : > { %23117 = vst [vmem:[#allocation17_spill] sm:$0xff] %v21041_v29  ;;  %v7232_v43 = vadd.f32 %v23120_v20, %v23119_v35  ;;  %8211 = vst [vmem:[#allocation3 + $0xf9] sm:$0xff] %v21041_v29  ;;  %v21056_v52 = vadd.f32 %v8146_v32, %v5577_v44  ;;  %v8149_v48 = vmax.f32 %v8117_v59, 0.0  ;;  %v8116_v16 = vadd.f32 %v20754_v27, %v8080_v4  ;;  %v23122_v45 = vld [vmem:[#allocation30_spill] sm:$0xff]  ;;  %v23124_v21 = vld [vmem:[#allocation92_spill] sm:$0xff]  ;;  %v8011_v22 = vpop.f32.mrf.mxu0  ;;  %v14665_v32 = vpop.f32.mrf.mxu1 }
 0x5d6   : > { %14922 = vmatpush3.msra.mxu1 %v8751_v1  ;;  %v6960_v24 = vadd.f32 %v23122_v45, %v20803_v51  ;;  %v23123_v58 = vld [vmem:[#allocation110_spill] sm:$0xff]  ;;  %v7231_v35 = vadd.f32 %v23124_v21, %v6958_v3  ;;  %v5580_v20 = vld [vmem:[#allocation3 + $0x111] sm:$0xff]  ;;  %v7812_v28 = vadd.f32 %v20948_v63, %v7539_v9  ;;  %v21066_v61 = vld [vmem:[#allocation3 + $0xc8] sm:$0xff]  ;;  %v8119_v51 = vadd.f32 %v20754_v27, %v8083_v10 }
 0x5d7   : > { %23121 = vst [vmem:[#allocation72_spill] sm:$0xff] %v21056_v52  ;;  %v7541_v19 = vadd.f32 %v23123_v58, %v7232_v43  ;;  %v21063_v36 = vld [vmem:[#allocation3 + $0xc0] sm:$0xff]  ;;  %14923 = vmatprep.subr.mxu1 %v8750_v54  ;;  %8210 = vst [vmem:[#allocation3 + $0xf1] sm:$0xff] %v21056_v52  ;;  %v21069_v1 = vadd.f32 %v8149_v48, %v5580_v20  ;;  %v8148_v7 = vmax.f32 %v8116_v16, 0.0  ;;  %v8749_v63 = vld [vmem:[%s22360_s1 + $0x10b8] sm:$0xff]  ;;  %v14739_v48 = vpop.f32.mrf.mxu0 }
 0x5d8   : > { %v8082_v59 = vadd.f32 %v8011_v22, %v7809_v18  ;;  %14802 = vmatprep.mubr.f32.mxu1 %v21063_v36  ;;  %14885 = vmatprep.mubr.f32.mxu0 %v21063_v36  ;;  %v23125_v3 = vld [vmem:[#allocation111_spill] sm:$0xff]  ;;  %v23126_v4 = vld [vmem:[#allocation61_spill] sm:$0xff]  ;;  %v23127_v43 = vld [vmem:[#allocation64_spill] sm:$0xff]  ;;  %v7811_v22 = vadd.f32 %v20978_v30, %v7538_v34  ;;  %v8151_v16 = vmax.f32 %v8119_v51, 0.0  ;;  %v8085_v45 = vadd.f32 %v14739_v48, %v7812_v28 }
 0x5d9   : > { %v7540_v9 = vadd.f32 %v23125_v3, %v7231_v35  ;;  %v7234_v44 = vadd.f32 %v23127_v43, %v23126_v4  ;;  %14803 = vmatmul.mubr.f32.gmra.mxu1 %v21066_v61  ;;  %14886 = vmatmul.mubr.f32.gmra.mxu0 %v21066_v61  ;;  %8213 = vst [vmem:[#allocation3 + $0x111] sm:$0xff] %v21069_v1  ;;  %v23128_v58 = vld [vmem:[#allocation7_spill] sm:$0xff]  ;;  %v23129_v35 = vld [vmem:[#allocation36_spill] sm:$0xff]  ;;  %v8021_v29 = vpop.f32.mrf.mxu0 }
 0x5da   : > { %v21084_v18 = vadd.f32 %v8148_v7, %v5579_v41  ;;  %v8118_v10 = vadd.f32 %v20754_v27, %v8082_v59  ;;  %14924 = vmatpush3.msra.mxu1 %v8750_v54  ;;  %v6962_v21 = vadd.f32 %v23128_v58, %v20846_v39  ;;  %v23130_v3 = vld [vmem:[#allocation48_spill] sm:$0xff]  ;;  %v21091_v52 = vld [vmem:[#allocation3 + $0xd8] sm:$0xff]  ;;  %v7814_v30 = vadd.f32 %v21008_v25, %v7541_v19  ;;  %v21094_v34 = vld [vmem:[#allocation3 + $0xe0] sm:$0xff]  ;;  %v7768_v7 = vpop.f32.mrf.mxu1 }
 0x5db   : > { %v7543_v20 = vadd.f32 %v23129_v35, %v7234_v44  ;;  %v7233_v4 = vadd.f32 %v23130_v3, %v6960_v24  ;;  %v5582_v43 = vld [vmem:[#allocation3 + $0x129] sm:$0xff]  ;;  %14925 = vmatprep.subr.mxu1 %v8749_v63  ;;  %v8121_v39 = vadd.f32 %v20754_v27, %v8085_v45  ;;  %v8084_v51 = vadd.f32 %v8021_v29, %v7811_v22  ;;  %v8748_v25 = vld [vmem:[%s22360_s1 + $0x10b0] sm:$0xff]  ;;  %v14742_v48 = vpop.f32.mrf.mxu0 }
 0x5dc   : > { %8212 = vst [vmem:[#allocation3 + $0x109] sm:$0xff] %v21084_v18  ;;  %v21097_v54 = vadd.f32 %v8151_v16, %v5582_v43  ;;  %v8150_v28 = vmax.f32 %v8118_v10, 0.0  ;;  %14805 = vmatprep.mubr.f32.mxu1 %v21091_v52  ;;  %14888 = vmatprep.mubr.f32.mxu0 %v21091_v52  ;;  %v23131_v19 = vld [vmem:[#allocation62_spill] sm:$0xff]  ;;  %v23132_v59 = vld [vmem:[#allocation83_spill] sm:$0xff]  ;;  %v7813_v29 = vadd.f32 %v21038_v15, %v7540_v9  ;;  %v14668_v15 = vpop.f32.mrf.mxu1 }
 0x5dd   : > { %v7542_v24 = vadd.f32 %v20709_v13, %v7233_v4  ;;  %v7236_v44 = vadd.f32 %v23132_v59, %v23131_v19  ;;  %v5581_v41 = vld [vmem:[#allocation3 + $0x121] sm:$0xff]  ;;  %14806 = vmatmul.mubr.f32.gmra.mxu1 %v21094_v34  ;;  %14889 = vmatmul.mubr.f32.gmra.mxu0 %v21094_v34  ;;  %v8153_v16 = vmax.f32 %v8121_v39, 0.0  ;;  %v8120_v10 = vadd.f32 %v20754_v27, %v8084_v51  ;;  %v8031_v4 = vpop.f32.mrf.mxu0 }
 0x5de   : > { %8215 = vst [vmem:[#allocation3 + $0x129] sm:$0xff] %v21097_v54  ;;  %v21112_v22 = vadd.f32 %v8150_v28, %v5581_v41  ;;  %v8087_v45 = vadd.f32 %v14742_v48, %v7814_v30  ;;  %14926 = vmatpush3.msra.mxu1 %v8749_v63  ;;  %v23133_v58 = vld [vmem:[#allocation6_spill] sm:$0xff]  ;;  %v21117_v43 = vld [vmem:[#allocation3 + $0xf0] sm:$0xff]  ;;  %v7816_v19 = vadd.f32 %v14665_v32, %v7543_v20  ;;  %v21119_v59 = vld [vmem:[#allocation3 + $0xf8] sm:$0xff] }
 0x5df   : > { %v7545_v13 = vadd.f32 %v20727_v56, %v7236_v44  ;;  %v7235_v35 = vadd.f32 %v23133_v58, %v6962_v21  ;;  %v5584_v3 = vld [vmem:[#allocation3 + $0x141] sm:$0xff]  ;;  %14927 = vmatprep.subr.mxu1 %v8748_v25  ;;  %v8152_v28 = vmax.f32 %v8120_v10, 0.0  ;;  %v8086_v30 = vadd.f32 %v8031_v4, %v7813_v29  ;;  %14808 = vmatprep.mubr.f32.mxu1 %v21117_v43  ;;  %v8747_v56 = vld [vmem:[%s22360_s1 + $0x10a8] sm:$0xff]  ;;  %v14745_v20 = vpop.f32.mrf.mxu0  ;;  %v7778_v58 = vpop.f32.mrf.mxu1 }
 0x5e0   : > { %8214 = vst [vmem:[#allocation3 + $0x121] sm:$0xff] %v21112_v22  ;;  %v21122_v9 = vadd.f32 %v8153_v16, %v5584_v3  ;;  %v8123_v63 = vadd.f32 %v20754_v27, %v8087_v45  ;;  %14891 = vmatprep.mubr.f32.mxu0 %v21117_v43  ;;  %v5583_v21 = vld [vmem:[#allocation3 + $0x139] sm:$0xff]  ;;  %v7815_v39 = vadd.f32 %v7768_v7, %v7542_v24 }
 0x5e1   : > { %v7544_v32 = vadd.f32 %v20744_v37, %v7235_v35  ;;  %14809 = vmatmul.mubr.f32.gmra.mxu1 %v21119_v59  ;;  %14892 = vmatmul.mubr.f32.gmra.mxu0 %v21119_v59  ;;  %v21134_v51 = vadd.f32 %v8152_v28, %v5583_v21  ;;  %v8122_v41 = vadd.f32 %v20754_v27, %v8086_v30  ;;  %v5586_v29 = vld [vmem:[#allocation3 + $0x159] sm:$0xff]  ;;  %v8041_v16 = vpop.f32.mrf.mxu0  ;;  %v5588_v21 = vld [vmem:[#allocation3 + $0x171] sm:$0xff] }
 0x5e2   : > { %8217 = vst [vmem:[#allocation3 + $0x141] sm:$0xff] %v21122_v9  ;;  %v8155_v44 = vmax.f32 %v8123_v63, 0.0  ;;  %v8089_v48 = vadd.f32 %v14745_v20, %v7816_v19  ;;  %14928 = vmatpush3.msra.mxu1 %v8748_v25  ;;  %v7818_v37 = vadd.f32 %v14668_v15, %v7545_v13  ;;  %v8088_v3 = vadd.f32 %v8041_v16, %v7815_v39  ;;  %v8746_v25 = vld [vmem:[%s22360_s1 + $0x10a0] sm:$0xff] }
 0x5e3   : > { %v21137_v10 = vld [vmem:[#allocation3 + $0x108] sm:$0xff]  ;;  %v21139_v45 = vld [vmem:[#allocation3 + $0x110] sm:$0xff]  ;;  %14929 = vmatprep.subr.mxu1 %v8747_v56  ;;  %8216 = vst [vmem:[#allocation3 + $0x139] sm:$0xff] %v21134_v51  ;;  %v8154_v24 = vmax.f32 %v8122_v41, 0.0  ;;  %v14748_v4 = vpop.f32.mrf.mxu0  ;;  %v7817_v19 = vadd.f32 %v7778_v58, %v7544_v32 }
 0x5e4   : > { %v21142_v7 = vadd.f32 %v8155_v44, %v5586_v29  ;;  %v8125_v35 = vadd.f32 %v20754_v27, %v8089_v48  ;;  %14811 = vmatprep.mubr.f32.mxu1 %v21137_v10  ;;  %14894 = vmatprep.mubr.f32.mxu0 %v21137_v10  ;;  %v5585_v13 = vld [vmem:[#allocation3 + $0x151] sm:$0xff]  ;;  %v8124_v63 = vadd.f32 %v20754_v27, %v8088_v3  ;;  %v5587_v16 = vld [vmem:[#allocation3 + $0x169] sm:$0xff] }
 0x5e5   : > { %14812 = vmatmul.mubr.f32.gmra.mxu1 %v21139_v45  ;;  %14895 = vmatmul.mubr.f32.gmra.mxu0 %v21139_v45  ;;  %v21153_v15 = vadd.f32 %v8154_v24, %v5585_v13  ;;  %v8091_v30 = vadd.f32 %v14748_v4, %v7818_v37  ;;  %v8051_v20 = vpop.f32.mrf.mxu0 }
 0x5e6   : > { %8219 = vst [vmem:[#allocation3 + $0x159] sm:$0xff] %v21142_v7  ;;  %v8157_v28 = vmax.f32 %v8125_v35, 0.0  ;;  %14930 = vmatpush3.msra.mxu1 %v8747_v56  ;;  %v8156_v32 = vmax.f32 %v8124_v63, 0.0  ;;  %v8090_v29 = vadd.f32 %v8051_v20, %v7817_v19  ;;  %v8745_v56 = vld [vmem:[%s22360_s1 + $0x1098] sm:$0xff] }
 0x5e7   : > { %v21156_v39 = vld [vmem:[#allocation3 + $0x120] sm:$0xff]  ;;  %v21158_v44 = vld [vmem:[#allocation3 + $0x128] sm:$0xff]  ;;  %14931 = vmatprep.subr.mxu1 %v8746_v25  ;;  %8218 = vst [vmem:[#allocation3 + $0x151] sm:$0xff] %v21153_v15  ;;  %v8127_v48 = vadd.f32 %v20754_v27, %v8091_v30 }
 0x5e8   : > { %v21161_v41 = vadd.f32 %v8157_v28, %v5588_v21  ;;  %14814 = vmatprep.mubr.f32.mxu1 %v21156_v39  ;;  %14897 = vmatprep.mubr.f32.mxu0 %v21156_v39  ;;  %v21172_v37 = vadd.f32 %v8156_v32, %v5587_v16  ;;  %v8126_v24 = vadd.f32 %v20754_v27, %v8090_v29  ;;  %v5590_v35 = vld [vmem:[#allocation3 + $0x189] sm:$0xff]  ;;  %v8744_v27 = vld [vmem:[%s22360_s1 + $0x1090] sm:$0xff]  ;;  %v8743_v21 = vld [vmem:[%s22360_s1 + $0x1088] sm:$0xff] }
 0x5e9   : > { %14815 = vmatmul.mubr.f32.gmra.mxu1 %v21158_v44  ;;  %14898 = vmatmul.mubr.f32.gmra.mxu0 %v21158_v44  ;;  %v8159_v58 = vmax.f32 %v8127_v48, 0.0  ;;  %v9015_v48 = vld [vmem:[#allocation3 + $0x1] sm:$0xff]  ;;  %v8742_v29 = vld [vmem:[%s22360_s1 + $0x1080] sm:$0xff] }
 0x5ea   : > { %8221 = vst [vmem:[#allocation3 + $0x171] sm:$0xff] %v21161_v41  ;;  %14932 = vmatpush3.msra.mxu1 %v8746_v25  ;;  %v21175_v3 = vld [vmem:[#allocation3 + $0x138] sm:$0xff]  ;;  %v21177_v13 = vld [vmem:[#allocation3 + $0x140] sm:$0xff]  ;;  %8220 = vst [vmem:[#allocation3 + $0x169] sm:$0xff] %v21172_v37  ;;  %v8158_v19 = vmax.f32 %v8126_v24, 0.0 }
 0x5eb   : > { %14933 = vmatprep.subr.mxu1 %v8745_v56  ;;  %v21180_v4 = vadd.f32 %v8159_v58, %v5590_v35  ;;  %14817 = vmatprep.mubr.f32.mxu1 %v21175_v3  ;;  %v5589_v25 = vld [vmem:[#allocation3 + $0x181] sm:$0xff] }
 0x5ec   : > { %14900 = vmatprep.mubr.f32.mxu0 %v21175_v3  ;;  %v21190_v28 = vadd.f32 %v8158_v19, %v5589_v25  ;;  %14934 = vmatpush3.msra.mxu1 %v8745_v56  ;;  %v9016_v56 = vld [vmem:[#allocation3 + $0x9] sm:$0xff]  ;;  %v9611_v35 = vld [vmem:[%s22360_s1 + $0x1170] sm:$0xff] }
 0x5ed   : > { %14818 = vmatmul.mubr.f32.gmra.mxu1 %v21177_v13  ;;  %14901 = vmatmul.mubr.f32.gmra.mxu0 %v21177_v13  ;;  %8223 = vst [vmem:[#allocation3 + $0x189] sm:$0xff] %v21180_v4  ;;  %v9339_v24 = vld [vmem:[%s22360_s1 + $0xff8] sm:$0xff]  ;;  %v9597_v25 = vld [vmem:[%s22360_s1 + $0x1100] sm:$0xff] }
 0x5ee   : > { %v21192_v63 = vld [vmem:[#allocation3 + $0x150] sm:$0xff]  ;;  %v21194_v30 = vld [vmem:[#allocation3 + $0x158] sm:$0xff]  ;;  %14935 = vmatprep.subr.mxu1 %v8744_v27  ;;  %8222 = vst [vmem:[#allocation3 + $0x181] sm:$0xff] %v21190_v28  ;;  %v15505_v19 = vld [vmem:[%s22360_s1 + $0x1178] sm:$0xff] }
 0x5ef   : > { %14820 = vmatprep.mubr.f32.mxu1 %v21192_v63  ;;  %14903 = vmatprep.mubr.f32.mxu0 %v21192_v63 }
 0x5f0   : > { %14936 = vmatpush3.msra.mxu1 %v8744_v27  ;;  %v9338_v27 = vld [vmem:[%s22360_s1 + $0xff0] sm:$0xff] }
 0x5f1   : > { %14821 = vmatmul.mubr.f32.gmra.mxu1 %v21194_v30  ;;  %14904 = vmatmul.mubr.f32.gmra.mxu0 %v21194_v30  ;;  %v21204_v20 = vld [vmem:[#allocation3 + $0x168] sm:$0xff]  ;;  %v21206_v32 = vld [vmem:[#allocation3 + $0x170] sm:$0xff] }
 0x5f2   : > { %14937 = vmatprep.subr.mxu1 %v8743_v21  ;;  %14823 = vmatprep.mubr.f32.mxu1 %v21204_v20 }
 0x5f3   : > { %14906 = vmatprep.mubr.f32.mxu0 %v21204_v20  ;;  %14938 = vmatpush3.msra.mxu1 %v8743_v21  ;;  %v10194_v21 = vld [vmem:[%s22360_s1 + $0x1078] sm:$0xff] }
 0x5f4   : > { %14939 = vmatprep.subr.mxu1 %v8742_v29 }
 0x5f5   : > { %14824 = vmatmul.mubr.f32.gmra.mxu1 %v21206_v32  ;;  %14907 = vmatmul.mubr.f32.gmra.mxu0 %v21206_v32  ;;  %v21215_v16 = vld [vmem:[#allocation3 + $0x180] sm:$0xff]  ;;  %v21217_v58 = vld [vmem:[#allocation3 + $0x188] sm:$0xff] }
 0x5f6   : > { %15021 = vmatprep.mubr.f32.mxu0 %v9015_v48  ;;  %14826 = vmatprep.mubr.f32.mxu1 %v21215_v16  ;;  %v15507_v48 = vld [vmem:[#allocation2 + $0x8] sm:$0xff] }
 0x5f7   : > { %14940 = vmatpush3.msra.mxu1 %v8742_v29  ;;  %v15508_v29 = vld [vmem:[#allocation3 + $0x39] sm:$0xff] }
 0x5f8   : > { %15069 = vmatprep.subr.mxu1 %v9339_v24 }
 0x5f9   : > { %14827 = vmatmul.mubr.f32.gmra.mxu1 %v21217_v58  ;;  %15022 = vmatmul.mubr.f32.vlgmr.msra.gmra.mxu0 %v9016_v56  ;;  %v15509_v56 = vld [vmem:[#allocation3 + $0x19] sm:$0xff] }
 0x5fa   : > { %14941 = vmatprep.mubr.f32.mxu1 %v20883_v23  ;;  %15024 = vmatprep.mubr.f32.mxu0 %v20810_v14  ;;  %v9610_v23 = vld [vmem:[%s22360_s1 + $0x1168] sm:$0xff]  ;;  %v9609_v14 = vld [vmem:[%s22360_s1 + $0x1160] sm:$0xff] }
 0x5fb   : > { %15150 = vmatpush3.msra.mxu0 %v15505_v19  ;;  %v9920_v19 = vld [vmem:[%s22360_s1 + $0xef0] sm:$0xff] }
 0x5fc   : > { %15151 = vmatprep.subr.mxu0 %v9611_v35 }
 0x5fd   : > { %14942 = vmatmul.mubr.f32.vlgmr.msra.gmra.mxu1 %v20886_v49  ;;  %15025 = vmatmul.mubr.f32.gmra.mxu0 %v20799_v62  ;;  %v9337_v62 = vld [vmem:[%s22360_s1 + $0xfe8] sm:$0xff] }
 0x5fe   : > { %14944 = vmatprep.mubr.f32.mxu1 %v20913_v57  ;;  %15027 = vmatprep.mubr.f32.mxu0 %v20831_v0  ;;  %v9608_v0 = vld [vmem:[%s22360_s1 + $0x1158] sm:$0xff]  ;;  %v9333_v49 = vld [vmem:[%s22360_s1 + $0xfc8] sm:$0xff]  ;;  %v23134_v57 = vld [vmem:[#allocation78_spill] sm:$0xff] }
 0x5ff   : > { %15070 = vmatpush3.msra.mxu1 %v9339_v24  ;;  %15152 = vmatpush3.msra.mxu0 %v9611_v35  ;;  %v15511_v24 = vld [vmem:[#allocation3 + $0x21] sm:$0xff]  ;;  %v15512_v35 = vld [vmem:[#allocation3 + $0x51] sm:$0xff] }
 0x600   : > { %15071 = vmatprep.subr.mxu1 %v9338_v27  ;;  %15153 = vmatprep.subr.mxu0 %v9610_v23 }
 0x601   : > { %14945 = vmatmul.mubr.f32.gmra.mxu1 %v20916_v55  ;;  %15028 = vmatmul.mubr.f32.gmra.mxu0 %v20821_v40  ;;  %v9336_v40 = vld [vmem:[%s22360_s1 + $0xfe0] sm:$0xff] }
 0x602   : > { %14947 = vmatprep.mubr.f32.mxu1 %v20943_v2  ;;  %15030 = vmatprep.mubr.f32.mxu0 %v20853_v5  ;;  %v9607_v5 = vld [vmem:[%s22360_s1 + $0x1150] sm:$0xff]  ;;  %v9332_v55 = vld [vmem:[%s22360_s1 + $0xfc0] sm:$0xff]  ;;  %v9604_v2 = vld [vmem:[%s22360_s1 + $0x1138] sm:$0xff] }
 0x603   : > { %15072 = vmatpush3.msra.mxu1 %v9338_v27  ;;  %15154 = vmatpush3.msra.mxu0 %v9610_v23  ;;  %v15513_v27 = vld [vmem:[#allocation3 + $0x61] sm:$0xff]  ;;  %v10192_v23 = vld [vmem:[%s22360_s1 + $0x1068] sm:$0xff] }
 0x604   : > { %15073 = vmatprep.subr.mxu1 %v9337_v62  ;;  %15155 = vmatprep.subr.mxu0 %v9609_v14 }
 0x605   : > { %14948 = vmatmul.mubr.f32.gmra.mxu1 %v20946_v46  ;;  %15031 = vmatmul.mubr.f32.gmra.mxu0 %v20842_v17  ;;  %v9335_v17 = vld [vmem:[%s22360_s1 + $0xfd8] sm:$0xff]  ;;  %v23135_v46 = vld [vmem:[#allocation14_spill] sm:$0xff] }
 0x606   : > { %14950 = vmatprep.mubr.f32.mxu1 %v20973_v11  ;;  %15033 = vmatprep.mubr.f32.mxu0 %v20875_v12  ;;  %v9606_v12 = vld [vmem:[%s22360_s1 + $0x1148] sm:$0xff]  ;;  %v9331_v11 = vld [vmem:[%s22360_s1 + $0xfb8] sm:$0xff] }
 0x607   : > { %15074 = vmatpush3.msra.mxu1 %v9337_v62  ;;  %15156 = vmatpush3.msra.mxu0 %v9609_v14  ;;  %v15514_v62 = vld [vmem:[#allocation3 + $0x69] sm:$0xff]  ;;  %v9919_v14 = vld [vmem:[%s22360_s1 + $0xee8] sm:$0xff] }
 0x608   : > { %15075 = vmatprep.subr.mxu1 %v9336_v40  ;;  %15157 = vmatprep.subr.mxu0 %v9608_v0 }
 0x609   : > { %14951 = vmatmul.mubr.f32.gmra.mxu1 %v20976_v42  ;;  %15034 = vmatmul.mubr.f32.gmra.mxu0 %v20864_v8  ;;  %v9334_v8 = vld [vmem:[%s22360_s1 + $0xfd0] sm:$0xff] }
 0x60a   : > { %14953 = vmatprep.mubr.f32.mxu1 %v21003_v53  ;;  %15036 = vmatprep.mubr.f32.mxu0 %v20906_v38  ;;  %v23136_v53 = vld [vmem:[#allocation79_spill] sm:$0xff]  ;;  %v9603_v42 = vld [vmem:[%s22360_s1 + $0x1130] sm:$0xff] }
 0x60b   : > { %15076 = vmatpush3.msra.mxu1 %v9336_v40  ;;  %15158 = vmatpush3.msra.mxu0 %v9608_v0  ;;  %v10191_v40 = vld [vmem:[%s22360_s1 + $0x1060] sm:$0xff]  ;;  %v15515_v0 = vld [vmem:[#allocation3 + $0x81] sm:$0xff] }
 0x60c   : > { %15077 = vmatprep.subr.mxu1 %v9335_v17  ;;  %15159 = vmatprep.subr.mxu0 %v9607_v5 }
 0x60d   : > { %14954 = vmatmul.mubr.f32.gmra.mxu1 %v21006_v50  ;;  %15037 = vmatmul.mubr.f32.gmra.mxu0 %v20891_v26  ;;  %v9605_v26 = vld [vmem:[%s22360_s1 + $0x1140] sm:$0xff] }
 0x60e   : > { %14956 = vmatprep.mubr.f32.mxu1 %v21033_v31  ;;  %15039 = vmatprep.mubr.f32.mxu0 %v20936_v33  ;;  %v23137_v31 = vld [vmem:[#allocation40_spill] sm:$0xff] }
 0x60f   : > { %15078 = vmatpush3.msra.mxu1 %v9335_v17  ;;  %15160 = vmatpush3.msra.mxu0 %v9607_v5  ;;  %v23138_v50 = vld [vmem:[#allocation24_spill] sm:$0xff]  ;;  %v9917_v5 = vld [vmem:[%s22360_s1 + $0xed8] sm:$0xff] }
 0x610   : > { %15079 = vmatprep.subr.mxu1 %v9334_v8  ;;  %15161 = vmatprep.subr.mxu0 %v9606_v12  ;;  %v9918_v17 = vld [vmem:[%s22360_s1 + $0xee0] sm:$0xff] }
 0x611   : > { %14957 = vmatmul.mubr.f32.gmra.mxu1 %v21036_v47  ;;  %15040 = vmatmul.mubr.f32.gmra.mxu0 %v20921_v60  ;;  %v9602_v47 = vld [vmem:[%s22360_s1 + $0x1128] sm:$0xff] }
 0x612   : > { %14959 = vmatprep.mubr.f32.mxu1 %v21063_v36  ;;  %15042 = vmatprep.mubr.f32.mxu0 %v20966_v6  ;;  %v9330_v36 = vld [vmem:[%s22360_s1 + $0xfb0] sm:$0xff] }
 0x613   : > { %15080 = vmatpush3.msra.mxu1 %v9334_v8  ;;  %15162 = vmatpush3.msra.mxu0 %v9606_v12  ;;  %v15516_v8 = vld [vmem:[#allocation3 + $0x79] sm:$0xff] }
 0x614   : > { %15081 = vmatprep.subr.mxu1 %v9333_v49  ;;  %15163 = vmatprep.subr.mxu0 %v9605_v26  ;;  %v10189_v12 = vld [vmem:[%s22360_s1 + $0x1050] sm:$0xff] }
 0x615   : > { %14960 = vmatmul.mubr.f32.gmra.mxu1 %v21066_v61  ;;  %15043 = vmatmul.mubr.f32.gmra.mxu0 %v23134_v57  ;;  %v23140_v61 = vld [vmem:[#allocation17_spill] sm:$0xff] }
 0x616   : > { %14962 = vmatprep.mubr.f32.mxu1 %v21091_v52  ;;  %15045 = vmatprep.mubr.f32.mxu0 %v23135_v46  ;;  %v23139_v52 = vld [vmem:[#allocation72_spill] sm:$0xff] }
 0x617   : > { %15082 = vmatpush3.msra.mxu1 %v9333_v49  ;;  %15164 = vmatpush3.msra.mxu0 %v9605_v26  ;;  %v10188_v49 = vld [vmem:[%s22360_s1 + $0x1048] sm:$0xff] }
 0x618   : > { %15083 = vmatprep.subr.mxu1 %v9332_v55  ;;  %15165 = vmatprep.subr.mxu0 %v9604_v2  ;;  %v15517_v26 = vld [vmem:[#allocation3 + $0x99] sm:$0xff] }
 0x619   : > { %14963 = vmatmul.mubr.f32.gmra.mxu1 %v21094_v34  ;;  %15046 = vmatmul.mubr.f32.gmra.mxu0 %v23136_v53  ;;  %v9329_v34 = vld [vmem:[%s22360_s1 + $0xfa8] sm:$0xff] }
 0x61a   : > { %14965 = vmatprep.mubr.f32.mxu1 %v21117_v43  ;;  %15048 = vmatprep.mubr.f32.mxu0 %v23137_v31  ;;  %v9601_v43 = vld [vmem:[%s22360_s1 + $0x1120] sm:$0xff] }
 0x61b   : > { %15084 = vmatpush3.msra.mxu1 %v9332_v55  ;;  %15166 = vmatpush3.msra.mxu0 %v9604_v2  ;;  %v9915_v55 = vld [vmem:[%s22360_s1 + $0xec8] sm:$0xff]  ;;  %v9914_v2 = vld [vmem:[%s22360_s1 + $0xec0] sm:$0xff] }
 0x61c   : > { %15085 = vmatprep.subr.mxu1 %v9331_v11  ;;  %15167 = vmatprep.subr.mxu0 %v9603_v42 }
 0x61d   : > { %14966 = vmatmul.mubr.f32.gmra.mxu1 %v21119_v59  ;;  %15049 = vmatmul.mubr.f32.gmra.mxu0 %v23138_v50  ;;  %v9328_v59 = vld [vmem:[%s22360_s1 + $0xfa0] sm:$0xff] }
 0x61e   : > { %14968 = vmatprep.mubr.f32.mxu1 %v21137_v10  ;;  %15051 = vmatprep.mubr.f32.mxu0 %v23139_v52  ;;  %v9600_v10 = vld [vmem:[%s22360_s1 + $0x1118] sm:$0xff] }
 0x61f   : > { %15086 = vmatpush3.msra.mxu1 %v9331_v11  ;;  %15168 = vmatpush3.msra.mxu0 %v9603_v42  ;;  %v10184_v11 = vld [vmem:[%s22360_s1 + $0x1028] sm:$0xff] }
 0x620   : > { %15087 = vmatprep.subr.mxu1 %v9330_v36  ;;  %15169 = vmatprep.subr.mxu0 %v9602_v47  ;;  %v9911_v42 = vld [vmem:[%s22360_s1 + $0xea8] sm:$0xff] }
 0x621   : > { %14969 = vmatmul.mubr.f32.gmra.mxu1 %v21139_v45  ;;  %15052 = vmatmul.mubr.f32.gmra.mxu0 %v23140_v61  ;;  %v9327_v45 = vld [vmem:[%s22360_s1 + $0xf98] sm:$0xff] }
 0x622   : > { %14971 = vmatprep.mubr.f32.mxu1 %v21156_v39  ;;  %15054 = vmatprep.mubr.f32.mxu0 %v21084_v18  ;;  %v9599_v39 = vld [vmem:[%s22360_s1 + $0x1110] sm:$0xff] }
 0x623   : > { %15088 = vmatpush3.msra.mxu1 %v9330_v36  ;;  %15170 = vmatpush3.msra.mxu0 %v9602_v47  ;;  %v9907_v36 = vld [vmem:[%s22360_s1 + $0xe88] sm:$0xff]  ;;  %v10179_v47 = vld [vmem:[%s22360_s1 + $0x1000] sm:$0xff] }
 0x624   : > { %15089 = vmatprep.subr.mxu1 %v9329_v34  ;;  %15171 = vmatprep.subr.mxu0 %v9601_v43 }
 0x625   : > { %14972 = vmatmul.mubr.f32.gmra.mxu1 %v21158_v44  ;;  %15055 = vmatmul.mubr.f32.gmra.mxu0 %v21069_v1  ;;  %v9326_v44 = vld [vmem:[%s22360_s1 + $0xf90] sm:$0xff] }
 0x626   : > { %14974 = vmatprep.mubr.f32.mxu1 %v21175_v3  ;;  %15057 = vmatprep.mubr.f32.mxu0 %v21112_v22  ;;  %v9598_v3 = vld [vmem:[%s22360_s1 + $0x1108] sm:$0xff] }
 0x627   : > { %15090 = vmatpush3.msra.mxu1 %v9329_v34  ;;  %15172 = vmatpush3.msra.mxu0 %v9601_v43  ;;  %v9870_v34 = vld [vmem:[#allocation3 + $0x2] sm:$0xff]  ;;  %v21522_v43 = vld [vmem:[#allocation3 + $0x32] sm:$0xff] }
 0x628   : > { %15091 = vmatprep.subr.mxu1 %v9328_v59  ;;  %15173 = vmatprep.subr.mxu0 %v9600_v10 }
 0x629   : > { %14975 = vmatmul.mubr.f32.gmra.mxu1 %v21177_v13  ;;  %15058 = vmatmul.mubr.f32.gmra.mxu0 %v21097_v54  ;;  %v9325_v13 = vld [vmem:[%s22360_s1 + $0xf88] sm:$0xff] }
 0x62a   : > { %14977 = vmatprep.mubr.f32.mxu1 %v21192_v63  ;;  %15060 = vmatprep.mubr.f32.mxu0 %v21134_v51  ;;  %v8258_v63 = vld [vmem:[#allocation3 + $0x198] sm:$0xff] }
 0x62b   : > { %15092 = vmatpush3.msra.mxu1 %v9328_v59  ;;  %15174 = vmatpush3.msra.mxu0 %v9600_v10  ;;  %v21525_v10 = vld [vmem:[#allocation3 + $0x3a] sm:$0xff] }
 0x62c   : > { %15093 = vmatprep.subr.mxu1 %v9327_v45  ;;  %15175 = vmatprep.subr.mxu0 %v9599_v39 }
 0x62d   : > { %14978 = vmatmul.mubr.f32.gmra.mxu1 %v21194_v30  ;;  %15061 = vmatmul.mubr.f32.gmra.mxu0 %v21122_v9  ;;  %v9324_v30 = vld [vmem:[%s22360_s1 + $0xf80] sm:$0xff] }
 0x62e   : > { %14980 = vmatprep.mubr.f32.mxu1 %v21204_v20  ;;  %15063 = vmatprep.mubr.f32.mxu0 %v21153_v15  ;;  %v15506_v20 = vld [vmem:[#allocation3 + $0x31] sm:$0xff] }
 0x62f   : > { %15094 = vmatpush3.msra.mxu1 %v9327_v45  ;;  %15176 = vmatpush3.msra.mxu0 %v9599_v39 }
 0x630   : > { %15095 = vmatprep.subr.mxu1 %v9326_v44  ;;  %15177 = vmatprep.subr.mxu0 %v9598_v3 }
 0x631   : > { %14981 = vmatmul.mubr.f32.gmra.mxu1 %v21206_v32  ;;  %15064 = vmatmul.mubr.f32.gmra.mxu0 %v21142_v7  ;;  %v9921_v32 = vld [vmem:[%s22360_s1 + $0xef8] sm:$0xff] }
 0x632   : > { %14983 = vmatprep.mubr.f32.mxu1 %v21215_v16  ;;  %15066 = vmatprep.mubr.f32.mxu0 %v21172_v37  ;;  %v15510_v16 = vld [vmem:[#allocation3 + $0x49] sm:$0xff] }
 0x633   : > { %15096 = vmatpush3.msra.mxu1 %v9326_v44  ;;  %15178 = vmatpush3.msra.mxu0 %v9598_v3  ;;  %v21530_v44 = vld [vmem:[#allocation3 + $0x4a] sm:$0xff] }
 0x634   : > { %15097 = vmatprep.subr.mxu1 %v9325_v13  ;;  %15179 = vmatprep.subr.mxu0 %v9597_v25 }
 0x635   : > { %14984 = vmatmul.mubr.f32.gmra.mxu1 %v21217_v58  ;;  %15067 = vmatmul.mubr.f32.gmra.mxu0 %v21161_v41  ;;  %v10193_v58 = vld [vmem:[%s22360_s1 + $0x1070] sm:$0xff] }
 0x636   : > { %15098 = vmatpush3.msra.mxu1 %v9325_v13  ;;  %15181 = vmatprep.mubr.f32.mxu0 %v15506_v20 }
 0x637   : > { %14986 = vmatprep.mubr.f32.mxu1 %v8258_v63  ;;  %15180 = vmatpush3.msra.mxu0 %v9597_v25  ;;  %v21538_v63 = vld [vmem:[#allocation3 + $0x52] sm:$0xff] }
 0x638   : > { %15099 = vmatprep.subr.mxu1 %v9324_v30  ;;  %15309 = vmatprep.subr.mxu0 %v10194_v21 }
 0x639   : > { %14987 = vmatmul.mubr.f32.gmra.mxu1 %v15507_v48  ;;  %15182 = vmatmul.mubr.f32.vlgmr.msra.gmra.mxu0 %v15508_v29 }
 0x63a   : > { %15100 = vmatpush3.msra.mxu1 %v9324_v30  ;;  %15101 = vmatprep.mubr.f32.mxu1 %v15509_v56 }
 0x63b   : > { %15184 = vmatprep.mubr.f32.mxu0 %v15510_v16  ;;  %15229 = vmatprep.subr.mxu1 %v9921_v32 }
 0x63c   : > { %15310 = vmatpush3.msra.mxu0 %v10194_v21 }
 0x63d   : > { %15102 = vmatmul.mubr.f32.vlgmr.msra.gmra.mxu1 %v15511_v24  ;;  %15185 = vmatmul.mubr.f32.gmra.mxu0 %v15512_v35 }
 0x63e   : > { %15104 = vmatprep.mubr.f32.mxu1 %v15506_v20  ;;  %15187 = vmatprep.mubr.f32.mxu0 %v15513_v27  ;;  %v21541_v20 = vld [vmem:[#allocation3 + $0x62] sm:$0xff] }
 0x63f   : > { %15230 = vmatpush3.msra.mxu1 %v9921_v32  ;;  %15311 = vmatprep.subr.mxu0 %v10193_v58  ;;  %v10465_v32 = vld [vmem:[%s22360_s1 + $0x11e8] sm:$0xff] }
 0x640   : > { %15231 = vmatprep.subr.mxu1 %v9920_v19  ;;  %15312 = vmatpush3.msra.mxu0 %v10193_v58  ;;  %v21552_v58 = vld [vmem:[#allocation3 + $0x6a] sm:$0xff] }
 0x641   : > { %15105 = vmatmul.mubr.f32.gmra.mxu1 %v15508_v29  ;;  %15188 = vmatmul.mubr.f32.gmra.mxu0 %v15514_v62 }
 0x642   : > { %15107 = vmatprep.mubr.f32.mxu1 %v15510_v16  ;;  %15190 = vmatprep.mubr.f32.mxu0 %v20906_v38  ;;  %v10190_v38 = vld [vmem:[%s22360_s1 + $0x1058] sm:$0xff] }
 0x643   : > { %15232 = vmatpush3.msra.mxu1 %v9920_v19  ;;  %15313 = vmatprep.subr.mxu0 %v10192_v23  ;;  %v21556_v19 = vld [vmem:[#allocation3 + $0x7a] sm:$0xff] }
 0x644   : > { %15233 = vmatprep.subr.mxu1 %v9919_v14  ;;  %15314 = vmatpush3.msra.mxu0 %v10192_v23 }
 0x645   : > { %15108 = vmatmul.mubr.f32.gmra.mxu1 %v15512_v35  ;;  %15191 = vmatmul.mubr.f32.gmra.mxu0 %v15515_v0 }
 0x646   : > { %15110 = vmatprep.mubr.f32.mxu1 %v15513_v27  ;;  %15193 = vmatprep.mubr.f32.mxu0 %v20936_v33  ;;  %v10464_v27 = vld [vmem:[%s22360_s1 + $0x11e0] sm:$0xff] }
 0x647   : > { %15234 = vmatpush3.msra.mxu1 %v9919_v14  ;;  %15315 = vmatprep.subr.mxu0 %v10191_v40 }
 0x648   : > { %15235 = vmatprep.subr.mxu1 %v9918_v17  ;;  %15316 = vmatpush3.msra.mxu0 %v10191_v40 }
 0x649   : > { %15111 = vmatmul.mubr.f32.gmra.mxu1 %v15514_v62  ;;  %15194 = vmatmul.mubr.f32.gmra.mxu0 %v20921_v60  ;;  %v9916_v60 = vld [vmem:[%s22360_s1 + $0xed0] sm:$0xff] }
 0x64a   : > { %15113 = vmatprep.mubr.f32.mxu1 %v15516_v8  ;;  %15196 = vmatprep.mubr.f32.mxu0 %v20966_v6  ;;  %v10463_v8 = vld [vmem:[%s22360_s1 + $0x11d8] sm:$0xff] }
 0x64b   : > { %15236 = vmatpush3.msra.mxu1 %v9918_v17  ;;  %15317 = vmatprep.subr.mxu0 %v10190_v38 }
 0x64c   : > { %15237 = vmatprep.subr.mxu1 %v9917_v5  ;;  %15318 = vmatpush3.msra.mxu0 %v10190_v38 }
 0x64d   : > { %15114 = vmatmul.mubr.f32.gmra.mxu1 %v15515_v0  ;;  %15197 = vmatmul.mubr.f32.gmra.mxu0 %v23134_v57  ;;  %v21567_v0 = vld [vmem:[#allocation3 + $0x82] sm:$0xff] }
 0x64e   : > { %15116 = vmatprep.mubr.f32.mxu1 %v20936_v33  ;;  %15199 = vmatprep.mubr.f32.mxu0 %v23135_v46  ;;  %v10187_v33 = vld [vmem:[%s22360_s1 + $0x1040] sm:$0xff] }
 0x64f   : > { %15238 = vmatpush3.msra.mxu1 %v9917_v5  ;;  %15319 = vmatprep.subr.mxu0 %v10189_v12  ;;  %v21571_v5 = vld [vmem:[#allocation3 + $0x92] sm:$0xff] }
 0x650   : > { %15239 = vmatprep.subr.mxu1 %v9916_v60  ;;  %15320 = vmatpush3.msra.mxu0 %v10189_v12 }
 0x651   : > { %15117 = vmatmul.mubr.f32.gmra.mxu1 %v15517_v26  ;;  %15200 = vmatmul.mubr.f32.gmra.mxu0 %v23136_v53 }
 0x652   : > { %15119 = vmatprep.mubr.f32.mxu1 %v20966_v6  ;;  %15202 = vmatprep.mubr.f32.mxu0 %v23137_v31  ;;  %v10186_v6 = vld [vmem:[%s22360_s1 + $0x1038] sm:$0xff] }
 0x653   : > { %15240 = vmatpush3.msra.mxu1 %v9916_v60  ;;  %15321 = vmatprep.subr.mxu0 %v10188_v49 }
 0x654   : > { %15241 = vmatprep.subr.mxu1 %v9915_v55  ;;  %15322 = vmatpush3.msra.mxu0 %v10188_v49 }
 0x655   : > { %15120 = vmatmul.mubr.f32.gmra.mxu1 %v23134_v57  ;;  %15203 = vmatmul.mubr.f32.gmra.mxu0 %v23138_v50  ;;  %v9913_v57 = vld [vmem:[%s22360_s1 + $0xeb8] sm:$0xff] }
 0x656   : > { %15122 = vmatprep.mubr.f32.mxu1 %v23135_v46  ;;  %15205 = vmatprep.mubr.f32.mxu0 %v23139_v52  ;;  %v10185_v46 = vld [vmem:[%s22360_s1 + $0x1030] sm:$0xff] }
 0x657   : > { %15242 = vmatpush3.msra.mxu1 %v9915_v55  ;;  %15323 = vmatprep.subr.mxu0 %v10187_v33  ;;  %v21582_v55 = vld [vmem:[#allocation3 + $0x9a] sm:$0xff] }
 0x658   : > { %15243 = vmatprep.subr.mxu1 %v9914_v2  ;;  %15324 = vmatpush3.msra.mxu0 %v10187_v33 }
 0x659   : > { %15123 = vmatmul.mubr.f32.gmra.mxu1 %v23136_v53  ;;  %15206 = vmatmul.mubr.f32.gmra.mxu0 %v23140_v61  ;;  %v9912_v53 = vld [vmem:[%s22360_s1 + $0xeb0] sm:$0xff] }
 0x65a   : > { %15125 = vmatprep.mubr.f32.mxu1 %v23137_v31  ;;  %15208 = vmatprep.mubr.f32.mxu0 %v21084_v18  ;;  %v10183_v31 = vld [vmem:[%s22360_s1 + $0x1020] sm:$0xff] }
 0x65b   : > { %15244 = vmatpush3.msra.mxu1 %v9914_v2  ;;  %15325 = vmatprep.subr.mxu0 %v10186_v6 }
 0x65c   : > { %15245 = vmatprep.subr.mxu1 %v9913_v57  ;;  %15326 = vmatpush3.msra.mxu0 %v10186_v6  ;;  %v21586_v6 = vld [vmem:[#allocation3 + $0xaa] sm:$0xff] }
 0x65d   : > { %15126 = vmatmul.mubr.f32.gmra.mxu1 %v23138_v50  ;;  %15209 = vmatmul.mubr.f32.gmra.mxu0 %v21069_v1  ;;  %v9910_v50 = vld [vmem:[%s22360_s1 + $0xea0] sm:$0xff] }
 0x65e   : > { %15128 = vmatprep.mubr.f32.mxu1 %v23139_v52  ;;  %15211 = vmatprep.mubr.f32.mxu0 %v21112_v22  ;;  %v9906_v52 = vld [vmem:[%s22360_s1 + $0xe80] sm:$0xff] }
 0x65f   : > { %15246 = vmatpush3.msra.mxu1 %v9913_v57  ;;  %15327 = vmatprep.subr.mxu0 %v10185_v46  ;;  %v10462_v57 = vld [vmem:[%s22360_s1 + $0x11d0] sm:$0xff] }
 0x660   : > { %15247 = vmatprep.subr.mxu1 %v9912_v53  ;;  %15328 = vmatpush3.msra.mxu0 %v10185_v46 }
 0x661   : > { %15129 = vmatmul.mubr.f32.gmra.mxu1 %v23140_v61  ;;  %15212 = vmatmul.mubr.f32.gmra.mxu0 %v21097_v54  ;;  %v9873_v61 = vld [vmem:[#allocation3 + $0x22] sm:$0xff] }
 0x662   : > { %15131 = vmatprep.mubr.f32.mxu1 %v21084_v18  ;;  %15214 = vmatprep.mubr.f32.mxu0 %v21134_v51  ;;  %v10182_v18 = vld [vmem:[%s22360_s1 + $0x1018] sm:$0xff] }
 0x663   : > { %15248 = vmatpush3.msra.mxu1 %v9912_v53  ;;  %15329 = vmatprep.subr.mxu0 %v10184_v11 }
 0x664   : > { %15249 = vmatprep.subr.mxu1 %v9911_v42  ;;  %15330 = vmatpush3.msra.mxu0 %v10184_v11 }
 0x665   : > { %15132 = vmatmul.mubr.f32.gmra.mxu1 %v21069_v1  ;;  %15215 = vmatmul.mubr.f32.gmra.mxu0 %v21122_v9  ;;  %v9909_v1 = vld [vmem:[%s22360_s1 + $0xe98] sm:$0xff] }
 0x666   : > { %15134 = vmatprep.mubr.f32.mxu1 %v21112_v22  ;;  %15217 = vmatprep.mubr.f32.mxu0 %v21153_v15  ;;  %v10181_v22 = vld [vmem:[%s22360_s1 + $0x1010] sm:$0xff] }
 0x667   : > { %15250 = vmatpush3.msra.mxu1 %v9911_v42  ;;  %15331 = vmatprep.subr.mxu0 %v10183_v31 }
 0x668   : > { %15251 = vmatprep.subr.mxu1 %v9910_v50  ;;  %15332 = vmatpush3.msra.mxu0 %v10183_v31  ;;  %v21597_v31 = vld [vmem:[#allocation3 + $0xb2] sm:$0xff] }
 0x669   : > { %15135 = vmatmul.mubr.f32.gmra.mxu1 %v21097_v54  ;;  %15218 = vmatmul.mubr.f32.gmra.mxu0 %v21142_v7  ;;  %v9908_v54 = vld [vmem:[%s22360_s1 + $0xe90] sm:$0xff] }
 0x66a   : > { %15137 = vmatprep.mubr.f32.mxu1 %v21134_v51  ;;  %15220 = vmatprep.mubr.f32.mxu0 %v21172_v37  ;;  %v9049_v51 = vld [vmem:[#allocation3 + $0x199] sm:$0xff] }
 0x66b   : > { %15252 = vmatpush3.msra.mxu1 %v9910_v50  ;;  %15333 = vmatprep.subr.mxu0 %v10182_v18 }
 0x66c   : > { %15253 = vmatprep.subr.mxu1 %v9909_v1  ;;  %15334 = vmatpush3.msra.mxu0 %v10182_v18 }
 0x66d   : > { %15138 = vmatmul.mubr.f32.gmra.mxu1 %v21122_v9  ;;  %15221 = vmatmul.mubr.f32.gmra.mxu0 %v21161_v41  ;;  %v10180_v9 = vld [vmem:[%s22360_s1 + $0x1008] sm:$0xff] }
 0x66e   : > { %15140 = vmatprep.mubr.f32.mxu1 %v21153_v15  ;;  %15223 = vmatprep.mubr.f32.mxu0 %v21190_v28  ;;  %v9050_v15 = vld [vmem:[#allocation3 + $0x1a1] sm:$0xff] }
 0x66f   : > { %15254 = vmatpush3.msra.mxu1 %v9909_v1  ;;  %15335 = vmatprep.subr.mxu0 %v10181_v22  ;;  %v21601_v1 = vld [vmem:[#allocation3 + $0xc2] sm:$0xff] }
 0x670   : > { %15255 = vmatprep.subr.mxu1 %v9908_v54  ;;  %15336 = vmatpush3.msra.mxu0 %v10181_v22  ;;  %v10461_v22 = vld [vmem:[%s22360_s1 + $0x11c8] sm:$0xff] }
 0x671   : > { %15141 = vmatmul.mubr.f32.gmra.mxu1 %v21142_v7  ;;  %15224 = vmatmul.mubr.f32.gmra.mxu0 %v21180_v4  ;;  %v21512_v7 = vpop.f32.mrf.mxu0 }
 0x672   : > { %15143 = vmatprep.mubr.f32.mxu1 %v21172_v37  ;;  %15256 = vmatpush3.msra.mxu1 %v9908_v54  ;;  %v9872_v37 = vld [vmem:[#allocation3 + $0x1a] sm:$0xff] }
 0x673   : > { %15226 = vmatprep.mubr.f32.mxu0 %v9049_v51  ;;  %15257 = vmatprep.subr.mxu1 %v9907_v36  ;;  %v8583_v59 = vpop.f32.mrf.mxu0 }
 0x674   : > { %15337 = vmatprep.subr.mxu0 %v10180_v9  ;;  %15258 = vmatpush3.msra.mxu1 %v9907_v36 }
 0x675   : > { %15144 = vmatmul.mubr.f32.gmra.mxu1 %v21161_v41  ;;  %15227 = vmatmul.mubr.f32.gmra.mxu0 %v9050_v15  ;;  %v10467_v41 = vld [vmem:[%s22360_s1 + $0x11f8] sm:$0xff] }
 0x676   : > { %15146 = vmatprep.mubr.f32.mxu1 %v21190_v28  ;;  %15338 = vmatpush3.msra.mxu0 %v10180_v9  ;;  %v9871_v28 = vld [vmem:[#allocation3 + $0xa] sm:$0xff] }
 0x677   : > { %15341 = vmatprep.mubr.f32.mxu0 %v9872_v37  ;;  %15339 = vmatprep.subr.mxu0 %v10179_v47  ;;  %v21612_v15 = vld [vmem:[#allocation3 + $0xca] sm:$0xff] }
 0x678   : > { %15340 = vmatpush3.msra.mxu0 %v10179_v47  ;;  %15259 = vmatprep.subr.mxu1 %v9906_v52 }
 0x679   : > { %15147 = vmatmul.mubr.f32.gmra.mxu1 %v21180_v4  ;;  %15342 = vmatmul.mubr.f32.vlgmr.msra.gmra.mxu0 %v9873_v61  ;;  %v10466_v4 = vld [vmem:[%s22360_s1 + $0x11f0] sm:$0xff] }
 0x67a   : > { %15260 = vmatpush3.msra.mxu1 %v9906_v52  ;;  %15344 = vmatprep.mubr.f32.mxu0 %v21522_v43  ;;  %v21527_v45 = vpop.f32.mrf.mxu1 }
 0x67b   : > { %15261 = vmatprep.mubr.f32.mxu1 %v9870_v34  ;;  %15389 = vmatprep.subr.mxu1 %v10467_v41  ;;  %v14866_v39 = vpop.f32.mrf.mxu0 }
 0x67c   : > { %v8358_v3 = vpop.f32.mrf.mxu1 }
 0x67d   : > { %15262 = vmatmul.mubr.f32.vlgmr.msra.gmra.mxu1 %v9871_v28  ;;  %15345 = vmatmul.mubr.f32.gmra.mxu0 %v21525_v10  ;;  %v8593_v13 = vpop.f32.mrf.mxu0  ;;  %v21536_v25 = vadd.f32 %v8583_v59, %v8358_v3 }
 0x67e   : > { %15264 = vmatprep.mubr.f32.mxu1 %v9872_v37  ;;  %15347 = vmatprep.mubr.f32.mxu0 %v21530_v44  ;;  %v21616_v37 = vld [vmem:[#allocation3 + $0xda] sm:$0xff] }
 0x67f   : > { %15390 = vmatpush3.msra.mxu1 %v10467_v41  ;;  %v14786_v30 = vpop.f32.mrf.mxu1  ;;  %v14869_v21 = vpop.f32.mrf.mxu0 }
 0x680   : > { %15391 = vmatprep.subr.mxu1 %v10466_v4  ;;  %v21546_v48 = vadd.f32 %v14866_v39, %v14786_v30  ;;  %v21627_v39 = vld [vmem:[#allocation3 + $0xe2] sm:$0xff] }
 0x681   : > { %15265 = vmatmul.mubr.f32.gmra.mxu1 %v9873_v61  ;;  %15348 = vmatmul.mubr.f32.gmra.mxu0 %v21538_v63  ;;  %v8368_v29 = vpop.f32.mrf.mxu1  ;;  %v8603_v56 = vpop.f32.mrf.mxu0  ;;  %v10460_v61 = vld [vmem:[%s22360_s1 + $0x11c0] sm:$0xff]  ;;  %v10459_v30 = vld [vmem:[%s22360_s1 + $0x11b8] sm:$0xff] }
 0x682   : > { %15267 = vmatprep.mubr.f32.mxu1 %v21522_v43  ;;  %15350 = vmatprep.mubr.f32.mxu0 %v21541_v20  ;;  %v21550_v16 = vadd.f32 %v8593_v13, %v8368_v29  ;;  %v21631_v13 = vld [vmem:[#allocation3 + $0xf2] sm:$0xff] }
 0x683   : > { %15392 = vmatpush3.msra.mxu1 %v10466_v4  ;;  %v14789_v24 = vpop.f32.mrf.mxu1  ;;  %v14872_v35 = vpop.f32.mrf.mxu0 }
 0x684   : > { %15393 = vmatprep.subr.mxu1 %v10465_v32  ;;  %v21561_v23 = vadd.f32 %v14869_v21, %v14789_v24  ;;  %v21642_v24 = vld [vmem:[#allocation3 + $0xfa] sm:$0xff] }
 0x685   : > { %15268 = vmatmul.mubr.f32.gmra.mxu1 %v21525_v10  ;;  %15351 = vmatmul.mubr.f32.gmra.mxu0 %v21552_v58  ;;  %v8378_v62 = vpop.f32.mrf.mxu1  ;;  %v8613_v14 = vpop.f32.mrf.mxu0 }
 0x686   : > { %15270 = vmatprep.mubr.f32.mxu1 %v21530_v44  ;;  %15353 = vmatprep.mubr.f32.mxu0 %v21556_v19  ;;  %v21565_v40 = vadd.f32 %v8603_v56, %v8378_v62  ;;  %v21646_v62 = vld [vmem:[#allocation3 + $0x10a] sm:$0xff] }
 0x687   : > { %15394 = vmatpush3.msra.mxu1 %v10465_v32  ;;  %v14792_v17 = vpop.f32.mrf.mxu1  ;;  %v14875_v38 = vpop.f32.mrf.mxu0 }
 0x688   : > { %15395 = vmatprep.subr.mxu1 %v10464_v27  ;;  %v21576_v12 = vadd.f32 %v14872_v35, %v14792_v17 }
 0x689   : > { %15271 = vmatmul.mubr.f32.gmra.mxu1 %v21538_v63  ;;  %15354 = vmatmul.mubr.f32.gmra.mxu0 %v21567_v0  ;;  %v8388_v60 = vpop.f32.mrf.mxu1  ;;  %v8623_v49 = vpop.f32.mrf.mxu0 }
 0x68a   : > { %15273 = vmatprep.mubr.f32.mxu1 %v21541_v20  ;;  %15356 = vmatprep.mubr.f32.mxu0 %v21571_v5  ;;  %v21580_v26 = vadd.f32 %v8613_v14, %v8388_v60  ;;  %v10458_v14 = vld [vmem:[%s22360_s1 + $0x11b0] sm:$0xff] }
 0x68b   : > { %15396 = vmatpush3.msra.mxu1 %v10464_v27  ;;  %v14795_v33 = vpop.f32.mrf.mxu1 }
 0x68c   : > { %15397 = vmatprep.subr.mxu1 %v10463_v8  ;;  %v14878_v2 = vpop.f32.mrf.mxu0  ;;  %v21591_v46 = vadd.f32 %v14875_v38, %v14795_v33 }
 0x68d   : > { %15274 = vmatmul.mubr.f32.gmra.mxu1 %v21552_v58  ;;  %15357 = vmatmul.mubr.f32.gmra.mxu0 %v21582_v55  ;;  %v8398_v53 = vpop.f32.mrf.mxu1 }
 0x68e   : > { %15276 = vmatprep.mubr.f32.mxu1 %v21556_v19  ;;  %15359 = vmatprep.mubr.f32.mxu0 %v21586_v6  ;;  %v8633_v11 = vpop.f32.mrf.mxu0  ;;  %v21595_v42 = vadd.f32 %v8623_v49, %v8398_v53  ;;  %v21657_v49 = vld [vmem:[#allocation3 + $0x112] sm:$0xff] }
 0x68f   : > { %15398 = vmatpush3.msra.mxu1 %v10463_v8  ;;  %v10457_v53 = vld [vmem:[%s22360_s1 + $0x11a8] sm:$0xff] }
 0x690   : > { %15399 = vmatprep.subr.mxu1 %v10462_v57  ;;  %v14798_v50 = vpop.f32.mrf.mxu1  ;;  %v14881_v18 = vpop.f32.mrf.mxu0 }
 0x691   : > { %15277 = vmatmul.mubr.f32.gmra.mxu1 %v21567_v0  ;;  %15360 = vmatmul.mubr.f32.gmra.mxu0 %v21597_v31  ;;  %v21606_v54 = vadd.f32 %v14878_v2, %v14798_v50 }
 0x692   : > { %15279 = vmatprep.mubr.f32.mxu1 %v21571_v5  ;;  %15362 = vmatprep.mubr.f32.mxu0 %v21601_v1  ;;  %v8408_v51 = vpop.f32.mrf.mxu1  ;;  %v8643_v36 = vpop.f32.mrf.mxu0 }
 0x693   : > { %15400 = vmatpush3.msra.mxu1 %v10462_v57  ;;  %v21610_v9 = vadd.f32 %v8633_v11, %v8408_v51  ;;  %v21661_v57 = vld [vmem:[#allocation3 + $0x122] sm:$0xff]  ;;  %v21672_v51 = vld [vmem:[#allocation3 + $0x12a] sm:$0xff] }
 0x694   : > { %15401 = vmatprep.subr.mxu1 %v10461_v22  ;;  %v14801_v47 = vpop.f32.mrf.mxu1  ;;  %v14884_v52 = vpop.f32.mrf.mxu0 }
 0x695   : > { %15280 = vmatmul.mubr.f32.gmra.mxu1 %v21582_v55  ;;  %15363 = vmatmul.mubr.f32.gmra.mxu0 %v21612_v15  ;;  %v21621_v34 = vadd.f32 %v14881_v18, %v14801_v47 }
 0x696   : > { %15282 = vmatprep.mubr.f32.mxu1 %v21586_v6  ;;  %15365 = vmatprep.mubr.f32.mxu0 %v21616_v37  ;;  %v8418_v41 = vpop.f32.mrf.mxu1  ;;  %v8653_v59 = vpop.f32.mrf.mxu0 }
 0x697   : > { %15402 = vmatpush3.msra.mxu1 %v10461_v22  ;;  %v21625_v28 = vadd.f32 %v8643_v36, %v8418_v41 }
 0x698   : > { %15403 = vmatprep.subr.mxu1 %v10460_v61 }
 0x699   : > { %v14804_v4 = vpop.f32.mrf.mxu1  ;;  %v14887_v3 = vpop.f32.mrf.mxu0  ;;  %15283 = vmatmul.mubr.f32.gmra.mxu1 %v21597_v31  ;;  %15366 = vmatmul.mubr.f32.gmra.mxu0 %v21627_v39 }
 0x69a   : > { %v21636_v21 = vadd.f32 %v14884_v52, %v14804_v4  ;;  %15285 = vmatprep.mubr.f32.mxu1 %v21601_v1  ;;  %15368 = vmatprep.mubr.f32.mxu0 %v21631_v13  ;;  %v21676_v52 = vld [vmem:[#allocation3 + $0x13a] sm:$0xff] }
 0x69b   : > { %15404 = vmatpush3.msra.mxu1 %v10460_v61  ;;  %v8428_v32 = vpop.f32.mrf.mxu1  ;;  %v8663_v29 = vpop.f32.mrf.mxu0  ;;  %v10456_v61 = vld [vmem:[%s22360_s1 + $0x11a0] sm:$0xff] }
 0x69c   : > { %v21640_v56 = vadd.f32 %v8653_v59, %v8428_v32  ;;  %15405 = vmatprep.subr.mxu1 %v10459_v30 }
 0x69d   : > { %v14807_v35 = vpop.f32.mrf.mxu1  ;;  %v14890_v27 = vpop.f32.mrf.mxu0  ;;  %15286 = vmatmul.mubr.f32.gmra.mxu1 %v21612_v15  ;;  %15369 = vmatmul.mubr.f32.gmra.mxu0 %v21642_v24 }
 0x69e   : > { %v21651_v17 = vadd.f32 %v14887_v3, %v14807_v35  ;;  %15288 = vmatprep.mubr.f32.mxu1 %v21616_v37  ;;  %15371 = vmatprep.mubr.f32.mxu0 %v21646_v62  ;;  %v21691_v35 = vld [vmem:[#allocation3 + $0x152] sm:$0xff] }
 0x69f   : > { %15406 = vmatpush3.msra.mxu1 %v10459_v30  ;;  %v8438_v38 = vpop.f32.mrf.mxu1  ;;  %v8673_v8 = vpop.f32.mrf.mxu0  ;;  %v21687_v30 = vld [vmem:[#allocation3 + $0x142] sm:$0xff] }
 0x6a0   : > { %v21655_v60 = vadd.f32 %v8663_v29, %v8438_v38  ;;  %15407 = vmatprep.subr.mxu1 %v10458_v14  ;;  %23142 = vst [vmem:[#allocation52_spill] sm:$0xff] %v21687_v30 }
 0x6a1   : > { %v14810_v33 = vpop.f32.mrf.mxu1  ;;  %v14893_v2 = vpop.f32.mrf.mxu0  ;;  %15289 = vmatmul.mubr.f32.gmra.mxu1 %v21627_v39  ;;  %15372 = vmatmul.mubr.f32.gmra.mxu0 %v21657_v49 }
 0x6a2   : > { %v21666_v11 = vadd.f32 %v14890_v27, %v14810_v33  ;;  %15291 = vmatprep.mubr.f32.mxu1 %v21631_v13  ;;  %15374 = vmatprep.mubr.f32.mxu0 %v21661_v57  ;;  %v10455_v27 = vld [vmem:[%s22360_s1 + $0x1198] sm:$0xff] }
 0x6a3   : > { %15408 = vmatpush3.msra.mxu1 %v10458_v14  ;;  %v8448_v50 = vpop.f32.mrf.mxu1  ;;  %v8683_v18 = vpop.f32.mrf.mxu0 }
 0x6a4   : > { %v21670_v22 = vadd.f32 %v8673_v8, %v8448_v50  ;;  %15409 = vmatprep.subr.mxu1 %v10457_v53 }
 0x6a5   : > { %v14813_v36 = vpop.f32.mrf.mxu1  ;;  %v14896_v47 = vpop.f32.mrf.mxu0  ;;  %15292 = vmatmul.mubr.f32.gmra.mxu1 %v21642_v24  ;;  %15375 = vmatmul.mubr.f32.gmra.mxu0 %v21672_v51 }
 0x6a6   : > { %v21681_v41 = vadd.f32 %v14893_v2, %v14813_v36  ;;  %15294 = vmatprep.mubr.f32.mxu1 %v21646_v62  ;;  %15377 = vmatprep.mubr.f32.mxu0 %v21676_v52  ;;  %v21702_v2 = vld [vmem:[#allocation3 + $0x15a] sm:$0xff] }
 0x6a7   : > { %15410 = vmatpush3.msra.mxu1 %v10457_v53  ;;  %v8458_v59 = vpop.f32.mrf.mxu1  ;;  %v8693_v4 = vpop.f32.mrf.mxu0  ;;  %v10454_v36 = vld [vmem:[%s22360_s1 + $0x1190] sm:$0xff] }
 0x6a8   : > { %v21685_v3 = vadd.f32 %v8683_v18, %v8458_v59  ;;  %15411 = vmatprep.subr.mxu1 %v10456_v61  ;;  %v21706_v18 = vld [vmem:[#allocation3 + $0x16a] sm:$0xff] }
 0x6a9   : > { %v14816_v32 = vpop.f32.mrf.mxu1  ;;  %v14899_v29 = vpop.f32.mrf.mxu0  ;;  %15295 = vmatmul.mubr.f32.gmra.mxu1 %v21657_v49  ;;  %15378 = vmatmul.mubr.f32.gmra.mxu0 %v21687_v30 }
 0x6aa   : > { %23141 = vst [vmem:[#allocation70_spill] sm:$0xff] %v21685_v3  ;;  %v21696_v14 = vadd.f32 %v14896_v47, %v14816_v32  ;;  %15297 = vmatprep.mubr.f32.mxu1 %v21661_v57  ;;  %15380 = vmatprep.mubr.f32.mxu0 %v21691_v35  ;;  %v21717_v32 = vld [vmem:[#allocation3 + $0x172] sm:$0xff] }
 0x6ab   : > { %15412 = vmatpush3.msra.mxu1 %v10456_v61  ;;  %v8468_v38 = vpop.f32.mrf.mxu1  ;;  %v8703_v8 = vpop.f32.mrf.mxu0 }
 0x6ac   : > { %23143 = vst [vmem:[#allocation41_spill] sm:$0xff] %v21696_v14  ;;  %v21700_v33 = vadd.f32 %v8693_v4, %v8468_v38  ;;  %15413 = vmatprep.subr.mxu1 %v10455_v27  ;;  %v10452_v14 = vld [vmem:[%s22360_s1 + $0x1180] sm:$0xff] }
 0x6ad   : > { %v14819_v53 = vpop.f32.mrf.mxu1  ;;  %v14902_v50 = vpop.f32.mrf.mxu0  ;;  %15298 = vmatmul.mubr.f32.gmra.mxu1 %v21672_v51  ;;  %15381 = vmatmul.mubr.f32.gmra.mxu0 %v21702_v2 }
 0x6ae   : > { %23144 = vst [vmem:[#allocation66_spill] sm:$0xff] %v21700_v33  ;;  %v21711_v47 = vadd.f32 %v14899_v29, %v14819_v53  ;;  %15300 = vmatprep.mubr.f32.mxu1 %v21676_v52  ;;  %15383 = vmatprep.mubr.f32.mxu0 %v21706_v18  ;;  %v21721_v29 = vld [vmem:[#allocation3 + $0x182] sm:$0xff]  ;;  %v10453_v53 = vld [vmem:[%s22360_s1 + $0x1188] sm:$0xff] }
 0x6af   : > { %15414 = vmatpush3.msra.mxu1 %v10455_v27  ;;  %v8478_v61 = vpop.f32.mrf.mxu1  ;;  %v8713_v59 = vpop.f32.mrf.mxu0  ;;  %23147 = vst [vmem:[#allocation46_spill] sm:$0xff] %v21721_v29 }
 0x6b0   : > { %23145 = vst [vmem:[#allocation86_spill] sm:$0xff] %v21711_v47  ;;  %v21715_v4 = vadd.f32 %v8703_v8, %v8478_v61  ;;  %15415 = vmatprep.subr.mxu1 %v10454_v36  ;;  %v21732_v47 = vld [vmem:[#allocation3 + $0x18a] sm:$0xff] }
 0x6b1   : > { %v14822_v38 = vpop.f32.mrf.mxu1  ;;  %v14905_v33 = vpop.f32.mrf.mxu0  ;;  %15301 = vmatmul.mubr.f32.gmra.mxu1 %v21687_v30  ;;  %15384 = vmatmul.mubr.f32.gmra.mxu0 %v21717_v32  ;;  %23150 = vst [vmem:[#allocation67_spill] sm:$0xff] %v21732_v47 }
 0x6b2   : > { %23146 = vst [vmem:[#allocation88_spill] sm:$0xff] %v21715_v4  ;;  %v21726_v27 = vadd.f32 %v14902_v50, %v14822_v38  ;;  %15303 = vmatprep.mubr.f32.mxu1 %v21691_v35  ;;  %15386 = vmatprep.mubr.f32.mxu0 %v21721_v29 }
 0x6b3   : > { %15416 = vmatpush3.msra.mxu1 %v10454_v36  ;;  %v8488_v8 = vpop.f32.mrf.mxu1  ;;  %v8723_v61 = vpop.f32.mrf.mxu0 }
 0x6b4   : > { %23148 = vst [vmem:[#allocation59_spill] sm:$0xff] %v21726_v27  ;;  %v21730_v4 = vadd.f32 %v8713_v59, %v8488_v8  ;;  %15417 = vmatprep.subr.mxu1 %v10453_v53 }
 0x6b5   : > { %v14825_v30 = vpop.f32.mrf.mxu1  ;;  %v14908_v3 = vpop.f32.mrf.mxu0  ;;  %15304 = vmatmul.mubr.f32.gmra.mxu1 %v21702_v2  ;;  %15387 = vmatmul.mubr.f32.gmra.mxu0 %v21732_v47 }
 0x6b6   : > { %23149 = vst [vmem:[#allocation102_spill] sm:$0xff] %v21730_v4  ;;  %v21739_v50 = vadd.f32 %v14905_v33, %v14825_v30  ;;  %15306 = vmatprep.mubr.f32.mxu1 %v21706_v18  ;;  %15418 = vmatpush3.msra.mxu1 %v10453_v53  ;;  %v8589_v33 = vadd.f32 %v21512_v7, %v21527_v45 }
 0x6b7   : > { %v8498_v36 = vpop.f32.mrf.mxu1  ;;  %v8733_v59 = vpop.f32.mrf.mxu0  ;;  %15419 = vmatprep.subr.mxu1 %v10452_v14 }
 0x6b8   : > { %23151 = vst [vmem:[#allocation84_spill] sm:$0xff] %v21739_v50  ;;  %v21742_v38 = vadd.f32 %v8723_v61, %v8498_v36  ;;  %15420 = vmatpush3.msra.mxu1 %v10452_v14 }
 0x6b9   : > { %v14828_v8 = vpop.f32.mrf.mxu1  ;;  %v15023_v4 = vpop.f32.mrf.mxu0  ;;  %15307 = vmatmul.mubr.f32.gmra.mxu1 %v21717_v32 }
 0x6ba   : > { %v21745_v29 = vadd.f32 %v14908_v3, %v14828_v8  ;;  %15421 = vmatprep.mubr.f32.mxu1 %v21522_v43 }
 0x6bb   : > { %v8508_v47 = vpop.f32.mrf.mxu1  ;;  %v9133_v30 = vpop.f32.mrf.mxu0 }
 0x6bc   : > { %23152 = vst [vmem:[#allocation80_spill] sm:$0xff] %v21745_v29  ;;  %v21750_v53 = vadd.f32 %v8733_v59, %v8508_v47 }
 0x6bd   : > { %v14943_v50 = vpop.f32.mrf.mxu1  ;;  %v15026_v27 = vpop.f32.mrf.mxu0  ;;  %15422 = vmatmul.mubr.f32.vlgmr.msra.gmra.mxu1 %v21525_v10 }
 0x6be   : > { %v8984_v14 = vadd.f32 %v14943_v50, %v8589_v33  ;;  %15424 = vmatprep.mubr.f32.mxu1 %v21530_v44 }
 0x6bf   : > { %v8824_v61 = vpop.f32.mrf.mxu1  ;;  %v9143_v36 = vpop.f32.mrf.mxu0 }
 0x6c0   : > { %v8983_v3 = vadd.f32 %v8824_v61, %v21536_v25  ;;  %v21755_v8 = vadd.f32 %v15023_v4, %v8984_v14 }
 0x6c1   : > { %v14946_v43 = vpop.f32.mrf.mxu1  ;;  %v15029_v29 = vpop.f32.mrf.mxu0  ;;  %15425 = vmatmul.mubr.f32.gmra.mxu1 %v21538_v63 }
 0x6c2   : > { %v8986_v7 = vadd.f32 %v14946_v43, %v21546_v48  ;;  %15427 = vmatprep.mubr.f32.mxu1 %v21541_v20  ;;  %v21760_v45 = vadd.f32 %v9133_v30, %v8983_v3 }
 0x6c3   : > { %v8834_v10 = vpop.f32.mrf.mxu1  ;;  %v9153_v47 = vpop.f32.mrf.mxu0 }
 0x6c4   : > { %v8985_v44 = vadd.f32 %v8834_v10, %v21550_v16  ;;  %v21763_v50 = vadd.f32 %v15026_v27, %v8986_v7 }
 0x6c5   : > { %v14949_v59 = vpop.f32.mrf.mxu1  ;;  %v15032_v25 = vpop.f32.mrf.mxu0  ;;  %15428 = vmatmul.mubr.f32.gmra.mxu1 %v21552_v58 }
 0x6c6   : > { %v8988_v4 = vadd.f32 %v14949_v59, %v21561_v23  ;;  %15430 = vmatprep.mubr.f32.mxu1 %v21556_v19  ;;  %v21768_v63 = vadd.f32 %v9143_v36, %v8985_v44 }
 0x6c7   : > { %v8844_v48 = vpop.f32.mrf.mxu1  ;;  %v9163_v20 = vpop.f32.mrf.mxu0 }
 0x6c8   : > { %v8987_v30 = vadd.f32 %v8844_v48, %v21565_v40  ;;  %v21771_v33 = vadd.f32 %v15029_v29, %v8988_v4 }
 0x6c9   : > { %v14952_v14 = vpop.f32.mrf.mxu1  ;;  %v15035_v16 = vpop.f32.mrf.mxu0  ;;  %15431 = vmatmul.mubr.f32.gmra.mxu1 %v21567_v0 }
 0x6ca   : > { %v8990_v27 = vadd.f32 %v14952_v14, %v21576_v12  ;;  %15433 = vmatprep.mubr.f32.mxu1 %v21571_v5  ;;  %v21776_v58 = vadd.f32 %v9153_v47, %v8987_v30 }
 0x6cb   : > { %v8854_v23 = vpop.f32.mrf.mxu1  ;;  %v9173_v19 = vpop.f32.mrf.mxu0 }
 0x6cc   : > { %v8989_v61 = vadd.f32 %v8854_v23, %v21580_v26  ;;  %v21779_v36 = vadd.f32 %v15032_v25, %v8990_v27 }
 0x6cd   : > { %v14955_v3 = vpop.f32.mrf.mxu1  ;;  %v15038_v40 = vpop.f32.mrf.mxu0  ;;  %15434 = vmatmul.mubr.f32.gmra.mxu1 %v21582_v55 }
 0x6ce   : > { %v8992_v29 = vadd.f32 %v14955_v3, %v21591_v46  ;;  %15436 = vmatprep.mubr.f32.mxu1 %v21586_v6  ;;  %v21784_v0 = vadd.f32 %v9163_v20, %v8989_v61 }
 0x6cf   : > { %v8864_v12 = vpop.f32.mrf.mxu1  ;;  %v9183_v5 = vpop.f32.mrf.mxu0 }
 0x6d0   : > { %v8991_v43 = vadd.f32 %v8864_v12, %v21595_v42  ;;  %v21787_v7 = vadd.f32 %v15035_v16, %v8992_v29 }
 0x6d1   : > { %v14958_v10 = vpop.f32.mrf.mxu1  ;;  %v15041_v26 = vpop.f32.mrf.mxu0  ;;  %15437 = vmatmul.mubr.f32.gmra.mxu1 %v21597_v31 }
 0x6d2   : > { %v8994_v47 = vadd.f32 %v14958_v10, %v21606_v54  ;;  %15439 = vmatprep.mubr.f32.mxu1 %v21601_v1  ;;  %v21792_v55 = vadd.f32 %v9173_v19, %v8991_v43 }
 0x6d3   : > { %v8874_v46 = vpop.f32.mrf.mxu1  ;;  %v9193_v6 = vpop.f32.mrf.mxu0 }
 0x6d4   : > { %v8993_v44 = vadd.f32 %v8874_v46, %v21610_v9  ;;  %v21795_v59 = vadd.f32 %v15038_v40, %v8994_v47 }
 0x6d5   : > { %v14961_v25 = vpop.f32.mrf.mxu1  ;;  %v15044_v42 = vpop.f32.mrf.mxu0  ;;  %15440 = vmatmul.mubr.f32.gmra.mxu1 %v21612_v15 }
 0x6d6   : > { %v8996_v4 = vadd.f32 %v14961_v25, %v21621_v34  ;;  %15442 = vmatprep.mubr.f32.mxu1 %v21616_v37  ;;  %v21800_v31 = vadd.f32 %v9183_v5, %v8993_v44  ;;  %v23154_v44 = vld [vmem:[#allocation52_spill] sm:$0xff]  ;;  %v23155_v25 = vld [vmem:[#allocation41_spill] sm:$0xff] }
 0x6d7   : > { %v8884_v54 = vpop.f32.mrf.mxu1  ;;  %v9203_v1 = vpop.f32.mrf.mxu0 }
 0x6d8   : > { %v8995_v48 = vadd.f32 %v8884_v54, %v21625_v28  ;;  %v21803_v20 = vadd.f32 %v15041_v26, %v8996_v4  ;;  %v23153_v26 = vld [vmem:[#allocation70_spill] sm:$0xff] }
 0x6d9   : > { %v14964_v30 = vpop.f32.mrf.mxu1  ;;  %v15047_v9 = vpop.f32.mrf.mxu0  ;;  %15443 = vmatmul.mubr.f32.gmra.mxu1 %v21627_v39  ;;  %v23156_v4 = vld [vmem:[#allocation66_spill] sm:$0xff] }
 0x6da   : > { %v8998_v14 = vadd.f32 %v14964_v30, %v21636_v21  ;;  %15445 = vmatprep.mubr.f32.mxu1 %v21631_v13  ;;  %v21808_v15 = vadd.f32 %v9193_v6, %v8995_v48 }
 0x6db   : > { %v8894_v34 = vpop.f32.mrf.mxu1  ;;  %v9213_v37 = vpop.f32.mrf.mxu0 }
 0x6dc   : > { %v8997_v16 = vadd.f32 %v8894_v34, %v21640_v56  ;;  %v21811_v27 = vadd.f32 %v15044_v42, %v8998_v14 }
 0x6dd   : > { %v14967_v23 = vpop.f32.mrf.mxu1  ;;  %v15050_v28 = vpop.f32.mrf.mxu0  ;;  %15446 = vmatmul.mubr.f32.gmra.mxu1 %v21642_v24 }
 0x6de   : > { %v9000_v19 = vadd.f32 %v14967_v23, %v21651_v17  ;;  %15448 = vmatprep.mubr.f32.mxu1 %v21646_v62  ;;  %v21816_v39 = vadd.f32 %v9203_v1, %v8997_v16  ;;  %v23158_v16 = vld [vmem:[#allocation88_spill] sm:$0xff] }
 0x6df   : > { %v8904_v21 = vpop.f32.mrf.mxu1  ;;  %v9223_v13 = vpop.f32.mrf.mxu0 }
 0x6e0   : > { %v8999_v61 = vadd.f32 %v8904_v21, %v21655_v60  ;;  %v21819_v3 = vadd.f32 %v15047_v9, %v9000_v19  ;;  %v23157_v9 = vld [vmem:[#allocation86_spill] sm:$0xff] }
 0x6e1   : > { %v14970_v40 = vpop.f32.mrf.mxu1  ;;  %v15053_v56 = vpop.f32.mrf.mxu0  ;;  %15449 = vmatmul.mubr.f32.gmra.mxu1 %v21657_v49 }
 0x6e2   : > { %v9002_v29 = vadd.f32 %v14970_v40, %v21666_v11  ;;  %15451 = vmatprep.mubr.f32.mxu1 %v21661_v57  ;;  %v21824_v24 = vadd.f32 %v9213_v37, %v8999_v61  ;;  %v23160_v40 = vld [vmem:[#allocation46_spill] sm:$0xff] }
 0x6e3   : > { %v8914_v17 = vpop.f32.mrf.mxu1  ;;  %v9233_v62 = vpop.f32.mrf.mxu0 }
 0x6e4   : > { %v9001_v12 = vadd.f32 %v8914_v17, %v21670_v22  ;;  %v21827_v5 = vadd.f32 %v15050_v28, %v9002_v29  ;;  %v9904_v29 = vld [vmem:[#allocation3 + $0x19a] sm:$0xff] }
 0x6e5   : > { %v14973_v43 = vpop.f32.mrf.mxu1  ;;  %v15056_v60 = vpop.f32.mrf.mxu0  ;;  %15452 = vmatmul.mubr.f32.gmra.mxu1 %v21672_v51  ;;  %v23161_v17 = vld [vmem:[#allocation102_spill] sm:$0xff] }
 0x6e6   : > { %v9004_v10 = vadd.f32 %v14973_v43, %v21681_v41  ;;  %15454 = vmatprep.mubr.f32.mxu1 %v21676_v52  ;;  %v21832_v49 = vadd.f32 %v9223_v13, %v9001_v12  ;;  %v23159_v13 = vld [vmem:[#allocation59_spill] sm:$0xff] }
 0x6e7   : > { %v8924_v11 = vpop.f32.mrf.mxu1  ;;  %v9243_v57 = vpop.f32.mrf.mxu0 }
 0x6e8   : > { %v9003_v47 = vadd.f32 %v8924_v11, %v23153_v26  ;;  %v21835_v46 = vadd.f32 %v15053_v56, %v9004_v10  ;;  %v23162_v10 = vld [vmem:[#allocation67_spill] sm:$0xff]  ;;  %v23163_v11 = vld [vmem:[#allocation84_spill] sm:$0xff] }
 0x6e9   : > { %v14976_v6 = vpop.f32.mrf.mxu1  ;;  %v15059_v22 = vpop.f32.mrf.mxu0  ;;  %15455 = vmatmul.mubr.f32.gmra.mxu1 %v23154_v44 }
 0x6ea   : > { %v9006_v42 = vadd.f32 %v14976_v6, %v23155_v25  ;;  %15457 = vmatprep.mubr.f32.mxu1 %v21691_v35  ;;  %v21840_v51 = vadd.f32 %v9233_v62, %v9003_v47 }
 0x6eb   : > { %v8934_v41 = vpop.f32.mrf.mxu1  ;;  %v9253_v52 = vpop.f32.mrf.mxu0 }
 0x6ec   : > { %v9005_v54 = vadd.f32 %v8934_v41, %v23156_v4  ;;  %v21843_v1 = vadd.f32 %v15056_v60, %v9006_v42  ;;  %v23164_v41 = vld [vmem:[#allocation80_spill] sm:$0xff] }
 0x6ed   : > { %v14979_v48 = vpop.f32.mrf.mxu1  ;;  %v15062_v30 = vpop.f32.mrf.mxu0  ;;  %15458 = vmatmul.mubr.f32.gmra.mxu1 %v21702_v2 }
 0x6ee   : > { %v9008_v14 = vadd.f32 %v14979_v48, %v23157_v9  ;;  %15460 = vmatprep.mubr.f32.mxu1 %v21706_v18  ;;  %v21848_v34 = vadd.f32 %v9243_v57, %v9005_v54 }
 0x6ef   : > { %v8944_v37 = vpop.f32.mrf.mxu1  ;;  %v9263_v35 = vpop.f32.mrf.mxu0 }
 0x6f0   : > { %v9007_v23 = vadd.f32 %v8944_v37, %v23158_v16  ;;  %v21851_v28 = vadd.f32 %v15059_v22, %v9008_v14 }
 0x6f1   : > { %v14982_v19 = vpop.f32.mrf.mxu1  ;;  %v15065_v21 = vpop.f32.mrf.mxu0  ;;  %15461 = vmatmul.mubr.f32.gmra.mxu1 %v21717_v32  ;;  %v9905_v32 = vld [vmem:[#allocation3 + $0x1a2] sm:$0xff] }
 0x6f2   : > { %v9010_v61 = vadd.f32 %v14982_v19, %v23159_v13  ;;  %15463 = vmatprep.mubr.f32.mxu1 %v23160_v40  ;;  %v21856_v2 = vadd.f32 %v9253_v52, %v9007_v23 }
 0x6f3   : > { %v8954_v56 = vpop.f32.mrf.mxu1  ;;  %v9273_v18 = vpop.f32.mrf.mxu0 }
 0x6f4   : > { %v9009_v62 = vadd.f32 %v8954_v56, %v23161_v17  ;;  %v21859_v12 = vadd.f32 %v15062_v30, %v9010_v61 }
 0x6f5   : > { %v14985_v43 = vpop.f32.mrf.mxu1  ;;  %v15068_v60 = vpop.f32.mrf.mxu0  ;;  %15464 = vmatmul.mubr.f32.gmra.mxu1 %v23162_v10 }
 0x6f6   : > { %v9012_v57 = vadd.f32 %v14985_v43, %v23163_v11  ;;  %15466 = vmatprep.mubr.f32.mxu1 %v9904_v29  ;;  %v21863_v26 = vadd.f32 %v9263_v35, %v9009_v62 }
 0x6f7   : > { %v8964_v47 = vpop.f32.mrf.mxu1  ;;  %v9283_v6 = vpop.f32.mrf.mxu0 }
 0x6f8   : > { %v9011_v22 = vadd.f32 %v8964_v47, %v21742_v38  ;;  %v21866_v44 = vadd.f32 %v15065_v21, %v9012_v57 }
 0x6f9   : > { %v14988_v25 = vpop.f32.mrf.mxu1  ;;  %v21868_v42 = vpop.f32.mrf.mxu0  ;;  %15467 = vmatmul.mubr.f32.gmra.mxu1 %v9905_v32 }
 0x6fa   : > { %v9014_v52 = vadd.f32 %v14988_v25, %v23164_v41  ;;  %v21871_v4 = vadd.f32 %v9273_v18, %v9011_v22 }
 0x6fb   : > { %v8974_v54 = vpop.f32.mrf.mxu1  ;;  %v21873_v48 = vpop.f32.mrf.mxu0 }
 0x6fc   : > { %v9013_v30 = vadd.f32 %v8974_v54, %v21750_v53  ;;  %v21876_v9 = vadd.f32 %v15068_v60, %v9014_v52 }
 0x6fd   : > { %v15103_v14 = vpop.f32.mrf.mxu1  ;;  %v21878_v37 = vpop.f32.mrf.mxu0 }
 0x6fe   : > { %v21881_v38 = vadd.f32 %v15103_v14, %v21755_v8  ;;  %v21883_v35 = vadd.f32 %v9283_v6, %v9013_v30 }
 0x6ff   : > { %v9406_v16 = vpop.f32.mrf.mxu1  ;;  %v21885_v23 = vpop.f32.mrf.mxu0 }
 0x700   : > { %v21888_v19 = vadd.f32 %v9406_v16, %v21760_v45 }
 0x701   : > { %v15106_v21 = vpop.f32.mrf.mxu1  ;;  %v21890_v13 = vpop.f32.mrf.mxu0 }
 0x702   : > { %v21893_v53 = vadd.f32 %v15106_v21, %v21763_v50 }
 0x703   : > { %v9416_v61 = vpop.f32.mrf.mxu1  ;;  %v21895_v40 = vpop.f32.mrf.mxu0 }
 0x704   : > { %v21898_v8 = vadd.f32 %v9416_v61, %v21768_v63 }
 0x705   : > { %v15109_v56 = vpop.f32.mrf.mxu1  ;;  %v21900_v18 = vpop.f32.mrf.mxu0 }
 0x706   : > { %v21903_v29 = vadd.f32 %v15109_v56, %v21771_v33 }
 0x707   : > { %v9426_v45 = vpop.f32.mrf.mxu1  ;;  %v21905_v17 = vpop.f32.mrf.mxu0 }
 0x708   : > { %v21908_v62 = vadd.f32 %v9426_v45, %v21776_v58 }
 0x709   : > { %v15112_v50 = vpop.f32.mrf.mxu1  ;;  %v21910_v43 = vpop.f32.mrf.mxu0 }
 0x70a   : > { %v21913_v60 = vadd.f32 %v15112_v50, %v21779_v36 }
 0x70b   : > { %v9436_v63 = vpop.f32.mrf.mxu1  ;;  %v21915_v10 = vpop.f32.mrf.mxu0 }
 0x70c   : > { %v21918_v11 = vadd.f32 %v9436_v63, %v21784_v0 }
 0x70d   : > { %v15115_v33 = vpop.f32.mrf.mxu1  ;;  %v21920_v57 = vpop.f32.mrf.mxu0 }
 0x70e   : > { %v21923_v32 = vadd.f32 %v15115_v33, %v21787_v7 }
 0x70f   : > { %v9446_v58 = vpop.f32.mrf.mxu1  ;;  %v21925_v47 = vpop.f32.mrf.mxu0 }
 0x710   : > { %v21928_v6 = vadd.f32 %v9446_v58, %v21792_v55 }
 0x711   : > { %v15118_v36 = vpop.f32.mrf.mxu1  ;;  %v21930_v22 = vpop.f32.mrf.mxu0 }
 0x712   : > { %v21933_v25 = vadd.f32 %v15118_v36, %v21795_v59 }
 0x713   : > { %v9456_v0 = vpop.f32.mrf.mxu1  ;;  %v21935_v41 = vpop.f32.mrf.mxu0 }
 0x714   : > { %v21938_v52 = vadd.f32 %v9456_v0, %v21800_v31 }
 0x715   : > { %v15121_v7 = vpop.f32.mrf.mxu1  ;;  %v21940_v54 = vpop.f32.mrf.mxu0 }
 0x716   : > { %23165 = vst [vmem:[#allocation74_spill] sm:$0xff] %v21940_v54  ;;  %v21943_v30 = vadd.f32 %v15121_v7, %v21803_v20 }
 0x717   : > { %v9466_v55 = vpop.f32.mrf.mxu1  ;;  %v21945_v14 = vpop.f32.mrf.mxu0 }
 0x718   : > { %23166 = vst [vmem:[#allocation45_spill] sm:$0xff] %v21945_v14  ;;  %v21948_v16 = vadd.f32 %v9466_v55, %v21808_v15 }
 0x719   : > { %v15124_v59 = vpop.f32.mrf.mxu1  ;;  %v21950_v21 = vpop.f32.mrf.mxu0 }
 0x71a   : > { %23167 = vst [vmem:[#allocation97_spill] sm:$0xff] %v21950_v21  ;;  %v21953_v61 = vadd.f32 %v15124_v59, %v21811_v27 }
 0x71b   : > { %v9476_v31 = vpop.f32.mrf.mxu1  ;;  %v21955_v56 = vpop.f32.mrf.mxu0 }
 0x71c   : > { %23168 = vst [vmem:[#allocation9_spill] sm:$0xff] %v21955_v56  ;;  %v21958_v45 = vadd.f32 %v9476_v31, %v21816_v39 }
 0x71d   : > { %v15127_v20 = vpop.f32.mrf.mxu1  ;;  %v21960_v50 = vpop.f32.mrf.mxu0 }
 0x71e   : > { %23169 = vst [vmem:[#allocation91_spill] sm:$0xff] %v21958_v45  ;;  %23170 = vst [vmem:[#allocation95_spill] sm:$0xff] %v21960_v50  ;;  %v21963_v63 = vadd.f32 %v15127_v20, %v21819_v3 }
 0x71f   : > { %v9486_v15 = vpop.f32.mrf.mxu1  ;;  %v21965_v33 = vpop.f32.mrf.mxu0 }
 0x720   : > { %23171 = vst [vmem:[#allocation50_spill] sm:$0xff] %v21963_v63  ;;  %23172 = vst [vmem:[#allocation33_spill] sm:$0xff] %v21965_v33  ;;  %v21968_v58 = vadd.f32 %v9486_v15, %v21824_v24 }
 0x721   : > { %v15130_v27 = vpop.f32.mrf.mxu1  ;;  %v21970_v36 = vpop.f32.mrf.mxu0 }
 0x722   : > { %23173 = vst [vmem:[#allocation101_spill] sm:$0xff] %v21968_v58  ;;  %23174 = vst [vmem:[#allocation81_spill] sm:$0xff] %v21970_v36  ;;  %v21973_v0 = vadd.f32 %v15130_v27, %v21827_v5 }
 0x723   : > { %v9496_v39 = vpop.f32.mrf.mxu1  ;;  %v21975_v7 = vpop.f32.mrf.mxu0 }
 0x724   : > { %23175 = vst [vmem:[#allocation85_spill] sm:$0xff] %v21973_v0  ;;  %23176 = vst [vmem:[#allocation103_spill] sm:$0xff] %v21975_v7  ;;  %v21978_v55 = vadd.f32 %v9496_v39, %v21832_v49 }
 0x725   : > { %v15133_v3 = vpop.f32.mrf.mxu1  ;;  %v21980_v59 = vpop.f32.mrf.mxu0 }
 0x726   : > { %23177 = vst [vmem:[#allocation68_spill] sm:$0xff] %v21978_v55  ;;  %23178 = vst [vmem:[#allocation69_spill] sm:$0xff] %v21980_v59  ;;  %v21983_v31 = vadd.f32 %v15133_v3, %v21835_v46 }
 0x727   : > { %v9506_v24 = vpop.f32.mrf.mxu1  ;;  %v21985_v20 = vpop.f32.mrf.mxu0 }
 0x728   : > { %23179 = vst [vmem:[#allocation32_spill] sm:$0xff] %v21983_v31  ;;  %23180 = vst [vmem:[#allocation49_spill] sm:$0xff] %v21985_v20  ;;  %v21988_v15 = vadd.f32 %v9506_v24, %v21840_v51 }
 0x729   : > { %v15136_v5 = vpop.f32.mrf.mxu1  ;;  %v21990_v27 = vpop.f32.mrf.mxu0 }
 0x72a   : > { %23181 = vst [vmem:[#allocation96_spill] sm:$0xff] %v21988_v15  ;;  %23182 = vst [vmem:[#allocation8_spill] sm:$0xff] %v21990_v27  ;;  %v21993_v7 = vadd.f32 %v15136_v5, %v21843_v1 }
 0x72b   : > { %v9516_v49 = vpop.f32.mrf.mxu1  ;;  %v21995_v39 = vpop.f32.mrf.mxu0 }
 0x72c   : > { %23183 = vst [vmem:[#allocation27_spill] sm:$0xff] %v21993_v7  ;;  %23184 = vst [vmem:[#allocation19_spill] sm:$0xff] %v21995_v39  ;;  %v21998_v59 = vadd.f32 %v9516_v49, %v21848_v34 }
 0x72d   : > { %v15139_v46 = vpop.f32.mrf.mxu1  ;;  %v22000_v3 = vpop.f32.mrf.mxu0 }
 0x72e   : > { %23185 = vst [vmem:[#allocation26_spill] sm:$0xff] %v21998_v59  ;;  %23186 = vst [vmem:[#allocation98_spill] sm:$0xff] %v22000_v3  ;;  %v22003_v20 = vadd.f32 %v15139_v46, %v21851_v28 }
 0x72f   : > { %v9526_v51 = vpop.f32.mrf.mxu1  ;;  %v22005_v24 = vpop.f32.mrf.mxu0 }
 0x730   : > { %23187 = vst [vmem:[#allocation56_spill] sm:$0xff] %v22003_v20  ;;  %23188 = vst [vmem:[#allocation99_spill] sm:$0xff] %v22005_v24  ;;  %v22008_v27 = vadd.f32 %v9526_v51, %v21856_v2 }
 0x731   : > { %v15142_v1 = vpop.f32.mrf.mxu1  ;;  %v22010_v5 = vpop.f32.mrf.mxu0 }
 0x732   : > { %23189 = vst [vmem:[#allocation47_spill] sm:$0xff] %v22008_v27  ;;  %23190 = vst [vmem:[#allocation65_spill] sm:$0xff] %v22010_v5  ;;  %v22013_v39 = vadd.f32 %v15142_v1, %v21859_v12 }
 0x733   : > { %v9536_v34 = vpop.f32.mrf.mxu1  ;;  %v22015_v49 = vpop.f32.mrf.mxu0 }
 0x734   : > { %23191 = vst [vmem:[#allocation53_spill] sm:$0xff] %v22013_v39  ;;  %23192 = vst [vmem:[#allocation87_spill] sm:$0xff] %v22015_v49  ;;  %v22018_v3 = vadd.f32 %v9536_v34, %v21863_v26 }
 0x735   : > { %v15145_v28 = vpop.f32.mrf.mxu1  ;;  %v22020_v46 = vpop.f32.mrf.mxu0 }
 0x736   : > { %23193 = vst [vmem:[#allocation11_spill] sm:$0xff] %v22018_v3  ;;  %23194 = vst [vmem:[#allocation51_spill] sm:$0xff] %v22020_v46  ;;  %v22023_v24 = vadd.f32 %v15145_v28, %v21866_v44 }
 0x737   : > { %v9546_v2 = vpop.f32.mrf.mxu1  ;;  %v22028_v5 = vpop.f32.mrf.mxu0 }
 0x738   : > { %23195 = vst [vmem:[#allocation18_spill] sm:$0xff] %v22023_v24  ;;  %v22026_v51 = vadd.f32 %v9546_v2, %v21871_v4  ;;  %23197 = vst [vmem:[#allocation82_spill] sm:$0xff] %v22028_v5 }
 0x739   : > { %v15148_v12 = vpop.f32.mrf.mxu1  ;;  %v15343_v34 = vpop.f32.mrf.mxu0 }
 0x73a   : > { %23196 = vst [vmem:[#allocation21_spill] sm:$0xff] %v22026_v51  ;;  %v22031_v1 = vadd.f32 %v15148_v12, %v21876_v9 }
 0x73b   : > { %v9556_v49 = vpop.f32.mrf.mxu1  ;;  %v10261_v39 = vpop.f32.mrf.mxu0 }
 0x73c   : > { %23198 = vst [vmem:[#allocation16_spill] sm:$0xff] %v22031_v1  ;;  %v22034_v26 = vadd.f32 %v9556_v49, %v21883_v35 }
 0x73d   : > { %v15263_v3 = vpop.f32.mrf.mxu1  ;;  %v22036_v24 = vpop.f32.mrf.mxu0 }
 0x73e   : > { %23199 = vst [vmem:[#allocation54_spill] sm:$0xff] %v22034_v26 }
 0x73f   : > { %v9988_v46 = vpop.f32.mrf.mxu1  ;;  %v22040_v5 = vpop.f32.mrf.mxu0 }
 0x741   : > { %v15266_v44 = vpop.f32.mrf.mxu1  ;;  %v22046_v12 = vpop.f32.mrf.mxu0 }
 0x743   : > { %v9998_v28 = vpop.f32.mrf.mxu1  ;;  %v22052_v26 = vpop.f32.mrf.mxu0 }
 0x745   : > { %v15269_v4 = vpop.f32.mrf.mxu1  ;;  %v22058_v20 = vpop.f32.mrf.mxu0 }
 0x747   : > { %v22038_v2 = vpop.f32.mrf.mxu1  ;;  %v22064_v15 = vpop.f32.mrf.mxu0 }
 0x749   : > { %v22042_v51 = vpop.f32.mrf.mxu1  ;;  %v22070_v33 = vpop.f32.mrf.mxu0 }
 0x74b   : > { %v22044_v9 = vpop.f32.mrf.mxu1  ;;  %v22076_v0 = vpop.f32.mrf.mxu0 }
 0x74d   : > { %v22048_v35 = vpop.f32.mrf.mxu1  ;;  %v22082_v21 = vpop.f32.mrf.mxu0 }
 0x74f   : > { %v22050_v49 = vpop.f32.mrf.mxu1 }
 0x751   : > { %v22054_v1 = vpop.f32.mrf.mxu1 }
 0x753   : > { %v22056_v27 = vpop.f32.mrf.mxu1 }
 0x755   : > { %v22060_v59 = vpop.f32.mrf.mxu1 }
 0x757   : > { %v22062_v7 = vpop.f32.mrf.mxu1 }
 0x758   : > { %23200 = vst [vmem:[#allocation44_spill] sm:$0xff] %v22062_v7 }
 0x759   : > { %v22066_v36 = vpop.f32.mrf.mxu1 }
 0x75a   : > { %23201 = vst [vmem:[#allocation25_spill] sm:$0xff] %v22066_v36  ;;  %v22088_v36 = vpop.f32.mrf.mxu0 }
 0x75b   : > { %v22068_v31 = vpop.f32.mrf.mxu1  ;;  %23209 = vst [vmem:[#allocation35_spill] sm:$0xff] %v22088_v36 }
 0x75c   : > { %23202 = vst [vmem:[#allocation71_spill] sm:$0xff] %v22068_v31 }
 0x75d   : > { %v22072_v55 = vpop.f32.mrf.mxu1 }
 0x75e   : > { %23203 = vst [vmem:[#allocation29_spill] sm:$0xff] %v22072_v55  ;;  %v22094_v55 = vpop.f32.mrf.mxu0 }
 0x75f   : > { %v22074_v50 = vpop.f32.mrf.mxu1  ;;  %23212 = vst [vmem:[#allocation100_spill] sm:$0xff] %v22094_v55 }
 0x760   : > { %23204 = vst [vmem:[#allocation63_spill] sm:$0xff] %v22074_v50 }
 0x761   : > { %v22078_v56 = vpop.f32.mrf.mxu1 }
 0x762   : > { %23205 = vst [vmem:[#allocation15_spill] sm:$0xff] %v22078_v56  ;;  %v22100_v56 = vpop.f32.mrf.mxu0 }
 0x763   : > { %v22080_v58 = vpop.f32.mrf.mxu1  ;;  %23215 = vst [vmem:[#allocation5_spill] sm:$0xff] %v22100_v56 }
 0x764   : > { %23206 = vst [vmem:[#allocation106_spill] sm:$0xff] %v22080_v58 }
 0x765   : > { %v22084_v63 = vpop.f32.mrf.mxu1 }
 0x766   : > { %23207 = vst [vmem:[#allocation34_spill] sm:$0xff] %v22084_v63  ;;  %v22106_v63 = vpop.f32.mrf.mxu0 }
 0x767   : > { %v22086_v14 = vpop.f32.mrf.mxu1  ;;  %23218 = vst [vmem:[#allocation28_spill] sm:$0xff] %v22106_v63 }
 0x768   : > { %23208 = vst [vmem:[#allocation73_spill] sm:$0xff] %v22086_v14  ;;  %v22117_v56 = vpop.f32.mrf.mxu0 }
 0x769   : > { %v22090_v31 = vpop.f32.mrf.mxu1 }
 0x76a   : > { %23210 = vst [vmem:[#allocation109_spill] sm:$0xff] %v22090_v31  ;;  %v9839_v31 = vadd.f32 %v21868_v42, %v21881_v38  ;;  %v9840_v38 = vadd.f32 %v21885_v23, %v21898_v8 }
 0x76b   : > { %v22092_v45 = vpop.f32.mrf.mxu1 }
 0x76c   : > { %23211 = vst [vmem:[#allocation76_spill] sm:$0xff] %v22092_v45  ;;  %v10148_v55 = vadd.f32 %v15263_v3, %v9839_v31 }
 0x76d   : > { %v22096_v50 = vpop.f32.mrf.mxu1 }
 0x76e   : > { %23213 = vst [vmem:[#allocation23_spill] sm:$0xff] %v22096_v50  ;;  %v9838_v50 = vadd.f32 %v21873_v48, %v21888_v19  ;;  %v10421_v31 = vadd.f32 %v15343_v34, %v10148_v55  ;;  %v15518_v48 = vld [vmem:[%s22361_s2] sm:$0xf] }
 0x76f   : > { %v22098_v7 = vpop.f32.mrf.mxu1 }
 0x770   : > { %23214 = vst [vmem:[#allocation112_spill] sm:$0xff] %v22098_v7  ;;  %v23220_v7 = vld [vmem:[#allocation104_spill] sm:$0xff] }
 0x771   : > { %v22102_v58 = vpop.f32.mrf.mxu1  ;;  %v10727_v36 = vsub.s32 3, %v23220_v7  ;;  %v22132_v7 = vpop.f32.mrf.mxu0 }
 0x772   : > { %23216 = vst [vmem:[#allocation90_spill] sm:$0xff] %v22102_v58 }
 0x773   : > { %v22104_v54 = vpop.f32.mrf.mxu1  ;;  %v22130_v19 = vrot.slane %v15518_v48, %v10727_v36  ;;  %v9846_v48 = vadd.f32 %v21915_v10, %v21928_v6 }
 0x774   : > { %23217 = vst [vmem:[#allocation39_spill] sm:$0xff] %v22104_v54  ;;  %v10147_v54 = vadd.f32 %v9988_v46, %v9838_v50  ;;  %v10149_v50 = vadd.f32 %v9998_v28, %v9840_v38  ;;  %v9844_v28 = vadd.f32 %v21905_v17, %v21918_v11 }
 0x775   : > { %v22108_v14 = vpop.f32.mrf.mxu1 }
 0x776   : > { %23219 = vst [vmem:[#allocation13_spill] sm:$0xff] %v22108_v14  ;;  %v9841_v14 = vadd.f32 %v21878_v37, %v21893_v53  ;;  %v9843_v37 = vadd.f32 %v21890_v13, %v21903_v29  ;;  %v10420_v46 = vadd.f32 %v10261_v39, %v10147_v54  ;;  %v9845_v29 = vadd.f32 %v21900_v18, %v21913_v60  ;;  %v22149_v54 = vpop.f32.mrf.mxu0 }
 0x777   : > { %v22112_v45 = vpop.f32.mrf.mxu1 }
 0x778   : > { %v10150_v42 = vadd.f32 %v15266_v44, %v9841_v14  ;;  %v9842_v14 = vadd.f32 %v21895_v40, %v21908_v62  ;;  %v10152_v8 = vadd.f32 %v15269_v4, %v9843_v37  ;;  %v10422_v44 = vadd.f32 %v22040_v5, %v10149_v50  ;;  %v22165_v38 = vpop.f32.mrf.mxu0 }
 0x779   : > { %v22119_v58 = vpop.f32.mrf.mxu1  ;;  %v10154_v4 = vadd.f32 %v22042_v51, %v9845_v29  ;;  %v9849_v50 = vadd.f32 %v21920_v57, %v21933_v25  ;;  %v23221_v29 = vld [vmem:[#allocation74_spill] sm:$0xff] }
 0x77a   : > { %v10423_v13 = vadd.f32 %v22036_v24, %v10150_v42  ;;  %v10151_v62 = vadd.f32 %v22038_v2, %v9842_v14  ;;  %v10425_v2 = vadd.f32 %v22046_v12, %v10152_v8  ;;  %v9847_v42 = vadd.f32 %v21910_v43, %v21923_v32  ;;  %v22181_v37 = vpop.f32.mrf.mxu0 }
 0x77b   : > { %v22123_v63 = vpop.f32.mrf.mxu1  ;;  %v10158_v14 = vadd.f32 %v22054_v1, %v9849_v50 }
 0x77c   : > { %v10424_v51 = vadd.f32 %v22052_v26, %v10151_v62  ;;  %v22197_v8 = vpop.f32.mrf.mxu0 }
 0x77d   : > { %v15423_v3 = vpop.f32.mrf.mxu1 }
 0x77e   : > { %v10694_v53 = vadd.f32 %v15423_v3, %v10421_v31  ;;  %v10153_v31 = vadd.f32 %v22044_v9, %v9844_v28  ;;  %v10156_v3 = vadd.f32 %v22048_v35, %v9847_v42  ;;  %v10427_v9 = vadd.f32 %v22058_v20, %v10154_v4  ;;  %v22213_v62 = vpop.f32.mrf.mxu0  ;;  %v23224_v28 = vld [vmem:[#allocation91_spill] sm:$0xff]  ;;  %v23227_v42 = vld [vmem:[#allocation100_spill] sm:$0xff] }
 0x77f   : > { %v10534_v23 = vpop.f32.mrf.mxu1 }
 0x780   : > { %v10730_v36 = vadd.f32 %v22130_v19, %v10694_v53  ;;  %v10693_v55 = vadd.f32 %v10534_v23, %v10420_v46  ;;  %v10155_v53 = vadd.f32 %v22050_v49, %v9846_v48  ;;  %v10426_v35 = vadd.f32 %v22064_v15, %v10153_v31  ;;  %v23228_v31 = vld [vmem:[#allocation50_spill] sm:$0xff] }
 0x781   : > { %v15426_v40 = vpop.f32.mrf.mxu1  ;;  %v9848_v46 = vadd.f32 %v21925_v47, %v21938_v52  ;;  %v10429_v49 = vadd.f32 %v22070_v33, %v10156_v3  ;;  %v9851_v23 = vadd.f32 %v21930_v22, %v21943_v30 }
 0x782   : > { %10762 = vst.msk [vmem:[%s22143_s5 + $0x8] sm:$0xff] %vm290_vm0, %v10730_v36  ;;  %v10729_v39 = vadd.f32 %v22130_v19, %v10693_v55  ;;  %v10696_v34 = vadd.f32 %v15426_v40, %v10423_v13  ;;  %v10428_v1 = vadd.f32 %v22076_v0, %v10155_v53  ;;  %v9850_v55 = vadd.f32 %v21935_v41, %v21948_v16  ;;  %v23233_v53 = vld [vmem:[#allocation9_spill] sm:$0xff] }
 0x783   : > { %v10544_v24 = vpop.f32.mrf.mxu1  ;;  %v10157_v36 = vadd.f32 %v22056_v27, %v9848_v46  ;;  %v10160_v13 = vadd.f32 %v22060_v59, %v9851_v23  ;;  %v10431_v27 = vadd.f32 %v22082_v21, %v10158_v14  ;;  %v9853_v40 = vadd.f32 %v23221_v29, %v21953_v61  ;;  %v23223_v59 = vld [vmem:[#allocation35_spill] sm:$0xff] }
 0x784   : > { %10761 = vst.msk [vmem:[%s22143_s5] sm:$0xff] %vm290_vm0, %v10729_v39  ;;  %v10732_v18 = vadd.f32 %v22130_v19, %v10696_v34  ;;  %v10695_v60 = vadd.f32 %v10544_v24, %v10422_v44  ;;  %v23222_v39 = vld [vmem:[#allocation44_spill] sm:$0xff]  ;;  %v23225_v24 = vld [vmem:[#allocation45_spill] sm:$0xff]  ;;  %v23237_v23 = vld [vmem:[#allocation95_spill] sm:$0xff] }
 0x785   : > { %v15429_v5 = vpop.f32.mrf.mxu1  ;;  %v10159_v34 = vadd.f32 %v23222_v39, %v9850_v55  ;;  %v10430_v44 = vadd.f32 %v23223_v59, %v10157_v36  ;;  %v9852_v4 = vadd.f32 %v23225_v24, %v23224_v28  ;;  %v23243_v59 = vld [vmem:[#allocation81_spill] sm:$0xff] }
 0x786   : > { %10764 = vst.msk [vmem:[%s22143_s5 + $0x18] sm:$0xff] %vm290_vm0, %v10732_v18  ;;  %v10731_v17 = vadd.f32 %v22130_v19, %v10695_v60  ;;  %v10698_v11 = vadd.f32 %v15429_v5, %v10425_v2  ;;  %v23226_v18 = vld [vmem:[#allocation25_spill] sm:$0xff]  ;;  %v10433_v5 = vadd.f32 %v23227_v42, %v10160_v13 }
 0x787   : > { %v10554_v12 = vpop.f32.mrf.mxu1  ;;  %v10162_v60 = vadd.f32 %v23226_v18, %v9853_v40  ;;  %v23241_v40 = vld [vmem:[#allocation15_spill] sm:$0xff] }
 0x788   : > { %10763 = vst.msk [vmem:[%s22143_s5 + $0x10] sm:$0xff] %vm290_vm0, %v10731_v17  ;;  %v10734_v43 = vadd.f32 %v22130_v19, %v10698_v11  ;;  %v10697_v32 = vadd.f32 %v10554_v12, %v10424_v51  ;;  %v23229_v17 = vld [vmem:[#allocation97_spill] sm:$0xff]  ;;  %v22229_v51 = vpop.f32.mrf.mxu0  ;;  %v23230_v12 = vld [vmem:[#allocation71_spill] sm:$0xff] }
 0x789   : > { %v15432_v26 = vpop.f32.mrf.mxu1  ;;  %v9855_v11 = vadd.f32 %v23229_v17, %v23228_v31  ;;  %v10161_v3 = vadd.f32 %v23230_v12, %v9852_v4  ;;  %v23248_v12 = vld [vmem:[#allocation27_spill] sm:$0xff] }
 0x78a   : > { %10766 = vst.msk [vmem:[%s22143_s5 + $0x28] sm:$0xff] %vm290_vm0, %v10734_v43  ;;  %v10733_v10 = vadd.f32 %v22130_v19, %v10697_v32  ;;  %v10700_v6 = vadd.f32 %v15432_v26, %v10427_v9  ;;  %v23231_v9 = vld [vmem:[#allocation5_spill] sm:$0xff]  ;;  %v22245_v36 = vpop.f32.mrf.mxu0 }
 0x78b   : > { %v10564_v20 = vpop.f32.mrf.mxu1  ;;  %v10432_v50 = vadd.f32 %v23231_v9, %v10159_v34  ;;  %v23232_v26 = vld [vmem:[#allocation101_spill] sm:$0xff]  ;;  %v10434_v13 = vadd.f32 %v22117_v56, %v10161_v3  ;;  %v23244_v56 = vld [vmem:[#allocation106_spill] sm:$0xff] }
 0x78c   : > { %10765 = vst.msk [vmem:[%s22143_s5 + $0x20] sm:$0xff] %vm290_vm0, %v10733_v10  ;;  %v10736_v57 = vadd.f32 %v22130_v19, %v10700_v6  ;;  %v10699_v25 = vadd.f32 %v10564_v20, %v10426_v35  ;;  %v9854_v10 = vadd.f32 %v23233_v53, %v23232_v26  ;;  %v23234_v35 = vld [vmem:[#allocation29_spill] sm:$0xff]  ;;  %v15379_v28 = vpop.f32.mrf.mxu0 }
 0x78d   : > { %v15435_v15 = vpop.f32.mrf.mxu1  ;;  %v10164_v46 = vadd.f32 %v23234_v35, %v9855_v11  ;;  %v23249_v3 = vld [vmem:[#allocation69_spill] sm:$0xff] }
 0x78e   : > { %10768 = vst.msk [vmem:[%s22143_s5 + $0x38] sm:$0xff] %vm290_vm0, %v10736_v57  ;;  %v10735_v47 = vadd.f32 %v22130_v19, %v10699_v25  ;;  %v10702_v52 = vadd.f32 %v15435_v15, %v10429_v49  ;;  %v23235_v57 = vld [vmem:[#allocation28_spill] sm:$0xff]  ;;  %v23236_v49 = vld [vmem:[#allocation85_spill] sm:$0xff] }
 0x78f   : > { %v10574_v33 = vpop.f32.mrf.mxu1  ;;  %v10435_v25 = vadd.f32 %v23235_v57, %v10162_v60  ;;  %v9857_v15 = vadd.f32 %v23237_v23, %v23236_v49  ;;  %v23252_v35 = vld [vmem:[#allocation49_spill] sm:$0xff]  ;;  %v23254_v23 = vld [vmem:[#allocation56_spill] sm:$0xff] }
 0x790   : > { %10767 = vst.msk [vmem:[%s22143_s5 + $0x30] sm:$0xff] %vm290_vm0, %v10735_v47  ;;  %v10738_v22 = vadd.f32 %v22130_v19, %v10702_v52  ;;  %v10701_v30 = vadd.f32 %v10574_v33, %v10428_v1  ;;  %v23238_v52 = vld [vmem:[#allocation63_spill] sm:$0xff] }
 0x791   : > { %v15438_v0 = vpop.f32.mrf.mxu1  ;;  %v10163_v1 = vadd.f32 %v23238_v52, %v9854_v10 }
 0x792   : > { %10770 = vst.msk [vmem:[%s22143_s5 + $0x48] sm:$0xff] %vm290_vm0, %v10738_v22  ;;  %v10737_v41 = vadd.f32 %v22130_v19, %v10701_v30  ;;  %v10704_v16 = vadd.f32 %v15438_v0, %v10431_v27  ;;  %v23239_v22 = vld [vmem:[#allocation68_spill] sm:$0xff]  ;;  %v23240_v30 = vld [vmem:[#allocation33_spill] sm:$0xff]  ;;  %v10166_v0 = vadd.f32 %v23241_v40, %v9857_v15 }
 0x793   : > { %v10584_v21 = vpop.f32.mrf.mxu1  ;;  %v9856_v27 = vadd.f32 %v23240_v30, %v23239_v22  ;;  %v10436_v60 = vadd.f32 %v22149_v54, %v10163_v1  ;;  %v23250_v54 = vld [vmem:[#allocation73_spill] sm:$0xff]  ;;  %v23255_v15 = vld [vmem:[#allocation8_spill] sm:$0xff]  ;;  %v23257_v30 = vld [vmem:[#allocation47_spill] sm:$0xff] }
 0x794   : > { %10769 = vst.msk [vmem:[%s22143_s5 + $0x40] sm:$0xff] %vm290_vm0, %v10737_v41  ;;  %v10740_v61 = vadd.f32 %v22130_v19, %v10704_v16  ;;  %v10703_v2 = vadd.f32 %v10584_v21, %v10430_v44  ;;  %v10437_v41 = vadd.f32 %v22132_v7, %v10164_v46  ;;  %v23242_v16 = vld [vmem:[#allocation32_spill] sm:$0xff]  ;;  %v23247_v7 = vld [vmem:[#allocation34_spill] sm:$0xff] }
 0x795   : > { %v15441_v48 = vpop.f32.mrf.mxu1  ;;  %v9859_v44 = vadd.f32 %v23243_v59, %v23242_v16  ;;  %v10165_v4 = vadd.f32 %v23244_v56, %v9856_v27  ;;  %v23258_v27 = vld [vmem:[#allocation19_spill] sm:$0xff]  ;;  %v23260_v59 = vld [vmem:[#allocation53_spill] sm:$0xff] }
 0x796   : > { %10772 = vst.msk [vmem:[%s22143_s5 + $0x58] sm:$0xff] %vm290_vm0, %v10740_v61  ;;  %v10739_v43 = vadd.f32 %v22130_v19, %v10703_v2  ;;  %v10706_v32 = vadd.f32 %v15441_v48, %v10433_v5  ;;  %v23245_v61 = vld [vmem:[#allocation96_spill] sm:$0xff]  ;;  %v23246_v2 = vld [vmem:[#allocation103_spill] sm:$0xff]  ;;  %v10439_v48 = vadd.f32 %v22165_v38, %v10166_v0  ;;  %v23253_v38 = vld [vmem:[#allocation109_spill] sm:$0xff] }
 0x797   : > { %v10594_v6 = vpop.f32.mrf.mxu1  ;;  %v9858_v42 = vadd.f32 %v23246_v2, %v23245_v61  ;;  %v10168_v31 = vadd.f32 %v23247_v7, %v9859_v44  ;;  %v10438_v10 = vadd.f32 %v22181_v37, %v10165_v4  ;;  %v23256_v37 = vld [vmem:[#allocation76_spill] sm:$0xff]  ;;  %v23261_v44 = vld [vmem:[#allocation98_spill] sm:$0xff]  ;;  %v23263_v61 = vld [vmem:[#allocation11_spill] sm:$0xff] }
 0x798   : > { %10771 = vst.msk [vmem:[%s22143_s5 + $0x50] sm:$0xff] %vm290_vm0, %v10739_v43  ;;  %v10742_v20 = vadd.f32 %v22130_v19, %v10706_v32  ;;  %v10705_v14 = vadd.f32 %v10594_v6, %v10432_v50  ;;  %v9861_v43 = vadd.f32 %v23249_v3, %v23248_v12  ;;  %v10381_v32 = vpop.f32.mrf.mxu0  ;;  %v23251_v6 = vld [vmem:[#allocation26_spill] sm:$0xff]  ;;  %v23264_v2 = vld [vmem:[#allocation99_spill] sm:$0xff]  ;;  %v23267_v3 = vld [vmem:[#allocation65_spill] sm:$0xff] }
 0x799   : > { %v15444_v47 = vpop.f32.mrf.mxu1  ;;  %v10167_v50 = vadd.f32 %v23250_v54, %v9858_v42  ;;  %v9860_v46 = vadd.f32 %v23252_v35, %v23251_v6  ;;  %v10441_v49 = vadd.f32 %v22197_v8, %v10168_v31  ;;  %v23259_v8 = vld [vmem:[#allocation23_spill] sm:$0xff]  ;;  %v9864_v42 = vadd.f32 %v23264_v2, %v23263_v61  ;;  %v23266_v12 = vld [vmem:[#allocation18_spill] sm:$0xff] }
 0x79a   : > { %10774 = vst.msk [vmem:[%s22143_s5 + $0x68] sm:$0xff] %vm290_vm0, %v10742_v20  ;;  %v10741_v55 = vadd.f32 %v22130_v19, %v10705_v14  ;;  %v10708_v33 = vadd.f32 %v15444_v47, %v10435_v25  ;;  %v10170_v14 = vadd.f32 %v23253_v38, %v9861_v43  ;;  %v9863_v47 = vadd.f32 %v23255_v15, %v23254_v23  ;;  %v15382_v52 = vpop.f32.mrf.mxu0  ;;  %v23268_v54 = vld [vmem:[#allocation39_spill] sm:$0xff] }
 0x79b   : > { %v10604_v29 = vpop.f32.mrf.mxu1  ;;  %v10440_v22 = vadd.f32 %v22213_v62, %v10167_v50  ;;  %v23262_v62 = vld [vmem:[#allocation112_spill] sm:$0xff]  ;;  %v9867_v43 = vadd.f32 %v23267_v3, %v23266_v12  ;;  %v23270_v6 = vld [vmem:[#allocation87_spill] sm:$0xff] }
 0x79c   : > { %10773 = vst.msk [vmem:[%s22143_s5 + $0x60] sm:$0xff] %vm290_vm0, %v10741_v55  ;;  %v10744_v39 = vadd.f32 %v22130_v19, %v10708_v33  ;;  %v10707_v34 = vadd.f32 %v10604_v29, %v10434_v13  ;;  %v10169_v55 = vadd.f32 %v23256_v37, %v9860_v46  ;;  %v9862_v29 = vadd.f32 %v23258_v27, %v23257_v30  ;;  %v10391_v16 = vpop.f32.mrf.mxu0  ;;  %v23273_v23 = vld [vmem:[#allocation51_spill] sm:$0xff] }
 0x79d   : > { %v15447_v24 = vpop.f32.mrf.mxu1  ;;  %v10172_v0 = vadd.f32 %v23259_v8, %v9863_v47 }
 0x79e   : > { %10776 = vst.msk [vmem:[%s22143_s5 + $0x78] sm:$0xff] %vm290_vm0, %v10744_v39  ;;  %v10743_v21 = vadd.f32 %v22130_v19, %v10707_v34  ;;  %v10710_v18 = vadd.f32 %v15447_v24, %v10437_v41  ;;  %v10443_v41 = vadd.f32 %v22229_v51, %v10170_v14  ;;  %v9865_v24 = vadd.f32 %v23261_v44, %v23260_v59  ;;  %v23265_v51 = vld [vmem:[#allocation90_spill] sm:$0xff] }
 0x79f   : > { %v10614_v5 = vpop.f32.mrf.mxu1  ;;  %v10171_v4 = vadd.f32 %v23262_v62, %v9862_v29 }
 0x7a0   : > { %10775 = vst.msk [vmem:[%s22143_s5 + $0x70] sm:$0xff] %vm290_vm0, %v10743_v21  ;;  %v10746_v17 = vadd.f32 %v22130_v19, %v10710_v18  ;;  %v10709_v11 = vadd.f32 %v10614_v5, %v10436_v60  ;;  %v10442_v60 = vadd.f32 %v22245_v36, %v10169_v55  ;;  %v10174_v7 = vadd.f32 %v23265_v51, %v9865_v24 }
 0x7a1   : > { %v15450_v9 = vpop.f32.mrf.mxu1  ;;  %v10173_v36 = vadd.f32 %v23268_v54, %v9864_v42 }
 0x7a2   : > { %10778 = vst.msk [vmem:[%s22143_s5 + $0x88] sm:$0xff] %vm290_vm0, %v10746_v17  ;;  %v10745_v26 = vadd.f32 %v22130_v19, %v10709_v11  ;;  %v10712_v53 = vadd.f32 %v15450_v9, %v10439_v48  ;;  %v10445_v11 = vadd.f32 %v15379_v28, %v10172_v0  ;;  %v15385_v48 = vpop.f32.mrf.mxu0 }
 0x7a3   : > { %v10624_v20 = vpop.f32.mrf.mxu1  ;;  %v10446_v55 = vadd.f32 %v10391_v16, %v10173_v36 }
 0x7a4   : > { %10777 = vst.msk [vmem:[%s22143_s5 + $0x80] sm:$0xff] %vm290_vm0, %v10745_v26  ;;  %v10748_v57 = vadd.f32 %v22130_v19, %v10712_v53  ;;  %v10711_v25 = vadd.f32 %v10624_v20, %v10438_v10  ;;  %v10444_v53 = vadd.f32 %v10381_v32, %v10171_v4  ;;  %v23269_v10 = vld [vmem:[#allocation21_spill] sm:$0xff] }
 0x7a5   : > { %v15453_v1 = vpop.f32.mrf.mxu1  ;;  %v9866_v35 = vadd.f32 %v23270_v6, %v23269_v10  ;;  %v23271_v20 = vld [vmem:[#allocation13_spill] sm:$0xff] }
 0x7a6   : > { %10780 = vst.msk [vmem:[%s22143_s5 + $0x98] sm:$0xff] %vm290_vm0, %v10748_v57  ;;  %v10747_v33 = vadd.f32 %v22130_v19, %v10711_v25  ;;  %v10714_v13 = vadd.f32 %v15453_v1, %v10441_v49  ;;  %v10176_v28 = vadd.f32 %v23271_v20, %v9867_v43  ;;  %v10447_v57 = vadd.f32 %v15382_v52, %v10174_v7  ;;  %v10401_v25 = vpop.f32.mrf.mxu0  ;;  %v23272_v49 = vld [vmem:[#allocation16_spill] sm:$0xff] }
 0x7a7   : > { %v10634_v40 = vpop.f32.mrf.mxu1  ;;  %v9869_v15 = vadd.f32 %v23273_v23, %v23272_v49  ;;  %v10175_v32 = vadd.f32 %v22112_v45, %v9866_v35 }
 0x7a8   : > { %10779 = vst.msk [vmem:[%s22143_s5 + $0x90] sm:$0xff] %vm290_vm0, %v10747_v33  ;;  %v10750_v39 = vadd.f32 %v22130_v19, %v10714_v13  ;;  %v10713_v34 = vadd.f32 %v10634_v40, %v10440_v22  ;;  %v23274_v33 = vld [vmem:[#allocation54_spill] sm:$0xff]  ;;  %v10449_v45 = vadd.f32 %v15385_v48, %v10176_v28  ;;  %v15388_v40 = vpop.f32.mrf.mxu0 }
 0x7a9   : > { %v15456_v56 = vpop.f32.mrf.mxu1  ;;  %v23275_v13 = vld [vmem:[#allocation82_spill] sm:$0xff]  ;;  %v10178_v52 = vadd.f32 %v22119_v58, %v9869_v15 }
 0x7aa   : > { %10782 = vst.msk [vmem:[%s22143_s5 + $0xa8] sm:$0xff] %vm290_vm0, %v10750_v39  ;;  %v10749_v21 = vadd.f32 %v22130_v19, %v10713_v34  ;;  %v10716_v18 = vadd.f32 %v15456_v56, %v10443_v41  ;;  %v9868_v22 = vadd.f32 %v23275_v13, %v23274_v33  ;;  %v10448_v41 = vadd.f32 %v10401_v25, %v10175_v32  ;;  %v10411_v24 = vpop.f32.mrf.mxu0 }
 0x7ab   : > { %v10644_v5 = vpop.f32.mrf.mxu1  ;;  %v10451_v44 = vadd.f32 %v15388_v40, %v10178_v52 }
 0x7ac   : > { %10781 = vst.msk [vmem:[%s22143_s5 + $0xa0] sm:$0xff] %vm290_vm0, %v10749_v21  ;;  %v10752_v31 = vadd.f32 %v22130_v19, %v10716_v18  ;;  %v10715_v17 = vadd.f32 %v10644_v5, %v10442_v60  ;;  %v10177_v0 = vadd.f32 %v22123_v63, %v9868_v22 }
 0x7ad   : > { %v15459_v9 = vpop.f32.mrf.mxu1 }
 0x7ae   : > { %10784 = vst.msk [vmem:[%s22143_s5 + $0xb8] sm:$0xff] %vm290_vm0, %v10752_v31  ;;  %v10751_v50 = vadd.f32 %v22130_v19, %v10715_v17  ;;  %v10718_v26 = vadd.f32 %v15459_v9, %v10445_v11  ;;  %v10450_v4 = vadd.f32 %v10411_v24, %v10177_v0 }
 0x7af   : > { %v10654_v46 = vpop.f32.mrf.mxu1 }
 0x7b0   : > { %10783 = vst.msk [vmem:[%s22143_s5 + $0xb0] sm:$0xff] %vm290_vm0, %v10751_v50  ;;  %v10754_v38 = vadd.f32 %v22130_v19, %v10718_v26  ;;  %v10717_v14 = vadd.f32 %v10654_v46, %v10444_v53 }
 0x7b1   : > { %v15462_v47 = vpop.f32.mrf.mxu1 }
 0x7b2   : > { %10786 = vst.msk [vmem:[%s22143_s5 + $0xc8] sm:$0xff] %vm290_vm0, %v10754_v38  ;;  %v10753_v1 = vadd.f32 %v22130_v19, %v10717_v14  ;;  %v10720_v37 = vadd.f32 %v15462_v47, %v10447_v57 }
 0x7b3   : > { %v10664_v30 = vpop.f32.mrf.mxu1 }
 0x7b4   : > { %10785 = vst.msk [vmem:[%s22143_s5 + $0xc0] sm:$0xff] %vm290_vm0, %v10753_v1  ;;  %v10756_v27 = vadd.f32 %v22130_v19, %v10720_v37  ;;  %v10719_v29 = vadd.f32 %v10664_v30, %v10446_v55 }
 0x7b5   : > { %v15465_v8 = vpop.f32.mrf.mxu1 }
 0x7b6   : > { %10788 = vst.msk [vmem:[%s22143_s5 + $0xd8] sm:$0xff] %vm290_vm0, %v10756_v27  ;;  %v10755_v39 = vadd.f32 %v22130_v19, %v10719_v29  ;;  %v10722_v34 = vadd.f32 %v15465_v8, %v10449_v45 }
 0x7b7   : > { %v10674_v58 = vpop.f32.mrf.mxu1 }
 0x7b8   : > { %10787 = vst.msk [vmem:[%s22143_s5 + $0xd0] sm:$0xff] %vm290_vm0, %v10755_v39  ;;  %v10758_v16 = vadd.f32 %v22130_v19, %v10722_v34  ;;  %v10721_v59 = vadd.f32 %v10674_v58, %v10448_v41 }
 0x7b9   : > { %v15468_v56 = vpop.f32.mrf.mxu1 }
 0x7ba   : > { %10790 = vst.msk [vmem:[%s22143_s5 + $0xe8] sm:$0xff] %vm290_vm0, %v10758_v16  ;;  %v10757_v63 = vadd.f32 %v22130_v19, %v10721_v59  ;;  %v10724_v62 = vadd.f32 %v15468_v56, %v10451_v44 }
 0x7bb   : > { %v10684_v21 = vpop.f32.mrf.mxu1 }
 0x7bc   : > { %10789 = vst.msk [vmem:[%s22143_s5 + $0xe0] sm:$0xff] %vm290_vm0, %v10757_v63  ;;  %v10760_v18 = vadd.f32 %v22130_v19, %v10724_v62  ;;  %v10723_v60 = vadd.f32 %v10684_v21, %v10450_v4 }
 0x7be   : > { %10792 = vst.msk [vmem:[%s22143_s5 + $0xf8] sm:$0xff] %vm290_vm0, %v10760_v18  ;;  %v10759_v61 = vadd.f32 %v22130_v19, %v10723_v60 }
 0x7c0   : > { %10791 = vst.msk [vmem:[%s22143_s5 + $0xf0] sm:$0xff] %vm290_vm0, %v10759_v61 }
 0x7c1 PF: > { %s13_s12 = sadd.s32 1, %s15616_s12  }
 0x7c2   : > { %p10_p4 = scmp.ge.s32.totalorder %s13_s12, 4  }
 0x7c4   :  { %12 = sbr.rel (!%p10_p4) target bundleno = 1 (0x1), region = 66 }

</bundles_post_ra>
